<compile_context>
chip_gen: v7x
topology: tpu7x:2x2x1
jax: 0.10.0
libtpu: 0.0.40
codegen_flags: <defaults>
</compile_context>

<pallas_src>
import functools

import jax
import jax.numpy as jnp
from jax.experimental import pallas as pl
from jax.experimental.pallas import tpu as pltpu


def _round_up(x, m):
    return ((x + m - 1) // m) * m


# ----------------------------------------------------------------------------
# Mask 'B' (causal, center included), exactly as built in MaskConv3d.__init__:
# keep tap with 0-based flat index f = kd*k^2 + kh*k + kw  iff  f <= k^3 // 2.
# ----------------------------------------------------------------------------
def kept_taps_mask_b(k: int):
    taps = []
    central = k * k * k // 2
    flat = 0
    for kd in range(k):
        for kh in range(k):
            for kw in range(k):
                if flat <= central:
                    taps.append((kd, kh, kw))
                flat += 1
    return taps


# ----------------------------------------------------------------------------
# Fused kernel: one grid step = `nb` batch elements.
# Activations are (C, L) with the padded spatial volume flattened into the
# lane dim; padded-flat position f lives at lane f + x0 (x0 = base - center),
# so the core output span [center, center+nq) starts exactly at lane `base`
# (a multiple of 128)  ->  all core-span stores are unmasked, lane-aligned.
# Conv at output q reads input flat position q + off, off = kd*Hp*Wp+kh*Wp+kw.
# ----------------------------------------------------------------------------
def _maskb_resblock_kernel(x_ref, w1_ref, b1_ref, w2_ref, b2_ref, mask_ref,
                           o_ref, y1_ref, *,
                           tap_offsets, base, x0, nq_pad, nb):
    c = y1_ref.shape[0]

    # Leading `base` lanes of the y1 scratch are conv2's zero padding.  Single
    # vreg-sized store, re-done every step (see header comment re: megacore).
    if base > 0:
        y1_ref[:, 0:base] = jnp.zeros((c, base), jnp.float32)

    mask = mask_ref[...]                       # (1, nq_pad): 1 on real outputs

    def conv(read, w_ref, b_ref):
        # Mask-'B' conv = accumulation of per-tap (Cout,Cin)@(Cin,nq_pad)
        # matmuls (no im2col patch), bf16 operands, f32 accumulation.
        acc = jnp.zeros((c, nq_pad), jnp.float32)
        for t, off in enumerate(tap_offsets):
            acc = acc + jnp.dot(w_ref[t], read(off),
                                preferred_element_type=jnp.float32)
        return acc + b_ref[...]

    for s in range(nb):
        # ---- conv1 ('B') + bias + ReLU; masked zeros double as conv2 pad ---
        def read_x(off, s=s):
            return x_ref[s, :, x0 + off:x0 + off + nq_pad].astype(jnp.bfloat16)

        y1 = jnp.maximum(conv(read_x, w1_ref, b1_ref), 0.0) * mask
        # lane-aligned unmasked store; y1 never leaves the chip
        y1_ref[:, base:base + nq_pad] = y1

        # ---- conv2 ('B') + bias + residual ----------------------------------
        def read_y1(off):
            return y1_ref[:, x0 + off:x0 + off + nq_pad].astype(jnp.bfloat16)

        y2 = conv(read_y1, w2_ref, b2_ref) + x_ref[s, :, base:base + nq_pad]

        # Full-block store, no zero-fill: non-core / tail lanes carry garbage
        # by design and are cropped by the wrapper (never read them raw).
        o_ref[s, :, :] = y2.astype(o_ref.dtype)


# ----------------------------------------------------------------------------
# Maskb_resblock module
# ----------------------------------------------------------------------------
class MaskbResblockPallas:
    def __init__(self, in_channel, out_channel, kernel_size, stride, padding,
                 key, batch_per_step=2):
        assert stride == 1, "residual add implies stride 1"
        assert in_channel == out_channel, "residual add implies in_ch == out_ch"
        assert kernel_size % 2 == 1, "'same' residual block needs odd kernel"
        assert padding == kernel_size // 2, "residual add implies 'same' padding"
        self.k = int(kernel_size)
        self.p = int(padding)
        self.cin = int(in_channel)
        self.cout = int(out_channel)
        self.batch_per_step = int(batch_per_step)

        k1, k2, k3, k4 = jax.random.split(key, 4)
        fan_in = self.cin * self.k ** 3
        bound = 1.0 / (fan_in ** 0.5)
        w1 = jax.random.uniform(k1, (self.cout, self.cin, self.k, self.k, self.k),
                                minval=-bound, maxval=bound, dtype=jnp.float32)
        w2 = jax.random.uniform(k2, (self.cout, self.cin, self.k, self.k, self.k),
                                minval=-bound, maxval=bound, dtype=jnp.float32)
        self.b1 = jax.random.uniform(k3, (self.cout,), minval=-bound,
                                     maxval=bound, dtype=jnp.float32)
        self.b2 = jax.random.uniform(k4, (self.cout,), minval=-bound,
                                     maxval=bound, dtype=jnp.float32)

        # taps kept by mask 'B' (skipped taps are exactly the zeroed ones)
        self.taps = kept_taps_mask_b(self.k)

        # per-tap weight stacks (T, Cout, Cin), stored bf16 for the MXU
        def per_tap(w):
            return jnp.stack([w[:, :, kd, kh, kw] for (kd, kh, kw) in self.taps],
                             axis=0).astype(jnp.bfloat16)
        self.w1_taps = per_tap(w1)
        self.w2_taps = per_tap(w2)
        self.b1_col = self.b1.reshape(self.cout, 1)
        self.b2_col = self.b2.reshape(self.cout, 1)

        # masked full-precision weights (for the XLA reference only)
        keep = (jnp.arange(self.k ** 3) <= (self.k ** 3) // 2).astype(jnp.float32)
        mask3d = keep.reshape(self.k, self.k, self.k)
        self.w1_masked = w1 * mask3d[None, None]
        self.w2_masked = w2 * mask3d[None, None]

    def __call__(self, x_ncdhw):
        N, C, D, H, W = x_ncdhw.shape
        assert C == self.cin
        p = self.p
        Dp, Hp, Wp = D + 2 * p, H + 2 * p, W + 2 * p
        hw = Hp * Wp
        sp = Dp * hw
        center = p * hw + p * Wp + p                  # flat offset of 1st output
        nq = (D - 1) * hw + (H - 1) * Wp + W          # flat span of core outputs
        nq_pad = _round_up(nq, 128)                   # lane-aligned output width
        base = _round_up(center, 128)                 # core span starts here
        x0 = base - center                            # lane of padded-flat pos 0
        lin = _round_up(max(x0 + sp, base + nq_pad), 128)
        tap_offsets = tuple(kd * hw + kh * Wp + kw for (kd, kh, kw) in self.taps)

        nb = max(1, min(self.batch_per_step, N))
        n_pad = _round_up(N, nb)

        # validity mask over the computed flat span (1 = real output position)
        q = jnp.arange(nq_pad)
        pos = center + q
        dpi = pos // hw
        rem = pos - dpi * hw
        hpi = rem // Wp
        wpi = rem - hpi * Wp
        core = ((q < nq) & (dpi >= p) & (dpi < p + D)
                & (hpi >= p) & (hpi < p + H) & (wpi >= p) & (wpi < p + W))
        mask_q = core.astype(jnp.float32).reshape(1, nq_pad)

        # zero halo + flatten padded volume into the lane dim, rebased so the
        # core span starts at lane `base`; pad batch to a multiple of nb.
        # TODO(synk): fold this halo pad and the final crop into the kernel
        # to drop two wrapper-side HBM passes on large volumes.
        xp = jnp.pad(x_ncdhw, ((0, n_pad - N), (0, 0), (p, p), (p, p), (p, p)))
        xf = xp.reshape(n_pad, C, sp)
        xf = jnp.pad(xf, ((0, 0), (0, 0), (x0, lin - x0 - sp)))

        t = len(self.taps)
        kernel = functools.partial(_maskb_resblock_kernel,
                                   tap_offsets=tap_offsets, base=base, x0=x0,
                                   nq_pad=nq_pad, nb=nb)

        out_flat = pl.pallas_call(
            kernel,
            out_shape=jax.ShapeDtypeStruct((n_pad, self.cout, nq_pad),
                                           x_ncdhw.dtype),
            grid=(n_pad // nb,),
            in_specs=[
                pl.BlockSpec((nb, C, lin), lambda g: (g, 0, 0)),
                pl.BlockSpec((t, self.cout, self.cin), lambda g: (0, 0, 0)),
                pl.BlockSpec((self.cout, 1), lambda g: (0, 0)),
                pl.BlockSpec((t, self.cout, self.cin), lambda g: (0, 0, 0)),
                pl.BlockSpec((self.cout, 1), lambda g: (0, 0)),
                pl.BlockSpec((1, nq_pad), lambda g: (0, 0)),
            ],
            out_specs=pl.BlockSpec((nb, self.cout, nq_pad), lambda g: (g, 0, 0)),
            scratch_shapes=[pltpu.VMEM((self.cout, base + nq_pad), jnp.float32)],
            compiler_params=pltpu.CompilerParams(
                dimension_semantics=("parallel",)),
        )(xf, self.w1_taps, self.b1_col, self.w2_taps, self.b2_col, mask_q)

        # Only lanes [0, nq) of each real sample are meaningful (and within
        # those, only core positions) -- everything else is intentionally
        # garbage and dropped here.
        out = out_flat[:N, :, :nq]
        full = jnp.pad(out, ((0, 0), (0, 0), (center, sp - center - nq)))
        full = full.reshape(N, self.cout, Dp, Hp, Wp)
        return full[:, :, p:p + D, p:p + H, p:p + W]


# ----------------------------------------------------------------------------
# Pure-JAX reference (lax.conv_general_dilated, NCDHW) for correctness check
# ----------------------------------------------------------------------------
def _ref_forward(x, w1_masked, b1, w2_masked, b2, p):
    dn = ("NCDHW", "OIDHW", "NCDHW")
    pad = [(p, p)] * 3
    y1 = jax.lax.conv_general_dilated(x, w1_masked, (1, 1, 1), pad,
                                      dimension_numbers=dn)
    y1 = jnp.maximum(y1 + b1.reshape(1, -1, 1, 1, 1), 0.0)
    y2 = jax.lax.conv_general_dilated(y1, w2_masked, (1, 1, 1), pad,
                                      dimension_numbers=dn)
    return x + y2 + b2.reshape(1, -1, 1, 1, 1)


if __name__ == "__main__":
    key = jax.random.PRNGKey(0)
    kx, kp = jax.random.split(key)

    # Small shapes consistent with the module (in_ch == out_ch for residual).
    N, C, D, H, W = 2, 8, 8, 8, 8
    x = jax.random.normal(kx, (N, C, D, H, W), dtype=jnp.float32)

    block = MaskbResblockPallas(in_channel=C, out_channel=C, kernel_size=3,
                                stride=1, padding=1, key=kp, batch_per_step=2)

    out = jax.block_until_ready(block(x))

    ref = _ref_forward(x, block.w1_masked, block.b1, block.w2_masked, block.b2,
                       block.p)
    assert out.shape == x.shape
    # bf16 matmul operands with f32 accumulation -> ~1e-2-level tolerance.
    max_err = float(jnp.max(jnp.abs(out - ref)))
    assert jnp.allclose(out, ref, atol=2e-2, rtol=2e-2), (
        f"mismatch vs reference (max abs err {max_err})")

    print("KERNEL_OK")
</pallas_src>

<mosaic_0001>
module attributes {stable_mosaic.version = 11 : i64} {
  func.func @_maskb_resblock_kernel(%arg0: i32, %arg1: memref<2x8x1024xf32, #tpu.memory_space<vmem>>, %arg2: memref<14x8x8xbf16, #tpu.memory_space<vmem>>, %arg3: memref<8x1xf32, #tpu.memory_space<vmem>>, %arg4: memref<14x8x8xbf16, #tpu.memory_space<vmem>>, %arg5: memref<8x1xf32, #tpu.memory_space<vmem>>, %arg6: memref<1x896xf32, #tpu.memory_space<vmem>>, %arg7: memref<2x8x896xf32, #tpu.memory_space<vmem>>, %arg8: memref<8x1024xf32, #tpu.memory_space<vmem>>) attributes {dimension_semantics = [#tpu.dimension_semantics<parallel>], iteration_bounds = array<i64: 1>, scalar_prefetch = 0 : i64, scratch_operands = 1 : i64, tpu.core_type = #tpu.core_type<tc>, window_params = [{transform_indices = @transform_0, window_bounds = array<i64: 2, 8, 1024>}, {pipeline_mode = #tpu.pipeline_mode<synchronous>, transform_indices = @transform_1, window_bounds = array<i64: 14, 8, 8>}, {pipeline_mode = #tpu.pipeline_mode<synchronous>, transform_indices = @transform_2, window_bounds = array<i64: 8, 1>}, {pipeline_mode = #tpu.pipeline_mode<synchronous>, transform_indices = @transform_3, window_bounds = array<i64: 14, 8, 8>}, {pipeline_mode = #tpu.pipeline_mode<synchronous>, transform_indices = @transform_4, window_bounds = array<i64: 8, 1>}, {pipeline_mode = #tpu.pipeline_mode<synchronous>, transform_indices = @transform_5, window_bounds = array<i64: 1, 896>}, {transform_indices = @transform_6, window_bounds = array<i64: 2, 8, 896>}]} {
    %cst = arith.constant 0.000000e+00 : f32
    %0 = vector.broadcast %cst : f32 to vector<8x128xf32>
    %c0 = arith.constant 0 : index
    %c0_0 = arith.constant 0 : index
    %1 = vector.load %arg8[%c0, %c0_0] : memref<8x1024xf32, #tpu.memory_space<vmem>>, vector<8x128xf32>
    tpu.vector_store %arg8[%c0, %c0_0], %0 {strides = array<i32>} : memref<8x1024xf32, #tpu.memory_space<vmem>>, vector<8x128xf32>,
    %c0_1 = arith.constant 0 : index
    %c0_2 = arith.constant 0 : index
    %2 = vector.load %arg6[%c0_1, %c0_2] : memref<1x896xf32, #tpu.memory_space<vmem>>, vector<1x896xf32>
    %cst_3 = arith.constant 0.000000e+00 : f32
    %3 = vector.broadcast %cst_3 : f32 to vector<8x896xf32>
    %c0_4 = arith.constant 0 : index
    %c0_5 = arith.constant 0 : index
    %c0_6 = arith.constant 0 : index
    %4 = vector.load %arg2[%c0_4, %c0_5, %c0_6] : memref<14x8x8xbf16, #tpu.memory_space<vmem>>, vector<1x8x8xbf16>
    %5 = vector.shape_cast %4 : vector<1x8x8xbf16> to vector<8x8xbf16>
    %c0_7 = arith.constant 0 : index
    %c0_8 = arith.constant 0 : index
    %c17 = arith.constant 17 : index
    %6 = vector.load %arg1[%c0_7, %c0_8, %c17] : memref<2x8x1024xf32, #tpu.memory_space<vmem>>, vector<1x8x896xf32>
    %7 = vector.shape_cast %6 : vector<1x8x896xf32> to vector<8x896xf32>
    %8 = arith.truncf %7 : vector<8x896xf32> to vector<8x896xbf16>
    %cst_9 = arith.constant dense<0.000000e+00> : vector<8x896xf32>
    %9 = tpu.matmul %5, %8, %cst_9 {dimension_numbers = #tpu.dot_dimension_numbers<[1], [0], [0], [1], [0, 0, 1, 1], [], []>} : vector<8x8xbf16>, vector<8x896xbf16>, vector<8x896xf32> -> vector<8x896xf32>
    %10 = arith.addf %3, %9 : vector<8x896xf32>
    %c1 = arith.constant 1 : index
    %c0_10 = arith.constant 0 : index
    %c0_11 = arith.constant 0 : index
    %11 = vector.load %arg2[%c1, %c0_10, %c0_11] : memref<14x8x8xbf16, #tpu.memory_space<vmem>>, vector<1x8x8xbf16>
    %12 = vector.shape_cast %11 : vector<1x8x8xbf16> to vector<8x8xbf16>
    %c0_12 = arith.constant 0 : index
    %c0_13 = arith.constant 0 : index
    %c18 = arith.constant 18 : index
    %13 = vector.load %arg1[%c0_12, %c0_13, %c18] : memref<2x8x1024xf32, #tpu.memory_space<vmem>>, vector<1x8x896xf32>
    %14 = vector.shape_cast %13 : vector<1x8x896xf32> to vector<8x896xf32>
    %15 = arith.truncf %14 : vector<8x896xf32> to vector<8x896xbf16>
    %cst_14 = arith.constant dense<0.000000e+00> : vector<8x896xf32>
    %16 = tpu.matmul %12, %15, %cst_14 {dimension_numbers = #tpu.dot_dimension_numbers<[1], [0], [0], [1], [0, 0, 1, 1], [], []>} : vector<8x8xbf16>, vector<8x896xbf16>, vector<8x896xf32> -> vector<8x896xf32>
    %17 = arith.addf %10, %16 : vector<8x896xf32>
    %c2 = arith.constant 2 : index
    %c0_15 = arith.constant 0 : index
    %c0_16 = arith.constant 0 : index
    %18 = vector.load %arg2[%c2, %c0_15, %c0_16] : memref<14x8x8xbf16, #tpu.memory_space<vmem>>, vector<1x8x8xbf16>
    %19 = vector.shape_cast %18 : vector<1x8x8xbf16> to vector<8x8xbf16>
    %c0_17 = arith.constant 0 : index
    %c0_18 = arith.constant 0 : index
    %c19 = arith.constant 19 : index
    %20 = vector.load %arg1[%c0_17, %c0_18, %c19] : memref<2x8x1024xf32, #tpu.memory_space<vmem>>, vector<1x8x896xf32>
    %21 = vector.shape_cast %20 : vector<1x8x896xf32> to vector<8x896xf32>
    %22 = arith.truncf %21 : vector<8x896xf32> to vector<8x896xbf16>
    %cst_19 = arith.constant dense<0.000000e+00> : vector<8x896xf32>
    %23 = tpu.matmul %19, %22, %cst_19 {dimension_numbers = #tpu.dot_dimension_numbers<[1], [0], [0], [1], [0, 0, 1, 1], [], []>} : vector<8x8xbf16>, vector<8x896xbf16>, vector<8x896xf32> -> vector<8x896xf32>
    %24 = arith.addf %17, %23 : vector<8x896xf32>
    %c3 = arith.constant 3 : index
    %c0_20 = arith.constant 0 : index
    %c0_21 = arith.constant 0 : index
    %25 = vector.load %arg2[%c3, %c0_20, %c0_21] : memref<14x8x8xbf16, #tpu.memory_space<vmem>>, vector<1x8x8xbf16>
    %26 = vector.shape_cast %25 : vector<1x8x8xbf16> to vector<8x8xbf16>
    %c0_22 = arith.constant 0 : index
    %c0_23 = arith.constant 0 : index
    %c27 = arith.constant 27 : index
    %27 = vector.load %arg1[%c0_22, %c0_23, %c27] : memref<2x8x1024xf32, #tpu.memory_space<vmem>>, vector<1x8x896xf32>
    %28 = vector.shape_cast %27 : vector<1x8x896xf32> to vector<8x896xf32>
    %29 = arith.truncf %28 : vector<8x896xf32> to vector<8x896xbf16>
    %cst_24 = arith.constant dense<0.000000e+00> : vector<8x896xf32>
    %30 = tpu.matmul %26, %29, %cst_24 {dimension_numbers = #tpu.dot_dimension_numbers<[1], [0], [0], [1], [0, 0, 1, 1], [], []>} : vector<8x8xbf16>, vector<8x896xbf16>, vector<8x896xf32> -> vector<8x896xf32>
    %31 = arith.addf %24, %30 : vector<8x896xf32>
    %c4 = arith.constant 4 : index
    %c0_25 = arith.constant 0 : index
    %c0_26 = arith.constant 0 : index
    %32 = vector.load %arg2[%c4, %c0_25, %c0_26] : memref<14x8x8xbf16, #tpu.memory_space<vmem>>, vector<1x8x8xbf16>
    %33 = vector.shape_cast %32 : vector<1x8x8xbf16> to vector<8x8xbf16>
    %c0_27 = arith.constant 0 : index
    %c0_28 = arith.constant 0 : index
    %c28 = arith.constant 28 : index
    %34 = vector.load %arg1[%c0_27, %c0_28, %c28] : memref<2x8x1024xf32, #tpu.memory_space<vmem>>, vector<1x8x896xf32>
    %35 = vector.shape_cast %34 : vector<1x8x896xf32> to vector<8x896xf32>
    %36 = arith.truncf %35 : vector<8x896xf32> to vector<8x896xbf16>
    %cst_29 = arith.constant dense<0.000000e+00> : vector<8x896xf32>
    %37 = tpu.matmul %33, %36, %cst_29 {dimension_numbers = #tpu.dot_dimension_numbers<[1], [0], [0], [1], [0, 0, 1, 1], [], []>} : vector<8x8xbf16>, vector<8x896xbf16>, vector<8x896xf32> -> vector<8x896xf32>
    %38 = arith.addf %31, %37 : vector<8x896xf32>
    %c5 = arith.constant 5 : index
    %c0_30 = arith.constant 0 : index
    %c0_31 = arith.constant 0 : index
    %39 = vector.load %arg2[%c5, %c0_30, %c0_31] : memref<14x8x8xbf16, #tpu.memory_space<vmem>>, vector<1x8x8xbf16>
    %40 = vector.shape_cast %39 : vector<1x8x8xbf16> to vector<8x8xbf16>
    %c0_32 = arith.constant 0 : index
    %c0_33 = arith.constant 0 : index
    %c29 = arith.constant 29 : index
    %41 = vector.load %arg1[%c0_32, %c0_33, %c29] : memref<2x8x1024xf32, #tpu.memory_space<vmem>>, vector<1x8x896xf32>
    %42 = vector.shape_cast %41 : vector<1x8x896xf32> to vector<8x896xf32>
    %43 = arith.truncf %42 : vector<8x896xf32> to vector<8x896xbf16>
    %cst_34 = arith.constant dense<0.000000e+00> : vector<8x896xf32>
    %44 = tpu.matmul %40, %43, %cst_34 {dimension_numbers = #tpu.dot_dimension_numbers<[1], [0], [0], [1], [0, 0, 1, 1], [], []>} : vector<8x8xbf16>, vector<8x896xbf16>, vector<8x896xf32> -> vector<8x896xf32>
    %45 = arith.addf %38, %44 : vector<8x896xf32>
    %c6 = arith.constant 6 : index
    %c0_35 = arith.constant 0 : index
    %c0_36 = arith.constant 0 : index
    %46 = vector.load %arg2[%c6, %c0_35, %c0_36] : memref<14x8x8xbf16, #tpu.memory_space<vmem>>, vector<1x8x8xbf16>
    %47 = vector.shape_cast %46 : vector<1x8x8xbf16> to vector<8x8xbf16>
    %c0_37 = arith.constant 0 : index
    %c0_38 = arith.constant 0 : index
    %c37 = arith.constant 37 : index
    %48 = vector.load %arg1[%c0_37, %c0_38, %c37] : memref<2x8x1024xf32, #tpu.memory_space<vmem>>, vector<1x8x896xf32>
    %49 = vector.shape_cast %48 : vector<1x8x896xf32> to vector<8x896xf32>
    %50 = arith.truncf %49 : vector<8x896xf32> to vector<8x896xbf16>
    %cst_39 = arith.constant dense<0.000000e+00> : vector<8x896xf32>
    %51 = tpu.matmul %47, %50, %cst_39 {dimension_numbers = #tpu.dot_dimension_numbers<[1], [0], [0], [1], [0, 0, 1, 1], [], []>} : vector<8x8xbf16>, vector<8x896xbf16>, vector<8x896xf32> -> vector<8x896xf32>
    %52 = arith.addf %45, %51 : vector<8x896xf32>
    %c7 = arith.constant 7 : index
    %c0_40 = arith.constant 0 : index
    %c0_41 = arith.constant 0 : index
    %53 = vector.load %arg2[%c7, %c0_40, %c0_41] : memref<14x8x8xbf16, #tpu.memory_space<vmem>>, vector<1x8x8xbf16>
    %54 = vector.shape_cast %53 : vector<1x8x8xbf16> to vector<8x8xbf16>
    %c0_42 = arith.constant 0 : index
    %c0_43 = arith.constant 0 : index
    %c38 = arith.constant 38 : index
    %55 = vector.load %arg1[%c0_42, %c0_43, %c38] : memref<2x8x1024xf32, #tpu.memory_space<vmem>>, vector<1x8x896xf32>
    %56 = vector.shape_cast %55 : vector<1x8x896xf32> to vector<8x896xf32>
    %57 = arith.truncf %56 : vector<8x896xf32> to vector<8x896xbf16>
    %cst_44 = arith.constant dense<0.000000e+00> : vector<8x896xf32>
    %58 = tpu.matmul %54, %57, %cst_44 {dimension_numbers = #tpu.dot_dimension_numbers<[1], [0], [0], [1], [0, 0, 1, 1], [], []>} : vector<8x8xbf16>, vector<8x896xbf16>, vector<8x896xf32> -> vector<8x896xf32>
    %59 = arith.addf %52, %58 : vector<8x896xf32>
    %c8 = arith.constant 8 : index
    %c0_45 = arith.constant 0 : index
    %c0_46 = arith.constant 0 : index
    %60 = vector.load %arg2[%c8, %c0_45, %c0_46] : memref<14x8x8xbf16, #tpu.memory_space<vmem>>, vector<1x8x8xbf16>
    %61 = vector.shape_cast %60 : vector<1x8x8xbf16> to vector<8x8xbf16>
    %c0_47 = arith.constant 0 : index
    %c0_48 = arith.constant 0 : index
    %c39 = arith.constant 39 : index
    %62 = vector.load %arg1[%c0_47, %c0_48, %c39] : memref<2x8x1024xf32, #tpu.memory_space<vmem>>, vector<1x8x896xf32>
    %63 = vector.shape_cast %62 : vector<1x8x896xf32> to vector<8x896xf32>
    %64 = arith.truncf %63 : vector<8x896xf32> to vector<8x896xbf16>
    %cst_49 = arith.constant dense<0.000000e+00> : vector<8x896xf32>
    %65 = tpu.matmul %61, %64, %cst_49 {dimension_numbers = #tpu.dot_dimension_numbers<[1], [0], [0], [1], [0, 0, 1, 1], [], []>} : vector<8x8xbf16>, vector<8x896xbf16>, vector<8x896xf32> -> vector<8x896xf32>
    %66 = arith.addf %59, %65 : vector<8x896xf32>
    %c9 = arith.constant 9 : index
    %c0_50 = arith.constant 0 : index
    %c0_51 = arith.constant 0 : index
    %67 = vector.load %arg2[%c9, %c0_50, %c0_51] : memref<14x8x8xbf16, #tpu.memory_space<vmem>>, vector<1x8x8xbf16>
    %68 = vector.shape_cast %67 : vector<1x8x8xbf16> to vector<8x8xbf16>
    %c0_52 = arith.constant 0 : index
    %c0_53 = arith.constant 0 : index
    %c117 = arith.constant 117 : index
    %69 = vector.load %arg1[%c0_52, %c0_53, %c117] : memref<2x8x1024xf32, #tpu.memory_space<vmem>>, vector<1x8x896xf32>
    %70 = vector.shape_cast %69 : vector<1x8x896xf32> to vector<8x896xf32>
    %71 = arith.truncf %70 : vector<8x896xf32> to vector<8x896xbf16>
    %cst_54 = arith.constant dense<0.000000e+00> : vector<8x896xf32>
    %72 = tpu.matmul %68, %71, %cst_54 {dimension_numbers = #tpu.dot_dimension_numbers<[1], [0], [0], [1], [0, 0, 1, 1], [], []>} : vector<8x8xbf16>, vector<8x896xbf16>, vector<8x896xf32> -> vector<8x896xf32>
    %73 = arith.addf %66, %72 : vector<8x896xf32>
    %c10 = arith.constant 10 : index
    %c0_55 = arith.constant 0 : index
    %c0_56 = arith.constant 0 : index
    %74 = vector.load %arg2[%c10, %c0_55, %c0_56] : memref<14x8x8xbf16, #tpu.memory_space<vmem>>, vector<1x8x8xbf16>
    %75 = vector.shape_cast %74 : vector<1x8x8xbf16> to vector<8x8xbf16>
    %c0_57 = arith.constant 0 : index
    %c0_58 = arith.constant 0 : index
    %c118 = arith.constant 118 : index
    %76 = vector.load %arg1[%c0_57, %c0_58, %c118] : memref<2x8x1024xf32, #tpu.memory_space<vmem>>, vector<1x8x896xf32>
    %77 = vector.shape_cast %76 : vector<1x8x896xf32> to vector<8x896xf32>
    %78 = arith.truncf %77 : vector<8x896xf32> to vector<8x896xbf16>
    %cst_59 = arith.constant dense<0.000000e+00> : vector<8x896xf32>
    %79 = tpu.matmul %75, %78, %cst_59 {dimension_numbers = #tpu.dot_dimension_numbers<[1], [0], [0], [1], [0, 0, 1, 1], [], []>} : vector<8x8xbf16>, vector<8x896xbf16>, vector<8x896xf32> -> vector<8x896xf32>
    %80 = arith.addf %73, %79 : vector<8x896xf32>
    %c11 = arith.constant 11 : index
    %c0_60 = arith.constant 0 : index
    %c0_61 = arith.constant 0 : index
    %81 = vector.load %arg2[%c11, %c0_60, %c0_61] : memref<14x8x8xbf16, #tpu.memory_space<vmem>>, vector<1x8x8xbf16>
    %82 = vector.shape_cast %81 : vector<1x8x8xbf16> to vector<8x8xbf16>
    %c0_62 = arith.constant 0 : index
    %c0_63 = arith.constant 0 : index
    %c119 = arith.constant 119 : index
    %83 = vector.load %arg1[%c0_62, %c0_63, %c119] : memref<2x8x1024xf32, #tpu.memory_space<vmem>>, vector<1x8x896xf32>
    %84 = vector.shape_cast %83 : vector<1x8x896xf32> to vector<8x896xf32>
    %85 = arith.truncf %84 : vector<8x896xf32> to vector<8x896xbf16>
    %cst_64 = arith.constant dense<0.000000e+00> : vector<8x896xf32>
    %86 = tpu.matmul %82, %85, %cst_64 {dimension_numbers = #tpu.dot_dimension_numbers<[1], [0], [0], [1], [0, 0, 1, 1], [], []>} : vector<8x8xbf16>, vector<8x896xbf16>, vector<8x896xf32> -> vector<8x896xf32>
    %87 = arith.addf %80, %86 : vector<8x896xf32>
    %c12 = arith.constant 12 : index
    %c0_65 = arith.constant 0 : index
    %c0_66 = arith.constant 0 : index
    %88 = vector.load %arg2[%c12, %c0_65, %c0_66] : memref<14x8x8xbf16, #tpu.memory_space<vmem>>, vector<1x8x8xbf16>
    %89 = vector.shape_cast %88 : vector<1x8x8xbf16> to vector<8x8xbf16>
    %c0_67 = arith.constant 0 : index
    %c0_68 = arith.constant 0 : index
    %c127 = arith.constant 127 : index
    %90 = vector.load %arg1[%c0_67, %c0_68, %c127] : memref<2x8x1024xf32, #tpu.memory_space<vmem>>, vector<1x8x896xf32>
    %91 = vector.shape_cast %90 : vector<1x8x896xf32> to vector<8x896xf32>
    %92 = arith.truncf %91 : vector<8x896xf32> to vector<8x896xbf16>
    %cst_69 = arith.constant dense<0.000000e+00> : vector<8x896xf32>
    %93 = tpu.matmul %89, %92, %cst_69 {dimension_numbers = #tpu.dot_dimension_numbers<[1], [0], [0], [1], [0, 0, 1, 1], [], []>} : vector<8x8xbf16>, vector<8x896xbf16>, vector<8x896xf32> -> vector<8x896xf32>
    %94 = arith.addf %87, %93 : vector<8x896xf32>
    %c13 = arith.constant 13 : index
    %c0_70 = arith.constant 0 : index
    %c0_71 = arith.constant 0 : index
    %95 = vector.load %arg2[%c13, %c0_70, %c0_71] : memref<14x8x8xbf16, #tpu.memory_space<vmem>>, vector<1x8x8xbf16>
    %96 = vector.shape_cast %95 : vector<1x8x8xbf16> to vector<8x8xbf16>
    %c0_72 = arith.constant 0 : index
    %c0_73 = arith.constant 0 : index
    %c128 = arith.constant 128 : index
    %97 = vector.load %arg1[%c0_72, %c0_73, %c128] : memref<2x8x1024xf32, #tpu.memory_space<vmem>>, vector<1x8x896xf32>
    %98 = vector.shape_cast %97 : vector<1x8x896xf32> to vector<8x896xf32>
    %99 = arith.truncf %98 : vector<8x896xf32> to vector<8x896xbf16>
    %cst_74 = arith.constant dense<0.000000e+00> : vector<8x896xf32>
    %100 = tpu.matmul %96, %99, %cst_74 {dimension_numbers = #tpu.dot_dimension_numbers<[1], [0], [0], [1], [0, 0, 1, 1], [], []>} : vector<8x8xbf16>, vector<8x896xbf16>, vector<8x896xf32> -> vector<8x896xf32>
    %101 = arith.addf %94, %100 : vector<8x896xf32>
    %c0_75 = arith.constant 0 : index
    %c0_76 = arith.constant 0 : index
    %102 = vector.load %arg3[%c0_75, %c0_76] : memref<8x1xf32, #tpu.memory_space<vmem>>, vector<8x1xf32>
    %103 = vector.broadcast %102 : vector<8x1xf32> to vector<8x896xf32>
    %104 = arith.addf %101, %103 : vector<8x896xf32>
    %cst_77 = arith.constant 0.000000e+00 : f32
    %105 = vector.broadcast %cst_77 : f32 to vector<8x896xf32>
    %106 = arith.maximumf %104, %105 : vector<8x896xf32>
    %107 = vector.broadcast %2 : vector<1x896xf32> to vector<8x896xf32>
    %108 = arith.mulf %106, %107 : vector<8x896xf32>
    %c0_78 = arith.constant 0 : index
    %c128_79 = arith.constant 128 : index
    %109 = vector.load %arg8[%c0_78, %c128_79] : memref<8x1024xf32, #tpu.memory_space<vmem>>, vector<8x896xf32>
    tpu.vector_store %arg8[%c0_78, %c128_79], %108 {strides = array<i32>} : memref<8x1024xf32, #tpu.memory_space<vmem>>, vector<8x896xf32>,
    %cst_80 = arith.constant 0.000000e+00 : f32
    %110 = vector.broadcast %cst_80 : f32 to vector<8x896xf32>
    %c0_81 = arith.constant 0 : index
    %c0_82 = arith.constant 0 : index
    %c0_83 = arith.constant 0 : index
    %111 = vector.load %arg4[%c0_81, %c0_82, %c0_83] : memref<14x8x8xbf16, #tpu.memory_space<vmem>>, vector<1x8x8xbf16>
    %112 = vector.shape_cast %111 : vector<1x8x8xbf16> to vector<8x8xbf16>
    %c0_84 = arith.constant 0 : index
    %c17_85 = arith.constant 17 : index
    %113 = vector.load %arg8[%c0_84, %c17_85] : memref<8x1024xf32, #tpu.memory_space<vmem>>, vector<8x896xf32>
    %114 = arith.truncf %113 : vector<8x896xf32> to vector<8x896xbf16>
    %cst_86 = arith.constant dense<0.000000e+00> : vector<8x896xf32>
    %115 = tpu.matmul %112, %114, %cst_86 {dimension_numbers = #tpu.dot_dimension_numbers<[1], [0], [0], [1], [0, 0, 1, 1], [], []>} : vector<8x8xbf16>, vector<8x896xbf16>, vector<8x896xf32> -> vector<8x896xf32>
    %116 = arith.addf %110, %115 : vector<8x896xf32>
    %c1_87 = arith.constant 1 : index
    %c0_88 = arith.constant 0 : index
    %c0_89 = arith.constant 0 : index
    %117 = vector.load %arg4[%c1_87, %c0_88, %c0_89] : memref<14x8x8xbf16, #tpu.memory_space<vmem>>, vector<1x8x8xbf16>
    %118 = vector.shape_cast %117 : vector<1x8x8xbf16> to vector<8x8xbf16>
    %c0_90 = arith.constant 0 : index
    %c18_91 = arith.constant 18 : index
    %119 = vector.load %arg8[%c0_90, %c18_91] : memref<8x1024xf32, #tpu.memory_space<vmem>>, vector<8x896xf32>
    %120 = arith.truncf %119 : vector<8x896xf32> to vector<8x896xbf16>
    %cst_92 = arith.constant dense<0.000000e+00> : vector<8x896xf32>
    %121 = tpu.matmul %118, %120, %cst_92 {dimension_numbers = #tpu.dot_dimension_numbers<[1], [0], [0], [1], [0, 0, 1, 1], [], []>} : vector<8x8xbf16>, vector<8x896xbf16>, vector<8x896xf32> -> vector<8x896xf32>
    %122 = arith.addf %116, %121 : vector<8x896xf32>
    %c2_93 = arith.constant 2 : index
    %c0_94 = arith.constant 0 : index
    %c0_95 = arith.constant 0 : index
    %123 = vector.load %arg4[%c2_93, %c0_94, %c0_95] : memref<14x8x8xbf16, #tpu.memory_space<vmem>>, vector<1x8x8xbf16>
    %124 = vector.shape_cast %123 : vector<1x8x8xbf16> to vector<8x8xbf16>
    %c0_96 = arith.constant 0 : index
    %c19_97 = arith.constant 19 : index
    %125 = vector.load %arg8[%c0_96, %c19_97] : memref<8x1024xf32, #tpu.memory_space<vmem>>, vector<8x896xf32>
    %126 = arith.truncf %125 : vector<8x896xf32> to vector<8x896xbf16>
    %cst_98 = arith.constant dense<0.000000e+00> : vector<8x896xf32>
    %127 = tpu.matmul %124, %126, %cst_98 {dimension_numbers = #tpu.dot_dimension_numbers<[1], [0], [0], [1], [0, 0, 1, 1], [], []>} : vector<8x8xbf16>, vector<8x896xbf16>, vector<8x896xf32> -> vector<8x896xf32>
    %128 = arith.addf %122, %127 : vector<8x896xf32>
    %c3_99 = arith.constant 3 : index
    %c0_100 = arith.constant 0 : index
    %c0_101 = arith.constant 0 : index
    %129 = vector.load %arg4[%c3_99, %c0_100, %c0_101] : memref<14x8x8xbf16, #tpu.memory_space<vmem>>, vector<1x8x8xbf16>
    %130 = vector.shape_cast %129 : vector<1x8x8xbf16> to vector<8x8xbf16>
    %c0_102 = arith.constant 0 : index
    %c27_103 = arith.constant 27 : index
    %131 = vector.load %arg8[%c0_102, %c27_103] : memref<8x1024xf32, #tpu.memory_space<vmem>>, vector<8x896xf32>
    %132 = arith.truncf %131 : vector<8x896xf32> to vector<8x896xbf16>
    %cst_104 = arith.constant dense<0.000000e+00> : vector<8x896xf32>
    %133 = tpu.matmul %130, %132, %cst_104 {dimension_numbers = #tpu.dot_dimension_numbers<[1], [0], [0], [1], [0, 0, 1, 1], [], []>} : vector<8x8xbf16>, vector<8x896xbf16>, vector<8x896xf32> -> vector<8x896xf32>
    %134 = arith.addf %128, %133 : vector<8x896xf32>
    %c4_105 = arith.constant 4 : index
    %c0_106 = arith.constant 0 : index
    %c0_107 = arith.constant 0 : index
    %135 = vector.load %arg4[%c4_105, %c0_106, %c0_107] : memref<14x8x8xbf16, #tpu.memory_space<vmem>>, vector<1x8x8xbf16>
    %136 = vector.shape_cast %135 : vector<1x8x8xbf16> to vector<8x8xbf16>
    %c0_108 = arith.constant 0 : index
    %c28_109 = arith.constant 28 : index
    %137 = vector.load %arg8[%c0_108, %c28_109] : memref<8x1024xf32, #tpu.memory_space<vmem>>, vector<8x896xf32>
    %138 = arith.truncf %137 : vector<8x896xf32> to vector<8x896xbf16>
    %cst_110 = arith.constant dense<0.000000e+00> : vector<8x896xf32>
    %139 = tpu.matmul %136, %138, %cst_110 {dimension_numbers = #tpu.dot_dimension_numbers<[1], [0], [0], [1], [0, 0, 1, 1], [], []>} : vector<8x8xbf16>, vector<8x896xbf16>, vector<8x896xf32> -> vector<8x896xf32>
    %140 = arith.addf %134, %139 : vector<8x896xf32>
    %c5_111 = arith.constant 5 : index
    %c0_112 = arith.constant 0 : index
    %c0_113 = arith.constant 0 : index
    %141 = vector.load %arg4[%c5_111, %c0_112, %c0_113] : memref<14x8x8xbf16, #tpu.memory_space<vmem>>, vector<1x8x8xbf16>
    %142 = vector.shape_cast %141 : vector<1x8x8xbf16> to vector<8x8xbf16>
    %c0_114 = arith.constant 0 : index
    %c29_115 = arith.constant 29 : index
    %143 = vector.load %arg8[%c0_114, %c29_115] : memref<8x1024xf32, #tpu.memory_space<vmem>>, vector<8x896xf32>
    %144 = arith.truncf %143 : vector<8x896xf32> to vector<8x896xbf16>
    %cst_116 = arith.constant dense<0.000000e+00> : vector<8x896xf32>
    %145 = tpu.matmul %142, %144, %cst_116 {dimension_numbers = #tpu.dot_dimension_numbers<[1], [0], [0], [1], [0, 0, 1, 1], [], []>} : vector<8x8xbf16>, vector<8x896xbf16>, vector<8x896xf32> -> vector<8x896xf32>
    %146 = arith.addf %140, %145 : vector<8x896xf32>
    %c6_117 = arith.constant 6 : index
    %c0_118 = arith.constant 0 : index
    %c0_119 = arith.constant 0 : index
    %147 = vector.load %arg4[%c6_117, %c0_118, %c0_119] : memref<14x8x8xbf16, #tpu.memory_space<vmem>>, vector<1x8x8xbf16>
    %148 = vector.shape_cast %147 : vector<1x8x8xbf16> to vector<8x8xbf16>
    %c0_120 = arith.constant 0 : index
    %c37_121 = arith.constant 37 : index
    %149 = vector.load %arg8[%c0_120, %c37_121] : memref<8x1024xf32, #tpu.memory_space<vmem>>, vector<8x896xf32>
    %150 = arith.truncf %149 : vector<8x896xf32> to vector<8x896xbf16>
    %cst_122 = arith.constant dense<0.000000e+00> : vector<8x896xf32>
    %151 = tpu.matmul %148, %150, %cst_122 {dimension_numbers = #tpu.dot_dimension_numbers<[1], [0], [0], [1], [0, 0, 1, 1], [], []>} : vector<8x8xbf16>, vector<8x896xbf16>, vector<8x896xf32> -> vector<8x896xf32>
    %152 = arith.addf %146, %151 : vector<8x896xf32>
    %c7_123 = arith.constant 7 : index
    %c0_124 = arith.constant 0 : index
    %c0_125 = arith.constant 0 : index
    %153 = vector.load %arg4[%c7_123, %c0_124, %c0_125] : memref<14x8x8xbf16, #tpu.memory_space<vmem>>, vector<1x8x8xbf16>
    %154 = vector.shape_cast %153 : vector<1x8x8xbf16> to vector<8x8xbf16>
    %c0_126 = arith.constant 0 : index
    %c38_127 = arith.constant 38 : index
    %155 = vector.load %arg8[%c0_126, %c38_127] : memref<8x1024xf32, #tpu.memory_space<vmem>>, vector<8x896xf32>
    %156 = arith.truncf %155 : vector<8x896xf32> to vector<8x896xbf16>
    %cst_128 = arith.constant dense<0.000000e+00> : vector<8x896xf32>
    %157 = tpu.matmul %154, %156, %cst_128 {dimension_numbers = #tpu.dot_dimension_numbers<[1], [0], [0], [1], [0, 0, 1, 1], [], []>} : vector<8x8xbf16>, vector<8x896xbf16>, vector<8x896xf32> -> vector<8x896xf32>
    %158 = arith.addf %152, %157 : vector<8x896xf32>
    %c8_129 = arith.constant 8 : index
    %c0_130 = arith.constant 0 : index
    %c0_131 = arith.constant 0 : index
    %159 = vector.load %arg4[%c8_129, %c0_130, %c0_131] : memref<14x8x8xbf16, #tpu.memory_space<vmem>>, vector<1x8x8xbf16>
    %160 = vector.shape_cast %159 : vector<1x8x8xbf16> to vector<8x8xbf16>
    %c0_132 = arith.constant 0 : index
    %c39_133 = arith.constant 39 : index
    %161 = vector.load %arg8[%c0_132, %c39_133] : memref<8x1024xf32, #tpu.memory_space<vmem>>, vector<8x896xf32>
    %162 = arith.truncf %161 : vector<8x896xf32> to vector<8x896xbf16>
    %cst_134 = arith.constant dense<0.000000e+00> : vector<8x896xf32>
    %163 = tpu.matmul %160, %162, %cst_134 {dimension_numbers = #tpu.dot_dimension_numbers<[1], [0], [0], [1], [0, 0, 1, 1], [], []>} : vector<8x8xbf16>, vector<8x896xbf16>, vector<8x896xf32> -> vector<8x896xf32>
    %164 = arith.addf %158, %163 : vector<8x896xf32>
    %c9_135 = arith.constant 9 : index
    %c0_136 = arith.constant 0 : index
    %c0_137 = arith.constant 0 : index
    %165 = vector.load %arg4[%c9_135, %c0_136, %c0_137] : memref<14x8x8xbf16, #tpu.memory_space<vmem>>, vector<1x8x8xbf16>
    %166 = vector.shape_cast %165 : vector<1x8x8xbf16> to vector<8x8xbf16>
    %c0_138 = arith.constant 0 : index
    %c117_139 = arith.constant 117 : index
    %167 = vector.load %arg8[%c0_138, %c117_139] : memref<8x1024xf32, #tpu.memory_space<vmem>>, vector<8x896xf32>
    %168 = arith.truncf %167 : vector<8x896xf32> to vector<8x896xbf16>
    %cst_140 = arith.constant dense<0.000000e+00> : vector<8x896xf32>
    %169 = tpu.matmul %166, %168, %cst_140 {dimension_numbers = #tpu.dot_dimension_numbers<[1], [0], [0], [1], [0, 0, 1, 1], [], []>} : vector<8x8xbf16>, vector<8x896xbf16>, vector<8x896xf32> -> vector<8x896xf32>
    %170 = arith.addf %164, %169 : vector<8x896xf32>
    %c10_141 = arith.constant 10 : index
    %c0_142 = arith.constant 0 : index
    %c0_143 = arith.constant 0 : index
    %171 = vector.load %arg4[%c10_141, %c0_142, %c0_143] : memref<14x8x8xbf16, #tpu.memory_space<vmem>>, vector<1x8x8xbf16>
    %172 = vector.shape_cast %171 : vector<1x8x8xbf16> to vector<8x8xbf16>
    %c0_144 = arith.constant 0 : index
    %c118_145 = arith.constant 118 : index
    %173 = vector.load %arg8[%c0_144, %c118_145] : memref<8x1024xf32, #tpu.memory_space<vmem>>, vector<8x896xf32>
    %174 = arith.truncf %173 : vector<8x896xf32> to vector<8x896xbf16>
    %cst_146 = arith.constant dense<0.000000e+00> : vector<8x896xf32>
    %175 = tpu.matmul %172, %174, %cst_146 {dimension_numbers = #tpu.dot_dimension_numbers<[1], [0], [0], [1], [0, 0, 1, 1], [], []>} : vector<8x8xbf16>, vector<8x896xbf16>, vector<8x896xf32> -> vector<8x896xf32>
    %176 = arith.addf %170, %175 : vector<8x896xf32>
    %c11_147 = arith.constant 11 : index
    %c0_148 = arith.constant 0 : index
    %c0_149 = arith.constant 0 : index
    %177 = vector.load %arg4[%c11_147, %c0_148, %c0_149] : memref<14x8x8xbf16, #tpu.memory_space<vmem>>, vector<1x8x8xbf16>
    %178 = vector.shape_cast %177 : vector<1x8x8xbf16> to vector<8x8xbf16>
    %c0_150 = arith.constant 0 : index
    %c119_151 = arith.constant 119 : index
    %179 = vector.load %arg8[%c0_150, %c119_151] : memref<8x1024xf32, #tpu.memory_space<vmem>>, vector<8x896xf32>
    %180 = arith.truncf %179 : vector<8x896xf32> to vector<8x896xbf16>
    %cst_152 = arith.constant dense<0.000000e+00> : vector<8x896xf32>
    %181 = tpu.matmul %178, %180, %cst_152 {dimension_numbers = #tpu.dot_dimension_numbers<[1], [0], [0], [1], [0, 0, 1, 1], [], []>} : vector<8x8xbf16>, vector<8x896xbf16>, vector<8x896xf32> -> vector<8x896xf32>
    %182 = arith.addf %176, %181 : vector<8x896xf32>
    %c12_153 = arith.constant 12 : index
    %c0_154 = arith.constant 0 : index
    %c0_155 = arith.constant 0 : index
    %183 = vector.load %arg4[%c12_153, %c0_154, %c0_155] : memref<14x8x8xbf16, #tpu.memory_space<vmem>>, vector<1x8x8xbf16>
    %184 = vector.shape_cast %183 : vector<1x8x8xbf16> to vector<8x8xbf16>
    %c0_156 = arith.constant 0 : index
    %c127_157 = arith.constant 127 : index
    %185 = vector.load %arg8[%c0_156, %c127_157] : memref<8x1024xf32, #tpu.memory_space<vmem>>, vector<8x896xf32>
    %186 = arith.truncf %185 : vector<8x896xf32> to vector<8x896xbf16>
    %cst_158 = arith.constant dense<0.000000e+00> : vector<8x896xf32>
    %187 = tpu.matmul %184, %186, %cst_158 {dimension_numbers = #tpu.dot_dimension_numbers<[1], [0], [0], [1], [0, 0, 1, 1], [], []>} : vector<8x8xbf16>, vector<8x896xbf16>, vector<8x896xf32> -> vector<8x896xf32>
    %188 = arith.addf %182, %187 : vector<8x896xf32>
    %c13_159 = arith.constant 13 : index
    %c0_160 = arith.constant 0 : index
    %c0_161 = arith.constant 0 : index
    %189 = vector.load %arg4[%c13_159, %c0_160, %c0_161] : memref<14x8x8xbf16, #tpu.memory_space<vmem>>, vector<1x8x8xbf16>
    %190 = vector.shape_cast %189 : vector<1x8x8xbf16> to vector<8x8xbf16>
    %c0_162 = arith.constant 0 : index
    %c128_163 = arith.constant 128 : index
    %191 = vector.load %arg8[%c0_162, %c128_163] : memref<8x1024xf32, #tpu.memory_space<vmem>>, vector<8x896xf32>
    %192 = arith.truncf %191 : vector<8x896xf32> to vector<8x896xbf16>
    %cst_164 = arith.constant dense<0.000000e+00> : vector<8x896xf32>
    %193 = tpu.matmul %190, %192, %cst_164 {dimension_numbers = #tpu.dot_dimension_numbers<[1], [0], [0], [1], [0, 0, 1, 1], [], []>} : vector<8x8xbf16>, vector<8x896xbf16>, vector<8x896xf32> -> vector<8x896xf32>
    %194 = arith.addf %188, %193 : vector<8x896xf32>
    %c0_165 = arith.constant 0 : index
    %c0_166 = arith.constant 0 : index
    %195 = vector.load %arg5[%c0_165, %c0_166] : memref<8x1xf32, #tpu.memory_space<vmem>>, vector<8x1xf32>
    %196 = vector.broadcast %195 : vector<8x1xf32> to vector<8x896xf32>
    %197 = arith.addf %194, %196 : vector<8x896xf32>
    %c0_167 = arith.constant 0 : index
    %c0_168 = arith.constant 0 : index
    %c128_169 = arith.constant 128 : index
    %198 = vector.load %arg1[%c0_167, %c0_168, %c128_169] : memref<2x8x1024xf32, #tpu.memory_space<vmem>>, vector<1x8x896xf32>
    %199 = vector.shape_cast %198 : vector<1x8x896xf32> to vector<8x896xf32>
    %200 = arith.addf %197, %199 : vector<8x896xf32>
    %c0_170 = arith.constant 0 : index
    %c0_171 = arith.constant 0 : index
    %c0_172 = arith.constant 0 : index
    %201 = vector.load %arg7[%c0_170, %c0_171, %c0_172] : memref<2x8x896xf32, #tpu.memory_space<vmem>>, vector<1x8x896xf32>
    %202 = vector.shape_cast %201 : vector<1x8x896xf32> to vector<8x896xf32>
    %203 = vector.shape_cast %200 : vector<8x896xf32> to vector<1x8x896xf32>
    tpu.vector_store %arg7[%c0_170, %c0_171, %c0_172], %203 {strides = array<i32>} : memref<2x8x896xf32, #tpu.memory_space<vmem>>, vector<1x8x896xf32>,
    %cst_173 = arith.constant 0.000000e+00 : f32
    %204 = vector.broadcast %cst_173 : f32 to vector<8x896xf32>
    %c0_174 = arith.constant 0 : index
    %c0_175 = arith.constant 0 : index
    %c0_176 = arith.constant 0 : index
    %205 = vector.load %arg2[%c0_174, %c0_175, %c0_176] : memref<14x8x8xbf16, #tpu.memory_space<vmem>>, vector<1x8x8xbf16>
    %206 = vector.shape_cast %205 : vector<1x8x8xbf16> to vector<8x8xbf16>
    %c1_177 = arith.constant 1 : index
    %c0_178 = arith.constant 0 : index
    %c17_179 = arith.constant 17 : index
    %207 = vector.load %arg1[%c1_177, %c0_178, %c17_179] : memref<2x8x1024xf32, #tpu.memory_space<vmem>>, vector<1x8x896xf32>
    %208 = vector.shape_cast %207 : vector<1x8x896xf32> to vector<8x896xf32>
    %209 = arith.truncf %208 : vector<8x896xf32> to vector<8x896xbf16>
    %cst_180 = arith.constant dense<0.000000e+00> : vector<8x896xf32>
    %210 = tpu.matmul %206, %209, %cst_180 {dimension_numbers = #tpu.dot_dimension_numbers<[1], [0], [0], [1], [0, 0, 1, 1], [], []>} : vector<8x8xbf16>, vector<8x896xbf16>, vector<8x896xf32> -> vector<8x896xf32>
    %211 = arith.addf %204, %210 : vector<8x896xf32>
    %c1_181 = arith.constant 1 : index
    %c0_182 = arith.constant 0 : index
    %c0_183 = arith.constant 0 : index
    %212 = vector.load %arg2[%c1_181, %c0_182, %c0_183] : memref<14x8x8xbf16, #tpu.memory_space<vmem>>, vector<1x8x8xbf16>
    %213 = vector.shape_cast %212 : vector<1x8x8xbf16> to vector<8x8xbf16>
    %c1_184 = arith.constant 1 : index
    %c0_185 = arith.constant 0 : index
    %c18_186 = arith.constant 18 : index
    %214 = vector.load %arg1[%c1_184, %c0_185, %c18_186] : memref<2x8x1024xf32, #tpu.memory_space<vmem>>, vector<1x8x896xf32>
    %215 = vector.shape_cast %214 : vector<1x8x896xf32> to vector<8x896xf32>
    %216 = arith.truncf %215 : vector<8x896xf32> to vector<8x896xbf16>
    %cst_187 = arith.constant dense<0.000000e+00> : vector<8x896xf32>
    %217 = tpu.matmul %213, %216, %cst_187 {dimension_numbers = #tpu.dot_dimension_numbers<[1], [0], [0], [1], [0, 0, 1, 1], [], []>} : vector<8x8xbf16>, vector<8x896xbf16>, vector<8x896xf32> -> vector<8x896xf32>
    %218 = arith.addf %211, %217 : vector<8x896xf32>
    %c2_188 = arith.constant 2 : index
    %c0_189 = arith.constant 0 : index
    %c0_190 = arith.constant 0 : index
    %219 = vector.load %arg2[%c2_188, %c0_189, %c0_190] : memref<14x8x8xbf16, #tpu.memory_space<vmem>>, vector<1x8x8xbf16>
    %220 = vector.shape_cast %219 : vector<1x8x8xbf16> to vector<8x8xbf16>
    %c1_191 = arith.constant 1 : index
    %c0_192 = arith.constant 0 : index
    %c19_193 = arith.constant 19 : index
    %221 = vector.load %arg1[%c1_191, %c0_192, %c19_193] : memref<2x8x1024xf32, #tpu.memory_space<vmem>>, vector<1x8x896xf32>
    %222 = vector.shape_cast %221 : vector<1x8x896xf32> to vector<8x896xf32>
    %223 = arith.truncf %222 : vector<8x896xf32> to vector<8x896xbf16>
    %cst_194 = arith.constant dense<0.000000e+00> : vector<8x896xf32>
    %224 = tpu.matmul %220, %223, %cst_194 {dimension_numbers = #tpu.dot_dimension_numbers<[1], [0], [0], [1], [0, 0, 1, 1], [], []>} : vector<8x8xbf16>, vector<8x896xbf16>, vector<8x896xf32> -> vector<8x896xf32>
    %225 = arith.addf %218, %224 : vector<8x896xf32>
    %c3_195 = arith.constant 3 : index
    %c0_196 = arith.constant 0 : index
    %c0_197 = arith.constant 0 : index
    %226 = vector.load %arg2[%c3_195, %c0_196, %c0_197] : memref<14x8x8xbf16, #tpu.memory_space<vmem>>, vector<1x8x8xbf16>
    %227 = vector.shape_cast %226 : vector<1x8x8xbf16> to vector<8x8xbf16>
    %c1_198 = arith.constant 1 : index
    %c0_199 = arith.constant 0 : index
    %c27_200 = arith.constant 27 : index
    %228 = vector.load %arg1[%c1_198, %c0_199, %c27_200] : memref<2x8x1024xf32, #tpu.memory_space<vmem>>, vector<1x8x896xf32>
    %229 = vector.shape_cast %228 : vector<1x8x896xf32> to vector<8x896xf32>
    %230 = arith.truncf %229 : vector<8x896xf32> to vector<8x896xbf16>
    %cst_201 = arith.constant dense<0.000000e+00> : vector<8x896xf32>
    %231 = tpu.matmul %227, %230, %cst_201 {dimension_numbers = #tpu.dot_dimension_numbers<[1], [0], [0], [1], [0, 0, 1, 1], [], []>} : vector<8x8xbf16>, vector<8x896xbf16>, vector<8x896xf32> -> vector<8x896xf32>
    %232 = arith.addf %225, %231 : vector<8x896xf32>
    %c4_202 = arith.constant 4 : index
    %c0_203 = arith.constant 0 : index
    %c0_204 = arith.constant 0 : index
    %233 = vector.load %arg2[%c4_202, %c0_203, %c0_204] : memref<14x8x8xbf16, #tpu.memory_space<vmem>>, vector<1x8x8xbf16>
    %234 = vector.shape_cast %233 : vector<1x8x8xbf16> to vector<8x8xbf16>
    %c1_205 = arith.constant 1 : index
    %c0_206 = arith.constant 0 : index
    %c28_207 = arith.constant 28 : index
    %235 = vector.load %arg1[%c1_205, %c0_206, %c28_207] : memref<2x8x1024xf32, #tpu.memory_space<vmem>>, vector<1x8x896xf32>
    %236 = vector.shape_cast %235 : vector<1x8x896xf32> to vector<8x896xf32>
    %237 = arith.truncf %236 : vector<8x896xf32> to vector<8x896xbf16>
    %cst_208 = arith.constant dense<0.000000e+00> : vector<8x896xf32>
    %238 = tpu.matmul %234, %237, %cst_208 {dimension_numbers = #tpu.dot_dimension_numbers<[1], [0], [0], [1], [0, 0, 1, 1], [], []>} : vector<8x8xbf16>, vector<8x896xbf16>, vector<8x896xf32> -> vector<8x896xf32>
    %239 = arith.addf %232, %238 : vector<8x896xf32>
    %c5_209 = arith.constant 5 : index
    %c0_210 = arith.constant 0 : index
    %c0_211 = arith.constant 0 : index
    %240 = vector.load %arg2[%c5_209, %c0_210, %c0_211] : memref<14x8x8xbf16, #tpu.memory_space<vmem>>, vector<1x8x8xbf16>
    %241 = vector.shape_cast %240 : vector<1x8x8xbf16> to vector<8x8xbf16>
    %c1_212 = arith.constant 1 : index
    %c0_213 = arith.constant 0 : index
    %c29_214 = arith.constant 29 : index
    %242 = vector.load %arg1[%c1_212, %c0_213, %c29_214] : memref<2x8x1024xf32, #tpu.memory_space<vmem>>, vector<1x8x896xf32>
    %243 = vector.shape_cast %242 : vector<1x8x896xf32> to vector<8x896xf32>
    %244 = arith.truncf %243 : vector<8x896xf32> to vector<8x896xbf16>
    %cst_215 = arith.constant dense<0.000000e+00> : vector<8x896xf32>
    %245 = tpu.matmul %241, %244, %cst_215 {dimension_numbers = #tpu.dot_dimension_numbers<[1], [0], [0], [1], [0, 0, 1, 1], [], []>} : vector<8x8xbf16>, vector<8x896xbf16>, vector<8x896xf32> -> vector<8x896xf32>
    %246 = arith.addf %239, %245 : vector<8x896xf32>
    %c6_216 = arith.constant 6 : index
    %c0_217 = arith.constant 0 : index
    %c0_218 = arith.constant 0 : index
    %247 = vector.load %arg2[%c6_216, %c0_217, %c0_218] : memref<14x8x8xbf16, #tpu.memory_space<vmem>>, vector<1x8x8xbf16>
    %248 = vector.shape_cast %247 : vector<1x8x8xbf16> to vector<8x8xbf16>
    %c1_219 = arith.constant 1 : index
    %c0_220 = arith.constant 0 : index
    %c37_221 = arith.constant 37 : index
    %249 = vector.load %arg1[%c1_219, %c0_220, %c37_221] : memref<2x8x1024xf32, #tpu.memory_space<vmem>>, vector<1x8x896xf32>
    %250 = vector.shape_cast %249 : vector<1x8x896xf32> to vector<8x896xf32>
    %251 = arith.truncf %250 : vector<8x896xf32> to vector<8x896xbf16>
    %cst_222 = arith.constant dense<0.000000e+00> : vector<8x896xf32>
    %252 = tpu.matmul %248, %251, %cst_222 {dimension_numbers = #tpu.dot_dimension_numbers<[1], [0], [0], [1], [0, 0, 1, 1], [], []>} : vector<8x8xbf16>, vector<8x896xbf16>, vector<8x896xf32> -> vector<8x896xf32>
    %253 = arith.addf %246, %252 : vector<8x896xf32>
    %c7_223 = arith.constant 7 : index
    %c0_224 = arith.constant 0 : index
    %c0_225 = arith.constant 0 : index
    %254 = vector.load %arg2[%c7_223, %c0_224, %c0_225] : memref<14x8x8xbf16, #tpu.memory_space<vmem>>, vector<1x8x8xbf16>
    %255 = vector.shape_cast %254 : vector<1x8x8xbf16> to vector<8x8xbf16>
    %c1_226 = arith.constant 1 : index
    %c0_227 = arith.constant 0 : index
    %c38_228 = arith.constant 38 : index
    %256 = vector.load %arg1[%c1_226, %c0_227, %c38_228] : memref<2x8x1024xf32, #tpu.memory_space<vmem>>, vector<1x8x896xf32>
    %257 = vector.shape_cast %256 : vector<1x8x896xf32> to vector<8x896xf32>
    %258 = arith.truncf %257 : vector<8x896xf32> to vector<8x896xbf16>
    %cst_229 = arith.constant dense<0.000000e+00> : vector<8x896xf32>
    %259 = tpu.matmul %255, %258, %cst_229 {dimension_numbers = #tpu.dot_dimension_numbers<[1], [0], [0], [1], [0, 0, 1, 1], [], []>} : vector<8x8xbf16>, vector<8x896xbf16>, vector<8x896xf32> -> vector<8x896xf32>
    %260 = arith.addf %253, %259 : vector<8x896xf32>
    %c8_230 = arith.constant 8 : index
    %c0_231 = arith.constant 0 : index
    %c0_232 = arith.constant 0 : index
    %261 = vector.load %arg2[%c8_230, %c0_231, %c0_232] : memref<14x8x8xbf16, #tpu.memory_space<vmem>>, vector<1x8x8xbf16>
    %262 = vector.shape_cast %261 : vector<1x8x8xbf16> to vector<8x8xbf16>
    %c1_233 = arith.constant 1 : index
    %c0_234 = arith.constant 0 : index
    %c39_235 = arith.constant 39 : index
    %263 = vector.load %arg1[%c1_233, %c0_234, %c39_235] : memref<2x8x1024xf32, #tpu.memory_space<vmem>>, vector<1x8x896xf32>
    %264 = vector.shape_cast %263 : vector<1x8x896xf32> to vector<8x896xf32>
    %265 = arith.truncf %264 : vector<8x896xf32> to vector<8x896xbf16>
    %cst_236 = arith.constant dense<0.000000e+00> : vector<8x896xf32>
    %266 = tpu.matmul %262, %265, %cst_236 {dimension_numbers = #tpu.dot_dimension_numbers<[1], [0], [0], [1], [0, 0, 1, 1], [], []>} : vector<8x8xbf16>, vector<8x896xbf16>, vector<8x896xf32> -> vector<8x896xf32>
    %267 = arith.addf %260, %266 : vector<8x896xf32>
    %c9_237 = arith.constant 9 : index
    %c0_238 = arith.constant 0 : index
    %c0_239 = arith.constant 0 : index
    %268 = vector.load %arg2[%c9_237, %c0_238, %c0_239] : memref<14x8x8xbf16, #tpu.memory_space<vmem>>, vector<1x8x8xbf16>
    %269 = vector.shape_cast %268 : vector<1x8x8xbf16> to vector<8x8xbf16>
    %c1_240 = arith.constant 1 : index
    %c0_241 = arith.constant 0 : index
    %c117_242 = arith.constant 117 : index
    %270 = vector.load %arg1[%c1_240, %c0_241, %c117_242] : memref<2x8x1024xf32, #tpu.memory_space<vmem>>, vector<1x8x896xf32>
    %271 = vector.shape_cast %270 : vector<1x8x896xf32> to vector<8x896xf32>
    %272 = arith.truncf %271 : vector<8x896xf32> to vector<8x896xbf16>
    %cst_243 = arith.constant dense<0.000000e+00> : vector<8x896xf32>
    %273 = tpu.matmul %269, %272, %cst_243 {dimension_numbers = #tpu.dot_dimension_numbers<[1], [0], [0], [1], [0, 0, 1, 1], [], []>} : vector<8x8xbf16>, vector<8x896xbf16>, vector<8x896xf32> -> vector<8x896xf32>
    %274 = arith.addf %267, %273 : vector<8x896xf32>
    %c10_244 = arith.constant 10 : index
    %c0_245 = arith.constant 0 : index
    %c0_246 = arith.constant 0 : index
    %275 = vector.load %arg2[%c10_244, %c0_245, %c0_246] : memref<14x8x8xbf16, #tpu.memory_space<vmem>>, vector<1x8x8xbf16>
    %276 = vector.shape_cast %275 : vector<1x8x8xbf16> to vector<8x8xbf16>
    %c1_247 = arith.constant 1 : index
    %c0_248 = arith.constant 0 : index
    %c118_249 = arith.constant 118 : index
    %277 = vector.load %arg1[%c1_247, %c0_248, %c118_249] : memref<2x8x1024xf32, #tpu.memory_space<vmem>>, vector<1x8x896xf32>
    %278 = vector.shape_cast %277 : vector<1x8x896xf32> to vector<8x896xf32>
    %279 = arith.truncf %278 : vector<8x896xf32> to vector<8x896xbf16>
    %cst_250 = arith.constant dense<0.000000e+00> : vector<8x896xf32>
    %280 = tpu.matmul %276, %279, %cst_250 {dimension_numbers = #tpu.dot_dimension_numbers<[1], [0], [0], [1], [0, 0, 1, 1], [], []>} : vector<8x8xbf16>, vector<8x896xbf16>, vector<8x896xf32> -> vector<8x896xf32>
    %281 = arith.addf %274, %280 : vector<8x896xf32>
    %c11_251 = arith.constant 11 : index
    %c0_252 = arith.constant 0 : index
    %c0_253 = arith.constant 0 : index
    %282 = vector.load %arg2[%c11_251, %c0_252, %c0_253] : memref<14x8x8xbf16, #tpu.memory_space<vmem>>, vector<1x8x8xbf16>
    %283 = vector.shape_cast %282 : vector<1x8x8xbf16> to vector<8x8xbf16>
    %c1_254 = arith.constant 1 : index
    %c0_255 = arith.constant 0 : index
    %c119_256 = arith.constant 119 : index
    %284 = vector.load %arg1[%c1_254, %c0_255, %c119_256] : memref<2x8x1024xf32, #tpu.memory_space<vmem>>, vector<1x8x896xf32>
    %285 = vector.shape_cast %284 : vector<1x8x896xf32> to vector<8x896xf32>
    %286 = arith.truncf %285 : vector<8x896xf32> to vector<8x896xbf16>
    %cst_257 = arith.constant dense<0.000000e+00> : vector<8x896xf32>
    %287 = tpu.matmul %283, %286, %cst_257 {dimension_numbers = #tpu.dot_dimension_numbers<[1], [0], [0], [1], [0, 0, 1, 1], [], []>} : vector<8x8xbf16>, vector<8x896xbf16>, vector<8x896xf32> -> vector<8x896xf32>
    %288 = arith.addf %281, %287 : vector<8x896xf32>
    %c12_258 = arith.constant 12 : index
    %c0_259 = arith.constant 0 : index
    %c0_260 = arith.constant 0 : index
    %289 = vector.load %arg2[%c12_258, %c0_259, %c0_260] : memref<14x8x8xbf16, #tpu.memory_space<vmem>>, vector<1x8x8xbf16>
    %290 = vector.shape_cast %289 : vector<1x8x8xbf16> to vector<8x8xbf16>
    %c1_261 = arith.constant 1 : index
    %c0_262 = arith.constant 0 : index
    %c127_263 = arith.constant 127 : index
    %291 = vector.load %arg1[%c1_261, %c0_262, %c127_263] : memref<2x8x1024xf32, #tpu.memory_space<vmem>>, vector<1x8x896xf32>
    %292 = vector.shape_cast %291 : vector<1x8x896xf32> to vector<8x896xf32>
    %293 = arith.truncf %292 : vector<8x896xf32> to vector<8x896xbf16>
    %cst_264 = arith.constant dense<0.000000e+00> : vector<8x896xf32>
    %294 = tpu.matmul %290, %293, %cst_264 {dimension_numbers = #tpu.dot_dimension_numbers<[1], [0], [0], [1], [0, 0, 1, 1], [], []>} : vector<8x8xbf16>, vector<8x896xbf16>, vector<8x896xf32> -> vector<8x896xf32>
    %295 = arith.addf %288, %294 : vector<8x896xf32>
    %c13_265 = arith.constant 13 : index
    %c0_266 = arith.constant 0 : index
    %c0_267 = arith.constant 0 : index
    %296 = vector.load %arg2[%c13_265, %c0_266, %c0_267] : memref<14x8x8xbf16, #tpu.memory_space<vmem>>, vector<1x8x8xbf16>
    %297 = vector.shape_cast %296 : vector<1x8x8xbf16> to vector<8x8xbf16>
    %c1_268 = arith.constant 1 : index
    %c0_269 = arith.constant 0 : index
    %c128_270 = arith.constant 128 : index
    %298 = vector.load %arg1[%c1_268, %c0_269, %c128_270] : memref<2x8x1024xf32, #tpu.memory_space<vmem>>, vector<1x8x896xf32>
    %299 = vector.shape_cast %298 : vector<1x8x896xf32> to vector<8x896xf32>
    %300 = arith.truncf %299 : vector<8x896xf32> to vector<8x896xbf16>
    %cst_271 = arith.constant dense<0.000000e+00> : vector<8x896xf32>
    %301 = tpu.matmul %297, %300, %cst_271 {dimension_numbers = #tpu.dot_dimension_numbers<[1], [0], [0], [1], [0, 0, 1, 1], [], []>} : vector<8x8xbf16>, vector<8x896xbf16>, vector<8x896xf32> -> vector<8x896xf32>
    %302 = arith.addf %295, %301 : vector<8x896xf32>
    %c0_272 = arith.constant 0 : index
    %c0_273 = arith.constant 0 : index
    %303 = vector.load %arg3[%c0_272, %c0_273] : memref<8x1xf32, #tpu.memory_space<vmem>>, vector<8x1xf32>
    %304 = vector.broadcast %303 : vector<8x1xf32> to vector<8x896xf32>
    %305 = arith.addf %302, %304 : vector<8x896xf32>
    %cst_274 = arith.constant 0.000000e+00 : f32
    %306 = vector.broadcast %cst_274 : f32 to vector<8x896xf32>
    %307 = arith.maximumf %305, %306 : vector<8x896xf32>
    %308 = vector.broadcast %2 : vector<1x896xf32> to vector<8x896xf32>
    %309 = arith.mulf %307, %308 : vector<8x896xf32>
    %c0_275 = arith.constant 0 : index
    %c128_276 = arith.constant 128 : index
    %310 = vector.load %arg8[%c0_275, %c128_276] : memref<8x1024xf32, #tpu.memory_space<vmem>>, vector<8x896xf32>
    tpu.vector_store %arg8[%c0_275, %c128_276], %309 {strides = array<i32>} : memref<8x1024xf32, #tpu.memory_space<vmem>>, vector<8x896xf32>,
    %cst_277 = arith.constant 0.000000e+00 : f32
    %311 = vector.broadcast %cst_277 : f32 to vector<8x896xf32>
    %c0_278 = arith.constant 0 : index
    %c0_279 = arith.constant 0 : index
    %c0_280 = arith.constant 0 : index
    %312 = vector.load %arg4[%c0_278, %c0_279, %c0_280] : memref<14x8x8xbf16, #tpu.memory_space<vmem>>, vector<1x8x8xbf16>
    %313 = vector.shape_cast %312 : vector<1x8x8xbf16> to vector<8x8xbf16>
    %c0_281 = arith.constant 0 : index
    %c17_282 = arith.constant 17 : index
    %314 = vector.load %arg8[%c0_281, %c17_282] : memref<8x1024xf32, #tpu.memory_space<vmem>>, vector<8x896xf32>
    %315 = arith.truncf %314 : vector<8x896xf32> to vector<8x896xbf16>
    %cst_283 = arith.constant dense<0.000000e+00> : vector<8x896xf32>
    %316 = tpu.matmul %313, %315, %cst_283 {dimension_numbers = #tpu.dot_dimension_numbers<[1], [0], [0], [1], [0, 0, 1, 1], [], []>} : vector<8x8xbf16>, vector<8x896xbf16>, vector<8x896xf32> -> vector<8x896xf32>
    %317 = arith.addf %311, %316 : vector<8x896xf32>
    %c1_284 = arith.constant 1 : index
    %c0_285 = arith.constant 0 : index
    %c0_286 = arith.constant 0 : index
    %318 = vector.load %arg4[%c1_284, %c0_285, %c0_286] : memref<14x8x8xbf16, #tpu.memory_space<vmem>>, vector<1x8x8xbf16>
    %319 = vector.shape_cast %318 : vector<1x8x8xbf16> to vector<8x8xbf16>
    %c0_287 = arith.constant 0 : index
    %c18_288 = arith.constant 18 : index
    %320 = vector.load %arg8[%c0_287, %c18_288] : memref<8x1024xf32, #tpu.memory_space<vmem>>, vector<8x896xf32>
    %321 = arith.truncf %320 : vector<8x896xf32> to vector<8x896xbf16>
    %cst_289 = arith.constant dense<0.000000e+00> : vector<8x896xf32>
    %322 = tpu.matmul %319, %321, %cst_289 {dimension_numbers = #tpu.dot_dimension_numbers<[1], [0], [0], [1], [0, 0, 1, 1], [], []>} : vector<8x8xbf16>, vector<8x896xbf16>, vector<8x896xf32> -> vector<8x896xf32>
    %323 = arith.addf %317, %322 : vector<8x896xf32>
    %c2_290 = arith.constant 2 : index
    %c0_291 = arith.constant 0 : index
    %c0_292 = arith.constant 0 : index
    %324 = vector.load %arg4[%c2_290, %c0_291, %c0_292] : memref<14x8x8xbf16, #tpu.memory_space<vmem>>, vector<1x8x8xbf16>
    %325 = vector.shape_cast %324 : vector<1x8x8xbf16> to vector<8x8xbf16>
    %c0_293 = arith.constant 0 : index
    %c19_294 = arith.constant 19 : index
    %326 = vector.load %arg8[%c0_293, %c19_294] : memref<8x1024xf32, #tpu.memory_space<vmem>>, vector<8x896xf32>
    %327 = arith.truncf %326 : vector<8x896xf32> to vector<8x896xbf16>
    %cst_295 = arith.constant dense<0.000000e+00> : vector<8x896xf32>
    %328 = tpu.matmul %325, %327, %cst_295 {dimension_numbers = #tpu.dot_dimension_numbers<[1], [0], [0], [1], [0, 0, 1, 1], [], []>} : vector<8x8xbf16>, vector<8x896xbf16>, vector<8x896xf32> -> vector<8x896xf32>
    %329 = arith.addf %323, %328 : vector<8x896xf32>
    %c3_296 = arith.constant 3 : index
    %c0_297 = arith.constant 0 : index
    %c0_298 = arith.constant 0 : index
    %330 = vector.load %arg4[%c3_296, %c0_297, %c0_298] : memref<14x8x8xbf16, #tpu.memory_space<vmem>>, vector<1x8x8xbf16>
    %331 = vector.shape_cast %330 : vector<1x8x8xbf16> to vector<8x8xbf16>
    %c0_299 = arith.constant 0 : index
    %c27_300 = arith.constant 27 : index
    %332 = vector.load %arg8[%c0_299, %c27_300] : memref<8x1024xf32, #tpu.memory_space<vmem>>, vector<8x896xf32>
    %333 = arith.truncf %332 : vector<8x896xf32> to vector<8x896xbf16>
    %cst_301 = arith.constant dense<0.000000e+00> : vector<8x896xf32>
    %334 = tpu.matmul %331, %333, %cst_301 {dimension_numbers = #tpu.dot_dimension_numbers<[1], [0], [0], [1], [0, 0, 1, 1], [], []>} : vector<8x8xbf16>, vector<8x896xbf16>, vector<8x896xf32> -> vector<8x896xf32>
    %335 = arith.addf %329, %334 : vector<8x896xf32>
    %c4_302 = arith.constant 4 : index
    %c0_303 = arith.constant 0 : index
    %c0_304 = arith.constant 0 : index
    %336 = vector.load %arg4[%c4_302, %c0_303, %c0_304] : memref<14x8x8xbf16, #tpu.memory_space<vmem>>, vector<1x8x8xbf16>
    %337 = vector.shape_cast %336 : vector<1x8x8xbf16> to vector<8x8xbf16>
    %c0_305 = arith.constant 0 : index
    %c28_306 = arith.constant 28 : index
    %338 = vector.load %arg8[%c0_305, %c28_306] : memref<8x1024xf32, #tpu.memory_space<vmem>>, vector<8x896xf32>
    %339 = arith.truncf %338 : vector<8x896xf32> to vector<8x896xbf16>
    %cst_307 = arith.constant dense<0.000000e+00> : vector<8x896xf32>
    %340 = tpu.matmul %337, %339, %cst_307 {dimension_numbers = #tpu.dot_dimension_numbers<[1], [0], [0], [1], [0, 0, 1, 1], [], []>} : vector<8x8xbf16>, vector<8x896xbf16>, vector<8x896xf32> -> vector<8x896xf32>
    %341 = arith.addf %335, %340 : vector<8x896xf32>
    %c5_308 = arith.constant 5 : index
    %c0_309 = arith.constant 0 : index
    %c0_310 = arith.constant 0 : index
    %342 = vector.load %arg4[%c5_308, %c0_309, %c0_310] : memref<14x8x8xbf16, #tpu.memory_space<vmem>>, vector<1x8x8xbf16>
    %343 = vector.shape_cast %342 : vector<1x8x8xbf16> to vector<8x8xbf16>
    %c0_311 = arith.constant 0 : index
    %c29_312 = arith.constant 29 : index
    %344 = vector.load %arg8[%c0_311, %c29_312] : memref<8x1024xf32, #tpu.memory_space<vmem>>, vector<8x896xf32>
    %345 = arith.truncf %344 : vector<8x896xf32> to vector<8x896xbf16>
    %cst_313 = arith.constant dense<0.000000e+00> : vector<8x896xf32>
    %346 = tpu.matmul %343, %345, %cst_313 {dimension_numbers = #tpu.dot_dimension_numbers<[1], [0], [0], [1], [0, 0, 1, 1], [], []>} : vector<8x8xbf16>, vector<8x896xbf16>, vector<8x896xf32> -> vector<8x896xf32>
    %347 = arith.addf %341, %346 : vector<8x896xf32>
    %c6_314 = arith.constant 6 : index
    %c0_315 = arith.constant 0 : index
    %c0_316 = arith.constant 0 : index
    %348 = vector.load %arg4[%c6_314, %c0_315, %c0_316] : memref<14x8x8xbf16, #tpu.memory_space<vmem>>, vector<1x8x8xbf16>
    %349 = vector.shape_cast %348 : vector<1x8x8xbf16> to vector<8x8xbf16>
    %c0_317 = arith.constant 0 : index
    %c37_318 = arith.constant 37 : index
    %350 = vector.load %arg8[%c0_317, %c37_318] : memref<8x1024xf32, #tpu.memory_space<vmem>>, vector<8x896xf32>
    %351 = arith.truncf %350 : vector<8x896xf32> to vector<8x896xbf16>
    %cst_319 = arith.constant dense<0.000000e+00> : vector<8x896xf32>
    %352 = tpu.matmul %349, %351, %cst_319 {dimension_numbers = #tpu.dot_dimension_numbers<[1], [0], [0], [1], [0, 0, 1, 1], [], []>} : vector<8x8xbf16>, vector<8x896xbf16>, vector<8x896xf32> -> vector<8x896xf32>
    %353 = arith.addf %347, %352 : vector<8x896xf32>
    %c7_320 = arith.constant 7 : index
    %c0_321 = arith.constant 0 : index
    %c0_322 = arith.constant 0 : index
    %354 = vector.load %arg4[%c7_320, %c0_321, %c0_322] : memref<14x8x8xbf16, #tpu.memory_space<vmem>>, vector<1x8x8xbf16>
    %355 = vector.shape_cast %354 : vector<1x8x8xbf16> to vector<8x8xbf16>
    %c0_323 = arith.constant 0 : index
    %c38_324 = arith.constant 38 : index
    %356 = vector.load %arg8[%c0_323, %c38_324] : memref<8x1024xf32, #tpu.memory_space<vmem>>, vector<8x896xf32>
    %357 = arith.truncf %356 : vector<8x896xf32> to vector<8x896xbf16>
    %cst_325 = arith.constant dense<0.000000e+00> : vector<8x896xf32>
    %358 = tpu.matmul %355, %357, %cst_325 {dimension_numbers = #tpu.dot_dimension_numbers<[1], [0], [0], [1], [0, 0, 1, 1], [], []>} : vector<8x8xbf16>, vector<8x896xbf16>, vector<8x896xf32> -> vector<8x896xf32>
    %359 = arith.addf %353, %358 : vector<8x896xf32>
    %c8_326 = arith.constant 8 : index
    %c0_327 = arith.constant 0 : index
    %c0_328 = arith.constant 0 : index
    %360 = vector.load %arg4[%c8_326, %c0_327, %c0_328] : memref<14x8x8xbf16, #tpu.memory_space<vmem>>, vector<1x8x8xbf16>
    %361 = vector.shape_cast %360 : vector<1x8x8xbf16> to vector<8x8xbf16>
    %c0_329 = arith.constant 0 : index
    %c39_330 = arith.constant 39 : index
    %362 = vector.load %arg8[%c0_329, %c39_330] : memref<8x1024xf32, #tpu.memory_space<vmem>>, vector<8x896xf32>
    %363 = arith.truncf %362 : vector<8x896xf32> to vector<8x896xbf16>
    %cst_331 = arith.constant dense<0.000000e+00> : vector<8x896xf32>
    %364 = tpu.matmul %361, %363, %cst_331 {dimension_numbers = #tpu.dot_dimension_numbers<[1], [0], [0], [1], [0, 0, 1, 1], [], []>} : vector<8x8xbf16>, vector<8x896xbf16>, vector<8x896xf32> -> vector<8x896xf32>
    %365 = arith.addf %359, %364 : vector<8x896xf32>
    %c9_332 = arith.constant 9 : index
    %c0_333 = arith.constant 0 : index
    %c0_334 = arith.constant 0 : index
    %366 = vector.load %arg4[%c9_332, %c0_333, %c0_334] : memref<14x8x8xbf16, #tpu.memory_space<vmem>>, vector<1x8x8xbf16>
    %367 = vector.shape_cast %366 : vector<1x8x8xbf16> to vector<8x8xbf16>
    %c0_335 = arith.constant 0 : index
    %c117_336 = arith.constant 117 : index
    %368 = vector.load %arg8[%c0_335, %c117_336] : memref<8x1024xf32, #tpu.memory_space<vmem>>, vector<8x896xf32>
    %369 = arith.truncf %368 : vector<8x896xf32> to vector<8x896xbf16>
    %cst_337 = arith.constant dense<0.000000e+00> : vector<8x896xf32>
    %370 = tpu.matmul %367, %369, %cst_337 {dimension_numbers = #tpu.dot_dimension_numbers<[1], [0], [0], [1], [0, 0, 1, 1], [], []>} : vector<8x8xbf16>, vector<8x896xbf16>, vector<8x896xf32> -> vector<8x896xf32>
    %371 = arith.addf %365, %370 : vector<8x896xf32>
    %c10_338 = arith.constant 10 : index
    %c0_339 = arith.constant 0 : index
    %c0_340 = arith.constant 0 : index
    %372 = vector.load %arg4[%c10_338, %c0_339, %c0_340] : memref<14x8x8xbf16, #tpu.memory_space<vmem>>, vector<1x8x8xbf16>
    %373 = vector.shape_cast %372 : vector<1x8x8xbf16> to vector<8x8xbf16>
    %c0_341 = arith.constant 0 : index
    %c118_342 = arith.constant 118 : index
    %374 = vector.load %arg8[%c0_341, %c118_342] : memref<8x1024xf32, #tpu.memory_space<vmem>>, vector<8x896xf32>
    %375 = arith.truncf %374 : vector<8x896xf32> to vector<8x896xbf16>
    %cst_343 = arith.constant dense<0.000000e+00> : vector<8x896xf32>
    %376 = tpu.matmul %373, %375, %cst_343 {dimension_numbers = #tpu.dot_dimension_numbers<[1], [0], [0], [1], [0, 0, 1, 1], [], []>} : vector<8x8xbf16>, vector<8x896xbf16>, vector<8x896xf32> -> vector<8x896xf32>
    %377 = arith.addf %371, %376 : vector<8x896xf32>
    %c11_344 = arith.constant 11 : index
    %c0_345 = arith.constant 0 : index
    %c0_346 = arith.constant 0 : index
    %378 = vector.load %arg4[%c11_344, %c0_345, %c0_346] : memref<14x8x8xbf16, #tpu.memory_space<vmem>>, vector<1x8x8xbf16>
    %379 = vector.shape_cast %378 : vector<1x8x8xbf16> to vector<8x8xbf16>
    %c0_347 = arith.constant 0 : index
    %c119_348 = arith.constant 119 : index
    %380 = vector.load %arg8[%c0_347, %c119_348] : memref<8x1024xf32, #tpu.memory_space<vmem>>, vector<8x896xf32>
    %381 = arith.truncf %380 : vector<8x896xf32> to vector<8x896xbf16>
    %cst_349 = arith.constant dense<0.000000e+00> : vector<8x896xf32>
    %382 = tpu.matmul %379, %381, %cst_349 {dimension_numbers = #tpu.dot_dimension_numbers<[1], [0], [0], [1], [0, 0, 1, 1], [], []>} : vector<8x8xbf16>, vector<8x896xbf16>, vector<8x896xf32> -> vector<8x896xf32>
    %383 = arith.addf %377, %382 : vector<8x896xf32>
    %c12_350 = arith.constant 12 : index
    %c0_351 = arith.constant 0 : index
    %c0_352 = arith.constant 0 : index
    %384 = vector.load %arg4[%c12_350, %c0_351, %c0_352] : memref<14x8x8xbf16, #tpu.memory_space<vmem>>, vector<1x8x8xbf16>
    %385 = vector.shape_cast %384 : vector<1x8x8xbf16> to vector<8x8xbf16>
    %c0_353 = arith.constant 0 : index
    %c127_354 = arith.constant 127 : index
    %386 = vector.load %arg8[%c0_353, %c127_354] : memref<8x1024xf32, #tpu.memory_space<vmem>>, vector<8x896xf32>
    %387 = arith.truncf %386 : vector<8x896xf32> to vector<8x896xbf16>
    %cst_355 = arith.constant dense<0.000000e+00> : vector<8x896xf32>
    %388 = tpu.matmul %385, %387, %cst_355 {dimension_numbers = #tpu.dot_dimension_numbers<[1], [0], [0], [1], [0, 0, 1, 1], [], []>} : vector<8x8xbf16>, vector<8x896xbf16>, vector<8x896xf32> -> vector<8x896xf32>
    %389 = arith.addf %383, %388 : vector<8x896xf32>
    %c13_356 = arith.constant 13 : index
    %c0_357 = arith.constant 0 : index
    %c0_358 = arith.constant 0 : index
    %390 = vector.load %arg4[%c13_356, %c0_357, %c0_358] : memref<14x8x8xbf16, #tpu.memory_space<vmem>>, vector<1x8x8xbf16>
    %391 = vector.shape_cast %390 : vector<1x8x8xbf16> to vector<8x8xbf16>
    %c0_359 = arith.constant 0 : index
    %c128_360 = arith.constant 128 : index
    %392 = vector.load %arg8[%c0_359, %c128_360] : memref<8x1024xf32, #tpu.memory_space<vmem>>, vector<8x896xf32>
    %393 = arith.truncf %392 : vector<8x896xf32> to vector<8x896xbf16>
    %cst_361 = arith.constant dense<0.000000e+00> : vector<8x896xf32>
    %394 = tpu.matmul %391, %393, %cst_361 {dimension_numbers = #tpu.dot_dimension_numbers<[1], [0], [0], [1], [0, 0, 1, 1], [], []>} : vector<8x8xbf16>, vector<8x896xbf16>, vector<8x896xf32> -> vector<8x896xf32>
    %395 = arith.addf %389, %394 : vector<8x896xf32>
    %c0_362 = arith.constant 0 : index
    %c0_363 = arith.constant 0 : index
    %396 = vector.load %arg5[%c0_362, %c0_363] : memref<8x1xf32, #tpu.memory_space<vmem>>, vector<8x1xf32>
    %397 = vector.broadcast %396 : vector<8x1xf32> to vector<8x896xf32>
    %398 = arith.addf %395, %397 : vector<8x896xf32>
    %c1_364 = arith.constant 1 : index
    %c0_365 = arith.constant 0 : index
    %c128_366 = arith.constant 128 : index
    %399 = vector.load %arg1[%c1_364, %c0_365, %c128_366] : memref<2x8x1024xf32, #tpu.memory_space<vmem>>, vector<1x8x896xf32>
    %400 = vector.shape_cast %399 : vector<1x8x896xf32> to vector<8x896xf32>
    %401 = arith.addf %398, %400 : vector<8x896xf32>
    %c1_367 = arith.constant 1 : index
    %c0_368 = arith.constant 0 : index
    %c0_369 = arith.constant 0 : index
    %402 = vector.load %arg7[%c1_367, %c0_368, %c0_369] : memref<2x8x896xf32, #tpu.memory_space<vmem>>, vector<1x8x896xf32>
    %403 = vector.shape_cast %402 : vector<1x8x896xf32> to vector<8x896xf32>
    %404 = vector.shape_cast %401 : vector<8x896xf32> to vector<1x8x896xf32>
    tpu.vector_store %arg7[%c1_367, %c0_368, %c0_369], %404 {strides = array<i32>} : memref<2x8x896xf32, #tpu.memory_space<vmem>>, vector<1x8x896xf32>,
    return
  }
  func.func @transform_0(%arg0: i32) -> (i32, i32, i32) {
    %c0_i32 = arith.constant 0 : i32
    %c0_i32_0 = arith.constant 0 : i32
    %c0_i32_1 = arith.constant 0 : i32
    return %arg0, %c0_i32, %c0_i32_0 : i32, i32, i32
  }
  func.func @transform_1(%arg0: i32) -> (i32, i32, i32) {
    %c0_i32 = arith.constant 0 : i32
    %c0_i32_0 = arith.constant 0 : i32
    %c0_i32_1 = arith.constant 0 : i32
    %c0_i32_2 = arith.constant 0 : i32
    return %c0_i32, %c0_i32_0, %c0_i32_1 : i32, i32, i32
  }
  func.func @transform_2(%arg0: i32) -> (i32, i32) {
    %c0_i32 = arith.constant 0 : i32
    %c0_i32_0 = arith.constant 0 : i32
    %c0_i32_1 = arith.constant 0 : i32
    return %c0_i32, %c0_i32_0 : i32, i32
  }
  func.func @transform_3(%arg0: i32) -> (i32, i32, i32) {
    %c0_i32 = arith.constant 0 : i32
    %c0_i32_0 = arith.constant 0 : i32
    %c0_i32_1 = arith.constant 0 : i32
    %c0_i32_2 = arith.constant 0 : i32
    return %c0_i32, %c0_i32_0, %c0_i32_1 : i32, i32, i32
  }
  func.func @transform_4(%arg0: i32) -> (i32, i32) {
    %c0_i32 = arith.constant 0 : i32
    %c0_i32_0 = arith.constant 0 : i32
    %c0_i32_1 = arith.constant 0 : i32
    return %c0_i32, %c0_i32_0 : i32, i32
  }
  func.func @transform_5(%arg0: i32) -> (i32, i32) {
    %c0_i32 = arith.constant 0 : i32
    %c0_i32_0 = arith.constant 0 : i32
    %c0_i32_1 = arith.constant 0 : i32
    return %c0_i32, %c0_i32_0 : i32, i32
  }
  func.func @transform_6(%arg0: i32) -> (i32, i32, i32) {
    %c0_i32 = arith.constant 0 : i32
    %c0_i32_0 = arith.constant 0 : i32
    %c0_i32_1 = arith.constant 0 : i32
    return %arg0, %c0_i32, %c0_i32_0 : i32, i32, i32
  }
}

</mosaic_0001>

<bundles_post_ra>
// kernel: tpu_custom_call.1
= control target key start
LH: loop header
LB: loop body
LE: loop exit
PB: predicated region body
PF: predicated region fallthrough
CT: control target
= control target key end

     0   :  { %s13367_s29 = smov 110   ;;  %v13368_v10 = vmov 0   ;;  %s16144_s0 = inlined_call_operand.vmem [shape: f32[2,8,1024], index: 0, kind: input, shape index: {}]   ;;  %s16145_s1 = inlined_call_operand.vmem [shape: bf16[14,8,8], index: 1, kind: input, shape index: {}]   ;;  %s16146_s2 = inlined_call_operand.vmem [shape: f32[8,1], index: 2, kind: input, shape index: {}]   ;;  %s16147_s3 = inlined_call_operand.vmem [shape: bf16[14,8,8], index: 3, kind: input, shape index: {}]   ;;  %s16148_s4 = inlined_call_operand.vmem [shape: f32[8,1], index: 4, kind: input, shape index: {}]   ;;  %s16149_s5 = inlined_call_operand.vmem [shape: f32[1,896], index: 5, kind: input, shape index: {}]   ;;  %s16150_s6 = inlined_call_operand.hbm [shape: f32[2,8,896], index: 6, kind: output, shape index: {}]  }
   0x1   :  { %v30_v0 = vld [vmem:[%s16144_s0 + $0x10] sm:$0xff]  ;;  %v28_v1 = vld [vmem:[%s16144_s0] sm:$0xff]  ;;  %v31_v2 = vld [vmem:[%s16144_s0 + $0x18] sm:$0xff]  ;;  %136 = vmatprep.mubr.bf16.mxu0 %v13368_v10  ;;  %177 = vmatprep.mubr.bf16.mxu1 %v13368_v10 }
   0x2   :  { %v13431_v3 = vpack.c.bf16 %v30_v0, %v30_v0  ;;  %v13433_v4 = vpack.c.bf16 %v28_v1, %v28_v1  ;;  %v29_v5 = vld [vmem:[%s16144_s0 + $0x8] sm:$0xff]  ;;  %v13442_v6 = vpack.c.bf16 %v31_v2, %v31_v2  ;;  %v32_v9 = vld [vmem:[%s16144_s0 + $0x20] sm:$0xff] }
   0x3   :  { %v13444_v7 = vpack.c.bf16 %v29_v5, %v29_v5  ;;  %v33_v8 = vld [vmem:[%s16144_s0 + $0x28] sm:$0xff] }
   0x4   :  { %58 = vrot.lane.b32.xlu1 %v13431_v3, %s13367_s29  ;;  %54 = vrot.lane.b32.xlu0 %v13433_v4, %s13367_s29 }
   0x5   :  { %11 = vsyncpa [#allocation4], 0  ;;  %13341 = vset.pattern.permute.xlu0 %v13368_v10  ;;  %13342 = vset.pattern.permute.xlu1 %v13368_v10  ;;  %v13460_v11 = vpack.c.bf16 %v33_v8, %v33_v8  ;;  %v13462_v12 = vpack.c.bf16 %v32_v9, %v32_v9  ;;  %v35_v13 = vld [vmem:[%s16144_s0 + $0x38] sm:$0xff]  ;;  %v34_v14 = vld [vmem:[%s16144_s0 + $0x30] sm:$0xff]  ;;  %s13369_s14 = smov 111   ;;  %s13370_s15 = smov 109  }
   0x6   :  { %v13474_v15 = vpack.c.bf16 %v35_v13, %v35_v13  ;;  %v13476_v16 = vpack.c.bf16 %v34_v14, %v34_v14  ;;  %s13371_s16 = smov 101   ;;  %s13372_s17 = smov 100   ;;  %vm70_vm0 = vcmask 900096   ;;  %vm82_vm1 = vcmask 1043456   ;;  %v12414_v26 = vld [vmem:[%s16145_s1 + $0x4] sm:$0xf] }
   0x7   :  { %s13373_s18 = smov 99   ;;  %s13374_s19 = smov 91   ;;  %vm78_vm2 = vcmask 64512   ;;  %v13376_v35 = vmov 0.0   ;;  %vm283_vm3 = vcmask 908288   ;;  %vm13378_vm4 = vmmov 0  }
   0x8   :  { %60 = vrot.lane.b32.xlu1 %v13442_v6, %s13367_s29  ;;  %56 = vrot.lane.b32.xlu0 %v13444_v7, %s13367_s29  ;;  %s13375_s20 = smov 90   ;;  %s13377_s23 = smov 89   ;;  %v27_v48 = vld [vmem:[%s16145_s1] sm:$0xf]  ;;  %vm496_vm5 = vcmask 891904   ;;  %vm716_vm6 = vcmask 826368  }
   0x9   :  { %s13379_s26 = smov 11   ;;  %v12429_v8 = vld [vmem:[%s16145_s1 + $0x8] sm:$0xf]  ;;  %s13380_s30 = smov 10   ;;  %vm936_vm7 = vcmask 818176   ;;  %vm1156_vm8 = vcmask 809984  }
   0xa   :  { %s13381_s9 = smov 9   ;;  %s13382_s12 = smov 1   ;;  %vm1376_vm9 = vcmask 744448   ;;  %vm1596_vm10 = vcmask 736256   ;;  %vm1816_vm11 = vcmask 728064   ;;  %vm2036_vm12 = vcmask 89088  }
   0xb   :  { %vm2256_vm13 = vcmask 80896   ;;  %vm2476_vm14 = vcmask 72704   ;;  %vm2696_vm15 = vcmask 7168  }
   0xc   :  { %64 = vrot.lane.b32.xlu1 %v13460_v11, %s13367_s29  ;;  %62 = vrot.lane.b32.xlu0 %v13462_v12, %s13367_s29 }
  0x10   :  { %68 = vrot.lane.b32.xlu1 %v13474_v15, %s13367_s29  ;;  %66 = vrot.lane.b32.xlu0 %v13476_v16, %s13367_s29 }
  0x14   :  { %269 = vrot.lane.b32.xlu1 %v13444_v7, %s13369_s14  ;;  %267 = vrot.lane.b32.xlu0 %v13433_v4, %s13369_s14 }
  0x18   :  { %273 = vrot.lane.b32.xlu1 %v13442_v6, %s13369_s14  ;;  %271 = vrot.lane.b32.xlu0 %v13431_v3, %s13369_s14 }
  0x1c   :  { %277 = vrot.lane.b32.xlu1 %v13460_v11, %s13369_s14  ;;  %275 = vrot.lane.b32.xlu0 %v13462_v12, %s13369_s14 }
  0x20   :  { %281 = vrot.lane.b32.xlu1 %v13474_v15, %s13369_s14  ;;  %279 = vrot.lane.b32.xlu0 %v13476_v16, %s13369_s14 }
  0x24   :  { %482 = vrot.lane.b32.xlu1 %v13444_v7, %s13370_s15  ;;  %480 = vrot.lane.b32.xlu0 %v13433_v4, %s13370_s15 }
  0x28   :  { %486 = vrot.lane.b32.xlu1 %v13442_v6, %s13370_s15  ;;  %484 = vrot.lane.b32.xlu0 %v13431_v3, %s13370_s15 }
  0x2c   :  { %490 = vrot.lane.b32.xlu1 %v13460_v11, %s13370_s15  ;;  %488 = vrot.lane.b32.xlu0 %v13462_v12, %s13370_s15 }
  0x30   :  { %494 = vrot.lane.b32.xlu1 %v13474_v15, %s13370_s15  ;;  %492 = vrot.lane.b32.xlu0 %v13476_v16, %s13370_s15 }
  0x34   :  { %702 = vrot.lane.b32.xlu1 %v13444_v7, %s13371_s16  ;;  %700 = vrot.lane.b32.xlu0 %v13433_v4, %s13371_s16 }
  0x38   :  { %706 = vrot.lane.b32.xlu1 %v13442_v6, %s13371_s16  ;;  %704 = vrot.lane.b32.xlu0 %v13431_v3, %s13371_s16 }
  0x3c   :  { %710 = vrot.lane.b32.xlu1 %v13460_v11, %s13371_s16  ;;  %708 = vrot.lane.b32.xlu0 %v13462_v12, %s13371_s16 }
  0x40   :  { %714 = vrot.lane.b32.xlu1 %v13474_v15, %s13371_s16  ;;  %712 = vrot.lane.b32.xlu0 %v13476_v16, %s13371_s16 }
  0x44   :  { %922 = vrot.lane.b32.xlu1 %v13444_v7, %s13372_s17  ;;  %920 = vrot.lane.b32.xlu0 %v13433_v4, %s13372_s17 }
  0x48   :  { %926 = vrot.lane.b32.xlu1 %v13442_v6, %s13372_s17  ;;  %924 = vrot.lane.b32.xlu0 %v13431_v3, %s13372_s17 }
  0x4c   :  { %930 = vrot.lane.b32.xlu1 %v13460_v11, %s13372_s17  ;;  %928 = vrot.lane.b32.xlu0 %v13462_v12, %s13372_s17 }
  0x50   :  { %934 = vrot.lane.b32.xlu1 %v13474_v15, %s13372_s17  ;;  %932 = vrot.lane.b32.xlu0 %v13476_v16, %s13372_s17 }
  0x54   :  { %1142 = vrot.lane.b32.xlu1 %v13444_v7, %s13373_s18  ;;  %1140 = vrot.lane.b32.xlu0 %v13433_v4, %s13373_s18 }
  0x58   :  { %1146 = vrot.lane.b32.xlu1 %v13442_v6, %s13373_s18  ;;  %1144 = vrot.lane.b32.xlu0 %v13431_v3, %s13373_s18 }
  0x5c   :  { %1150 = vrot.lane.b32.xlu1 %v13460_v11, %s13373_s18  ;;  %1148 = vrot.lane.b32.xlu0 %v13462_v12, %s13373_s18 }
  0x60   :  { %1154 = vrot.lane.b32.xlu1 %v13474_v15, %s13373_s18  ;;  %1152 = vrot.lane.b32.xlu0 %v13476_v16, %s13373_s18 }
  0x64   :  { %1362 = vrot.lane.b32.xlu1 %v13444_v7, %s13374_s19  ;;  %1360 = vrot.lane.b32.xlu0 %v13433_v4, %s13374_s19 }
  0x68   :  { %1366 = vrot.lane.b32.xlu1 %v13442_v6, %s13374_s19  ;;  %1364 = vrot.lane.b32.xlu0 %v13431_v3, %s13374_s19 }
  0x6c   :  { %1370 = vrot.lane.b32.xlu1 %v13460_v11, %s13374_s19  ;;  %1368 = vrot.lane.b32.xlu0 %v13462_v12, %s13374_s19 }
  0x70   :  { %1374 = vrot.lane.b32.xlu1 %v13474_v15, %s13374_s19  ;;  %1372 = vrot.lane.b32.xlu0 %v13476_v16, %s13374_s19 }
  0x74   :  { %1582 = vrot.lane.b32.xlu1 %v13444_v7, %s13375_s20  ;;  %1580 = vrot.lane.b32.xlu0 %v13433_v4, %s13375_s20 }
  0x76   :  { %v59_v17 = vpop.permute.xlu1 %58  ;;  %v55_v18 = vpop.permute.xlu0 %54 }
  0x78   :  { %1586 = vrot.lane.b32.xlu1 %v13442_v6, %s13375_s20  ;;  %1584 = vrot.lane.b32.xlu0 %v13431_v3, %s13375_s20 }
  0x7a   :  { %v61_v19 = vpop.permute.xlu1 %60  ;;  %v57_v20 = vpop.permute.xlu0 %56 }
  0x7b   :  { %v72_v21 = vsel %vm70_vm0, %v57_v20, %v59_v17  ;;  %v71_v22 = vsel %vm70_vm0, %v55_v18, %v57_v20  ;;  %v73_v27 = vsel %vm70_vm0, %v59_v17, %v61_v19 }
  0x7c   :  { %1590 = vrot.lane.b32.xlu1 %v13460_v11, %s13375_s20  ;;  %1588 = vrot.lane.b32.xlu0 %v13462_v12, %s13375_s20  ;;  %v84_v23 = vsel %vm82_vm1, %v71_v22, 0  ;;  %v90_v29 = vsel %vm82_vm1, %v73_v27, 0 }
  0x7d   :  { %12415 = vmatprep.subr.msk.bf16.mxu0 %vm82_vm1, %v72_v21 }
  0x7e   :  { %105 = vmatpush1.bf16.msra.mxu0 %v84_v23  ;;  %v65_v24 = vpop.permute.xlu1 %64  ;;  %v63_v25 = vpop.permute.xlu0 %62 }
  0x7f   :  { %v74_v28 = vsel %vm70_vm0, %v61_v19, %v63_v25  ;;  %v75_v30 = vsel %vm70_vm0, %v63_v25, %v65_v24 }
  0x80   :  { %1594 = vrot.lane.b32.xlu1 %v13474_v15, %s13375_s20  ;;  %1592 = vrot.lane.b32.xlu0 %v13476_v16, %s13375_s20  ;;  %v96_v37 = vsel %vm82_vm1, %v75_v30, 0 }
  0x81   :  { %12416 = vmatmul.mubr.msk.bf16.vlgmr.msra.gmra.mrb[0].mxu0 %vm78_vm2, %v12414_v26  ;;  %12417 = vmatprep.subr.msk.bf16.mxu1 %vm82_vm1, %v74_v28 }
  0x82   :  { %146 = vmatpush1.bf16.msra.mxu1 %v90_v29  ;;  %v69_v31 = vpop.permute.xlu1 %68  ;;  %v67_v32 = vpop.permute.xlu0 %66  ;;  %218 = vmatprep.mubr.bf16.mxu0 %v13368_v10 }
  0x83   :  { %v77_v33 = vsel %vm70_vm0, %v67_v32, %v69_v31  ;;  %v76_v34 = vsel %vm70_vm0, %v65_v24, %v67_v32  ;;  %12985 = vmatprep.subr.bf16.mxu1 %v13376_v35 }
  0x84   :  { %1802 = vrot.lane.b32.xlu1 %v13444_v7, %s13377_s23  ;;  %1800 = vrot.lane.b32.xlu0 %v13433_v4, %s13377_s23  ;;  %v102_v36 = vsel %vm82_vm1, %v77_v33, 0  ;;  %v12437_v33 = vld [vmem:[%s16145_s1 + $0xc] sm:$0xf] }
  0x85   :  { %12418 = vmatmul.mubr.msk.bf16.vlgmr.msra.gmra.mrb[0].mxu1 %vm78_vm2, %v12414_v26  ;;  %12419 = vmatprep.subr.msk.bf16.mxu0 %vm82_vm1, %v76_v34 }
  0x86   :  { %187 = vmatpush1.bf16.msra.mxu0 %v96_v37  ;;  %12986 = vmatpush3.bf16.msra.mxu1 %v102_v36  ;;  %v270_v38 = vpop.permute.xlu1 %269  ;;  %v268_v39 = vpop.permute.xlu0 %267 }
  0x87   :  { %12987 = vmatprep.mubr.msk.bf16.mxu1 %vm13378_vm4, %v13376_v35  ;;  %v284_v40 = vsel %vm283_vm3, %v268_v39, %v270_v38 }
  0x88   :  { %1806 = vrot.lane.b32.xlu1 %v13442_v6, %s13377_s23  ;;  %1804 = vrot.lane.b32.xlu0 %v13431_v3, %s13377_s23  ;;  %v295_v44 = vsel %vm82_vm1, %v284_v40, 0 }
  0x89   :  { %12420 = vmatmul.mubr.msk.bf16.vlgmr.msra.gmra.mrb[4].mxu0 %vm78_vm2, %v12414_v26 }
  0x8a   :  { %v274_v41 = vpop.permute.xlu1 %273  ;;  %v272_v42 = vpop.permute.xlu0 %271  ;;  %347 = vmatprep.mubr.bf16.mxu0 %v13368_v10 }
  0x8b   :  { %v285_v43 = vsel %vm283_vm3, %v270_v38, %v272_v42  ;;  %v286_v45 = vsel %vm283_vm3, %v272_v42, %v274_v41 }
  0x8c   :  { %1810 = vrot.lane.b32.xlu1 %v13460_v11, %s13377_s23  ;;  %1808 = vrot.lane.b32.xlu0 %v13462_v12, %s13377_s23  ;;  %v301_v50 = vsel %vm82_vm1, %v286_v45, 0 }
  0x8d   :  { %12988 = vmatmul.mubr.msk.bf16.vlgmr.msra.gmra.mrb[4].mxu1 %vm78_vm2, %v12414_v26  ;;  %12422 = vmatprep.subr.msk.bf16.mxu0 %vm82_vm1, %v285_v43 }
  0x8e   :  { %316 = vmatpush1.bf16.msra.mxu0 %v295_v44  ;;  %v278_v46 = vpop.permute.xlu1 %277  ;;  %v276_v47 = vpop.permute.xlu0 %275  ;;  %388 = vmatprep.mubr.bf16.mxu1 %v13368_v10 }
  0x8f   :  { %v287_v49 = vsel %vm283_vm3, %v274_v41, %v276_v47  ;;  %v288_v51 = vsel %vm283_vm3, %v276_v47, %v278_v46 }
  0x90   :  { %1814 = vrot.lane.b32.xlu1 %v13474_v15, %s13377_s23  ;;  %1812 = vrot.lane.b32.xlu0 %v13476_v16, %s13377_s23  ;;  %v307_v57 = vsel %vm82_vm1, %v288_v51, 0 }
  0x91   :  { %12423 = vmatmul.mubr.msk.bf16.vlgmr.msra.gmra.mrb[8].mxu0 %vm78_vm2, %v27_v48  ;;  %12424 = vmatprep.subr.msk.bf16.mxu1 %vm82_vm1, %v287_v49 }
  0x92   :  { %357 = vmatpush1.bf16.msra.mxu1 %v301_v50  ;;  %v282_v52 = vpop.permute.xlu1 %281  ;;  %v280_v53 = vpop.permute.xlu0 %279  ;;  %429 = vmatprep.mubr.bf16.mxu0 %v13368_v10 }
  0x93   :  { %v290_v54 = vsel %vm283_vm3, %v280_v53, %v282_v52  ;;  %v289_v55 = vsel %vm283_vm3, %v278_v46, %v280_v53  ;;  %12991 = vmatprep.subr.bf16.mxu1 %v13376_v35 }
  0x94   :  { %2022 = vrot.lane.b32.xlu1 %v13444_v7, %s13379_s26  ;;  %2020 = vrot.lane.b32.xlu0 %v13433_v4, %s13379_s26  ;;  %v313_v56 = vsel %vm82_vm1, %v290_v54, 0  ;;  %v12445_v54 = vld [vmem:[%s16145_s1 + $0x10] sm:$0xf] }
  0x95   :  { %12425 = vmatmul.mubr.msk.bf16.vlgmr.msra.gmra.mrb[8].mxu1 %vm78_vm2, %v27_v48  ;;  %12426 = vmatprep.subr.msk.bf16.mxu0 %vm82_vm1, %v289_v55 }
  0x96   :  { %398 = vmatpush1.bf16.msra.mxu0 %v307_v57  ;;  %12992 = vmatpush3.bf16.msra.mxu1 %v313_v56  ;;  %v483_v58 = vpop.permute.xlu1 %482  ;;  %v481_v59 = vpop.permute.xlu0 %480 }
  0x97   :  { %12993 = vmatprep.mubr.msk.bf16.mxu1 %vm13378_vm4, %v13376_v35  ;;  %v497_v60 = vsel %vm496_vm5, %v481_v59, %v483_v58 }
  0x98   :  { %2026 = vrot.lane.b32.xlu1 %v13442_v6, %s13379_s26  ;;  %2024 = vrot.lane.b32.xlu0 %v13431_v3, %s13379_s26  ;;  %v508_v0 = vsel %vm82_vm1, %v497_v60, 0 }
  0x99   :  { %12427 = vmatmul.mubr.msk.bf16.vlgmr.msra.gmra.mrb[12].mxu0 %vm78_vm2, %v27_v48 }
  0x9a   :  { %v487_v61 = vpop.permute.xlu1 %486  ;;  %v485_v62 = vpop.permute.xlu0 %484  ;;  %560 = vmatprep.mubr.bf16.mxu0 %v13368_v10 }
  0x9b   :  { %v498_v63 = vsel %vm496_vm5, %v483_v58, %v485_v62  ;;  %v499_v1 = vsel %vm496_vm5, %v485_v62, %v487_v61 }
  0x9c   :  { %2030 = vrot.lane.b32.xlu1 %v13460_v11, %s13379_s26  ;;  %2028 = vrot.lane.b32.xlu0 %v13462_v12, %s13379_s26  ;;  %v514_v13 = vsel %vm82_vm1, %v499_v1, 0 }
  0x9d   :  { %12994 = vmatmul.mubr.msk.bf16.vlgmr.msra.gmra.mrb[12].mxu1 %vm78_vm2, %v27_v48  ;;  %12430 = vmatprep.subr.msk.bf16.mxu0 %vm82_vm1, %v498_v63 }
  0x9e   :  { %529 = vmatpush1.bf16.msra.mxu0 %v508_v0  ;;  %v491_v2 = vpop.permute.xlu1 %490  ;;  %v489_v5 = vpop.permute.xlu0 %488  ;;  %601 = vmatprep.mubr.bf16.mxu1 %v13368_v10 }
  0x9f   :  { %v500_v9 = vsel %vm496_vm5, %v487_v61, %v489_v5  ;;  %v501_v14 = vsel %vm496_vm5, %v489_v5, %v491_v2 }
  0xa0   :  { %2034 = vrot.lane.b32.xlu1 %v13474_v15, %s13379_s26  ;;  %2032 = vrot.lane.b32.xlu0 %v13476_v16, %s13379_s26  ;;  %v520_v22 = vsel %vm82_vm1, %v501_v14, 0 }
  0xa1   :  { %12431 = vmatmul.mubr.msk.bf16.vlgmr.msra.gmra.mrb[16].mxu0 %vm78_vm2, %v12429_v8  ;;  %12432 = vmatprep.subr.msk.bf16.mxu1 %vm82_vm1, %v500_v9 }
  0xa2   :  { %570 = vmatpush1.bf16.msra.mxu1 %v514_v13  ;;  %v495_v17 = vpop.permute.xlu1 %494  ;;  %v493_v18 = vpop.permute.xlu0 %492  ;;  %642 = vmatprep.mubr.bf16.mxu0 %v13368_v10 }
  0xa3   :  { %v503_v19 = vsel %vm496_vm5, %v493_v18, %v495_v17  ;;  %v502_v20 = vsel %vm496_vm5, %v491_v2, %v493_v18  ;;  %12997 = vmatprep.subr.bf16.mxu1 %v13376_v35  ;;  %v12453_v18 = vld [vmem:[%s16145_s1 + $0x14] sm:$0xf] }
  0xa4   :  { %2242 = vrot.lane.b32.xlu1 %v13444_v7, %s13380_s30  ;;  %2240 = vrot.lane.b32.xlu0 %v13433_v4, %s13380_s30  ;;  %v526_v21 = vsel %vm82_vm1, %v503_v19, 0 }
  0xa5   :  { %12433 = vmatmul.mubr.msk.bf16.vlgmr.msra.gmra.mrb[16].mxu1 %vm78_vm2, %v12429_v8  ;;  %12434 = vmatprep.subr.msk.bf16.mxu0 %vm82_vm1, %v502_v20 }
  0xa6   :  { %611 = vmatpush1.bf16.msra.mxu0 %v520_v22  ;;  %12998 = vmatpush3.bf16.msra.mxu1 %v526_v21  ;;  %v703_v23 = vpop.permute.xlu1 %702  ;;  %v701_v24 = vpop.permute.xlu0 %700 }
  0xa7   :  { %12999 = vmatprep.mubr.msk.bf16.mxu1 %vm13378_vm4, %v13376_v35  ;;  %v717_v25 = vsel %vm716_vm6, %v701_v24, %v703_v23 }
  0xa8   :  { %2246 = vrot.lane.b32.xlu1 %v13442_v6, %s13380_s30  ;;  %2244 = vrot.lane.b32.xlu0 %v13431_v3, %s13380_s30  ;;  %v728_v29 = vsel %vm82_vm1, %v717_v25, 0 }
  0xa9   :  { %12435 = vmatmul.mubr.msk.bf16.vlgmr.msra.gmra.mrb[20].mxu0 %vm78_vm2, %v12429_v8 }
  0xaa   :  { %v707_v26 = vpop.permute.xlu1 %706  ;;  %v705_v27 = vpop.permute.xlu0 %704  ;;  %780 = vmatprep.mubr.bf16.mxu0 %v13368_v10 }
  0xab   :  { %v718_v28 = vsel %vm716_vm6, %v703_v23, %v705_v27  ;;  %v719_v30 = vsel %vm716_vm6, %v705_v27, %v707_v26 }
  0xac   :  { %2250 = vrot.lane.b32.xlu1 %v13460_v11, %s13380_s30  ;;  %2248 = vrot.lane.b32.xlu0 %v13462_v12, %s13380_s30  ;;  %v734_v36 = vsel %vm82_vm1, %v719_v30, 0 }
  0xad   :  { %13000 = vmatmul.mubr.msk.bf16.vlgmr.msra.gmra.mrb[20].mxu1 %vm78_vm2, %v12429_v8  ;;  %12438 = vmatprep.subr.msk.bf16.mxu0 %vm82_vm1, %v718_v28 }
  0xae   :  { %749 = vmatpush1.bf16.msra.mxu0 %v728_v29  ;;  %v711_v31 = vpop.permute.xlu1 %710  ;;  %v709_v32 = vpop.permute.xlu0 %708  ;;  %821 = vmatprep.mubr.bf16.mxu1 %v13368_v10 }
  0xaf   :  { %v720_v34 = vsel %vm716_vm6, %v707_v26, %v709_v32  ;;  %v721_v37 = vsel %vm716_vm6, %v709_v32, %v711_v31 }
  0xb0   :  { %2254 = vrot.lane.b32.xlu1 %v13474_v15, %s13380_s30  ;;  %2252 = vrot.lane.b32.xlu0 %v13476_v16, %s13380_s30  ;;  %v740_v43 = vsel %vm82_vm1, %v721_v37, 0 }
  0xb1   :  { %12439 = vmatmul.mubr.msk.bf16.vlgmr.msra.gmra.mrb[24].mxu0 %vm78_vm2, %v12437_v33  ;;  %12440 = vmatprep.subr.msk.bf16.mxu1 %vm82_vm1, %v720_v34 }
  0xb2   :  { %790 = vmatpush1.bf16.msra.mxu1 %v734_v36  ;;  %v715_v38 = vpop.permute.xlu1 %714  ;;  %v713_v39 = vpop.permute.xlu0 %712  ;;  %862 = vmatprep.mubr.bf16.mxu0 %v13368_v10 }
  0xb3   :  { %v723_v40 = vsel %vm716_vm6, %v713_v39, %v715_v38  ;;  %v722_v41 = vsel %vm716_vm6, %v711_v31, %v713_v39  ;;  %13003 = vmatprep.subr.bf16.mxu1 %v13376_v35  ;;  %v12461_v39 = vld [vmem:[%s16145_s1 + $0x18] sm:$0xf] }
  0xb4   :  { %2462 = vrot.lane.b32.xlu1 %v13444_v7, %s13381_s9  ;;  %2460 = vrot.lane.b32.xlu0 %v13433_v4, %s13381_s9  ;;  %v746_v42 = vsel %vm82_vm1, %v723_v40, 0 }
  0xb5   :  { %12441 = vmatmul.mubr.msk.bf16.vlgmr.msra.gmra.mrb[24].mxu1 %vm78_vm2, %v12437_v33  ;;  %12442 = vmatprep.subr.msk.bf16.mxu0 %vm82_vm1, %v722_v41 }
  0xb6   :  { %831 = vmatpush1.bf16.msra.mxu0 %v740_v43  ;;  %13004 = vmatpush3.bf16.msra.mxu1 %v746_v42  ;;  %v923_v44 = vpop.permute.xlu1 %922  ;;  %v921_v45 = vpop.permute.xlu0 %920 }
  0xb7   :  { %13005 = vmatprep.mubr.msk.bf16.mxu1 %vm13378_vm4, %v13376_v35  ;;  %v937_v46 = vsel %vm936_vm7, %v921_v45, %v923_v44 }
  0xb8   :  { %2466 = vrot.lane.b32.xlu1 %v13442_v6, %s13381_s9  ;;  %2464 = vrot.lane.b32.xlu0 %v13431_v3, %s13381_s9  ;;  %v948_v50 = vsel %vm82_vm1, %v937_v46, 0 }
  0xb9   :  { %12443 = vmatmul.mubr.msk.bf16.vlgmr.msra.gmra.mrb[28].mxu0 %vm78_vm2, %v12437_v33 }
  0xba   :  { %v927_v47 = vpop.permute.xlu1 %926  ;;  %v925_v48 = vpop.permute.xlu0 %924  ;;  %1000 = vmatprep.mubr.bf16.mxu0 %v13368_v10 }
  0xbb   :  { %v938_v49 = vsel %vm936_vm7, %v923_v44, %v925_v48  ;;  %v939_v51 = vsel %vm936_vm7, %v925_v48, %v927_v47 }
  0xbc   :  { %2470 = vrot.lane.b32.xlu1 %v13460_v11, %s13381_s9  ;;  %2468 = vrot.lane.b32.xlu0 %v13462_v12, %s13381_s9  ;;  %v954_v56 = vsel %vm82_vm1, %v939_v51, 0 }
  0xbd   :  { %13006 = vmatmul.mubr.msk.bf16.vlgmr.msra.gmra.mrb[28].mxu1 %vm78_vm2, %v12437_v33  ;;  %12446 = vmatprep.subr.msk.bf16.mxu0 %vm82_vm1, %v938_v49 }
  0xbe   :  { %969 = vmatpush1.bf16.msra.mxu0 %v948_v50  ;;  %v931_v52 = vpop.permute.xlu1 %930  ;;  %v929_v53 = vpop.permute.xlu0 %928  ;;  %1041 = vmatprep.mubr.bf16.mxu1 %v13368_v10 }
  0xbf   :  { %v940_v55 = vsel %vm936_vm7, %v927_v47, %v929_v53  ;;  %v941_v57 = vsel %vm936_vm7, %v929_v53, %v931_v52 }
  0xc0   :  { %2474 = vrot.lane.b32.xlu1 %v13474_v15, %s13381_s9  ;;  %2472 = vrot.lane.b32.xlu0 %v13476_v16, %s13381_s9  ;;  %v960_v63 = vsel %vm82_vm1, %v941_v57, 0 }
  0xc1   :  { %12447 = vmatmul.mubr.msk.bf16.vlgmr.msra.gmra.mrb[32].mxu0 %vm78_vm2, %v12445_v54  ;;  %12448 = vmatprep.subr.msk.bf16.mxu1 %vm82_vm1, %v940_v55 }
  0xc2   :  { %1010 = vmatpush1.bf16.msra.mxu1 %v954_v56  ;;  %v935_v58 = vpop.permute.xlu1 %934  ;;  %v933_v59 = vpop.permute.xlu0 %932  ;;  %1082 = vmatprep.mubr.bf16.mxu0 %v13368_v10 }
  0xc3   :  { %v943_v60 = vsel %vm936_vm7, %v933_v59, %v935_v58  ;;  %v942_v61 = vsel %vm936_vm7, %v931_v52, %v933_v59  ;;  %13009 = vmatprep.subr.bf16.mxu1 %v13376_v35  ;;  %v12469_v59 = vld [vmem:[%s16145_s1 + $0x1c] sm:$0xf] }
  0xc4   :  { %2682 = vrot.lane.b32.xlu1 %v13444_v7, %s13382_s12  ;;  %2680 = vrot.lane.b32.xlu0 %v13433_v4, %s13382_s12  ;;  %v966_v62 = vsel %vm82_vm1, %v943_v60, 0 }
  0xc5   :  { %12449 = vmatmul.mubr.msk.bf16.vlgmr.msra.gmra.mrb[32].mxu1 %vm78_vm2, %v12445_v54  ;;  %12450 = vmatprep.subr.msk.bf16.mxu0 %vm82_vm1, %v942_v61 }
  0xc6   :  { %1051 = vmatpush1.bf16.msra.mxu0 %v960_v63  ;;  %13010 = vmatpush3.bf16.msra.mxu1 %v966_v62  ;;  %v1143_v0 = vpop.permute.xlu1 %1142  ;;  %v1141_v1 = vpop.permute.xlu0 %1140 }
  0xc7   :  { %13011 = vmatprep.mubr.msk.bf16.mxu1 %vm13378_vm4, %v13376_v35  ;;  %v1157_v4 = vsel %vm1156_vm8, %v1141_v1, %v1143_v0 }
  0xc8   :  { %2686 = vrot.lane.b32.xlu1 %v13442_v6, %s13382_s12  ;;  %2684 = vrot.lane.b32.xlu0 %v13431_v3, %s13382_s12  ;;  %v1168_v9 = vsel %vm82_vm1, %v1157_v4, 0 }
  0xc9   :  { %12451 = vmatmul.mubr.msk.bf16.vlgmr.msra.gmra.mrb[36].mxu0 %vm78_vm2, %v12445_v54 }
  0xca   :  { %v1147_v2 = vpop.permute.xlu1 %1146  ;;  %v1145_v5 = vpop.permute.xlu0 %1144  ;;  %1220 = vmatprep.mubr.bf16.mxu0 %v13368_v10 }
  0xcb   :  { %v1158_v8 = vsel %vm1156_vm8, %v1143_v0, %v1145_v5  ;;  %v1159_v13 = vsel %vm1156_vm8, %v1145_v5, %v1147_v2 }
  0xcc   :  { %2690 = vrot.lane.b32.xlu1 %v13460_v11, %s13382_s12  ;;  %2688 = vrot.lane.b32.xlu0 %v13462_v12, %s13382_s12  ;;  %v1174_v21 = vsel %vm82_vm1, %v1159_v13, 0 }
  0xcd   :  { %13012 = vmatmul.mubr.msk.bf16.vlgmr.msra.gmra.mrb[36].mxu1 %vm78_vm2, %v12445_v54  ;;  %12454 = vmatprep.subr.msk.bf16.mxu0 %vm82_vm1, %v1158_v8 }
  0xce   :  { %1189 = vmatpush1.bf16.msra.mxu0 %v1168_v9  ;;  %v1151_v14 = vpop.permute.xlu1 %1150  ;;  %v1149_v17 = vpop.permute.xlu0 %1148  ;;  %1261 = vmatprep.mubr.bf16.mxu1 %v13368_v10 }
  0xcf   :  { %v1160_v19 = vsel %vm1156_vm8, %v1147_v2, %v1149_v17  ;;  %v1161_v20 = vsel %vm1156_vm8, %v1149_v17, %v1151_v14 }
  0xd0   :  { %2694 = vrot.lane.b32.xlu1 %v13474_v15, %s13382_s12  ;;  %2692 = vrot.lane.b32.xlu0 %v13476_v16, %s13382_s12  ;;  %v1180_v26 = vsel %vm82_vm1, %v1161_v20, 0 }
  0xd1   :  { %12455 = vmatmul.mubr.msk.bf16.vlgmr.msra.gmra.mrb[40].mxu0 %vm78_vm2, %v12453_v18  ;;  %12456 = vmatprep.subr.msk.bf16.mxu1 %vm82_vm1, %v1160_v19 }
  0xd2   :  { %1230 = vmatpush1.bf16.msra.mxu1 %v1174_v21  ;;  %v1155_v22 = vpop.permute.xlu1 %1154  ;;  %v1153_v23 = vpop.permute.xlu0 %1152  ;;  %1302 = vmatprep.mubr.bf16.mxu0 %v13368_v10 }
  0xd3   :  { %v1163_v24 = vsel %vm1156_vm8, %v1153_v23, %v1155_v22  ;;  %v1162_v25 = vsel %vm1156_vm8, %v1151_v14, %v1153_v23  ;;  %13015 = vmatprep.subr.bf16.mxu1 %v13376_v35  ;;  %v12477_v23 = vld [vmem:[%s16145_s1 + $0x20] sm:$0xf] }
  0xd4   :  { %12458 = vmatprep.subr.msk.bf16.mxu0 %vm82_vm1, %v1162_v25  ;;  %v1186_v27 = vsel %vm82_vm1, %v1163_v24, 0 }
  0xd5   :  { %12457 = vmatmul.mubr.msk.bf16.vlgmr.msra.gmra.mrb[40].mxu1 %vm78_vm2, %v12453_v18  ;;  %1271 = vmatpush1.bf16.msra.mxu0 %v1180_v26 }
  0xd6   :  { %13016 = vmatpush3.bf16.msra.mxu1 %v1186_v27  ;;  %v1363_v28 = vpop.permute.xlu1 %1362  ;;  %v1361_v29 = vpop.permute.xlu0 %1360  ;;  %13017 = vmatprep.mubr.msk.bf16.mxu1 %vm13378_vm4, %v13376_v35 }
  0xd7   :  { %v1377_v30 = vsel %vm1376_vm9, %v1361_v29, %v1363_v28 }
  0xd8   :  { %v1388_v34 = vsel %vm82_vm1, %v1377_v30, 0 }
  0xd9   :  { %12459 = vmatmul.mubr.msk.bf16.vlgmr.msra.gmra.mrb[44].mxu0 %vm78_vm2, %v12453_v18 }
  0xda   :  { %v1367_v31 = vpop.permute.xlu1 %1366  ;;  %v1365_v32 = vpop.permute.xlu0 %1364  ;;  %1440 = vmatprep.mubr.bf16.mxu0 %v13368_v10 }
  0xdb   :  { %v1378_v33 = vsel %vm1376_vm9, %v1363_v28, %v1365_v32  ;;  %v1379_v36 = vsel %vm1376_vm9, %v1365_v32, %v1367_v31 }
  0xdc   :  { %12462 = vmatprep.subr.msk.bf16.mxu0 %vm82_vm1, %v1378_v33  ;;  %v1394_v41 = vsel %vm82_vm1, %v1379_v36, 0 }
  0xdd   :  { %13018 = vmatmul.mubr.msk.bf16.vlgmr.msra.gmra.mrb[44].mxu1 %vm78_vm2, %v12453_v18  ;;  %1409 = vmatpush1.bf16.msra.mxu0 %v1388_v34 }
  0xde   :  { %v1371_v37 = vpop.permute.xlu1 %1370  ;;  %v1369_v38 = vpop.permute.xlu0 %1368  ;;  %1481 = vmatprep.mubr.bf16.mxu1 %v13368_v10 }
  0xdf   :  { %v1380_v40 = vsel %vm1376_vm9, %v1367_v31, %v1369_v38  ;;  %v1381_v42 = vsel %vm1376_vm9, %v1369_v38, %v1371_v37 }
  0xe0   :  { %12464 = vmatprep.subr.msk.bf16.mxu1 %vm82_vm1, %v1380_v40  ;;  %v1400_v47 = vsel %vm82_vm1, %v1381_v42, 0 }
  0xe1   :  { %12463 = vmatmul.mubr.msk.bf16.vlgmr.msra.gmra.mrb[48].mxu0 %vm78_vm2, %v12461_v39  ;;  %1450 = vmatpush1.bf16.msra.mxu1 %v1394_v41 }
  0xe2   :  { %v1375_v43 = vpop.permute.xlu1 %1374  ;;  %v1373_v44 = vpop.permute.xlu0 %1372  ;;  %13021 = vmatprep.subr.bf16.mxu1 %v13376_v35  ;;  %1522 = vmatprep.mubr.bf16.mxu0 %v13368_v10 }
  0xe3   :  { %v1383_v45 = vsel %vm1376_vm9, %v1373_v44, %v1375_v43  ;;  %v1382_v46 = vsel %vm1376_vm9, %v1371_v37, %v1373_v44  ;;  %v12485_v44 = vld [vmem:[%s16145_s1 + $0x24] sm:$0xf] }
  0xe4   :  { %12466 = vmatprep.subr.msk.bf16.mxu0 %vm82_vm1, %v1382_v46  ;;  %v1406_v48 = vsel %vm82_vm1, %v1383_v45, 0 }
  0xe5   :  { %12465 = vmatmul.mubr.msk.bf16.vlgmr.msra.gmra.mrb[48].mxu1 %vm78_vm2, %v12461_v39  ;;  %1491 = vmatpush1.bf16.msra.mxu0 %v1400_v47 }
  0xe6   :  { %13022 = vmatpush3.bf16.msra.mxu1 %v1406_v48  ;;  %v1583_v49 = vpop.permute.xlu1 %1582  ;;  %v1581_v50 = vpop.permute.xlu0 %1580  ;;  %13023 = vmatprep.mubr.msk.bf16.mxu1 %vm13378_vm4, %v13376_v35 }
  0xe7   :  { %v1597_v51 = vsel %vm1596_vm10, %v1581_v50, %v1583_v49 }
  0xe8   :  { %v1608_v55 = vsel %vm82_vm1, %v1597_v51, 0 }
  0xe9   :  { %12467 = vmatmul.mubr.msk.bf16.vlgmr.msra.gmra.mrb[52].mxu0 %vm78_vm2, %v12461_v39 }
  0xea   :  { %v1587_v52 = vpop.permute.xlu1 %1586  ;;  %v1585_v53 = vpop.permute.xlu0 %1584  ;;  %1660 = vmatprep.mubr.bf16.mxu0 %v13368_v10 }
  0xeb   :  { %v1598_v54 = vsel %vm1596_vm10, %v1583_v49, %v1585_v53  ;;  %v1599_v56 = vsel %vm1596_vm10, %v1585_v53, %v1587_v52 }
  0xec   :  { %12470 = vmatprep.subr.msk.bf16.mxu0 %vm82_vm1, %v1598_v54  ;;  %v1614_v61 = vsel %vm82_vm1, %v1599_v56, 0 }
  0xed   :  { %13024 = vmatmul.mubr.msk.bf16.vlgmr.msra.gmra.mrb[52].mxu1 %vm78_vm2, %v12461_v39  ;;  %1629 = vmatpush1.bf16.msra.mxu0 %v1608_v55 }
  0xee   :  { %v1591_v57 = vpop.permute.xlu1 %1590  ;;  %v1589_v58 = vpop.permute.xlu0 %1588  ;;  %1701 = vmatprep.mubr.bf16.mxu1 %v13368_v10 }
  0xef   :  { %v1600_v60 = vsel %vm1596_vm10, %v1587_v52, %v1589_v58  ;;  %v1601_v62 = vsel %vm1596_vm10, %v1589_v58, %v1591_v57 }
  0xf0   :  { %12472 = vmatprep.subr.msk.bf16.mxu1 %vm82_vm1, %v1600_v60  ;;  %v1620_v2 = vsel %vm82_vm1, %v1601_v62, 0 }
  0xf1   :  { %12471 = vmatmul.mubr.msk.bf16.vlgmr.msra.gmra.mrb[56].mxu0 %vm78_vm2, %v12469_v59  ;;  %1670 = vmatpush1.bf16.msra.mxu1 %v1614_v61 }
  0xf2   :  { %v1595_v63 = vpop.permute.xlu1 %1594  ;;  %v1593_v0 = vpop.permute.xlu0 %1592  ;;  %13027 = vmatprep.subr.bf16.mxu1 %v13376_v35  ;;  %1742 = vmatprep.mubr.bf16.mxu0 %v13368_v10 }
  0xf3   :  { %v1603_v1 = vsel %vm1596_vm10, %v1593_v0, %v1595_v63  ;;  %v1602_v4 = vsel %vm1596_vm10, %v1591_v57, %v1593_v0  ;;  %v12493_v0 = vld [vmem:[%s16145_s1 + $0x28] sm:$0xf] }
  0xf4   :  { %12474 = vmatprep.subr.msk.bf16.mxu0 %vm82_vm1, %v1602_v4  ;;  %v1626_v5 = vsel %vm82_vm1, %v1603_v1, 0 }
  0xf5   :  { %12473 = vmatmul.mubr.msk.bf16.vlgmr.msra.gmra.mrb[56].mxu1 %vm78_vm2, %v12469_v59  ;;  %1711 = vmatpush1.bf16.msra.mxu0 %v1620_v2 }
  0xf6   :  { %13028 = vmatpush3.bf16.msra.mxu1 %v1626_v5  ;;  %v1803_v8 = vpop.permute.xlu1 %1802  ;;  %v1801_v9 = vpop.permute.xlu0 %1800  ;;  %13029 = vmatprep.mubr.msk.bf16.mxu1 %vm13378_vm4, %v13376_v35 }
  0xf7   :  { %v1817_v13 = vsel %vm1816_vm11, %v1801_v9, %v1803_v8 }
  0xf8   :  { %v1828_v19 = vsel %vm82_vm1, %v1817_v13, 0 }
  0xf9   :  { %12475 = vmatmul.mubr.msk.bf16.vlgmr.msra.gmra.mrb[60].mxu0 %vm78_vm2, %v12469_v59 }
  0xfa   :  { %v1807_v14 = vpop.permute.xlu1 %1806  ;;  %v1805_v17 = vpop.permute.xlu0 %1804  ;;  %1880 = vmatprep.mubr.bf16.mxu0 %v13368_v10 }
  0xfb   :  { %v1818_v18 = vsel %vm1816_vm11, %v1803_v8, %v1805_v17  ;;  %v1819_v20 = vsel %vm1816_vm11, %v1805_v17, %v1807_v14 }
  0xfc   :  { %12478 = vmatprep.subr.msk.bf16.mxu0 %vm82_vm1, %v1818_v18  ;;  %v1834_v25 = vsel %vm82_vm1, %v1819_v20, 0  ;;  %v3094_v20 = vld [vmem:[%s16146_s2] sm:$0xff] }
  0xfd   :  { %13030 = vmatmul.mubr.msk.bf16.vlgmr.msra.gmra.mrb[60].mxu1 %vm78_vm2, %v12469_v59  ;;  %1849 = vmatpush1.bf16.msra.mxu0 %v1828_v19 }
  0xfe   :  { %v1811_v21 = vpop.permute.xlu1 %1810  ;;  %v1809_v22 = vpop.permute.xlu0 %1808  ;;  %1921 = vmatprep.mubr.bf16.mxu1 %v13368_v10  ;;  %3097 = vperm.xlu0 %13341, %v3094_v20  }
  0xff   :  { %v1820_v24 = vsel %vm1816_vm11, %v1807_v14, %v1809_v22  ;;  %v1821_v26 = vsel %vm1816_vm11, %v1809_v22, %v1811_v21 }
 0x100   :  { %12480 = vmatprep.subr.msk.bf16.mxu1 %vm82_vm1, %v1820_v24  ;;  %v1840_v31 = vsel %vm82_vm1, %v1821_v26, 0 }
 0x101   :  { %12479 = vmatmul.mubr.msk.bf16.vlgmr.msra.gmra.mrb[64].mxu0 %vm78_vm2, %v12477_v23  ;;  %1890 = vmatpush1.bf16.msra.mxu1 %v1834_v25 }
 0x102   :  { %v1815_v27 = vpop.permute.xlu1 %1814  ;;  %v1813_v28 = vpop.permute.xlu0 %1812  ;;  %13033 = vmatprep.subr.bf16.mxu1 %v13376_v35  ;;  %1962 = vmatprep.mubr.bf16.mxu0 %v13368_v10 }
 0x103   :  { %v1823_v29 = vsel %vm1816_vm11, %v1813_v28, %v1815_v27  ;;  %v1822_v30 = vsel %vm1816_vm11, %v1811_v21, %v1813_v28 }
 0x104   :  { %12482 = vmatprep.subr.msk.bf16.mxu0 %vm82_vm1, %v1822_v30  ;;  %v1846_v32 = vsel %vm82_vm1, %v1823_v29, 0  ;;  %v12501_v29 = vld [vmem:[%s16145_s1 + $0x2c] sm:$0xf] }
 0x105   :  { %12481 = vmatmul.mubr.msk.bf16.vlgmr.msra.gmra.mrb[64].mxu1 %vm78_vm2, %v12477_v23  ;;  %1931 = vmatpush1.bf16.msra.mxu0 %v1840_v31 }
 0x106   :  { %13034 = vmatpush3.bf16.msra.mxu1 %v1846_v32  ;;  %v2023_v33 = vpop.permute.xlu1 %2022  ;;  %v2021_v34 = vpop.permute.xlu0 %2020  ;;  %13035 = vmatprep.mubr.msk.bf16.mxu1 %vm13378_vm4, %v13376_v35 }
 0x107   :  { %v2037_v36 = vsel %vm2036_vm12, %v2021_v34, %v2023_v33 }
 0x108   :  { %v2048_v40 = vsel %vm82_vm1, %v2037_v36, 0 }
 0x109   :  { %12483 = vmatmul.mubr.msk.bf16.vlgmr.msra.gmra.mrb[68].mxu0 %vm78_vm2, %v12477_v23 }
 0x10a   :  { %v2027_v37 = vpop.permute.xlu1 %2026  ;;  %v2025_v38 = vpop.permute.xlu0 %2024  ;;  %2100 = vmatprep.mubr.bf16.mxu0 %v13368_v10 }
 0x10b   :  { %v2038_v39 = vsel %vm2036_vm12, %v2023_v33, %v2025_v38  ;;  %v2039_v41 = vsel %vm2036_vm12, %v2025_v38, %v2027_v37 }
 0x10c   :  { %12486 = vmatprep.subr.msk.bf16.mxu0 %vm82_vm1, %v2038_v39  ;;  %v2054_v46 = vsel %vm82_vm1, %v2039_v41, 0 }
 0x10d   :  { %13036 = vmatmul.mubr.msk.bf16.vlgmr.msra.gmra.mrb[68].mxu1 %vm78_vm2, %v12477_v23  ;;  %2069 = vmatpush1.bf16.msra.mxu0 %v2048_v40 }
 0x10e   :  { %v2031_v42 = vpop.permute.xlu1 %2030  ;;  %v2029_v43 = vpop.permute.xlu0 %2028  ;;  %2141 = vmatprep.mubr.bf16.mxu1 %v13368_v10 }
 0x10f   :  { %v2040_v45 = vsel %vm2036_vm12, %v2027_v37, %v2029_v43  ;;  %v2041_v47 = vsel %vm2036_vm12, %v2029_v43, %v2031_v42 }
 0x110   :  { %12488 = vmatprep.subr.msk.bf16.mxu1 %vm82_vm1, %v2040_v45  ;;  %v2060_v52 = vsel %vm82_vm1, %v2041_v47, 0 }
 0x111   :  { %12487 = vmatmul.mubr.msk.bf16.vlgmr.msra.gmra.mrb[72].mxu0 %vm78_vm2, %v12485_v44  ;;  %2110 = vmatpush1.bf16.msra.mxu1 %v2054_v46 }
 0x112   :  { %v2035_v48 = vpop.permute.xlu1 %2034  ;;  %v2033_v49 = vpop.permute.xlu0 %2032  ;;  %13039 = vmatprep.subr.bf16.mxu1 %v13376_v35  ;;  %2182 = vmatprep.mubr.bf16.mxu0 %v13368_v10 }
 0x113   :  { %v2043_v50 = vsel %vm2036_vm12, %v2033_v49, %v2035_v48  ;;  %v2042_v51 = vsel %vm2036_vm12, %v2031_v42, %v2033_v49 }
 0x114   :  { %12490 = vmatprep.subr.msk.bf16.mxu0 %vm82_vm1, %v2042_v51  ;;  %v2066_v53 = vsel %vm82_vm1, %v2043_v50, 0  ;;  %v12509_v50 = vld [vmem:[%s16145_s1 + $0x30] sm:$0xf] }
 0x115   :  { %12489 = vmatmul.mubr.msk.bf16.vlgmr.msra.gmra.mrb[72].mxu1 %vm78_vm2, %v12485_v44  ;;  %2151 = vmatpush1.bf16.msra.mxu0 %v2060_v52 }
 0x116   :  { %13040 = vmatpush3.bf16.msra.mxu1 %v2066_v53  ;;  %v2243_v54 = vpop.permute.xlu1 %2242  ;;  %v2241_v55 = vpop.permute.xlu0 %2240  ;;  %13041 = vmatprep.mubr.msk.bf16.mxu1 %vm13378_vm4, %v13376_v35 }
 0x117   :  { %v2257_v56 = vsel %vm2256_vm13, %v2241_v55, %v2243_v54 }
 0x118   :  { %v2268_v60 = vsel %vm82_vm1, %v2257_v56, 0 }
 0x119   :  { %12491 = vmatmul.mubr.msk.bf16.vlgmr.msra.gmra.mrb[76].mxu0 %vm78_vm2, %v12485_v44 }
 0x11a   :  { %v2247_v57 = vpop.permute.xlu1 %2246  ;;  %v2245_v58 = vpop.permute.xlu0 %2244  ;;  %2320 = vmatprep.mubr.bf16.mxu0 %v13368_v10 }
 0x11b   :  { %v2258_v59 = vsel %vm2256_vm13, %v2243_v54, %v2245_v58  ;;  %v2259_v61 = vsel %vm2256_vm13, %v2245_v58, %v2247_v57 }
 0x11c   :  { %12494 = vmatprep.subr.msk.bf16.mxu0 %vm82_vm1, %v2258_v59  ;;  %v2274_v4 = vsel %vm82_vm1, %v2259_v61, 0  ;;  %v2910_v61 = vsel %vm82_vm1, %v13442_v6, 0  ;;  %v2922_v6 = vsel %vm82_vm1, %v13474_v15, 0 }
 0x11d   :  { %13042 = vmatmul.mubr.msk.bf16.vlgmr.msra.gmra.mrb[76].mxu1 %vm78_vm2, %v12485_v44  ;;  %2289 = vmatpush1.bf16.msra.mxu0 %v2268_v60  ;;  %v2904_v60 = vsel %vm82_vm1, %v13444_v7, 0  ;;  %v2916_v7 = vsel %vm82_vm1, %v13460_v11, 0 }
 0x11e   :  { %v2251_v62 = vpop.permute.xlu1 %2250  ;;  %v2249_v63 = vpop.permute.xlu0 %2248  ;;  %2361 = vmatprep.mubr.bf16.mxu1 %v13368_v10 }
 0x11f   :  { %v2260_v1 = vsel %vm2256_vm13, %v2247_v57, %v2249_v63  ;;  %v2261_v2 = vsel %vm2256_vm13, %v2249_v63, %v2251_v62 }
 0x120   :  { %12496 = vmatprep.subr.msk.bf16.mxu1 %vm82_vm1, %v2260_v1  ;;  %v2280_v14 = vsel %vm82_vm1, %v2261_v2, 0 }
 0x121   :  { %12495 = vmatmul.mubr.msk.bf16.vlgmr.msra.gmra.mrb[80].mxu0 %vm78_vm2, %v12493_v0  ;;  %2330 = vmatpush1.bf16.msra.mxu1 %v2274_v4 }
 0x122   :  { %v2255_v5 = vpop.permute.xlu1 %2254  ;;  %v2253_v8 = vpop.permute.xlu0 %2252  ;;  %13045 = vmatprep.subr.bf16.mxu1 %v13376_v35  ;;  %2402 = vmatprep.mubr.bf16.mxu0 %v13368_v10 }
 0x123   :  { %v2263_v9 = vsel %vm2256_vm13, %v2253_v8, %v2255_v5  ;;  %v2262_v13 = vsel %vm2256_vm13, %v2251_v62, %v2253_v8 }
 0x124   :  { %12498 = vmatprep.subr.msk.bf16.mxu0 %vm82_vm1, %v2262_v13  ;;  %v2286_v17 = vsel %vm82_vm1, %v2263_v9, 0 }
 0x125   :  { %12497 = vmatmul.mubr.msk.bf16.vlgmr.msra.gmra.mrb[80].mxu1 %vm78_vm2, %v12493_v0  ;;  %2371 = vmatpush1.bf16.msra.mxu0 %v2280_v14 }
 0x126   :  { %13046 = vmatpush3.bf16.msra.mxu1 %v2286_v17  ;;  %v2463_v18 = vpop.permute.xlu1 %2462  ;;  %v2461_v19 = vpop.permute.xlu0 %2460  ;;  %13047 = vmatprep.mubr.msk.bf16.mxu1 %vm13378_vm4, %v13376_v35 }
 0x127   :  { %v2477_v21 = vsel %vm2476_vm14, %v2461_v19, %v2463_v18 }
 0x128   :  { %v2488_v25 = vsel %vm82_vm1, %v2477_v21, 0 }
 0x129   :  { %12499 = vmatmul.mubr.msk.bf16.vlgmr.msra.gmra.mrb[84].mxu0 %vm78_vm2, %v12493_v0 }
 0x12a   :  { %v2467_v22 = vpop.permute.xlu1 %2466  ;;  %v2465_v23 = vpop.permute.xlu0 %2464  ;;  %2540 = vmatprep.mubr.bf16.mxu0 %v13368_v10 }
 0x12b   :  { %v2478_v24 = vsel %vm2476_vm14, %v2463_v18, %v2465_v23  ;;  %v2479_v26 = vsel %vm2476_vm14, %v2465_v23, %v2467_v22 }
 0x12c   :  { %12502 = vmatprep.subr.msk.bf16.mxu0 %vm82_vm1, %v2478_v24  ;;  %v2494_v31 = vsel %vm82_vm1, %v2479_v26, 0 }
 0x12d   :  { %13048 = vmatmul.mubr.msk.bf16.vlgmr.msra.gmra.mrb[84].mxu1 %vm78_vm2, %v12493_v0  ;;  %2509 = vmatpush1.bf16.msra.mxu0 %v2488_v25 }
 0x12e   :  { %v2471_v27 = vpop.permute.xlu1 %2470  ;;  %v2469_v28 = vpop.permute.xlu0 %2468  ;;  %2581 = vmatprep.mubr.bf16.mxu1 %v13368_v10 }
 0x12f   :  { %v2480_v30 = vsel %vm2476_vm14, %v2467_v22, %v2469_v28  ;;  %v2481_v32 = vsel %vm2476_vm14, %v2469_v28, %v2471_v27 }
 0x130   :  { %12504 = vmatprep.subr.msk.bf16.mxu1 %vm82_vm1, %v2480_v30  ;;  %v2500_v38 = vsel %vm82_vm1, %v2481_v32, 0 }
 0x131   :  { %12503 = vmatmul.mubr.msk.bf16.vlgmr.msra.gmra.mrb[88].mxu0 %vm78_vm2, %v12501_v29  ;;  %2550 = vmatpush1.bf16.msra.mxu1 %v2494_v31 }
 0x132   :  { %v2475_v33 = vpop.permute.xlu1 %2474  ;;  %v2473_v34 = vpop.permute.xlu0 %2472  ;;  %13051 = vmatprep.subr.bf16.mxu1 %v13376_v35  ;;  %2622 = vmatprep.mubr.bf16.mxu0 %v13368_v10 }
 0x133   :  { %v2483_v36 = vsel %vm2476_vm14, %v2473_v34, %v2475_v33  ;;  %v2482_v37 = vsel %vm2476_vm14, %v2471_v27, %v2473_v34 }
 0x134   :  { %12506 = vmatprep.subr.msk.bf16.mxu0 %vm82_vm1, %v2482_v37  ;;  %v2506_v39 = vsel %vm82_vm1, %v2483_v36, 0 }
 0x135   :  { %12505 = vmatmul.mubr.msk.bf16.vlgmr.msra.gmra.mrb[88].mxu1 %vm78_vm2, %v12501_v29  ;;  %2591 = vmatpush1.bf16.msra.mxu0 %v2500_v38 }
 0x136   :  { %13052 = vmatpush3.bf16.msra.mxu1 %v2506_v39  ;;  %v2683_v40 = vpop.permute.xlu1 %2682  ;;  %v2681_v41 = vpop.permute.xlu0 %2680  ;;  %13053 = vmatprep.mubr.msk.bf16.mxu1 %vm13378_vm4, %v13376_v35 }
 0x137   :  { %v2697_v42 = vsel %vm2696_vm15, %v2681_v41, %v2683_v40 }
 0x138   :  { %v2708_v46 = vsel %vm82_vm1, %v2697_v42, 0 }
 0x139   :  { %12507 = vmatmul.mubr.msk.bf16.vlgmr.msra.gmra.mrb[92].mxu0 %vm78_vm2, %v12501_v29 }
 0x13a   :  { %v2687_v43 = vpop.permute.xlu1 %2686  ;;  %v2685_v44 = vpop.permute.xlu0 %2684  ;;  %2760 = vmatprep.mubr.bf16.mxu0 %v13368_v10 }
 0x13b   :  { %v2698_v45 = vsel %vm2696_vm15, %v2683_v40, %v2685_v44  ;;  %v2699_v47 = vsel %vm2696_vm15, %v2685_v44, %v2687_v43 }
 0x13c   :  { %12510 = vmatprep.subr.msk.bf16.mxu0 %vm82_vm1, %v2698_v45  ;;  %v2714_v52 = vsel %vm82_vm1, %v2699_v47, 0 }
 0x13d   :  { %13054 = vmatmul.mubr.msk.bf16.vlgmr.msra.gmra.mrb[92].mxu1 %vm78_vm2, %v12501_v29  ;;  %2729 = vmatpush1.bf16.msra.mxu0 %v2708_v46 }
 0x13e   :  { %v2691_v48 = vpop.permute.xlu1 %2690  ;;  %v2689_v49 = vpop.permute.xlu0 %2688  ;;  %2801 = vmatprep.mubr.bf16.mxu1 %v13368_v10 }
 0x13f   :  { %v2700_v51 = vsel %vm2696_vm15, %v2687_v43, %v2689_v49  ;;  %v2701_v53 = vsel %vm2696_vm15, %v2689_v49, %v2691_v48 }
 0x140   :  { %12512 = vmatprep.subr.msk.bf16.mxu1 %vm82_vm1, %v2700_v51  ;;  %v2720_v58 = vsel %vm82_vm1, %v2701_v53, 0 }
 0x141   :  { %12511 = vmatmul.mubr.msk.bf16.vlgmr.msra.gmra.mrb[96].mxu0 %vm78_vm2, %v12509_v50  ;;  %2770 = vmatpush1.bf16.msra.mxu1 %v2714_v52 }
 0x142   :  { %v2695_v54 = vpop.permute.xlu1 %2694  ;;  %v2693_v55 = vpop.permute.xlu0 %2692  ;;  %13057 = vmatprep.subr.bf16.mxu1 %v13376_v35  ;;  %2842 = vmatprep.mubr.bf16.mxu0 %v13368_v10 }
 0x143   :  { %v2703_v56 = vsel %vm2696_vm15, %v2693_v55, %v2695_v54  ;;  %v2702_v57 = vsel %vm2696_vm15, %v2691_v48, %v2693_v55 }
 0x144   :  { %12514 = vmatprep.subr.msk.bf16.mxu0 %vm82_vm1, %v2702_v57  ;;  %v2726_v59 = vsel %vm82_vm1, %v2703_v56, 0 }
 0x145   :  { %12513 = vmatmul.mubr.msk.bf16.vlgmr.msra.gmra.mrb[96].mxu1 %vm78_vm2, %v12509_v50  ;;  %2811 = vmatpush1.bf16.msra.mxu0 %v2720_v58 }
 0x146   :  { %13058 = vmatpush3.bf16.msra.mxu1 %v2726_v59  ;;  %13059 = vmatprep.mubr.msk.bf16.mxu1 %vm13378_vm4, %v13376_v35 }
 0x147   :  { %12518 = vmatprep.subr.msk.bf16.mxu0 %vm82_vm1, %v13431_v3  ;;  %12520 = vmatprep.subr.msk.bf16.mxu1 %vm82_vm1, %v13462_v12  ;;  %v12517_v3 = vld [vmem:[%s16145_s1 + $0x34] sm:$0xf] }
 0x149   :  { %12515 = vmatmul.mubr.msk.bf16.vlgmr.msra.gmra.mrb[100].mxu0 %vm78_vm2, %v12509_v50 }
 0x14a   :  { %2925 = vmatpush1.bf16.msra.mxu0 %v2904_v60  ;;  %2956 = vmatprep.mubr.bf16.mxu0 %v13368_v10 }
 0x14b   :  { %12522 = vmatprep.subr.msk.bf16.mxu0 %vm82_vm1, %v13476_v16 }
 0x14d   :  { %13060 = vmatmul.mubr.msk.bf16.vlgmr.msra.gmra.mrb[100].mxu1 %vm78_vm2, %v12509_v50 }
 0x14e   :  { %2966 = vmatpush1.bf16.msra.mxu1 %v2910_v61  ;;  %2997 = vmatprep.mubr.bf16.mxu1 %v13368_v10 }
 0x14f   :  { %13063 = vmatprep.subr.bf16.mxu1 %v13376_v35 }
 0x151   :  { %12519 = vmatmul.mubr.msk.bf16.vlgmr.msra.gmra.mrb[104].mxu0 %vm78_vm2, %v12517_v3 }
 0x152   :  { %3007 = vmatpush1.bf16.msra.mxu0 %v2916_v7  ;;  %3038 = vmatprep.mubr.bf16.mxu0 %v13368_v10 }
 0x154   :  { %v138_v12 = vpop.f32.mrb[0].mxu0 }
 0x155   :  { %v140_v16 = vpop.f32.mrb[1].mxu0  ;;  %12521 = vmatmul.mubr.msk.bf16.vlgmr.msra.gmra.mrb[104].mxu1 %vm78_vm2, %v12517_v3 }
 0x156   :  { %v142_v62 = vpop.f32.mrb[2].mxu0  ;;  %13064 = vmatpush3.bf16.msra.mxu1 %v2922_v6  ;;  %13065 = vmatprep.mubr.msk.bf16.mxu1 %vm13378_vm4, %v13376_v35 }
 0x157   :  { %v143_v11 = vpop.f32.mrb[3].mxu0 }
 0x158   :  { %v179_v63 = vpop.f32.mrb[0].mxu1 }
 0x159   :  { %v181_v0 = vpop.f32.mrb[1].mxu1  ;;  %12523 = vmatmul.mubr.msk.bf16.vlgmr.msra.gmra.mrb[108].mxu0 %vm78_vm2, %v12517_v3 }
 0x15a   :  { %v183_v1 = vpop.f32.mrb[2].mxu1  ;;  %3270 = vmatprep.mubr.bf16.mxu0 %v13368_v10 }
 0x15b   :  { %v184_v4 = vpop.f32.mrb[3].mxu1 }
 0x15c   :  { %v220_v2 = vpop.f32.mrb[4].mxu0 }
 0x15d   :  { %v222_v15 = vpop.f32.mrb[5].mxu0  ;;  %13066 = vmatmul.mubr.msk.bf16.vlgmr.msra.gmra.mrb[108].mxu1 %vm78_vm2, %v12517_v3 }
 0x15e   :  { %v224_v5 = vpop.f32.mrb[6].mxu0  ;;  %3311 = vmatprep.mubr.bf16.mxu1 %v13368_v10 }
 0x15f   :  { %v225_v8 = vpop.f32.mrb[7].mxu0 }
 0x160   :  { %v261_v9 = vpop.f32.mrb[4].mxu1 }
 0x161   :  { %v12989_v13 = vpop.f32.mrb[5].mxu1 }
 0x162   :  { %v264_v14 = vpop.f32.mrb[6].mxu1 }
 0x163   :  { %v12990_v17 = vpop.f32.mrb[7].mxu1 }
 0x164   :  { %v349_v18 = vpop.f32.mrb[8].mxu0 }
 0x165   :  { %v350_v19 = vadd.f32 %v349_v18, %v138_v12  ;;  %v351_v20 = vpop.f32.mrb[9].mxu0 }
 0x166   :  { %v352_v21 = vadd.f32 %v351_v20, %v140_v16  ;;  %v353_v22 = vpop.f32.mrb[10].mxu0 }
 0x167   :  { %v354_v23 = vpop.f32.mrb[11].mxu0 }
 0x168   :  { %v390_v24 = vpop.f32.mrb[8].mxu1 }
 0x169   :  { %v391_v25 = vadd.f32 %v390_v24, %v179_v63  ;;  %v392_v26 = vpop.f32.mrb[9].mxu1 }
 0x16a   :  { %v393_v27 = vadd.f32 %v392_v26, %v181_v0  ;;  %v394_v28 = vpop.f32.mrb[10].mxu1 }
 0x16b   :  { %v395_v29 = vpop.f32.mrb[11].mxu1 }
 0x16c   :  { %v431_v30 = vpop.f32.mrb[12].mxu0 }
 0x16d   :  { %v432_v31 = vadd.f32 %v431_v30, %v220_v2  ;;  %v433_v32 = vpop.f32.mrb[13].mxu0 }
 0x16e   :  { %v434_v33 = vadd.f32 %v433_v32, %v222_v15  ;;  %v435_v34 = vpop.f32.mrb[14].mxu0 }
 0x16f   :  { %v436_v36 = vpop.f32.mrb[15].mxu0 }
 0x170   :  { %v472_v37 = vpop.f32.mrb[12].mxu1 }
 0x171   :  { %v473_v38 = vadd.f32 %v472_v37, %v261_v9  ;;  %v12995_v39 = vpop.f32.mrb[13].mxu1 }
 0x172   :  { %v475_v40 = vpop.f32.mrb[14].mxu1 }
 0x173   :  { %v12996_v41 = vpop.f32.mrb[15].mxu1 }
 0x174   :  { %v562_v42 = vpop.f32.mrb[16].mxu0 }
 0x175   :  { %v691_v43 = vadd.f32 %v562_v42, %v350_v19  ;;  %v564_v44 = vpop.f32.mrb[17].mxu0 }
 0x176   :  { %v692_v45 = vadd.f32 %v564_v44, %v352_v21  ;;  %v566_v46 = vpop.f32.mrb[18].mxu0 }
 0x177   :  { %v567_v47 = vpop.f32.mrb[19].mxu0 }
 0x178   :  { %v603_v48 = vpop.f32.mrb[16].mxu1 }
 0x179   :  { %v693_v49 = vadd.f32 %v603_v48, %v391_v25  ;;  %v605_v50 = vpop.f32.mrb[17].mxu1 }
 0x17a   :  { %v694_v51 = vadd.f32 %v605_v50, %v393_v27  ;;  %v607_v52 = vpop.f32.mrb[18].mxu1 }
 0x17b   :  { %v608_v53 = vpop.f32.mrb[19].mxu1 }
 0x17c   :  { %v644_v54 = vpop.f32.mrb[20].mxu0 }
 0x17d   :  { %v695_v55 = vadd.f32 %v644_v54, %v432_v31  ;;  %v646_v56 = vpop.f32.mrb[21].mxu0 }
 0x17e   :  { %v696_v57 = vadd.f32 %v646_v56, %v434_v33  ;;  %v648_v58 = vpop.f32.mrb[22].mxu0 }
 0x17f   :  { %v649_v59 = vpop.f32.mrb[23].mxu0 }
 0x180   :  { %v685_v60 = vpop.f32.mrb[20].mxu1 }
 0x181   :  { %v697_v61 = vadd.f32 %v685_v60, %v473_v38  ;;  %v13001_v3 = vpop.f32.mrb[21].mxu1 }
 0x182   :  { %v688_v7 = vpop.f32.mrb[22].mxu1 }
 0x183   :  { %v13002_v6 = vpop.f32.mrb[23].mxu1 }
 0x184   :  { %v782_v12 = vpop.f32.mrb[24].mxu0 }
 0x185   :  { %v911_v16 = vadd.f32 %v782_v12, %v691_v43  ;;  %v784_v62 = vpop.f32.mrb[25].mxu0 }
 0x186   :  { %v912_v11 = vadd.f32 %v784_v62, %v692_v45  ;;  %v786_v63 = vpop.f32.mrb[26].mxu0 }
 0x187   :  { %v787_v0 = vpop.f32.mrb[27].mxu0 }
 0x188   :  { %v823_v1 = vpop.f32.mrb[24].mxu1 }
 0x189   :  { %v913_v4 = vadd.f32 %v823_v1, %v693_v49  ;;  %v825_v2 = vpop.f32.mrb[25].mxu1 }
 0x18a   :  { %v914_v15 = vadd.f32 %v825_v2, %v694_v51  ;;  %v827_v5 = vpop.f32.mrb[26].mxu1 }
 0x18b   :  { %v828_v8 = vpop.f32.mrb[27].mxu1 }
 0x18c   :  { %v864_v9 = vpop.f32.mrb[28].mxu0 }
 0x18d   :  { %v915_v13 = vadd.f32 %v864_v9, %v695_v55  ;;  %v866_v14 = vpop.f32.mrb[29].mxu0 }
 0x18e   :  { %v916_v17 = vadd.f32 %v866_v14, %v696_v57  ;;  %v868_v18 = vpop.f32.mrb[30].mxu0 }
 0x18f   :  { %v869_v19 = vpop.f32.mrb[31].mxu0 }
 0x190   :  { %v905_v20 = vpop.f32.mrb[28].mxu1 }
 0x191   :  { %v917_v21 = vadd.f32 %v905_v20, %v697_v61  ;;  %v13007_v22 = vpop.f32.mrb[29].mxu1  ;;  %v13383_v61 = vmov 0.0|0.0  }
 0x192   :  { %v908_v23 = vpop.f32.mrb[30].mxu1  ;;  %3191 = vrot.lane.b32.xlu1 %v13383_v61, %s13367_s29 }
 0x193   :  { %v13008_v24 = vpop.f32.mrb[31].mxu1 }
 0x194   :  { %v1002_v25 = vpop.f32.mrb[32].mxu0 }
 0x195   :  { %v1131_v26 = vadd.f32 %v1002_v25, %v911_v16  ;;  %v1004_v27 = vpop.f32.mrb[33].mxu0 }
 0x196   :  { %v1132_v28 = vadd.f32 %v1004_v27, %v912_v11  ;;  %v1006_v29 = vpop.f32.mrb[34].mxu0 }
 0x197   :  { %v1007_v30 = vpop.f32.mrb[35].mxu0 }
 0x198   :  { %v1043_v31 = vpop.f32.mrb[32].mxu1 }
 0x199   :  { %v1133_v32 = vadd.f32 %v1043_v31, %v913_v4  ;;  %v1045_v33 = vpop.f32.mrb[33].mxu1 }
 0x19a   :  { %v1134_v34 = vadd.f32 %v1045_v33, %v914_v15  ;;  %v1047_v36 = vpop.f32.mrb[34].mxu1 }
 0x19b   :  { %v1048_v37 = vpop.f32.mrb[35].mxu1 }
 0x19c   :  { %v1084_v38 = vpop.f32.mrb[36].mxu0 }
 0x19d   :  { %v1135_v39 = vadd.f32 %v1084_v38, %v915_v13  ;;  %v1086_v40 = vpop.f32.mrb[37].mxu0 }
 0x19e   :  { %v1136_v41 = vadd.f32 %v1086_v40, %v916_v17  ;;  %v1088_v42 = vpop.f32.mrb[38].mxu0 }
 0x19f   :  { %v1089_v43 = vpop.f32.mrb[39].mxu0 }
 0x1a0   :  { %v1125_v44 = vpop.f32.mrb[36].mxu1 }
 0x1a1   :  { %v1137_v45 = vadd.f32 %v1125_v44, %v917_v21  ;;  %v13013_v46 = vpop.f32.mrb[37].mxu1 }
 0x1a2   :  { %v1128_v47 = vpop.f32.mrb[38].mxu1 }
 0x1a3   :  { %v13014_v48 = vpop.f32.mrb[39].mxu1 }
 0x1a4   :  { %v1222_v49 = vpop.f32.mrb[40].mxu0 }
 0x1a5   :  { %v1351_v50 = vadd.f32 %v1222_v49, %v1131_v26  ;;  %v1224_v51 = vpop.f32.mrb[41].mxu0 }
 0x1a6   :  { %v1352_v52 = vadd.f32 %v1224_v51, %v1132_v28  ;;  %v1226_v53 = vpop.f32.mrb[42].mxu0 }
 0x1a7   :  { %v1227_v54 = vpop.f32.mrb[43].mxu0 }
 0x1a8   :  { %v1263_v55 = vpop.f32.mrb[40].mxu1 }
 0x1a9   :  { %v1353_v56 = vadd.f32 %v1263_v55, %v1133_v32  ;;  %v1265_v57 = vpop.f32.mrb[41].mxu1 }
 0x1aa   :  { %v1354_v58 = vadd.f32 %v1265_v57, %v1134_v34  ;;  %v1267_v59 = vpop.f32.mrb[42].mxu1 }
 0x1ab   :  { %v1268_v60 = vpop.f32.mrb[43].mxu1 }
 0x1ac   :  { %v1304_v3 = vpop.f32.mrb[44].mxu0 }
 0x1ad   :  { %v1355_v7 = vadd.f32 %v1304_v3, %v1135_v39  ;;  %v1306_v6 = vpop.f32.mrb[45].mxu0 }
 0x1ae   :  { %v1356_v12 = vadd.f32 %v1306_v6, %v1136_v41  ;;  %v1308_v16 = vpop.f32.mrb[46].mxu0 }
 0x1af   :  { %v1309_v62 = vpop.f32.mrb[47].mxu0 }
 0x1b0   :  { %v1345_v11 = vpop.f32.mrb[44].mxu1 }
 0x1b1   :  { %v1357_v63 = vadd.f32 %v1345_v11, %v1137_v45  ;;  %v13019_v0 = vpop.f32.mrb[45].mxu1 }
 0x1b2   :  { %v1348_v1 = vpop.f32.mrb[46].mxu1 }
 0x1b3   :  { %v13020_v4 = vpop.f32.mrb[47].mxu1 }
 0x1b4   :  { %v1442_v2 = vpop.f32.mrb[48].mxu0 }
 0x1b5   :  { %v1571_v15 = vadd.f32 %v1442_v2, %v1351_v50  ;;  %v1444_v5 = vpop.f32.mrb[49].mxu0 }
 0x1b6   :  { %v1572_v8 = vadd.f32 %v1444_v5, %v1352_v52  ;;  %v1446_v9 = vpop.f32.mrb[50].mxu0 }
 0x1b7   :  { %v1447_v13 = vpop.f32.mrb[51].mxu0 }
 0x1b8   :  { %v1483_v14 = vpop.f32.mrb[48].mxu1 }
 0x1b9   :  { %v1573_v17 = vadd.f32 %v1483_v14, %v1353_v56  ;;  %v1485_v18 = vpop.f32.mrb[49].mxu1 }
 0x1ba   :  { %v1574_v19 = vadd.f32 %v1485_v18, %v1354_v58  ;;  %v1487_v20 = vpop.f32.mrb[50].mxu1 }
 0x1bb   :  { %v1488_v21 = vpop.f32.mrb[51].mxu1 }
 0x1bc   :  { %v1524_v22 = vpop.f32.mrb[52].mxu0 }
 0x1bd   :  { %v1575_v23 = vadd.f32 %v1524_v22, %v1355_v7  ;;  %v1526_v24 = vpop.f32.mrb[53].mxu0 }
 0x1be   :  { %v1576_v25 = vadd.f32 %v1526_v24, %v1356_v12  ;;  %v1528_v26 = vpop.f32.mrb[54].mxu0 }
 0x1bf   :  { %v1529_v27 = vpop.f32.mrb[55].mxu0 }
 0x1c0   :  { %v1565_v28 = vpop.f32.mrb[52].mxu1 }
 0x1c1   :  { %v1577_v29 = vadd.f32 %v1565_v28, %v1357_v63  ;;  %v13025_v30 = vpop.f32.mrb[53].mxu1 }
 0x1c2   :  { %v1568_v31 = vpop.f32.mrb[54].mxu1 }
 0x1c3   :  { %v13026_v32 = vpop.f32.mrb[55].mxu1 }
 0x1c4   :  { %v1662_v33 = vpop.f32.mrb[56].mxu0 }
 0x1c5   :  { %v1791_v34 = vadd.f32 %v1662_v33, %v1571_v15  ;;  %v1664_v36 = vpop.f32.mrb[57].mxu0 }
 0x1c6   :  { %v1792_v37 = vadd.f32 %v1664_v36, %v1572_v8  ;;  %v1666_v38 = vpop.f32.mrb[58].mxu0 }
 0x1c7   :  { %v1667_v39 = vpop.f32.mrb[59].mxu0 }
 0x1c8   :  { %v1703_v40 = vpop.f32.mrb[56].mxu1 }
 0x1c9   :  { %v1793_v41 = vadd.f32 %v1703_v40, %v1573_v17  ;;  %v1705_v42 = vpop.f32.mrb[57].mxu1 }
 0x1ca   :  { %v1794_v43 = vadd.f32 %v1705_v42, %v1574_v19  ;;  %v1707_v44 = vpop.f32.mrb[58].mxu1 }
 0x1cb   :  { %v1708_v45 = vpop.f32.mrb[59].mxu1 }
 0x1cc   :  { %v1744_v46 = vpop.f32.mrb[60].mxu0 }
 0x1cd   :  { %v1795_v47 = vadd.f32 %v1744_v46, %v1575_v23  ;;  %v1746_v48 = vpop.f32.mrb[61].mxu0 }
 0x1ce   :  { %v1796_v49 = vadd.f32 %v1746_v48, %v1576_v25  ;;  %v1748_v50 = vpop.f32.mrb[62].mxu0 }
 0x1cf   :  { %v1749_v51 = vpop.f32.mrb[63].mxu0 }
 0x1d0   :  { %v1785_v52 = vpop.f32.mrb[60].mxu1 }
 0x1d1   :  { %v1797_v53 = vadd.f32 %v1785_v52, %v1577_v29  ;;  %v13031_v54 = vpop.f32.mrb[61].mxu1 }
 0x1d2   :  { %v1788_v55 = vpop.f32.mrb[62].mxu1 }
 0x1d3   :  { %v13032_v56 = vpop.f32.mrb[63].mxu1 }
 0x1d4   :  { %v1882_v57 = vpop.f32.mrb[64].mxu0 }
 0x1d5   :  { %v2011_v58 = vadd.f32 %v1882_v57, %v1791_v34  ;;  %v1884_v59 = vpop.f32.mrb[65].mxu0 }
 0x1d6   :  { %v2012_v60 = vadd.f32 %v1884_v59, %v1792_v37  ;;  %v1886_v3 = vpop.f32.mrb[66].mxu0 }
 0x1d7   :  { %v1887_v7 = vpop.f32.mrb[67].mxu0 }
 0x1d8   :  { %v1923_v6 = vpop.f32.mrb[64].mxu1 }
 0x1d9   :  { %v2013_v12 = vadd.f32 %v1923_v6, %v1793_v41  ;;  %v1925_v16 = vpop.f32.mrb[65].mxu1 }
 0x1da   :  { %v2014_v62 = vadd.f32 %v1925_v16, %v1794_v43  ;;  %v1927_v11 = vpop.f32.mrb[66].mxu1 }
 0x1db   :  { %v1928_v63 = vpop.f32.mrb[67].mxu1 }
 0x1dc   :  { %v1964_v0 = vpop.f32.mrb[68].mxu0 }
 0x1dd   :  { %v2015_v1 = vadd.f32 %v1964_v0, %v1795_v47  ;;  %v1966_v4 = vpop.f32.mrb[69].mxu0 }
 0x1de   :  { %v2016_v2 = vadd.f32 %v1966_v4, %v1796_v49  ;;  %v1968_v15 = vpop.f32.mrb[70].mxu0 }
 0x1df   :  { %v1969_v5 = vpop.f32.mrb[71].mxu0 }
 0x1e0   :  { %v2005_v8 = vpop.f32.mrb[68].mxu1 }
 0x1e1   :  { %v2017_v9 = vadd.f32 %v2005_v8, %v1797_v53  ;;  %v13037_v13 = vpop.f32.mrb[69].mxu1 }
 0x1e2   :  { %v2008_v14 = vpop.f32.mrb[70].mxu1 }
 0x1e3   :  { %v13038_v17 = vpop.f32.mrb[71].mxu1 }
 0x1e4   :  { %v2102_v18 = vpop.f32.mrb[72].mxu0 }
 0x1e5   :  { %v2231_v19 = vadd.f32 %v2102_v18, %v2011_v58  ;;  %v2104_v20 = vpop.f32.mrb[73].mxu0 }
 0x1e6   :  { %v2232_v21 = vadd.f32 %v2104_v20, %v2012_v60  ;;  %v2106_v22 = vpop.f32.mrb[74].mxu0 }
 0x1e7   :  { %v2107_v23 = vpop.f32.mrb[75].mxu0 }
 0x1e8   :  { %v2143_v24 = vpop.f32.mrb[72].mxu1 }
 0x1e9   :  { %v2233_v25 = vadd.f32 %v2143_v24, %v2013_v12  ;;  %v2145_v26 = vpop.f32.mrb[73].mxu1 }
 0x1ea   :  { %v2234_v27 = vadd.f32 %v2145_v26, %v2014_v62  ;;  %v2147_v28 = vpop.f32.mrb[74].mxu1 }
 0x1eb   :  { %v2148_v29 = vpop.f32.mrb[75].mxu1 }
 0x1ec   :  { %v2184_v30 = vpop.f32.mrb[76].mxu0 }
 0x1ed   :  { %v2235_v31 = vadd.f32 %v2184_v30, %v2015_v1  ;;  %v2186_v32 = vpop.f32.mrb[77].mxu0 }
 0x1ee   :  { %v2236_v33 = vadd.f32 %v2186_v32, %v2016_v2  ;;  %v2188_v34 = vpop.f32.mrb[78].mxu0 }
 0x1ef   :  { %v2189_v36 = vpop.f32.mrb[79].mxu0 }
 0x1f0   :  { %v2225_v37 = vpop.f32.mrb[76].mxu1 }
 0x1f1   :  { %v2237_v38 = vadd.f32 %v2225_v37, %v2017_v9  ;;  %v13043_v39 = vpop.f32.mrb[77].mxu1 }
 0x1f2   :  { %v2228_v40 = vpop.f32.mrb[78].mxu1  ;;  %v3115_v39 = vlaneseq }
 0x1f3   :  { %v13044_v41 = vpop.f32.mrb[79].mxu1 }
 0x1f4   :  { %v2322_v42 = vpop.f32.mrb[80].mxu0 }
 0x1f5   :  { %v2451_v43 = vadd.f32 %v2322_v42, %v2231_v19  ;;  %v2324_v44 = vpop.f32.mrb[81].mxu0 }
 0x1f6   :  { %v2452_v45 = vadd.f32 %v2324_v44, %v2232_v21  ;;  %v2326_v46 = vpop.f32.mrb[82].mxu0 }
 0x1f7   :  { %v2327_v47 = vpop.f32.mrb[83].mxu0  ;;  %v14057_v46 = vshrl.u32 %v3115_v39, 7 }
 0x1f8   :  { %v2363_v48 = vpop.f32.mrb[80].mxu1 }
 0x1f9   :  { %v2453_v49 = vadd.f32 %v2363_v48, %v2233_v25  ;;  %v2365_v50 = vpop.f32.mrb[81].mxu1 }
 0x1fa   :  { %v2454_v51 = vadd.f32 %v2365_v50, %v2234_v27  ;;  %v2367_v52 = vpop.f32.mrb[82].mxu1 }
 0x1fb   :  { %v2368_v53 = vpop.f32.mrb[83].mxu1  ;;  %v3117_v52 = vsub.s32 0, %v14057_v46 }
 0x1fc   :  { %v2404_v54 = vpop.f32.mrb[84].mxu0 }
 0x1fd   :  { %v2455_v55 = vadd.f32 %v2404_v54, %v2235_v31  ;;  %v2406_v56 = vpop.f32.mrb[85].mxu0  ;;  %v3121_v54 = vsub.s32 1, %v14057_v46 }
 0x1fe   :  { %v2456_v57 = vadd.f32 %v2406_v56, %v2236_v33  ;;  %v2408_v58 = vpop.f32.mrb[86].mxu0  ;;  %v26_v56 = vld [vmem:[%s16149_s5] sm:$0xff] }
 0x1ff   :  { %v2409_v59 = vpop.f32.mrb[87].mxu0 }
 0x200   :  { %v2445_v60 = vpop.f32.mrb[84].mxu1 }
 0x201   :  { %v2457_v3 = vadd.f32 %v2445_v60, %v2237_v38  ;;  %v13049_v7 = vpop.f32.mrb[85].mxu1 }
 0x202   :  { %v2448_v6 = vpop.f32.mrb[86].mxu1  ;;  %v14064_v7 = vrot.slane %v26_v56, %v3117_v52 }
 0x203   :  { %v13050_v12 = vpop.f32.mrb[87].mxu1 }
 0x204   :  { %v2542_v16 = vpop.f32.mrb[88].mxu0  ;;  %v3125_v12 = vsub.s32 2, %v14057_v46 }
 0x205   :  { %v2671_v62 = vadd.f32 %v2542_v16, %v2451_v43  ;;  %v2544_v11 = vpop.f32.mrb[89].mxu0 }
 0x206   :  { %v2672_v63 = vadd.f32 %v2544_v11, %v2452_v45  ;;  %v2546_v0 = vpop.f32.mrb[90].mxu0 }
 0x207   :  { %v2547_v1 = vpop.f32.mrb[91].mxu0 }
 0x208   :  { %v2583_v4 = vpop.f32.mrb[88].mxu1 }
 0x209   :  { %v2673_v2 = vadd.f32 %v2583_v4, %v2453_v49  ;;  %v2585_v15 = vpop.f32.mrb[89].mxu1 }
 0x20a   :  { %v2674_v5 = vadd.f32 %v2585_v15, %v2454_v51  ;;  %v2587_v8 = vpop.f32.mrb[90].mxu1 }
 0x20b   :  { %v2588_v9 = vpop.f32.mrb[91].mxu1 }
 0x20c   :  { %v2624_v13 = vpop.f32.mrb[92].mxu0 }
 0x20d   :  { %v2675_v14 = vadd.f32 %v2624_v13, %v2455_v55  ;;  %v2626_v17 = vpop.f32.mrb[93].mxu0  ;;  %v3098_v55 = vpop.permute.xlu0 %3097  ;;  %v14071_v13 = vrot.slane %v26_v56, %v3125_v12 }
 0x20e   :  { %v2676_v18 = vadd.f32 %v2626_v17, %v2456_v57  ;;  %v2628_v19 = vpop.f32.mrb[94].mxu0  ;;  %v3133_v17 = vsub.s32 4, %v14057_v46 }
 0x20f   :  { %v2629_v20 = vpop.f32.mrb[95].mxu0 }
 0x210   :  { %v2665_v21 = vpop.f32.mrb[92].mxu1 }
 0x211   :  { %v2677_v22 = vadd.f32 %v2665_v21, %v2457_v3  ;;  %v13055_v23 = vpop.f32.mrb[93].mxu1 }
 0x212   :  { %v2668_v24 = vpop.f32.mrb[94].mxu1 }
 0x213   :  { %v13056_v25 = vpop.f32.mrb[95].mxu1 }
 0x214   :  { %v2762_v26 = vpop.f32.mrb[96].mxu0 }
 0x215   :  { %v2891_v27 = vadd.f32 %v2762_v26, %v2671_v62  ;;  %v2764_v28 = vpop.f32.mrb[97].mxu0  ;;  %v14067_v62 = vrot.slane %v26_v56, %v3121_v54 }
 0x216   :  { %v2892_v29 = vadd.f32 %v2764_v28, %v2672_v63  ;;  %v2766_v30 = vpop.f32.mrb[98].mxu0  ;;  %v3129_v63 = vsub.s32 3, %v14057_v46 }
 0x217   :  { %v2767_v31 = vpop.f32.mrb[99].mxu0 }
 0x218   :  { %v2803_v32 = vpop.f32.mrb[96].mxu1  ;;  %v14075_v20 = vrot.slane %v26_v56, %v3129_v63 }
 0x219   :  { %v2893_v33 = vadd.f32 %v2803_v32, %v2673_v2  ;;  %v2805_v34 = vpop.f32.mrb[97].mxu1 }
 0x21a   :  { %v2894_v36 = vadd.f32 %v2805_v34, %v2674_v5  ;;  %v2807_v37 = vpop.f32.mrb[98].mxu1 }
 0x21b   :  { %v2808_v38 = vpop.f32.mrb[99].mxu1 }
 0x21c   :  { %v2844_v40 = vpop.f32.mrb[100].mxu0 }
 0x21d   :  { %v2895_v41 = vadd.f32 %v2844_v40, %v2675_v14  ;;  %v2846_v42 = vpop.f32.mrb[101].mxu0 }
 0x21e   :  { %v2896_v43 = vadd.f32 %v2846_v42, %v2676_v18  ;;  %v2848_v44 = vpop.f32.mrb[102].mxu0 }
 0x21f   :  { %v2849_v45 = vpop.f32.mrb[103].mxu0 }
 0x220   :  { %v2885_v47 = vpop.f32.mrb[100].mxu1 }
 0x221   :  { %v2897_v48 = vadd.f32 %v2885_v47, %v2677_v22  ;;  %v13061_v49 = vpop.f32.mrb[101].mxu1  ;;  %v3137_v22 = vsub.s32 5, %v14057_v46 }
 0x222   :  { %v2888_v50 = vpop.f32.mrb[102].mxu1 }
 0x223   :  { %v13062_v51 = vpop.f32.mrb[103].mxu1  ;;  %v14089_v39 = vrot.slane %v26_v56, %v3137_v22 }
 0x224   :  { %v2958_v53 = vpop.f32.mrb[104].mxu0 }
 0x225   :  { %v3087_v57 = vadd.f32 %v2958_v53, %v2891_v27  ;;  %v2960_v58 = vpop.f32.mrb[105].mxu0 }
 0x226   :  { %v3088_v59 = vadd.f32 %v2960_v58, %v2892_v29  ;;  %v2962_v60 = vpop.f32.mrb[106].mxu0 }
 0x227   :  { %v3100_v3 = vadd.f32 %v3098_v55, %v3087_v57  ;;  %v2963_v6 = vpop.f32.mrb[107].mxu0 }
 0x228   :  { %v3101_v16 = vadd.f32 %v3098_v55, %v3088_v59  ;;  %v2999_v11 = vpop.f32.mrb[104].mxu1 }
 0x229   :  { %v3107_v0 = vmax.f32 %v3100_v3, 0.0  ;;  %v3089_v1 = vadd.f32 %v2999_v11, %v2893_v33  ;;  %v3001_v4 = vpop.f32.mrb[105].mxu1  ;;  %v14083_v33 = vrot.slane %v26_v56, %v3133_v17  ;;  %v12525_v11 = vld [vmem:[%s16147_s3 + $0x4] sm:$0xf] }
 0x22a   :  { %v3108_v2 = vmax.f32 %v3101_v16, 0.0  ;;  %v3090_v15 = vadd.f32 %v3001_v4, %v2894_v36  ;;  %v3003_v5 = vpop.f32.mrb[106].mxu1  ;;  %v3141_v36 = vsub.s32 6, %v14057_v46 }
 0x22b   :  { %v3150_v8 = vmul.f32 %v14064_v7, %v3107_v0  ;;  %v3102_v9 = vadd.f32 %v3098_v55, %v3089_v1  ;;  %v3004_v14 = vpop.f32.mrb[107].mxu1 }
 0x22c   :  { %v3151_v18 = vmul.f32 %v14067_v62, %v3108_v2  ;;  %v3103_v19 = vadd.f32 %v3098_v55, %v3090_v15  ;;  %v3040_v21 = vpop.f32.mrb[108].mxu0  ;;  %v14098_v51 = vrot.slane %v26_v56, %v3141_v36  ;;  %v3192_v56 = vpop.permute.xlu1 %3191 }
 0x22d   :  { %v14078_v23 = vpack.c.bf16 %v3150_v8, %v3150_v8  ;;  %v3109_v24 = vmax.f32 %v3102_v9, 0.0  ;;  %v3091_v25 = vadd.f32 %v3040_v21, %v2895_v41  ;;  %v3042_v26 = vpop.f32.mrb[109].mxu0 }
 0x22e   :  { %v14080_v27 = vpack.c.bf16 %v3151_v18, %v3151_v18  ;;  %v3110_v28 = vmax.f32 %v3103_v19, 0.0  ;;  %v3092_v29 = vadd.f32 %v3042_v26, %v2896_v43  ;;  %v3044_v30 = vpop.f32.mrb[110].mxu0 }
 0x22f   :  { %v3152_v31 = vmul.f32 %v14071_v13, %v3109_v24  ;;  %v3104_v32 = vadd.f32 %v3098_v55, %v3091_v25  ;;  %v3045_v34 = vpop.f32.mrb[111].mxu0  ;;  %3193 = vrot.lane.b32.xlu1 %v14078_v23, %s13367_s29 }
 0x230   :  { %v3153_v37 = vmul.f32 %v14075_v20, %v3110_v28  ;;  %v3105_v38 = vadd.f32 %v3098_v55, %v3092_v29  ;;  %v3081_v40 = vpop.f32.mrb[108].mxu1  ;;  %3195 = vrot.lane.b32.xlu0 %v14080_v27, %s13367_s29  ;;  %v3164_v29 = vld [vmem:[%s16147_s3] sm:$0xf] }
 0x231   :  { %v14093_v41 = vpack.c.bf16 %v3152_v31, %v3152_v31  ;;  %v3111_v42 = vmax.f32 %v3104_v32, 0.0  ;;  %v3093_v43 = vadd.f32 %v3081_v40, %v2897_v48  ;;  %v13067_v44 = vpop.f32.mrb[109].mxu1 }
 0x232   :  { %v14095_v45 = vpack.c.bf16 %v3153_v37, %v3153_v37  ;;  %v3112_v47 = vmax.f32 %v3105_v38, 0.0  ;;  %v3084_v49 = vpop.f32.mrb[110].mxu1 }
 0x233   :  { %v3154_v46 = vmul.f32 %v14083_v33, %v3111_v42  ;;  %v3106_v50 = vadd.f32 %v3098_v55, %v3093_v43  ;;  %v13068_v52 = vpop.f32.mrb[111].mxu1  ;;  %3197 = vrot.lane.b32.xlu1 %v14093_v41, %s13367_s29 }
 0x234   :  { %v3155_v53 = vmul.f32 %v14089_v39, %v3112_v47  ;;  %3199 = vrot.lane.b32.xlu0 %v14095_v45, %s13367_s29 }
 0x235   :  { %v14105_v48 = vpack.c.bf16 %v3154_v46, %v3154_v46  ;;  %v3113_v54 = vmax.f32 %v3106_v50, 0.0 }
 0x236   :  { %v14107_v57 = vpack.c.bf16 %v3155_v53, %v3155_v53 }
 0x237   :  { %v3156_v58 = vmul.f32 %v14098_v51, %v3113_v54  ;;  %3201 = vrot.lane.b32.xlu1 %v14105_v48, %s13367_s29 }
 0x238   :  { %3203 = vrot.lane.b32.xlu0 %v14107_v57, %s13367_s29 }
 0x239   :  { %v14114_v55 = vpack.c.bf16 %v3156_v58, %v3156_v58 }
 0x23b   :  { %3205 = vrot.lane.b32.xlu1 %v14114_v55, %s13367_s29 }
 0x23c   :  { %3401 = vrot.lane.b32.xlu0 %v13383_v61, %s13369_s14 }
 0x23f   :  { %3403 = vrot.lane.b32.xlu1 %v14078_v23, %s13369_s14 }
 0x240   :  { %3405 = vrot.lane.b32.xlu0 %v14080_v27, %s13369_s14 }
 0x243   :  { %3407 = vrot.lane.b32.xlu1 %v14093_v41, %s13369_s14 }
 0x244   :  { %3409 = vrot.lane.b32.xlu0 %v14095_v45, %s13369_s14 }
 0x247   :  { %3411 = vrot.lane.b32.xlu1 %v14105_v48, %s13369_s14 }
 0x248   :  { %3413 = vrot.lane.b32.xlu0 %v14107_v57, %s13369_s14 }
 0x24b   :  { %3415 = vrot.lane.b32.xlu1 %v14114_v55, %s13369_s14 }
 0x24c   :  { %3613 = vrot.lane.b32.xlu0 %v13383_v61, %s13370_s15 }
 0x24f   :  { %3615 = vrot.lane.b32.xlu1 %v14078_v23, %s13370_s15 }
 0x250   :  { %3617 = vrot.lane.b32.xlu0 %v14080_v27, %s13370_s15 }
 0x253   :  { %3619 = vrot.lane.b32.xlu1 %v14093_v41, %s13370_s15 }
 0x254   :  { %3621 = vrot.lane.b32.xlu0 %v14095_v45, %s13370_s15 }
 0x257   :  { %3623 = vrot.lane.b32.xlu1 %v14105_v48, %s13370_s15 }
 0x258   :  { %3625 = vrot.lane.b32.xlu0 %v14107_v57, %s13370_s15 }
 0x25b   :  { %3627 = vrot.lane.b32.xlu1 %v14114_v55, %s13370_s15 }
 0x25c   :  { %3832 = vrot.lane.b32.xlu0 %v13383_v61, %s13371_s16 }
 0x25f   :  { %3834 = vrot.lane.b32.xlu1 %v14078_v23, %s13371_s16 }
 0x260   :  { %3836 = vrot.lane.b32.xlu0 %v14080_v27, %s13371_s16 }
 0x263   :  { %3838 = vrot.lane.b32.xlu1 %v14093_v41, %s13371_s16 }
 0x264   :  { %3840 = vrot.lane.b32.xlu0 %v14095_v45, %s13371_s16 }
 0x267   :  { %3842 = vrot.lane.b32.xlu1 %v14105_v48, %s13371_s16 }
 0x268   :  { %3844 = vrot.lane.b32.xlu0 %v14107_v57, %s13371_s16 }
 0x26b   :  { %3846 = vrot.lane.b32.xlu1 %v14114_v55, %s13371_s16 }
 0x26c   :  { %4051 = vrot.lane.b32.xlu0 %v13383_v61, %s13372_s17 }
 0x26f   :  { %4053 = vrot.lane.b32.xlu1 %v14078_v23, %s13372_s17 }
 0x270   :  { %4055 = vrot.lane.b32.xlu0 %v14080_v27, %s13372_s17 }
 0x273   :  { %4057 = vrot.lane.b32.xlu1 %v14093_v41, %s13372_s17 }
 0x274   :  { %4059 = vrot.lane.b32.xlu0 %v14095_v45, %s13372_s17 }
 0x277   :  { %4061 = vrot.lane.b32.xlu1 %v14105_v48, %s13372_s17 }
 0x278   :  { %4063 = vrot.lane.b32.xlu0 %v14107_v57, %s13372_s17 }
 0x27b   :  { %4065 = vrot.lane.b32.xlu1 %v14114_v55, %s13372_s17 }
 0x27c   :  { %4270 = vrot.lane.b32.xlu0 %v13383_v61, %s13373_s18 }
 0x27f   :  { %4272 = vrot.lane.b32.xlu1 %v14078_v23, %s13373_s18 }
 0x280   :  { %4274 = vrot.lane.b32.xlu0 %v14080_v27, %s13373_s18 }
 0x283   :  { %4276 = vrot.lane.b32.xlu1 %v14093_v41, %s13373_s18 }
 0x284   :  { %4278 = vrot.lane.b32.xlu0 %v14095_v45, %s13373_s18 }
 0x287   :  { %4280 = vrot.lane.b32.xlu1 %v14105_v48, %s13373_s18 }
 0x288   :  { %4282 = vrot.lane.b32.xlu0 %v14107_v57, %s13373_s18 }
 0x28b   :  { %4284 = vrot.lane.b32.xlu1 %v14114_v55, %s13373_s18 }
 0x28c   :  { %4489 = vrot.lane.b32.xlu0 %v13383_v61, %s13374_s19 }
 0x28f   :  { %4491 = vrot.lane.b32.xlu1 %v14078_v23, %s13374_s19 }
 0x290   :  { %4493 = vrot.lane.b32.xlu0 %v14080_v27, %s13374_s19 }
 0x293   :  { %4495 = vrot.lane.b32.xlu1 %v14093_v41, %s13374_s19 }
 0x294   :  { %4497 = vrot.lane.b32.xlu0 %v14095_v45, %s13374_s19 }
 0x297   :  { %4499 = vrot.lane.b32.xlu1 %v14105_v48, %s13374_s19 }
 0x298   :  { %4501 = vrot.lane.b32.xlu0 %v14107_v57, %s13374_s19 }
 0x29b   :  { %4503 = vrot.lane.b32.xlu1 %v14114_v55, %s13374_s19 }
 0x29c   :  { %4708 = vrot.lane.b32.xlu0 %v13383_v61, %s13375_s20 }
 0x29f   :  { %4710 = vrot.lane.b32.xlu1 %v14078_v23, %s13375_s20 }
 0x2a0   :  { %4712 = vrot.lane.b32.xlu0 %v14080_v27, %s13375_s20 }
 0x2a1   :  { %v3194_v59 = vpop.permute.xlu1 %3193 }
 0x2a2   :  { %v3207_v60 = vsel %vm70_vm0, %v3192_v56, %v3194_v59  ;;  %v3196_v3 = vpop.permute.xlu0 %3195  ;;  %v12540_v56 = vld [vmem:[%s16147_s3 + $0x8] sm:$0xf] }
 0x2a3   :  { %4714 = vrot.lane.b32.xlu1 %v14093_v41, %s13375_s20  ;;  %v3208_v6 = vsel %vm70_vm0, %v3194_v59, %v3196_v3  ;;  %v3218_v12 = vsel %vm82_vm1, %v3207_v60, 0 }
 0x2a4   :  { %4716 = vrot.lane.b32.xlu0 %v14095_v45, %s13375_s20  ;;  %12526 = vmatprep.subr.msk.bf16.mxu0 %vm82_vm1, %v3208_v6 }
 0x2a5   :  { %3239 = vmatpush1.bf16.msra.mxu0 %v3218_v12  ;;  %v3198_v16 = vpop.permute.xlu1 %3197 }
 0x2a6   :  { %v3209_v63 = vsel %vm70_vm0, %v3196_v3, %v3198_v16  ;;  %v3200_v0 = vpop.permute.xlu0 %3199 }
 0x2a7   :  { %4718 = vrot.lane.b32.xlu1 %v14105_v48, %s13375_s20  ;;  %v3210_v1 = vsel %vm70_vm0, %v3198_v16, %v3200_v0  ;;  %v3224_v4 = vsel %vm82_vm1, %v3209_v63, 0 }
 0x2a8   :  { %4720 = vrot.lane.b32.xlu0 %v14107_v57, %s13375_s20  ;;  %12527 = vmatmul.mubr.msk.bf16.vlgmr.msra.gmra.mrb[112].mxu0 %vm78_vm2, %v12525_v11 }
 0x2a9   :  { %12528 = vmatprep.subr.msk.bf16.mxu1 %vm82_vm1, %v3210_v1  ;;  %v3202_v2 = vpop.permute.xlu1 %3201  ;;  %3352 = vmatprep.mubr.bf16.mxu0 %v13368_v10 }
 0x2aa   :  { %3280 = vmatpush1.bf16.msra.mxu1 %v3224_v4  ;;  %v3211_v15 = vsel %vm70_vm0, %v3200_v0, %v3202_v2  ;;  %v3204_v5 = vpop.permute.xlu0 %3203 }
 0x2ab   :  { %4722 = vrot.lane.b32.xlu1 %v14114_v55, %s13375_s20  ;;  %v3212_v8 = vsel %vm70_vm0, %v3202_v2, %v3204_v5  ;;  %v3230_v9 = vsel %vm82_vm1, %v3211_v15, 0  ;;  %13069 = vmatprep.subr.bf16.mxu1 %v13376_v35 }
 0x2ac   :  { %4927 = vrot.lane.b32.xlu0 %v13383_v61, %s13377_s23  ;;  %12530 = vmatprep.subr.msk.bf16.mxu0 %vm82_vm1, %v3212_v8 }
 0x2ad   :  { %12529 = vmatmul.mubr.msk.bf16.vlgmr.msra.gmra.mrb[112].mxu1 %vm78_vm2, %v12525_v11  ;;  %3321 = vmatpush1.bf16.msra.mxu0 %v3230_v9  ;;  %v3206_v14 = vpop.permute.xlu1 %3205 }
 0x2ae   :  { %v3213_v17 = vsel %vm70_vm0, %v3204_v5, %v3206_v14  ;;  %v3402_v18 = vpop.permute.xlu0 %3401  ;;  %13071 = vmatprep.mubr.msk.bf16.mxu1 %vm13378_vm4, %v13376_v35 }
 0x2af   :  { %v3236_v19 = vsel %vm82_vm1, %v3213_v17, 0  ;;  %4929 = vrot.lane.b32.xlu1 %v14078_v23, %s13377_s23 }
 0x2b0   :  { %4931 = vrot.lane.b32.xlu0 %v14080_v27, %s13377_s23  ;;  %12531 = vmatmul.mubr.msk.bf16.vlgmr.msra.gmra.mrb[116].mxu0 %vm78_vm2, %v12525_v11 }
 0x2b1   :  { %13070 = vmatpush3.bf16.msra.mxu1 %v3236_v19  ;;  %v3404_v21 = vpop.permute.xlu1 %3403  ;;  %3480 = vmatprep.mubr.bf16.mxu0 %v13368_v10  ;;  %v12548_v19 = vld [vmem:[%s16147_s3 + $0xc] sm:$0xf] }
 0x2b2   :  { %v3417_v22 = vsel %vm283_vm3, %v3402_v18, %v3404_v21  ;;  %v3406_v24 = vpop.permute.xlu0 %3405 }
 0x2b3   :  { %4933 = vrot.lane.b32.xlu1 %v14093_v41, %s13377_s23  ;;  %v3418_v25 = vsel %vm283_vm3, %v3404_v21, %v3406_v24  ;;  %v3428_v26 = vsel %vm82_vm1, %v3417_v22, 0 }
 0x2b4   :  { %4935 = vrot.lane.b32.xlu0 %v14095_v45, %s13377_s23  ;;  %12533 = vmatprep.subr.msk.bf16.mxu0 %vm82_vm1, %v3418_v25 }
 0x2b5   :  { %13072 = vmatmul.mubr.msk.bf16.vlgmr.msra.gmra.mrb[116].mxu1 %vm78_vm2, %v12525_v11  ;;  %3449 = vmatpush1.bf16.msra.mxu0 %v3428_v26  ;;  %v3408_v28 = vpop.permute.xlu1 %3407 }
 0x2b6   :  { %v3419_v30 = vsel %vm283_vm3, %v3406_v24, %v3408_v28  ;;  %v3410_v31 = vpop.permute.xlu0 %3409  ;;  %3521 = vmatprep.mubr.bf16.mxu1 %v13368_v10 }
 0x2b7   :  { %4937 = vrot.lane.b32.xlu1 %v14105_v48, %s13377_s23  ;;  %v3420_v32 = vsel %vm283_vm3, %v3408_v28, %v3410_v31  ;;  %v3434_v34 = vsel %vm82_vm1, %v3419_v30, 0 }
 0x2b8   :  { %4939 = vrot.lane.b32.xlu0 %v14107_v57, %s13377_s23  ;;  %12534 = vmatmul.mubr.msk.bf16.vlgmr.msra.gmra.mrb[120].mxu0 %vm78_vm2, %v3164_v29 }
 0x2b9   :  { %12535 = vmatprep.subr.msk.bf16.mxu1 %vm82_vm1, %v3420_v32  ;;  %v3412_v36 = vpop.permute.xlu1 %3411  ;;  %3562 = vmatprep.mubr.bf16.mxu0 %v13368_v10 }
 0x2ba   :  { %3490 = vmatpush1.bf16.msra.mxu1 %v3434_v34  ;;  %v3421_v37 = vsel %vm283_vm3, %v3410_v31, %v3412_v36  ;;  %v3414_v38 = vpop.permute.xlu0 %3413 }
 0x2bb   :  { %4941 = vrot.lane.b32.xlu1 %v14114_v55, %s13377_s23  ;;  %v3422_v40 = vsel %vm283_vm3, %v3412_v36, %v3414_v38  ;;  %v3440_v42 = vsel %vm82_vm1, %v3421_v37, 0  ;;  %13075 = vmatprep.subr.bf16.mxu1 %v13376_v35 }
 0x2bc   :  { %5146 = vrot.lane.b32.xlu0 %v13383_v61, %s13379_s26  ;;  %12537 = vmatprep.subr.msk.bf16.mxu0 %vm82_vm1, %v3422_v40 }
 0x2bd   :  { %12536 = vmatmul.mubr.msk.bf16.vlgmr.msra.gmra.mrb[120].mxu1 %vm78_vm2, %v3164_v29  ;;  %3531 = vmatpush1.bf16.msra.mxu0 %v3440_v42  ;;  %v3416_v43 = vpop.permute.xlu1 %3415 }
 0x2be   :  { %v3423_v44 = vsel %vm283_vm3, %v3414_v38, %v3416_v43  ;;  %v3614_v47 = vpop.permute.xlu0 %3613  ;;  %13077 = vmatprep.mubr.msk.bf16.mxu1 %vm13378_vm4, %v13376_v35 }
 0x2bf   :  { %v3446_v49 = vsel %vm82_vm1, %v3423_v44, 0  ;;  %5148 = vrot.lane.b32.xlu1 %v14078_v23, %s13379_s26 }
 0x2c0   :  { %5150 = vrot.lane.b32.xlu0 %v14080_v27, %s13379_s26  ;;  %12538 = vmatmul.mubr.msk.bf16.vlgmr.msra.gmra.mrb[124].mxu0 %vm78_vm2, %v3164_v29 }
 0x2c1   :  { %13076 = vmatpush3.bf16.msra.mxu1 %v3446_v49  ;;  %v3616_v46 = vpop.permute.xlu1 %3615  ;;  %3692 = vmatprep.mubr.bf16.mxu0 %v13368_v10  ;;  %v12556_v49 = vld [vmem:[%s16147_s3 + $0x10] sm:$0xf] }
 0x2c2   :  { %v3629_v50 = vsel %vm496_vm5, %v3614_v47, %v3616_v46  ;;  %v3618_v52 = vpop.permute.xlu0 %3617 }
 0x2c3   :  { %5152 = vrot.lane.b32.xlu1 %v14093_v41, %s13379_s26  ;;  %v3630_v53 = vsel %vm496_vm5, %v3616_v46, %v3618_v52  ;;  %v3640_v54 = vsel %vm82_vm1, %v3629_v50, 0 }
 0x2c4   :  { %5154 = vrot.lane.b32.xlu0 %v14095_v45, %s13379_s26  ;;  %12541 = vmatprep.subr.msk.bf16.mxu0 %vm82_vm1, %v3630_v53 }
 0x2c5   :  { %13078 = vmatmul.mubr.msk.bf16.vlgmr.msra.gmra.mrb[124].mxu1 %vm78_vm2, %v3164_v29  ;;  %3661 = vmatpush1.bf16.msra.mxu0 %v3640_v54  ;;  %v3620_v58 = vpop.permute.xlu1 %3619 }
 0x2c6   :  { %v3631_v59 = vsel %vm496_vm5, %v3618_v52, %v3620_v58  ;;  %v3622_v60 = vpop.permute.xlu0 %3621  ;;  %3733 = vmatprep.mubr.bf16.mxu1 %v13368_v10 }
 0x2c7   :  { %5156 = vrot.lane.b32.xlu1 %v14105_v48, %s13379_s26  ;;  %v3632_v3 = vsel %vm496_vm5, %v3620_v58, %v3622_v60  ;;  %v3646_v6 = vsel %vm82_vm1, %v3631_v59, 0 }
 0x2c8   :  { %5158 = vrot.lane.b32.xlu0 %v14107_v57, %s13379_s26  ;;  %12542 = vmatmul.mubr.msk.bf16.vlgmr.msra.gmra.mrb[128].mxu0 %vm78_vm2, %v12540_v56 }
 0x2c9   :  { %12543 = vmatprep.subr.msk.bf16.mxu1 %vm82_vm1, %v3632_v3  ;;  %v3624_v12 = vpop.permute.xlu1 %3623  ;;  %3774 = vmatprep.mubr.bf16.mxu0 %v13368_v10 }
 0x2ca   :  { %3702 = vmatpush1.bf16.msra.mxu1 %v3646_v6  ;;  %v3633_v16 = vsel %vm496_vm5, %v3622_v60, %v3624_v12  ;;  %v3626_v11 = vpop.permute.xlu0 %3625 }
 0x2cb   :  { %5160 = vrot.lane.b32.xlu1 %v14114_v55, %s13379_s26  ;;  %v3634_v63 = vsel %vm496_vm5, %v3624_v12, %v3626_v11  ;;  %v3652_v0 = vsel %vm82_vm1, %v3633_v16, 0  ;;  %13081 = vmatprep.subr.bf16.mxu1 %v13376_v35 }
 0x2cc   :  { %5365 = vrot.lane.b32.xlu0 %v13383_v61, %s13380_s30  ;;  %12545 = vmatprep.subr.msk.bf16.mxu0 %vm82_vm1, %v3634_v63 }
 0x2cd   :  { %12544 = vmatmul.mubr.msk.bf16.vlgmr.msra.gmra.mrb[128].mxu1 %vm78_vm2, %v12540_v56  ;;  %3743 = vmatpush1.bf16.msra.mxu0 %v3652_v0  ;;  %v3628_v1 = vpop.permute.xlu1 %3627 }
 0x2ce   :  { %v3635_v4 = vsel %vm496_vm5, %v3626_v11, %v3628_v1  ;;  %v3833_v2 = vpop.permute.xlu0 %3832  ;;  %13083 = vmatprep.mubr.msk.bf16.mxu1 %vm13378_vm4, %v13376_v35 }
 0x2cf   :  { %v3658_v15 = vsel %vm82_vm1, %v3635_v4, 0  ;;  %5367 = vrot.lane.b32.xlu1 %v14078_v23, %s13380_s30 }
 0x2d0   :  { %5369 = vrot.lane.b32.xlu0 %v14080_v27, %s13380_s30  ;;  %12546 = vmatmul.mubr.msk.bf16.vlgmr.msra.gmra.mrb[132].mxu0 %vm78_vm2, %v12540_v56 }
 0x2d1   :  { %13082 = vmatpush3.bf16.msra.mxu1 %v3658_v15  ;;  %v3835_v5 = vpop.permute.xlu1 %3834  ;;  %3911 = vmatprep.mubr.bf16.mxu0 %v13368_v10  ;;  %v12564_v15 = vld [vmem:[%s16147_s3 + $0x14] sm:$0xf] }
 0x2d2   :  { %v3848_v8 = vsel %vm716_vm6, %v3833_v2, %v3835_v5  ;;  %v3837_v9 = vpop.permute.xlu0 %3836 }
 0x2d3   :  { %5371 = vrot.lane.b32.xlu1 %v14093_v41, %s13380_s30  ;;  %v3849_v14 = vsel %vm716_vm6, %v3835_v5, %v3837_v9  ;;  %v3859_v17 = vsel %vm82_vm1, %v3848_v8, 0  ;;  %v12636_v5 = vld [vmem:[%s16144_s0 + $0x40] sm:$0xff] }
 0x2d4   :  { %5373 = vrot.lane.b32.xlu0 %v14095_v45, %s13380_s30  ;;  %12549 = vmatprep.subr.msk.bf16.mxu0 %vm82_vm1, %v3849_v14 }
 0x2d5   :  { %13084 = vmatmul.mubr.msk.bf16.vlgmr.msra.gmra.mrb[132].mxu1 %vm78_vm2, %v12540_v56  ;;  %3880 = vmatpush1.bf16.msra.mxu0 %v3859_v17  ;;  %v3839_v18 = vpop.permute.xlu1 %3838 }
 0x2d6   :  { %v3850_v21 = vsel %vm716_vm6, %v3837_v9, %v3839_v18  ;;  %v3841_v22 = vpop.permute.xlu0 %3840  ;;  %3952 = vmatprep.mubr.bf16.mxu1 %v13368_v10 }
 0x2d7   :  { %5375 = vrot.lane.b32.xlu1 %v14105_v48, %s13380_s30  ;;  %v3851_v24 = vsel %vm716_vm6, %v3839_v18, %v3841_v22  ;;  %v3865_v25 = vsel %vm82_vm1, %v3850_v21, 0  ;;  %v14457_v18 = vpack.c.bf16 %v12636_v5, %v12636_v5 }
 0x2d8   :  { %5377 = vrot.lane.b32.xlu0 %v14107_v57, %s13380_s30  ;;  %12550 = vmatmul.mubr.msk.bf16.vlgmr.msra.gmra.mrb[136].mxu0 %vm78_vm2, %v12548_v19 }
 0x2d9   :  { %12551 = vmatprep.subr.msk.bf16.mxu1 %vm82_vm1, %v3851_v24  ;;  %v3843_v26 = vpop.permute.xlu1 %3842  ;;  %3993 = vmatprep.mubr.bf16.mxu0 %v13368_v10 }
 0x2da   :  { %3921 = vmatpush1.bf16.msra.mxu1 %v3865_v25  ;;  %v3852_v28 = vsel %vm716_vm6, %v3841_v22, %v3843_v26  ;;  %v3845_v29 = vpop.permute.xlu0 %3844  ;;  %v12638_v22 = vld [vmem:[%s16144_s0 + $0x50] sm:$0xff] }
 0x2db   :  { %5379 = vrot.lane.b32.xlu1 %v14114_v55, %s13380_s30  ;;  %v3853_v30 = vsel %vm716_vm6, %v3843_v26, %v3845_v29  ;;  %v3871_v31 = vsel %vm82_vm1, %v3852_v28, 0  ;;  %13087 = vmatprep.subr.bf16.mxu1 %v13376_v35 }
 0x2dc   :  { %5584 = vrot.lane.b32.xlu0 %v13383_v61, %s13381_s9  ;;  %12553 = vmatprep.subr.msk.bf16.mxu0 %vm82_vm1, %v3853_v30  ;;  %v14478_v30 = vpack.c.bf16 %v12638_v22, %v12638_v22 }
 0x2dd   :  { %12552 = vmatmul.mubr.msk.bf16.vlgmr.msra.gmra.mrb[136].mxu1 %vm78_vm2, %v12548_v19  ;;  %3962 = vmatpush1.bf16.msra.mxu0 %v3871_v31  ;;  %v3847_v32 = vpop.permute.xlu1 %3846  ;;  %v12639_v31 = vld [vmem:[%s16144_s0 + $0x58] sm:$0xff] }
 0x2de   :  { %v3854_v34 = vsel %vm716_vm6, %v3845_v29, %v3847_v32  ;;  %v4052_v36 = vpop.permute.xlu0 %4051  ;;  %13089 = vmatprep.mubr.msk.bf16.mxu1 %vm13378_vm4, %v13376_v35 }
 0x2df   :  { %v3877_v37 = vsel %vm82_vm1, %v3854_v34, 0  ;;  %5586 = vrot.lane.b32.xlu1 %v14078_v23, %s13381_s9  ;;  %v12640_v34 = vld [vmem:[%s16144_s0 + $0x60] sm:$0xff] }
 0x2e0   :  { %5588 = vrot.lane.b32.xlu0 %v14080_v27, %s13381_s9  ;;  %12554 = vmatmul.mubr.msk.bf16.vlgmr.msra.gmra.mrb[140].mxu0 %vm78_vm2, %v12548_v19 }
 0x2e1   :  { %13088 = vmatpush3.bf16.msra.mxu1 %v3877_v37  ;;  %v4054_v38 = vpop.permute.xlu1 %4053  ;;  %4130 = vmatprep.mubr.bf16.mxu0 %v13368_v10 }
 0x2e2   :  { %v4067_v40 = vsel %vm936_vm7, %v4052_v36, %v4054_v38  ;;  %v4056_v42 = vpop.permute.xlu0 %4055 }
 0x2e3   :  { %5590 = vrot.lane.b32.xlu1 %v14093_v41, %s13381_s9  ;;  %v4068_v43 = vsel %vm936_vm7, %v4054_v38, %v4056_v42  ;;  %v4078_v44 = vsel %vm82_vm1, %v4067_v40, 0  ;;  %v14493_v40 = vpack.c.bf16 %v12639_v31, %v12639_v31 }
 0x2e4   :  { %5592 = vrot.lane.b32.xlu0 %v14095_v45, %s13381_s9  ;;  %12557 = vmatprep.subr.msk.bf16.mxu0 %vm82_vm1, %v4068_v43  ;;  %v12641_v43 = vld [vmem:[%s16144_s0 + $0x68] sm:$0xff] }
 0x2e5   :  { %13090 = vmatmul.mubr.msk.bf16.vlgmr.msra.gmra.mrb[140].mxu1 %vm78_vm2, %v12548_v19  ;;  %4099 = vmatpush1.bf16.msra.mxu0 %v4078_v44  ;;  %v4058_v47 = vpop.permute.xlu1 %4057  ;;  %v12637_v19 = vld [vmem:[%s16144_s0 + $0x48] sm:$0xff] }
 0x2e6   :  { %v4069_v46 = vsel %vm936_vm7, %v4056_v42, %v4058_v47  ;;  %v4060_v50 = vpop.permute.xlu0 %4059  ;;  %4171 = vmatprep.mubr.bf16.mxu1 %v13368_v10  ;;  %v14473_v29 = vpack.c.bf16 %v12637_v19, %v12637_v19  ;;  %v14498_v42 = vpack.c.bf16 %v12640_v34, %v12640_v34 }
 0x2e7   :  { %5594 = vrot.lane.b32.xlu1 %v14105_v48, %s13381_s9  ;;  %v4070_v52 = vsel %vm936_vm7, %v4058_v47, %v4060_v50  ;;  %v4084_v53 = vsel %vm82_vm1, %v4069_v46, 0  ;;  %v12642_v47 = vld [vmem:[%s16144_s0 + $0x70] sm:$0xff] }
 0x2e8   :  { %5596 = vrot.lane.b32.xlu0 %v14107_v57, %s13381_s9  ;;  %12558 = vmatmul.mubr.msk.bf16.vlgmr.msra.gmra.mrb[144].mxu0 %vm78_vm2, %v12556_v49 }
 0x2e9   :  { %12559 = vmatprep.subr.msk.bf16.mxu1 %vm82_vm1, %v4070_v52  ;;  %v4062_v54 = vpop.permute.xlu1 %4061  ;;  %4212 = vmatprep.mubr.bf16.mxu0 %v13368_v10 }
 0x2ea   :  { %4140 = vmatpush1.bf16.msra.mxu1 %v4084_v53  ;;  %v4071_v58 = vsel %vm936_vm7, %v4060_v50, %v4062_v54  ;;  %v4064_v56 = vpop.permute.xlu0 %4063  ;;  %v14512_v53 = vpack.c.bf16 %v12641_v43, %v12641_v43 }
 0x2eb   :  { %5598 = vrot.lane.b32.xlu1 %v14114_v55, %s13381_s9  ;;  %v4072_v59 = vsel %vm936_vm7, %v4062_v54, %v4064_v56  ;;  %v4090_v60 = vsel %vm82_vm1, %v4071_v58, 0  ;;  %13093 = vmatprep.subr.bf16.mxu1 %v13376_v35  ;;  %v14517_v54 = vpack.c.bf16 %v12642_v47, %v12642_v47  ;;  %v12643_v58 = vld [vmem:[%s16144_s0 + $0x78] sm:$0xff] }
 0x2ec   :  { %5803 = vrot.lane.b32.xlu0 %v13383_v61, %s13382_s12  ;;  %12561 = vmatprep.subr.msk.bf16.mxu0 %vm82_vm1, %v4072_v59  ;;  %v12572_v59 = vld [vmem:[%s16147_s3 + $0x18] sm:$0xf] }
 0x2ed   :  { %12560 = vmatmul.mubr.msk.bf16.vlgmr.msra.gmra.mrb[144].mxu1 %vm78_vm2, %v12556_v49  ;;  %4181 = vmatpush1.bf16.msra.mxu0 %v4090_v60  ;;  %v4066_v3 = vpop.permute.xlu1 %4065 }
 0x2ee   :  { %v4073_v6 = vsel %vm936_vm7, %v4064_v56, %v4066_v3  ;;  %v4271_v12 = vpop.permute.xlu0 %4270  ;;  %13095 = vmatprep.mubr.msk.bf16.mxu1 %vm13378_vm4, %v13376_v35 }
 0x2ef   :  { %v4096_v16 = vsel %vm82_vm1, %v4073_v6, 0  ;;  %5805 = vrot.lane.b32.xlu1 %v14078_v23, %s13382_s12 }
 0x2f0   :  { %5807 = vrot.lane.b32.xlu0 %v14080_v27, %s13382_s12  ;;  %12562 = vmatmul.mubr.msk.bf16.vlgmr.msra.gmra.mrb[148].mxu0 %vm78_vm2, %v12556_v49 }
 0x2f1   :  { %13094 = vmatpush3.bf16.msra.mxu1 %v4096_v16  ;;  %v4273_v11 = vpop.permute.xlu1 %4272  ;;  %4349 = vmatprep.mubr.bf16.mxu0 %v13368_v10  ;;  %v14532_v16 = vpack.c.bf16 %v12643_v58, %v12643_v58 }
 0x2f2   :  { %v4286_v63 = vsel %vm1156_vm8, %v4271_v12, %v4273_v11  ;;  %v4275_v0 = vpop.permute.xlu0 %4274 }
 0x2f3   :  { %5809 = vrot.lane.b32.xlu1 %v14093_v41, %s13382_s12  ;;  %v4287_v1 = vsel %vm1156_vm8, %v4273_v11, %v4275_v0  ;;  %v4297_v4 = vsel %vm82_vm1, %v4286_v63, 0 }
 0x2f4   :  { %5811 = vrot.lane.b32.xlu0 %v14095_v45, %s13382_s12  ;;  %12565 = vmatprep.subr.msk.bf16.mxu0 %vm82_vm1, %v4287_v1 }
 0x2f5   :  { %13096 = vmatmul.mubr.msk.bf16.vlgmr.msra.gmra.mrb[148].mxu1 %vm78_vm2, %v12556_v49  ;;  %4318 = vmatpush1.bf16.msra.mxu0 %v4297_v4  ;;  %v4277_v2 = vpop.permute.xlu1 %4276 }
 0x2f6   :  { %v4288_v8 = vsel %vm1156_vm8, %v4275_v0, %v4277_v2  ;;  %v4279_v9 = vpop.permute.xlu0 %4278  ;;  %4390 = vmatprep.mubr.bf16.mxu1 %v13368_v10 }
 0x2f7   :  { %5813 = vrot.lane.b32.xlu1 %v14105_v48, %s13382_s12  ;;  %v4289_v14 = vsel %vm1156_vm8, %v4277_v2, %v4279_v9  ;;  %v4303_v17 = vsel %vm82_vm1, %v4288_v8, 0 }
 0x2f8   :  { %5815 = vrot.lane.b32.xlu0 %v14107_v57, %s13382_s12  ;;  %12566 = vmatmul.mubr.msk.bf16.vlgmr.msra.gmra.mrb[152].mxu0 %vm78_vm2, %v12564_v15 }
 0x2f9   :  { %12567 = vmatprep.subr.msk.bf16.mxu1 %vm82_vm1, %v4289_v14  ;;  %v4281_v21 = vpop.permute.xlu1 %4280  ;;  %4431 = vmatprep.mubr.bf16.mxu0 %v13368_v10 }
 0x2fa   :  { %4359 = vmatpush1.bf16.msra.mxu1 %v4303_v17  ;;  %v4290_v24 = vsel %vm1156_vm8, %v4279_v9, %v4281_v21  ;;  %v4283_v25 = vpop.permute.xlu0 %4282 }
 0x2fb   :  { %5817 = vrot.lane.b32.xlu1 %v14114_v55, %s13382_s12  ;;  %v4291_v26 = vsel %vm1156_vm8, %v4281_v21, %v4283_v25  ;;  %v4309_v28 = vsel %vm82_vm1, %v4290_v24, 0  ;;  %13099 = vmatprep.subr.bf16.mxu1 %v13376_v35  ;;  %v12580_v24 = vld [vmem:[%s16147_s3 + $0x1c] sm:$0xf] }
 0x2fc   :  { %6277 = vrot.lane.b32.xlu0 %v14457_v18, %s13367_s29  ;;  %12569 = vmatprep.subr.msk.bf16.mxu0 %vm82_vm1, %v4291_v26 }
 0x2fd   :  { %12568 = vmatmul.mubr.msk.bf16.vlgmr.msra.gmra.mrb[152].mxu1 %vm78_vm2, %v12564_v15  ;;  %4400 = vmatpush1.bf16.msra.mxu0 %v4309_v28  ;;  %v4285_v32 = vpop.permute.xlu1 %4284 }
 0x2fe   :  { %v4292_v36 = vsel %vm1156_vm8, %v4283_v25, %v4285_v32  ;;  %v4490_v37 = vpop.permute.xlu0 %4489  ;;  %13101 = vmatprep.mubr.msk.bf16.mxu1 %vm13378_vm4, %v13376_v35 }
 0x2ff   :  { %v4315_v38 = vsel %vm82_vm1, %v4292_v36, 0  ;;  %6279 = vrot.lane.b32.xlu1 %v14473_v29, %s13367_s29 }
 0x300   :  { %6281 = vrot.lane.b32.xlu0 %v14478_v30, %s13367_s29  ;;  %12570 = vmatmul.mubr.msk.bf16.vlgmr.msra.gmra.mrb[156].mxu0 %vm78_vm2, %v12564_v15 }
 0x301   :  { %13100 = vmatpush3.bf16.msra.mxu1 %v4315_v38  ;;  %v4492_v44 = vpop.permute.xlu1 %4491  ;;  %4568 = vmatprep.mubr.bf16.mxu0 %v13368_v10 }
 0x302   :  { %v4505_v49 = vsel %vm1376_vm9, %v4490_v37, %v4492_v44  ;;  %v4494_v46 = vpop.permute.xlu0 %4493 }
 0x303   :  { %v4506_v50 = vsel %vm1376_vm9, %v4492_v44, %v4494_v46  ;;  %v4516_v52 = vsel %vm82_vm1, %v4505_v49, 0  ;;  %6283 = vrot.lane.b32.xlu1 %v14493_v40, %s13367_s29 }
 0x304   :  { %6285 = vrot.lane.b32.xlu0 %v14498_v42, %s13367_s29  ;;  %12573 = vmatprep.subr.msk.bf16.mxu0 %vm82_vm1, %v4506_v50 }
 0x305   :  { %13102 = vmatmul.mubr.msk.bf16.vlgmr.msra.gmra.mrb[156].mxu1 %vm78_vm2, %v12564_v15  ;;  %4537 = vmatpush1.bf16.msra.mxu0 %v4516_v52  ;;  %v4496_v56 = vpop.permute.xlu1 %4495 }
 0x306   :  { %v4507_v60 = vsel %vm1376_vm9, %v4494_v46, %v4496_v56  ;;  %v4498_v3 = vpop.permute.xlu0 %4497  ;;  %4609 = vmatprep.mubr.bf16.mxu1 %v13368_v10 }
 0x307   :  { %v4508_v6 = vsel %vm1376_vm9, %v4496_v56, %v4498_v3  ;;  %v4522_v12 = vsel %vm82_vm1, %v4507_v60, 0  ;;  %6287 = vrot.lane.b32.xlu1 %v14512_v53, %s13367_s29  ;;  %v12588_v60 = vld [vmem:[%s16147_s3 + $0x20] sm:$0xf] }
 0x308   :  { %6289 = vrot.lane.b32.xlu0 %v14517_v54, %s13367_s29  ;;  %12574 = vmatmul.mubr.msk.bf16.vlgmr.msra.gmra.mrb[160].mxu0 %vm78_vm2, %v12572_v59 }
 0x309   :  { %12575 = vmatprep.subr.msk.bf16.mxu1 %vm82_vm1, %v4508_v6  ;;  %v4500_v11 = vpop.permute.xlu1 %4499  ;;  %4650 = vmatprep.mubr.bf16.mxu0 %v13368_v10 }
 0x30a   :  { %4578 = vmatpush1.bf16.msra.mxu1 %v4522_v12  ;;  %v4509_v63 = vsel %vm1376_vm9, %v4498_v3, %v4500_v11  ;;  %v4502_v0 = vpop.permute.xlu0 %4501 }
 0x30b   :  { %v4510_v1 = vsel %vm1376_vm9, %v4500_v11, %v4502_v0  ;;  %v4528_v4 = vsel %vm82_vm1, %v4509_v63, 0  ;;  %13105 = vmatprep.subr.bf16.mxu1 %v13376_v35  ;;  %6291 = vrot.lane.b32.xlu1 %v14532_v16, %s13367_s29 }
 0x30c   :  { %6487 = vrot.lane.b32.xlu0 %v14457_v18, %s13369_s14  ;;  %12577 = vmatprep.subr.msk.bf16.mxu0 %vm82_vm1, %v4510_v1 }
 0x30d   :  { %12576 = vmatmul.mubr.msk.bf16.vlgmr.msra.gmra.mrb[160].mxu1 %vm78_vm2, %v12572_v59  ;;  %4619 = vmatpush1.bf16.msra.mxu0 %v4528_v4  ;;  %v4504_v2 = vpop.permute.xlu1 %4503 }
 0x30e   :  { %v4511_v15 = vsel %vm1376_vm9, %v4502_v0, %v4504_v2  ;;  %v4709_v5 = vpop.permute.xlu0 %4708  ;;  %13107 = vmatprep.mubr.msk.bf16.mxu1 %vm13378_vm4, %v13376_v35 }
 0x30f   :  { %v4534_v8 = vsel %vm82_vm1, %v4511_v15, 0  ;;  %6489 = vrot.lane.b32.xlu1 %v14473_v29, %s13369_s14 }
 0x310   :  { %6491 = vrot.lane.b32.xlu0 %v14478_v30, %s13369_s14  ;;  %12578 = vmatmul.mubr.msk.bf16.vlgmr.msra.gmra.mrb[164].mxu0 %vm78_vm2, %v12572_v59 }
 0x311   :  { %13106 = vmatpush3.bf16.msra.mxu1 %v4534_v8  ;;  %v4711_v9 = vpop.permute.xlu1 %4710  ;;  %4787 = vmatprep.mubr.bf16.mxu0 %v13368_v10 }
 0x312   :  { %v4724_v14 = vsel %vm1596_vm10, %v4709_v5, %v4711_v9  ;;  %v4713_v17 = vpop.permute.xlu0 %4712 }
 0x313   :  { %v4725_v19 = vsel %vm1596_vm10, %v4711_v9, %v4713_v17  ;;  %v4735_v21 = vsel %vm82_vm1, %v4724_v14, 0  ;;  %6493 = vrot.lane.b32.xlu1 %v14493_v40, %s13369_s14 }
 0x314   :  { %6495 = vrot.lane.b32.xlu0 %v14498_v42, %s13369_s14  ;;  %12581 = vmatprep.subr.msk.bf16.mxu0 %vm82_vm1, %v4725_v19 }
 0x315   :  { %13108 = vmatmul.mubr.msk.bf16.vlgmr.msra.gmra.mrb[164].mxu1 %vm78_vm2, %v12572_v59  ;;  %4756 = vmatpush1.bf16.msra.mxu0 %v4735_v21  ;;  %v4715_v22 = vpop.permute.xlu1 %4714 }
 0x316   :  { %v4726_v25 = vsel %vm1596_vm10, %v4713_v17, %v4715_v22  ;;  %v4717_v26 = vpop.permute.xlu0 %4716  ;;  %4828 = vmatprep.mubr.bf16.mxu1 %v13368_v10 }
 0x317   :  { %v4727_v28 = vsel %vm1596_vm10, %v4715_v22, %v4717_v26  ;;  %v4741_v31 = vsel %vm82_vm1, %v4726_v25, 0  ;;  %6497 = vrot.lane.b32.xlu1 %v14512_v53, %s13369_s14  ;;  %v12596_v25 = vld [vmem:[%s16147_s3 + $0x24] sm:$0xf] }
 0x318   :  { %6499 = vrot.lane.b32.xlu0 %v14517_v54, %s13369_s14  ;;  %12582 = vmatmul.mubr.msk.bf16.vlgmr.msra.gmra.mrb[168].mxu0 %vm78_vm2, %v12580_v24 }
 0x319   :  { %12583 = vmatprep.subr.msk.bf16.mxu1 %vm82_vm1, %v4727_v28  ;;  %v4719_v32 = vpop.permute.xlu1 %4718  ;;  %4869 = vmatprep.mubr.bf16.mxu0 %v13368_v10 }
 0x31a   :  { %4797 = vmatpush1.bf16.msra.mxu1 %v4741_v31  ;;  %v4728_v34 = vsel %vm1596_vm10, %v4717_v26, %v4719_v32  ;;  %v4721_v36 = vpop.permute.xlu0 %4720 }
 0x31b   :  { %v4729_v37 = vsel %vm1596_vm10, %v4719_v32, %v4721_v36  ;;  %v4747_v38 = vsel %vm82_vm1, %v4728_v34, 0  ;;  %13111 = vmatprep.subr.bf16.mxu1 %v13376_v35  ;;  %6501 = vrot.lane.b32.xlu1 %v14532_v16, %s13369_s14 }
 0x31c   :  { %6698 = vrot.lane.b32.xlu0 %v14457_v18, %s13370_s15  ;;  %12585 = vmatprep.subr.msk.bf16.mxu0 %vm82_vm1, %v4729_v37 }
 0x31d   :  { %12584 = vmatmul.mubr.msk.bf16.vlgmr.msra.gmra.mrb[168].mxu1 %vm78_vm2, %v12580_v24  ;;  %4838 = vmatpush1.bf16.msra.mxu0 %v4747_v38  ;;  %v4723_v43 = vpop.permute.xlu1 %4722 }
 0x31e   :  { %v4730_v44 = vsel %vm1596_vm10, %v4721_v36, %v4723_v43  ;;  %v4928_v47 = vpop.permute.xlu0 %4927  ;;  %13113 = vmatprep.mubr.msk.bf16.mxu1 %vm13378_vm4, %v13376_v35 }
 0x31f   :  { %v4753_v49 = vsel %vm82_vm1, %v4730_v44, 0  ;;  %6700 = vrot.lane.b32.xlu1 %v14473_v29, %s13370_s15 }
 0x320   :  { %6702 = vrot.lane.b32.xlu0 %v14478_v30, %s13370_s15  ;;  %12586 = vmatmul.mubr.msk.bf16.vlgmr.msra.gmra.mrb[172].mxu0 %vm78_vm2, %v12580_v24 }
 0x321   :  { %13112 = vmatpush3.bf16.msra.mxu1 %v4753_v49  ;;  %v4930_v46 = vpop.permute.xlu1 %4929  ;;  %5006 = vmatprep.mubr.bf16.mxu0 %v13368_v10 }
 0x322   :  { %v4943_v50 = vsel %vm1816_vm11, %v4928_v47, %v4930_v46  ;;  %v4932_v52 = vpop.permute.xlu0 %4931 }
 0x323   :  { %v4944_v58 = vsel %vm1816_vm11, %v4930_v46, %v4932_v52  ;;  %v4954_v56 = vsel %vm82_vm1, %v4943_v50, 0  ;;  %6704 = vrot.lane.b32.xlu1 %v14493_v40, %s13370_s15 }
 0x324   :  { %6706 = vrot.lane.b32.xlu0 %v14498_v42, %s13370_s15  ;;  %12589 = vmatprep.subr.msk.bf16.mxu0 %vm82_vm1, %v4944_v58 }
 0x325   :  { %13114 = vmatmul.mubr.msk.bf16.vlgmr.msra.gmra.mrb[172].mxu1 %vm78_vm2, %v12580_v24  ;;  %4975 = vmatpush1.bf16.msra.mxu0 %v4954_v56  ;;  %v4934_v59 = vpop.permute.xlu1 %4933 }
 0x326   :  { %v4945_v3 = vsel %vm1816_vm11, %v4932_v52, %v4934_v59  ;;  %v4936_v6 = vpop.permute.xlu0 %4935  ;;  %5047 = vmatprep.mubr.bf16.mxu1 %v13368_v10 }
 0x327   :  { %v4946_v12 = vsel %vm1816_vm11, %v4934_v59, %v4936_v6  ;;  %v4960_v11 = vsel %vm82_vm1, %v4945_v3, 0  ;;  %6708 = vrot.lane.b32.xlu1 %v14512_v53, %s13370_s15  ;;  %v12604_v3 = vld [vmem:[%s16147_s3 + $0x28] sm:$0xf] }
 0x328   :  { %6710 = vrot.lane.b32.xlu0 %v14517_v54, %s13370_s15  ;;  %12590 = vmatmul.mubr.msk.bf16.vlgmr.msra.gmra.mrb[176].mxu0 %vm78_vm2, %v12588_v60 }
 0x329   :  { %12591 = vmatprep.subr.msk.bf16.mxu1 %vm82_vm1, %v4946_v12  ;;  %v4938_v63 = vpop.permute.xlu1 %4937  ;;  %5088 = vmatprep.mubr.bf16.mxu0 %v13368_v10 }
 0x32a   :  { %5016 = vmatpush1.bf16.msra.mxu1 %v4960_v11  ;;  %v4947_v0 = vsel %vm1816_vm11, %v4936_v6, %v4938_v63  ;;  %v4940_v1 = vpop.permute.xlu0 %4939 }
 0x32b   :  { %v4948_v4 = vsel %vm1816_vm11, %v4938_v63, %v4940_v1  ;;  %v4966_v2 = vsel %vm82_vm1, %v4947_v0, 0  ;;  %13117 = vmatprep.subr.bf16.mxu1 %v13376_v35  ;;  %6712 = vrot.lane.b32.xlu1 %v14532_v16, %s13370_s15 }
 0x32c   :  { %6916 = vrot.lane.b32.xlu0 %v14457_v18, %s13371_s16  ;;  %12593 = vmatprep.subr.msk.bf16.mxu0 %vm82_vm1, %v4948_v4 }
 0x32d   :  { %12592 = vmatmul.mubr.msk.bf16.vlgmr.msra.gmra.mrb[176].mxu1 %vm78_vm2, %v12588_v60  ;;  %5057 = vmatpush1.bf16.msra.mxu0 %v4966_v2  ;;  %v4942_v15 = vpop.permute.xlu1 %4941 }
 0x32e   :  { %v4949_v5 = vsel %vm1816_vm11, %v4940_v1, %v4942_v15  ;;  %v5147_v8 = vpop.permute.xlu0 %5146  ;;  %13119 = vmatprep.mubr.msk.bf16.mxu1 %vm13378_vm4, %v13376_v35 }
 0x32f   :  { %v4972_v9 = vsel %vm82_vm1, %v4949_v5, 0  ;;  %6918 = vrot.lane.b32.xlu1 %v14473_v29, %s13371_s16 }
 0x330   :  { %6920 = vrot.lane.b32.xlu0 %v14478_v30, %s13371_s16  ;;  %12594 = vmatmul.mubr.msk.bf16.vlgmr.msra.gmra.mrb[180].mxu0 %vm78_vm2, %v12588_v60 }
 0x331   :  { %13118 = vmatpush3.bf16.msra.mxu1 %v4972_v9  ;;  %v5149_v14 = vpop.permute.xlu1 %5148  ;;  %5225 = vmatprep.mubr.bf16.mxu0 %v13368_v10 }
 0x332   :  { %v5162_v17 = vsel %vm2036_vm12, %v5147_v8, %v5149_v14  ;;  %v5151_v19 = vpop.permute.xlu0 %5150 }
 0x333   :  { %v5163_v21 = vsel %vm2036_vm12, %v5149_v14, %v5151_v19  ;;  %v5173_v22 = vsel %vm82_vm1, %v5162_v17, 0  ;;  %6922 = vrot.lane.b32.xlu1 %v14493_v40, %s13371_s16 }
 0x334   :  { %6924 = vrot.lane.b32.xlu0 %v14498_v42, %s13371_s16  ;;  %12597 = vmatprep.subr.msk.bf16.mxu0 %vm82_vm1, %v5163_v21 }
 0x335   :  { %13120 = vmatmul.mubr.msk.bf16.vlgmr.msra.gmra.mrb[180].mxu1 %vm78_vm2, %v12588_v60  ;;  %5194 = vmatpush1.bf16.msra.mxu0 %v5173_v22  ;;  %v5153_v24 = vpop.permute.xlu1 %5152 }
 0x336   :  { %v5164_v26 = vsel %vm2036_vm12, %v5151_v19, %v5153_v24  ;;  %v5155_v28 = vpop.permute.xlu0 %5154  ;;  %5266 = vmatprep.mubr.bf16.mxu1 %v13368_v10 }
 0x337   :  { %v5165_v31 = vsel %vm2036_vm12, %v5153_v24, %v5155_v28  ;;  %v5179_v32 = vsel %vm82_vm1, %v5164_v26, 0  ;;  %6926 = vrot.lane.b32.xlu1 %v14512_v53, %s13371_s16  ;;  %v12612_v26 = vld [vmem:[%s16147_s3 + $0x2c] sm:$0xf] }
 0x338   :  { %6928 = vrot.lane.b32.xlu0 %v14517_v54, %s13371_s16  ;;  %12598 = vmatmul.mubr.msk.bf16.vlgmr.msra.gmra.mrb[184].mxu0 %vm78_vm2, %v12596_v25 }
 0x339   :  { %12599 = vmatprep.subr.msk.bf16.mxu1 %vm82_vm1, %v5165_v31  ;;  %v5157_v34 = vpop.permute.xlu1 %5156  ;;  %5307 = vmatprep.mubr.bf16.mxu0 %v13368_v10 }
 0x33a   :  { %5235 = vmatpush1.bf16.msra.mxu1 %v5179_v32  ;;  %v5166_v36 = vsel %vm2036_vm12, %v5155_v28, %v5157_v34  ;;  %v5159_v37 = vpop.permute.xlu0 %5158 }
 0x33b   :  { %v5167_v38 = vsel %vm2036_vm12, %v5157_v34, %v5159_v37  ;;  %v5185_v43 = vsel %vm82_vm1, %v5166_v36, 0  ;;  %13123 = vmatprep.subr.bf16.mxu1 %v13376_v35  ;;  %6930 = vrot.lane.b32.xlu1 %v14532_v16, %s13371_s16 }
 0x33c   :  { %7134 = vrot.lane.b32.xlu0 %v14457_v18, %s13372_s17  ;;  %12601 = vmatprep.subr.msk.bf16.mxu0 %vm82_vm1, %v5167_v38 }
 0x33d   :  { %12600 = vmatmul.mubr.msk.bf16.vlgmr.msra.gmra.mrb[184].mxu1 %vm78_vm2, %v12596_v25  ;;  %5276 = vmatpush1.bf16.msra.mxu0 %v5185_v43  ;;  %v5161_v44 = vpop.permute.xlu1 %5160 }
 0x33e   :  { %v5168_v47 = vsel %vm2036_vm12, %v5159_v37, %v5161_v44  ;;  %v5366_v49 = vpop.permute.xlu0 %5365  ;;  %13125 = vmatprep.mubr.msk.bf16.mxu1 %vm13378_vm4, %v13376_v35 }
 0x33f   :  { %v5191_v46 = vsel %vm82_vm1, %v5168_v47, 0  ;;  %7136 = vrot.lane.b32.xlu1 %v14473_v29, %s13372_s17 }
 0x340   :  { %7138 = vrot.lane.b32.xlu0 %v14478_v30, %s13372_s17  ;;  %12602 = vmatmul.mubr.msk.bf16.vlgmr.msra.gmra.mrb[188].mxu0 %vm78_vm2, %v12596_v25 }
 0x341   :  { %13124 = vmatpush3.bf16.msra.mxu1 %v5191_v46  ;;  %v5368_v50 = vpop.permute.xlu1 %5367  ;;  %5444 = vmatprep.mubr.bf16.mxu0 %v13368_v10 }
 0x342   :  { %v5381_v52 = vsel %vm2256_vm13, %v5366_v49, %v5368_v50  ;;  %v5370_v58 = vpop.permute.xlu0 %5369 }
 0x343   :  { %v5382_v56 = vsel %vm2256_vm13, %v5368_v50, %v5370_v58  ;;  %v5392_v59 = vsel %vm82_vm1, %v5381_v52, 0  ;;  %7140 = vrot.lane.b32.xlu1 %v14493_v40, %s13372_s17 }
 0x344   :  { %7142 = vrot.lane.b32.xlu0 %v14498_v42, %s13372_s17  ;;  %12605 = vmatprep.subr.msk.bf16.mxu0 %vm82_vm1, %v5382_v56 }
 0x345   :  { %13126 = vmatmul.mubr.msk.bf16.vlgmr.msra.gmra.mrb[188].mxu1 %vm78_vm2, %v12596_v25  ;;  %5413 = vmatpush1.bf16.msra.mxu0 %v5392_v59  ;;  %v5372_v60 = vpop.permute.xlu1 %5371 }
 0x346   :  { %v5383_v6 = vsel %vm2256_vm13, %v5370_v58, %v5372_v60  ;;  %v5374_v12 = vpop.permute.xlu0 %5373  ;;  %5485 = vmatprep.mubr.bf16.mxu1 %v13368_v10 }
 0x347   :  { %v5384_v11 = vsel %vm2256_vm13, %v5372_v60, %v5374_v12  ;;  %v5398_v63 = vsel %vm82_vm1, %v5383_v6, 0  ;;  %7144 = vrot.lane.b32.xlu1 %v14512_v53, %s13372_s17  ;;  %v12620_v6 = vld [vmem:[%s16147_s3 + $0x30] sm:$0xf] }
 0x348   :  { %7146 = vrot.lane.b32.xlu0 %v14517_v54, %s13372_s17  ;;  %12606 = vmatmul.mubr.msk.bf16.vlgmr.msra.gmra.mrb[192].mxu0 %vm78_vm2, %v12604_v3 }
 0x349   :  { %12607 = vmatprep.subr.msk.bf16.mxu1 %vm82_vm1, %v5384_v11  ;;  %v5376_v0 = vpop.permute.xlu1 %5375  ;;  %5526 = vmatprep.mubr.bf16.mxu0 %v13368_v10 }
 0x34a   :  { %5454 = vmatpush1.bf16.msra.mxu1 %v5398_v63  ;;  %v5385_v1 = vsel %vm2256_vm13, %v5374_v12, %v5376_v0  ;;  %v5378_v4 = vpop.permute.xlu0 %5377 }
 0x34b   :  { %v5386_v2 = vsel %vm2256_vm13, %v5376_v0, %v5378_v4  ;;  %v5404_v15 = vsel %vm82_vm1, %v5385_v1, 0  ;;  %13129 = vmatprep.subr.bf16.mxu1 %v13376_v35  ;;  %7148 = vrot.lane.b32.xlu1 %v14532_v16, %s13372_s17 }
 0x34c   :  { %7352 = vrot.lane.b32.xlu0 %v14457_v18, %s13373_s18  ;;  %12609 = vmatprep.subr.msk.bf16.mxu0 %vm82_vm1, %v5386_v2 }
 0x34d   :  { %12608 = vmatmul.mubr.msk.bf16.vlgmr.msra.gmra.mrb[192].mxu1 %vm78_vm2, %v12604_v3  ;;  %5495 = vmatpush1.bf16.msra.mxu0 %v5404_v15  ;;  %v5380_v5 = vpop.permute.xlu1 %5379 }
 0x34e   :  { %v5387_v8 = vsel %vm2256_vm13, %v5378_v4, %v5380_v5  ;;  %v5585_v9 = vpop.permute.xlu0 %5584  ;;  %13131 = vmatprep.mubr.msk.bf16.mxu1 %vm13378_vm4, %v13376_v35 }
 0x34f   :  { %v5410_v14 = vsel %vm82_vm1, %v5387_v8, 0  ;;  %7354 = vrot.lane.b32.xlu1 %v14473_v29, %s13373_s18 }
 0x350   :  { %7356 = vrot.lane.b32.xlu0 %v14478_v30, %s13373_s18  ;;  %12610 = vmatmul.mubr.msk.bf16.vlgmr.msra.gmra.mrb[196].mxu0 %vm78_vm2, %v12604_v3 }
 0x351   :  { %13130 = vmatpush3.bf16.msra.mxu1 %v5410_v14  ;;  %v5587_v17 = vpop.permute.xlu1 %5586  ;;  %5663 = vmatprep.mubr.bf16.mxu0 %v13368_v10 }
 0x352   :  { %v5600_v19 = vsel %vm2476_vm14, %v5585_v9, %v5587_v17  ;;  %v5589_v21 = vpop.permute.xlu0 %5588 }
 0x353   :  { %v5601_v22 = vsel %vm2476_vm14, %v5587_v17, %v5589_v21  ;;  %v5611_v24 = vsel %vm82_vm1, %v5600_v19, 0  ;;  %7358 = vrot.lane.b32.xlu1 %v14493_v40, %s13373_s18  ;;  %v6026_v19 = vsel %vm82_vm1, %v14078_v23, 0  ;;  %v6032_v23 = vsel %vm82_vm1, %v14093_v41, 0 }
 0x354   :  { %7360 = vrot.lane.b32.xlu0 %v14498_v42, %s13373_s18  ;;  %12613 = vmatprep.subr.msk.bf16.mxu0 %vm82_vm1, %v5601_v22  ;;  %v6038_v41 = vsel %vm82_vm1, %v14105_v48, 0 }
 0x355   :  { %13132 = vmatmul.mubr.msk.bf16.vlgmr.msra.gmra.mrb[196].mxu1 %vm78_vm2, %v12604_v3  ;;  %5632 = vmatpush1.bf16.msra.mxu0 %v5611_v24  ;;  %v5591_v25 = vpop.permute.xlu1 %5590 }
 0x356   :  { %v5602_v28 = vsel %vm2476_vm14, %v5589_v21, %v5591_v25  ;;  %v5593_v31 = vpop.permute.xlu0 %5592  ;;  %5704 = vmatprep.mubr.bf16.mxu1 %v13368_v10 }
 0x357   :  { %v5603_v32 = vsel %vm2476_vm14, %v5591_v25, %v5593_v31  ;;  %v5617_v34 = vsel %vm82_vm1, %v5602_v28, 0  ;;  %7362 = vrot.lane.b32.xlu1 %v14512_v53, %s13373_s18 }
 0x358   :  { %7364 = vrot.lane.b32.xlu0 %v14517_v54, %s13373_s18  ;;  %12614 = vmatmul.mubr.msk.bf16.vlgmr.msra.gmra.mrb[200].mxu0 %vm78_vm2, %v12612_v26 }
 0x359   :  { %12615 = vmatprep.subr.msk.bf16.mxu1 %vm82_vm1, %v5603_v32  ;;  %v5595_v36 = vpop.permute.xlu1 %5594  ;;  %5745 = vmatprep.mubr.bf16.mxu0 %v13368_v10 }
 0x35a   :  { %5673 = vmatpush1.bf16.msra.mxu1 %v5617_v34  ;;  %v5604_v37 = vsel %vm2476_vm14, %v5593_v31, %v5595_v36  ;;  %v5597_v38 = vpop.permute.xlu0 %5596  ;;  %v6044_v34 = vsel %vm82_vm1, %v14114_v55, 0 }
 0x35b   :  { %v5605_v43 = vsel %vm2476_vm14, %v5595_v36, %v5597_v38  ;;  %v5623_v44 = vsel %vm82_vm1, %v5604_v37, 0  ;;  %13135 = vmatprep.subr.bf16.mxu1 %v13376_v35  ;;  %7366 = vrot.lane.b32.xlu1 %v14532_v16, %s13373_s18 }
 0x35c   :  { %7570 = vrot.lane.b32.xlu0 %v14457_v18, %s13374_s19  ;;  %12617 = vmatprep.subr.msk.bf16.mxu0 %vm82_vm1, %v5605_v43 }
 0x35d   :  { %12616 = vmatmul.mubr.msk.bf16.vlgmr.msra.gmra.mrb[200].mxu1 %vm78_vm2, %v12612_v26  ;;  %5714 = vmatpush1.bf16.msra.mxu0 %v5623_v44  ;;  %v5599_v47 = vpop.permute.xlu1 %5598 }
 0x35e   :  { %v5606_v49 = vsel %vm2476_vm14, %v5597_v38, %v5599_v47  ;;  %v5804_v46 = vpop.permute.xlu0 %5803  ;;  %13137 = vmatprep.mubr.msk.bf16.mxu1 %vm13378_vm4, %v13376_v35 }
 0x35f   :  { %v5629_v50 = vsel %vm82_vm1, %v5606_v49, 0  ;;  %7572 = vrot.lane.b32.xlu1 %v14473_v29, %s13374_s19 }
 0x360   :  { %7574 = vrot.lane.b32.xlu0 %v14478_v30, %s13374_s19  ;;  %12618 = vmatmul.mubr.msk.bf16.vlgmr.msra.gmra.mrb[204].mxu0 %vm78_vm2, %v12612_v26 }
 0x361   :  { %13136 = vmatpush3.bf16.msra.mxu1 %v5629_v50  ;;  %v5806_v52 = vpop.permute.xlu1 %5805  ;;  %5882 = vmatprep.mubr.bf16.mxu0 %v13368_v10 }
 0x362   :  { %v5819_v58 = vsel %vm2696_vm15, %v5804_v46, %v5806_v52  ;;  %v5808_v56 = vpop.permute.xlu0 %5807 }
 0x363   :  { %v5820_v59 = vsel %vm2696_vm15, %v5806_v52, %v5808_v56  ;;  %v5830_v60 = vsel %vm82_vm1, %v5819_v58, 0  ;;  %7576 = vrot.lane.b32.xlu1 %v14493_v40, %s13374_s19 }
 0x364   :  { %7578 = vrot.lane.b32.xlu0 %v14498_v42, %s13374_s19  ;;  %12621 = vmatprep.subr.msk.bf16.mxu0 %vm82_vm1, %v5820_v59 }
 0x365   :  { %13138 = vmatmul.mubr.msk.bf16.vlgmr.msra.gmra.mrb[204].mxu1 %vm78_vm2, %v12612_v26  ;;  %5851 = vmatpush1.bf16.msra.mxu0 %v5830_v60  ;;  %v5810_v3 = vpop.permute.xlu1 %5809 }
 0x366   :  { %v5821_v12 = vsel %vm2696_vm15, %v5808_v56, %v5810_v3  ;;  %v5812_v11 = vpop.permute.xlu0 %5811  ;;  %5923 = vmatprep.mubr.bf16.mxu1 %v13368_v10 }
 0x367   :  { %v5822_v63 = vsel %vm2696_vm15, %v5810_v3, %v5812_v11  ;;  %v5836_v0 = vsel %vm82_vm1, %v5821_v12, 0  ;;  %7580 = vrot.lane.b32.xlu1 %v14512_v53, %s13374_s19 }
 0x368   :  { %7582 = vrot.lane.b32.xlu0 %v14517_v54, %s13374_s19  ;;  %12622 = vmatmul.mubr.msk.bf16.vlgmr.msra.gmra.mrb[208].mxu0 %vm78_vm2, %v12620_v6 }
 0x369   :  { %12623 = vmatprep.subr.msk.bf16.mxu1 %vm82_vm1, %v5822_v63  ;;  %v5814_v1 = vpop.permute.xlu1 %5813  ;;  %5964 = vmatprep.mubr.bf16.mxu0 %v13368_v10 }
 0x36a   :  { %5892 = vmatpush1.bf16.msra.mxu1 %v5836_v0  ;;  %v5823_v4 = vsel %vm2696_vm15, %v5812_v11, %v5814_v1  ;;  %v5816_v2 = vpop.permute.xlu0 %5815  ;;  %v14891_v11 = vld [vmem:[%s16145_s1 + $0x4] sm:$0xf] }
 0x36b   :  { %v5824_v15 = vsel %vm2696_vm15, %v5814_v1, %v5816_v2  ;;  %v5842_v5 = vsel %vm82_vm1, %v5823_v4, 0  ;;  %13141 = vmatprep.subr.bf16.mxu1 %v13376_v35  ;;  %7584 = vrot.lane.b32.xlu1 %v14532_v16, %s13374_s19 }
 0x36c   :  { %7788 = vrot.lane.b32.xlu0 %v14457_v18, %s13375_s20  ;;  %12625 = vmatprep.subr.msk.bf16.mxu0 %vm82_vm1, %v5824_v15 }
 0x36d   :  { %12624 = vmatmul.mubr.msk.bf16.vlgmr.msra.gmra.mrb[208].mxu1 %vm78_vm2, %v12620_v6  ;;  %5933 = vmatpush1.bf16.msra.mxu0 %v5842_v5  ;;  %v5818_v8 = vpop.permute.xlu1 %5817 }
 0x36e   :  { %v5825_v9 = vsel %vm2696_vm15, %v5816_v2, %v5818_v8  ;;  %12629 = vmatprep.subr.msk.bf16.mxu0 %vm82_vm1, %v14080_v27  ;;  %13143 = vmatprep.mubr.msk.bf16.mxu1 %vm13378_vm4, %v13376_v35  ;;  %v6278_v14 = vpop.permute.xlu0 %6277 }
 0x36f   :  { %v5848_v17 = vsel %vm82_vm1, %v5825_v9, 0  ;;  %7790 = vrot.lane.b32.xlu1 %v14473_v29, %s13375_s20 }
 0x370   :  { %7792 = vrot.lane.b32.xlu0 %v14478_v30, %s13375_s20  ;;  %12626 = vmatmul.mubr.msk.bf16.vlgmr.msra.gmra.mrb[212].mxu0 %vm78_vm2, %v12620_v6 }
 0x371   :  { %13142 = vmatpush3.bf16.msra.mxu1 %v5848_v17  ;;  %6047 = vmatpush1.bf16.msra.mxu0 %v6026_v19  ;;  %v6280_v27 = vpop.permute.xlu1 %6279 }
 0x372   :  { %12631 = vmatprep.subr.msk.bf16.mxu1 %vm82_vm1, %v14095_v45  ;;  %12633 = vmatprep.subr.msk.bf16.mxu0 %vm82_vm1, %v14107_v57  ;;  %v6282_v21 = vpop.permute.xlu0 %6281  ;;  %v12628_v45 = vld [vmem:[%s16147_s3 + $0x34] sm:$0xf]  ;;  %v6293_v31 = vsel %vm70_vm0, %v6278_v14, %v6280_v27 }
 0x373   :  { %6078 = vmatprep.mubr.bf16.mxu0 %v13368_v10  ;;  %7794 = vrot.lane.b32.xlu1 %v14493_v40, %s13375_s20  ;;  %v6294_v24 = vsel %vm70_vm0, %v6280_v27, %v6282_v21  ;;  %v6304_v43 = vsel %vm82_vm1, %v6293_v31, 0 }
 0x374   :  { %7796 = vrot.lane.b32.xlu0 %v14498_v42, %s13375_s20 }
 0x375   :  { %13144 = vmatmul.mubr.msk.bf16.vlgmr.msra.gmra.mrb[212].mxu1 %vm78_vm2, %v12620_v6  ;;  %v6284_v22 = vpop.permute.xlu1 %6283 }
 0x376   :  { %6088 = vmatpush1.bf16.msra.mxu1 %v6032_v23  ;;  %6119 = vmatprep.mubr.bf16.mxu1 %v13368_v10  ;;  %v6286_v57 = vpop.permute.xlu0 %6285  ;;  %v6295_v55 = vsel %vm70_vm0, %v6282_v21, %v6284_v22 }
 0x377   :  { %13147 = vmatprep.subr.bf16.mxu1 %v13376_v35  ;;  %7798 = vrot.lane.b32.xlu1 %v14512_v53, %s13375_s20  ;;  %v6296_v48 = vsel %vm70_vm0, %v6284_v22, %v6286_v57  ;;  %v6310_v60 = vsel %vm82_vm1, %v6295_v55, 0 }
 0x378   :  { %7800 = vrot.lane.b32.xlu0 %v14517_v54, %s13375_s20  ;;  %12630 = vmatmul.mubr.msk.bf16.vlgmr.msra.gmra.mrb[216].mxu0 %vm78_vm2, %v12628_v45 }
 0x379   :  { %6129 = vmatpush1.bf16.msra.mxu0 %v6038_v41  ;;  %6160 = vmatprep.mubr.bf16.mxu0 %v13368_v10  ;;  %v6288_v25 = vpop.permute.xlu1 %6287 }
 0x37a   :  { %12645 = vmatprep.subr.msk.bf16.mxu0 %vm82_vm1, %v6294_v24  ;;  %v6290_v26 = vpop.permute.xlu0 %6289  ;;  %v6297_v3 = vsel %vm70_vm0, %v6286_v57, %v6288_v25 }
 0x37b   :  { %v14847_v28 = vpop.f32.mrb[112].mxu0  ;;  %7802 = vrot.lane.b32.xlu1 %v14532_v16, %s13375_s20  ;;  %v6298_v47 = vsel %vm70_vm0, %v6288_v25, %v6290_v26  ;;  %v6316_v1 = vsel %vm82_vm1, %v6297_v3, 0  ;;  %v14960_v3 = vld [vmem:[%s16145_s1] sm:$0xf] }
 0x37c   :  { %8006 = vrot.lane.b32.xlu0 %v14457_v18, %s13377_s23  ;;  %v14854_v32 = vpop.f32.mrb[113].mxu0 }
 0x37d   :  { %12632 = vmatmul.mubr.msk.bf16.vlgmr.msra.gmra.mrb[216].mxu1 %vm78_vm2, %v12628_v45  ;;  %v3276_v36 = vpop.f32.mrb[114].mxu0  ;;  %v6292_v37 = vpop.permute.xlu1 %6291 }
 0x37e   :  { %13148 = vmatpush3.bf16.msra.mxu1 %v6044_v34  ;;  %v3277_v38 = vpop.f32.mrb[115].mxu0  ;;  %13149 = vmatprep.mubr.msk.bf16.mxu1 %vm13378_vm4, %v13376_v35  ;;  %v6488_v44 = vpop.permute.xlu0 %6487  ;;  %v6299_v5 = vsel %vm70_vm0, %v6290_v26, %v6292_v37 }
 0x37f   :  { %12647 = vmatprep.subr.msk.bf16.mxu1 %vm82_vm1, %v6296_v48  ;;  %8008 = vrot.lane.b32.xlu1 %v14473_v29, %s13377_s23  ;;  %v6322_v27 = vsel %vm82_vm1, %v6299_v5, 0 }
 0x380   :  { %v14867_v49 = vpop.f32.mrb[112].mxu1  ;;  %8010 = vrot.lane.b32.xlu0 %v14478_v30, %s13377_s23  ;;  %12634 = vmatmul.mubr.msk.bf16.vlgmr.msra.gmra.mrb[220].mxu0 %vm78_vm2, %v12628_v45 }
 0x381   :  { %v14873_v46 = vpop.f32.mrb[113].mxu1  ;;  %6325 = vmatpush1.bf16.msra.mxu0 %v6304_v43  ;;  %6356 = vmatprep.mubr.bf16.mxu0 %v13368_v10  ;;  %v6490_v50 = vpop.permute.xlu1 %6489 }
 0x382   :  { %v3317_v52 = vpop.f32.mrb[114].mxu1  ;;  %12649 = vmatprep.subr.msk.bf16.mxu0 %vm82_vm1, %v6298_v47  ;;  %v6492_v58 = vpop.permute.xlu0 %6491  ;;  %v6503_v23 = vsel %vm283_vm3, %v6488_v44, %v6490_v50 }
 0x383   :  { %v3318_v56 = vpop.f32.mrb[115].mxu1  ;;  %v14877_v59 = vpop.f32.mrb[116].mxu0  ;;  %8012 = vrot.lane.b32.xlu1 %v14493_v40, %s13377_s23  ;;  %v6504_v2 = vsel %vm283_vm3, %v6490_v50, %v6492_v58  ;;  %v6514_v31 = vsel %vm82_vm1, %v6503_v23, 0 }
 0x384   :  { %8014 = vrot.lane.b32.xlu0 %v14498_v42, %s13377_s23  ;;  %v14885_v6 = vpop.f32.mrb[117].mxu0 }
 0x385   :  { %13150 = vmatmul.mubr.msk.bf16.vlgmr.msra.gmra.mrb[220].mxu1 %vm78_vm2, %v12628_v45  ;;  %v3358_v12 = vpop.f32.mrb[118].mxu0  ;;  %v6494_v63 = vpop.permute.xlu1 %6493 }
 0x386   :  { %6366 = vmatpush1.bf16.msra.mxu1 %v6310_v60  ;;  %v3359_v0 = vpop.f32.mrb[119].mxu0  ;;  %6397 = vmatprep.mubr.bf16.mxu1 %v13368_v10  ;;  %v6496_v4 = vpop.permute.xlu0 %6495  ;;  %v6505_v34 = vsel %vm283_vm3, %v6492_v58, %v6494_v63 }
 0x387   :  { %13153 = vmatprep.subr.bf16.mxu1 %v13376_v35  ;;  %8016 = vrot.lane.b32.xlu1 %v14512_v53, %s13377_s23  ;;  %v6506_v57 = vsel %vm283_vm3, %v6494_v63, %v6496_v4  ;;  %v6520_v52 = vsel %vm82_vm1, %v6505_v34, 0 }
 0x388   :  { %v14899_v15 = vpop.f32.mrb[116].mxu1  ;;  %8018 = vrot.lane.b32.xlu0 %v14517_v54, %s13377_s23  ;;  %12646 = vmatmul.mubr.msk.bf16.vlgmr.msra.gmra.mrb[224].mxu0 %vm78_vm2, %v14891_v11 }
 0x389   :  { %v13073_v8 = vpop.f32.mrb[117].mxu1  ;;  %6407 = vmatpush1.bf16.msra.mxu0 %v6316_v1  ;;  %6438 = vmatprep.mubr.bf16.mxu0 %v13368_v10  ;;  %v6498_v9 = vpop.permute.xlu1 %6497 }
 0x38a   :  { %v3398_v14 = vpop.f32.mrb[118].mxu1  ;;  %12652 = vmatprep.subr.msk.bf16.mxu0 %vm82_vm1, %v6504_v2  ;;  %v6500_v17 = vpop.permute.xlu0 %6499  ;;  %v6507_v58 = vsel %vm283_vm3, %v6496_v4, %v6498_v9 }
 0x38b   :  { %v13074_v19 = vpop.f32.mrb[119].mxu1  ;;  %v3482_v21 = vpop.f32.mrb[120].mxu0  ;;  %8020 = vrot.lane.b32.xlu1 %v14532_v16, %s13377_s23  ;;  %v6508_v48 = vsel %vm283_vm3, %v6498_v9, %v6500_v17  ;;  %v6526_v63 = vsel %vm82_vm1, %v6507_v58, 0 }
 0x38c   :  { %v14913_v45 = vadd.f32 %v3482_v21, %v14847_v28  ;;  %8224 = vrot.lane.b32.xlu0 %v14457_v18, %s13379_s26  ;;  %v3484_v22 = vpop.f32.mrb[121].mxu0 }
 0x38d   :  { %v14919_v24 = vadd.f32 %v3484_v22, %v14854_v32  ;;  %12648 = vmatmul.mubr.msk.bf16.vlgmr.msra.gmra.mrb[224].mxu1 %vm78_vm2, %v14891_v11  ;;  %v3486_v41 = vpop.f32.mrb[122].mxu0  ;;  %v6502_v25 = vpop.permute.xlu1 %6501 }
 0x38e   :  { %13154 = vmatpush3.bf16.msra.mxu1 %v6322_v27  ;;  %v3487_v26 = vpop.f32.mrb[123].mxu0  ;;  %13155 = vmatprep.mubr.msk.bf16.mxu1 %vm13378_vm4, %v13376_v35  ;;  %v6699_v28 = vpop.permute.xlu0 %6698  ;;  %v6509_v1 = vsel %vm283_vm3, %v6500_v17, %v6502_v25 }
 0x38f   :  { %12654 = vmatprep.subr.msk.bf16.mxu1 %vm82_vm1, %v6506_v57  ;;  %8226 = vrot.lane.b32.xlu1 %v14473_v29, %s13379_s26  ;;  %v6532_v19 = vsel %vm82_vm1, %v6509_v1, 0 }
 0x390   :  { %v3523_v32 = vpop.f32.mrb[120].mxu1  ;;  %8228 = vrot.lane.b32.xlu0 %v14478_v30, %s13379_s26  ;;  %12650 = vmatmul.mubr.msk.bf16.vlgmr.msra.gmra.mrb[228].mxu0 %vm78_vm2, %v14891_v11 }
 0x391   :  { %v14936_v36 = vadd.f32 %v3523_v32, %v14867_v49  ;;  %v3525_v37 = vpop.f32.mrb[121].mxu1  ;;  %6535 = vmatpush1.bf16.msra.mxu0 %v6514_v31  ;;  %6566 = vmatprep.mubr.bf16.mxu0 %v13368_v10  ;;  %v6701_v38 = vpop.permute.xlu1 %6700 }
 0x392   :  { %v14940_v43 = vadd.f32 %v3525_v37, %v14873_v46  ;;  %v3527_v44 = vpop.f32.mrb[122].mxu1  ;;  %12656 = vmatprep.subr.msk.bf16.mxu0 %vm82_vm1, %v6508_v48  ;;  %v6703_v47 = vpop.permute.xlu0 %6702  ;;  %v6714_v21 = vsel %vm496_vm5, %v6699_v28, %v6701_v38 }
 0x393   :  { %v3528_v55 = vpop.f32.mrb[123].mxu1  ;;  %v3564_v50 = vpop.f32.mrb[124].mxu0  ;;  %8230 = vrot.lane.b32.xlu1 %v14493_v40, %s13379_s26  ;;  %v6725_v26 = vsel %vm82_vm1, %v6714_v21, 0 }
 0x394   :  { %v14948_v49 = vadd.f32 %v3564_v50, %v14877_v59  ;;  %8232 = vrot.lane.b32.xlu0 %v14498_v42, %s13379_s26  ;;  %v3566_v46 = vpop.f32.mrb[125].mxu0 }
 0x395   :  { %v14953_v56 = vadd.f32 %v3566_v46, %v14885_v6  ;;  %13156 = vmatmul.mubr.msk.bf16.vlgmr.msra.gmra.mrb[228].mxu1 %vm78_vm2, %v14891_v11  ;;  %v3568_v60 = vpop.f32.mrb[126].mxu0  ;;  %v6705_v12 = vpop.permute.xlu1 %6704  ;;  %v6715_v6 = vsel %vm496_vm5, %v6701_v38, %v6703_v47 }
 0x396   :  { %6576 = vmatpush1.bf16.msra.mxu1 %v6520_v52  ;;  %v3569_v59 = vpop.f32.mrb[127].mxu0  ;;  %6607 = vmatprep.mubr.bf16.mxu1 %v13368_v10  ;;  %v6707_v0 = vpop.permute.xlu0 %6706  ;;  %v6716_v28 = vsel %vm496_vm5, %v6703_v47, %v6705_v12  ;;  %v15030_v60 = vld [vmem:[%s16145_s1 + $0x8] sm:$0xf] }
 0x397   :  { %13159 = vmatprep.subr.bf16.mxu1 %v13376_v35  ;;  %8234 = vrot.lane.b32.xlu1 %v14512_v53, %s13379_s26  ;;  %v6717_v23 = vsel %vm496_vm5, %v6705_v12, %v6707_v0  ;;  %v6731_v52 = vsel %vm82_vm1, %v6716_v28, 0 }
 0x398   :  { %v3605_v11 = vpop.f32.mrb[124].mxu1  ;;  %8236 = vrot.lane.b32.xlu0 %v14517_v54, %s13379_s26  ;;  %12653 = vmatmul.mubr.msk.bf16.vlgmr.msra.gmra.mrb[232].mxu0 %vm78_vm2, %v14960_v3 }
 0x399   :  { %v14974_v4 = vadd.f32 %v3605_v11, %v14899_v15  ;;  %v13079_v2 = vpop.f32.mrb[125].mxu1  ;;  %6617 = vmatpush1.bf16.msra.mxu0 %v6526_v63  ;;  %6648 = vmatprep.mubr.bf16.mxu0 %v13368_v10  ;;  %v6709_v5 = vpop.permute.xlu1 %6708 }
 0x39a   :  { %v3608_v8 = vpop.f32.mrb[126].mxu1  ;;  %12660 = vmatprep.subr.msk.bf16.mxu0 %vm82_vm1, %v6715_v6  ;;  %v6711_v9 = vpop.permute.xlu0 %6710  ;;  %v6718_v47 = vsel %vm496_vm5, %v6707_v0, %v6709_v5 }
 0x39b   :  { %v13080_v14 = vpop.f32.mrb[127].mxu1  ;;  %v3694_v27 = vpop.f32.mrb[128].mxu0  ;;  %8238 = vrot.lane.b32.xlu1 %v14532_v16, %s13379_s26  ;;  %v6719_v31 = vsel %vm496_vm5, %v6709_v5, %v6711_v9  ;;  %v6737_v59 = vsel %vm82_vm1, %v6718_v47, 0 }
 0x39c   :  { %v14983_v15 = vadd.f32 %v3694_v27, %v14913_v45  ;;  %8442 = vrot.lane.b32.xlu0 %v14457_v18, %s13380_s30  ;;  %v3696_v17 = vpop.f32.mrb[129].mxu0 }
 0x39d   :  { %v14989_v22 = vadd.f32 %v3696_v17, %v14919_v24  ;;  %12655 = vmatmul.mubr.msk.bf16.vlgmr.msra.gmra.mrb[232].mxu1 %vm78_vm2, %v14960_v3  ;;  %v3698_v57 = vpop.f32.mrb[130].mxu0  ;;  %v6713_v41 = vpop.permute.xlu1 %6712 }
 0x39e   :  { %13160 = vmatpush3.bf16.msra.mxu1 %v6532_v19  ;;  %v3699_v25 = vpop.f32.mrb[131].mxu0  ;;  %13161 = vmatprep.mubr.msk.bf16.mxu1 %vm13378_vm4, %v13376_v35  ;;  %v6917_v45 = vpop.permute.xlu0 %6916  ;;  %v6720_v0 = vsel %vm496_vm5, %v6711_v9, %v6713_v41 }
 0x39f   :  { %12662 = vmatprep.subr.msk.bf16.mxu1 %vm82_vm1, %v6717_v23  ;;  %8444 = vrot.lane.b32.xlu1 %v14473_v29, %s13380_s30  ;;  %v6743_v14 = vsel %vm82_vm1, %v6720_v0, 0 }
 0x3a0   :  { %v3735_v24 = vpop.f32.mrb[128].mxu1  ;;  %8446 = vrot.lane.b32.xlu0 %v14478_v30, %s13380_s30  ;;  %12657 = vmatmul.mubr.msk.bf16.vlgmr.msra.gmra.mrb[236].mxu0 %vm78_vm2, %v14960_v3 }
 0x3a1   :  { %v15006_v48 = vadd.f32 %v3735_v24, %v14936_v36  ;;  %v3737_v32 = vpop.f32.mrb[129].mxu1  ;;  %6746 = vmatpush1.bf16.msra.mxu0 %v6725_v26  ;;  %6777 = vmatprep.mubr.bf16.mxu0 %v13368_v10  ;;  %v6919_v34 = vpop.permute.xlu1 %6918 }
 0x3a2   :  { %v15010_v37 = vadd.f32 %v3737_v32, %v14940_v43  ;;  %v3739_v38 = vpop.f32.mrb[130].mxu1  ;;  %12664 = vmatprep.subr.msk.bf16.mxu0 %vm82_vm1, %v6719_v31  ;;  %v6921_v44 = vpop.permute.xlu0 %6920  ;;  %v6932_v27 = vsel %vm716_vm6, %v6917_v45, %v6919_v34 }
 0x3a3   :  { %v3740_v55 = vpop.f32.mrb[131].mxu1  ;;  %v3776_v50 = vpop.f32.mrb[132].mxu0  ;;  %8448 = vrot.lane.b32.xlu1 %v14493_v40, %s13380_s30  ;;  %v6943_v25 = vsel %vm82_vm1, %v6932_v27, 0 }
 0x3a4   :  { %v15018_v36 = vadd.f32 %v3776_v50, %v14948_v49  ;;  %8450 = vrot.lane.b32.xlu0 %v14498_v42, %s13380_s30  ;;  %v3778_v43 = vpop.f32.mrb[133].mxu0 }
 0x3a5   :  { %v15023_v58 = vadd.f32 %v3778_v43, %v14953_v56  ;;  %13162 = vmatmul.mubr.msk.bf16.vlgmr.msra.gmra.mrb[236].mxu1 %vm78_vm2, %v14960_v3  ;;  %v3780_v46 = vpop.f32.mrb[134].mxu0  ;;  %v6923_v12 = vpop.permute.xlu1 %6922  ;;  %v6933_v56 = vsel %vm716_vm6, %v6919_v34, %v6921_v44 }
 0x3a6   :  { %6787 = vmatpush1.bf16.msra.mxu1 %v6731_v52  ;;  %v3781_v49 = vpop.f32.mrb[135].mxu0  ;;  %6818 = vmatprep.mubr.bf16.mxu1 %v13368_v10  ;;  %v6925_v63 = vpop.permute.xlu0 %6924  ;;  %v6934_v45 = vsel %vm716_vm6, %v6921_v44, %v6923_v12  ;;  %v15100_v46 = vld [vmem:[%s16145_s1 + $0xc] sm:$0xf] }
 0x3a7   :  { %13165 = vmatprep.subr.bf16.mxu1 %v13376_v35  ;;  %8452 = vrot.lane.b32.xlu1 %v14512_v53, %s13380_s30  ;;  %v6935_v21 = vsel %vm716_vm6, %v6923_v12, %v6925_v63  ;;  %v6949_v52 = vsel %vm82_vm1, %v6934_v45, 0 }
 0x3a8   :  { %v3817_v3 = vpop.f32.mrb[132].mxu1  ;;  %8454 = vrot.lane.b32.xlu0 %v14517_v54, %s13380_s30  ;;  %12661 = vmatmul.mubr.msk.bf16.vlgmr.msra.gmra.mrb[240].mxu0 %vm78_vm2, %v15030_v60 }
 0x3a9   :  { %v15044_v6 = vadd.f32 %v3817_v3, %v14974_v4  ;;  %v13085_v11 = vpop.f32.mrb[133].mxu1  ;;  %6828 = vmatpush1.bf16.msra.mxu0 %v6737_v59  ;;  %6859 = vmatprep.mubr.bf16.mxu0 %v13368_v10  ;;  %v6927_v1 = vpop.permute.xlu1 %6926 }
 0x3aa   :  { %v3820_v2 = vpop.f32.mrb[134].mxu1  ;;  %12668 = vmatprep.subr.msk.bf16.mxu0 %vm82_vm1, %v6933_v56  ;;  %v6929_v5 = vpop.permute.xlu0 %6928  ;;  %v6936_v44 = vsel %vm716_vm6, %v6925_v63, %v6927_v1 }
 0x3ab   :  { %v13086_v8 = vpop.f32.mrb[135].mxu1  ;;  %v3913_v19 = vpop.f32.mrb[136].mxu0  ;;  %8456 = vrot.lane.b32.xlu1 %v14532_v16, %s13380_s30  ;;  %v6937_v26 = vsel %vm716_vm6, %v6927_v1, %v6929_v5  ;;  %v6955_v49 = vsel %vm82_vm1, %v6936_v44, 0 }
 0x3ac   :  { %v15053_v4 = vadd.f32 %v3913_v19, %v14983_v15  ;;  %8660 = vrot.lane.b32.xlu0 %v14457_v18, %s13381_s9  ;;  %v3915_v9 = vpop.f32.mrb[137].mxu0 }
 0x3ad   :  { %v15059_v17 = vadd.f32 %v3915_v9, %v14989_v22  ;;  %12663 = vmatmul.mubr.msk.bf16.vlgmr.msra.gmra.mrb[240].mxu1 %vm78_vm2, %v15030_v60  ;;  %v3917_v23 = vpop.f32.mrb[138].mxu0  ;;  %v6931_v57 = vpop.permute.xlu1 %6930 }
 0x3ae   :  { %13166 = vmatpush3.bf16.msra.mxu1 %v6743_v14  ;;  %v3918_v41 = vpop.f32.mrb[139].mxu0  ;;  %13167 = vmatprep.mubr.msk.bf16.mxu1 %vm13378_vm4, %v13376_v35  ;;  %v7135_v15 = vpop.permute.xlu0 %7134  ;;  %v6938_v63 = vsel %vm716_vm6, %v6929_v5, %v6931_v57 }
 0x3af   :  { %12670 = vmatprep.subr.msk.bf16.mxu1 %vm82_vm1, %v6935_v21  ;;  %8662 = vrot.lane.b32.xlu1 %v14473_v29, %s13381_s9  ;;  %v6961_v8 = vsel %vm82_vm1, %v6938_v63, 0 }
 0x3b0   :  { %v3954_v22 = vpop.f32.mrb[136].mxu1  ;;  %8664 = vrot.lane.b32.xlu0 %v14478_v30, %s13381_s9  ;;  %12665 = vmatmul.mubr.msk.bf16.vlgmr.msra.gmra.mrb[244].mxu0 %vm78_vm2, %v15030_v60 }
 0x3b1   :  { %v15076_v31 = vadd.f32 %v3954_v22, %v15006_v48  ;;  %v3956_v24 = vpop.f32.mrb[137].mxu1  ;;  %6964 = vmatpush1.bf16.msra.mxu0 %v6943_v25  ;;  %6995 = vmatprep.mubr.bf16.mxu0 %v13368_v10  ;;  %v7137_v28 = vpop.permute.xlu1 %7136 }
 0x3b2   :  { %v15080_v32 = vadd.f32 %v3956_v24, %v15010_v37  ;;  %v3958_v34 = vpop.f32.mrb[138].mxu1  ;;  %12672 = vmatprep.subr.msk.bf16.mxu0 %vm82_vm1, %v6937_v26  ;;  %v7139_v38 = vpop.permute.xlu0 %7138  ;;  %v7150_v19 = vsel %vm936_vm7, %v7135_v15, %v7137_v28 }
 0x3b3   :  { %v3959_v55 = vpop.f32.mrb[139].mxu1  ;;  %v3995_v50 = vpop.f32.mrb[140].mxu0  ;;  %8666 = vrot.lane.b32.xlu1 %v14493_v40, %s13381_s9  ;;  %v7161_v41 = vsel %vm82_vm1, %v7150_v19, 0 }
 0x3b4   :  { %v15088_v48 = vadd.f32 %v3995_v50, %v15018_v36  ;;  %8668 = vrot.lane.b32.xlu0 %v14498_v42, %s13381_s9  ;;  %v3997_v37 = vpop.f32.mrb[141].mxu0 }
 0x3b5   :  { %v15093_v47 = vadd.f32 %v3997_v37, %v15023_v58  ;;  %13168 = vmatmul.mubr.msk.bf16.vlgmr.msra.gmra.mrb[244].mxu1 %vm78_vm2, %v15030_v60  ;;  %v3999_v43 = vpop.f32.mrb[142].mxu0  ;;  %v7141_v12 = vpop.permute.xlu1 %7140  ;;  %v7151_v58 = vsel %vm936_vm7, %v7137_v28, %v7139_v38  ;;  %v15170_v37 = vld [vmem:[%s16145_s1 + $0x10] sm:$0xf] }
 0x3b6   :  { %7005 = vmatpush1.bf16.msra.mxu1 %v6949_v52  ;;  %v4000_v36 = vpop.f32.mrb[143].mxu0  ;;  %7036 = vmatprep.mubr.bf16.mxu1 %v13368_v10  ;;  %v7143_v59 = vpop.permute.xlu0 %7142  ;;  %v7152_v25 = vsel %vm936_vm7, %v7139_v38, %v7141_v12 }
 0x3b7   :  { %13171 = vmatprep.subr.bf16.mxu1 %v13376_v35  ;;  %8670 = vrot.lane.b32.xlu1 %v14512_v53, %s13381_s9  ;;  %v7153_v27 = vsel %vm936_vm7, %v7141_v12, %v7143_v59  ;;  %v7167_v50 = vsel %vm82_vm1, %v7152_v25, 0 }
 0x3b8   :  { %v4036_v60 = vpop.f32.mrb[140].mxu1  ;;  %8672 = vrot.lane.b32.xlu0 %v14517_v54, %s13381_s9  ;;  %12669 = vmatmul.mubr.msk.bf16.vlgmr.msra.gmra.mrb[248].mxu0 %vm78_vm2, %v15100_v46 }
 0x3b9   :  { %v15114_v56 = vadd.f32 %v4036_v60, %v15044_v6  ;;  %v13091_v3 = vpop.f32.mrb[141].mxu1  ;;  %7046 = vmatpush1.bf16.msra.mxu0 %v6955_v49  ;;  %7077 = vmatprep.mubr.bf16.mxu0 %v13368_v10  ;;  %v7145_v0 = vpop.permute.xlu1 %7144  ;;  %v9290_v60 = vld [vmem:[%s16146_s2] sm:$0xff] }
 0x3ba   :  { %v4039_v11 = vpop.f32.mrb[142].mxu1  ;;  %12676 = vmatprep.subr.msk.bf16.mxu0 %vm82_vm1, %v7151_v58  ;;  %v7147_v1 = vpop.permute.xlu0 %7146  ;;  %v7154_v38 = vsel %vm936_vm7, %v7143_v59, %v7145_v0 }
 0x3bb   :  { %v13092_v2 = vpop.f32.mrb[143].mxu1  ;;  %v4132_v14 = vpop.f32.mrb[144].mxu0  ;;  %8674 = vrot.lane.b32.xlu1 %v14532_v16, %s13381_s9  ;;  %v7173_v12 = vsel %vm82_vm1, %v7154_v38, 0 }
 0x3bc   :  { %v15123_v6 = vadd.f32 %v4132_v14, %v15053_v4  ;;  %8878 = vrot.lane.b32.xlu0 %v14457_v18, %s13382_s12  ;;  %v4134_v5 = vpop.f32.mrb[145].mxu0  ;;  %v7155_v18 = vsel %vm936_vm7, %v7145_v0, %v7147_v1 }
 0x3bd   :  { %v15129_v9 = vadd.f32 %v4134_v5, %v15059_v17  ;;  %12671 = vmatmul.mubr.msk.bf16.vlgmr.msra.gmra.mrb[248].mxu1 %vm78_vm2, %v15100_v46  ;;  %v4136_v21 = vpop.f32.mrb[146].mxu0  ;;  %v7149_v23 = vpop.permute.xlu1 %7148 }
 0x3be   :  { %13172 = vmatpush3.bf16.msra.mxu1 %v6961_v8  ;;  %v4137_v57 = vpop.f32.mrb[147].mxu0  ;;  %13173 = vmatprep.mubr.msk.bf16.mxu1 %vm13378_vm4, %v13376_v35  ;;  %v7353_v4 = vpop.permute.xlu0 %7352  ;;  %v7156_v49 = vsel %vm936_vm7, %v7147_v1, %v7149_v23 }
 0x3bf   :  { %12678 = vmatprep.subr.msk.bf16.mxu1 %vm82_vm1, %v7153_v27  ;;  %8880 = vrot.lane.b32.xlu1 %v14473_v29, %s13382_s12  ;;  %v7179_v2 = vsel %vm82_vm1, %v7156_v49, 0 }
 0x3c0   :  { %v4173_v17 = vpop.f32.mrb[144].mxu1  ;;  %8882 = vrot.lane.b32.xlu0 %v14478_v30, %s13382_s12  ;;  %12673 = vmatmul.mubr.msk.bf16.vlgmr.msra.gmra.mrb[252].mxu0 %vm78_vm2, %v15100_v46 }
 0x3c1   :  { %v15146_v15 = vadd.f32 %v4173_v17, %v15076_v31  ;;  %v4175_v26 = vpop.f32.mrb[145].mxu1  ;;  %7182 = vmatpush1.bf16.msra.mxu0 %v7161_v41  ;;  %7213 = vmatprep.mubr.bf16.mxu0 %v13368_v10  ;;  %v7355_v22 = vpop.permute.xlu1 %7354 }
 0x3c2   :  { %v15150_v45 = vadd.f32 %v4175_v26, %v15080_v32  ;;  %v4177_v24 = vpop.f32.mrb[146].mxu1  ;;  %12680 = vmatprep.subr.msk.bf16.mxu0 %vm82_vm1, %v7155_v18  ;;  %v7357_v28 = vpop.permute.xlu0 %7356 }
 0x3c3   :  { %v4178_v34 = vpop.f32.mrb[147].mxu1  ;;  %v4214_v55 = vpop.f32.mrb[148].mxu0  ;;  %8884 = vrot.lane.b32.xlu1 %v14493_v40, %s13382_s12 }
 0x3c4   :  { %v15158_v31 = vadd.f32 %v4214_v55, %v15088_v48  ;;  %8886 = vrot.lane.b32.xlu0 %v14498_v42, %s13382_s12  ;;  %v4216_v32 = vpop.f32.mrb[149].mxu0 }
 0x3c5   :  { %v15163_v52 = vadd.f32 %v4216_v32, %v15093_v47  ;;  %13174 = vmatmul.mubr.msk.bf16.vlgmr.msra.gmra.mrb[252].mxu1 %vm78_vm2, %v15100_v46  ;;  %v4218_v44 = vpop.f32.mrb[150].mxu0  ;;  %v7359_v43 = vpop.permute.xlu1 %7358  ;;  %v7369_v47 = vsel %vm1156_vm8, %v7355_v22, %v7357_v28 }
 0x3c6   :  { %7223 = vmatpush1.bf16.msra.mxu1 %v7167_v50  ;;  %v4219_v48 = vpop.f32.mrb[151].mxu0  ;;  %7254 = vmatprep.mubr.bf16.mxu1 %v13368_v10  ;;  %v7361_v36 = vpop.permute.xlu0 %7360 }
 0x3c7   :  { %13177 = vmatprep.subr.bf16.mxu1 %v13376_v35  ;;  %8888 = vrot.lane.b32.xlu1 %v14512_v53, %s13382_s12  ;;  %v7371_v19 = vsel %vm1156_vm8, %v7359_v43, %v7361_v36 }
 0x3c8   :  { %v4255_v46 = vpop.f32.mrb[148].mxu1  ;;  %8890 = vrot.lane.b32.xlu0 %v14517_v54, %s13382_s12  ;;  %12677 = vmatmul.mubr.msk.bf16.vlgmr.msra.gmra.mrb[0].mxu0 %vm78_vm2, %v15170_v37 }
 0x3c9   :  { %v15184_v59 = vadd.f32 %v4255_v46, %v15114_v56  ;;  %v13097_v58 = vpop.f32.mrb[149].mxu1  ;;  %7264 = vmatpush1.bf16.msra.mxu0 %v7173_v12  ;;  %7295 = vmatprep.mubr.bf16.mxu0 %v13368_v10  ;;  %v7363_v63 = vpop.permute.xlu1 %7362  ;;  %v7368_v56 = vsel %vm1156_vm8, %v7353_v4, %v7355_v22  ;;  %v7370_v4 = vsel %vm1156_vm8, %v7357_v28, %v7359_v43 }
 0x3ca   :  { %v4258_v3 = vpop.f32.mrb[150].mxu1  ;;  %12684 = vmatprep.subr.msk.bf16.mxu0 %vm82_vm1, %v7369_v47  ;;  %v7365_v0 = vpop.permute.xlu0 %7364  ;;  %v7379_v57 = vsel %vm82_vm1, %v7368_v56, 0  ;;  %v7385_v50 = vsel %vm82_vm1, %v7370_v4, 0  ;;  %v7372_v38 = vsel %vm1156_vm8, %v7361_v36, %v7363_v63 }
 0x3cb   :  { %v13098_v11 = vpop.f32.mrb[151].mxu1  ;;  %v4351_v1 = vpop.f32.mrb[152].mxu0  ;;  %8892 = vrot.lane.b32.xlu1 %v14532_v16, %s13382_s12  ;;  %v7391_v12 = vsel %vm82_vm1, %v7372_v38, 0 }
 0x3cc   :  { %v4480_v8 = vadd.f32 %v4351_v1, %v15123_v6  ;;  %9293 = vperm.xlu0 %13341, %v9290_v60   ;;  %v4353_v14 = vpop.f32.mrb[153].mxu0  ;;  %v7373_v6 = vsel %vm1156_vm8, %v7363_v63, %v7365_v0 }
 0x3cd   :  { %v4481_v5 = vadd.f32 %v4353_v14, %v15129_v9  ;;  %12679 = vmatmul.mubr.msk.bf16.vlgmr.msra.gmra.mrb[0].mxu1 %vm78_vm2, %v15170_v37  ;;  %v4355_v27 = vpop.f32.mrb[154].mxu0  ;;  %v7367_v21 = vpop.permute.xlu1 %7366 }
 0x3ce   :  { %13178 = vmatpush3.bf16.msra.mxu1 %v7179_v2  ;;  %v4356_v23 = vpop.f32.mrb[155].mxu0  ;;  %13179 = vmatprep.mubr.msk.bf16.mxu1 %vm13378_vm4, %v13376_v35  ;;  %v7571_v41 = vpop.permute.xlu0 %7570 }
 0x3cf   :  { %12686 = vmatprep.subr.msk.bf16.mxu1 %vm82_vm1, %v7371_v19  ;;  %9350 = vrot.lane.b32.xlu1 %v13383_v61, %s13367_s29 }
 0x3d0   :  { %v4392_v9 = vpop.f32.mrb[152].mxu1  ;;  %12681 = vmatmul.mubr.msk.bf16.vlgmr.msra.gmra.mrb[4].mxu0 %vm78_vm2, %v15170_v37 }
 0x3d1   :  { %v4482_v18 = vadd.f32 %v4392_v9, %v15146_v15  ;;  %v4394_v17 = vpop.f32.mrb[153].mxu1  ;;  %7400 = vmatpush1.bf16.msra.mxu0 %v7379_v57  ;;  %7431 = vmatprep.mubr.bf16.mxu0 %v13368_v10  ;;  %v7573_v25 = vpop.permute.xlu1 %7572 }
 0x3d2   :  { %v4483_v26 = vadd.f32 %v4394_v17, %v15150_v45  ;;  %v4396_v22 = vpop.f32.mrb[154].mxu1  ;;  %12688 = vmatprep.subr.msk.bf16.mxu0 %vm82_vm1, %v7373_v6  ;;  %v7575_v24 = vpop.permute.xlu0 %7574  ;;  %v12683_v45 = vld [vmem:[%s16145_s1 + $0x14] sm:$0xf]  ;;  %v7586_v2 = vsel %vm1376_vm9, %v7571_v41, %v7573_v25 }
 0x3d3   :  { %v4397_v34 = vpop.f32.mrb[155].mxu1  ;;  %v4433_v55 = vpop.f32.mrb[156].mxu0 }
 0x3d4   :  { %v4484_v28 = vadd.f32 %v4433_v55, %v15158_v31  ;;  %v4435_v15 = vpop.f32.mrb[157].mxu0  ;;  %v7587_v31 = vsel %vm1376_vm9, %v7573_v25, %v7575_v24 }
 0x3d5   :  { %v4485_v32 = vadd.f32 %v4435_v15, %v15163_v52  ;;  %13180 = vmatmul.mubr.msk.bf16.vlgmr.msra.gmra.mrb[4].mxu1 %vm78_vm2, %v15170_v37  ;;  %v4437_v44 = vpop.f32.mrb[158].mxu0  ;;  %v7577_v43 = vpop.permute.xlu1 %7576  ;;  %v7374_v37 = vsel %vm1156_vm8, %v7365_v0, %v7367_v21  ;;  %v7597_v21 = vsel %vm82_vm1, %v7586_v2, 0 }
 0x3d6   :  { %7441 = vmatpush1.bf16.msra.mxu1 %v7385_v50  ;;  %v4438_v48 = vpop.f32.mrb[159].mxu0  ;;  %7472 = vmatprep.mubr.bf16.mxu1 %v13368_v10  ;;  %v7579_v36 = vpop.permute.xlu0 %7578  ;;  %v7397_v3 = vsel %vm82_vm1, %v7374_v37, 0 }
 0x3d7   :  { %13183 = vmatprep.subr.bf16.mxu1 %v13376_v35  ;;  %v7589_v0 = vsel %vm1376_vm9, %v7577_v43, %v7579_v36 }
 0x3d8   :  { %v4474_v52 = vpop.f32.mrb[156].mxu1  ;;  %12685 = vmatmul.mubr.msk.bf16.vlgmr.msra.gmra.mrb[8].mxu0 %vm78_vm2, %v12683_v45 }
 0x3d9   :  { %v4486_v47 = vadd.f32 %v4474_v52, %v15184_v59  ;;  %v13103_v46 = vpop.f32.mrb[157].mxu1  ;;  %7482 = vmatpush1.bf16.msra.mxu0 %v7391_v12  ;;  %7513 = vmatprep.mubr.bf16.mxu0 %v13368_v10  ;;  %v7581_v49 = vpop.permute.xlu1 %7580 }
 0x3da   :  { %v4477_v58 = vpop.f32.mrb[158].mxu1  ;;  %12692 = vmatprep.subr.msk.bf16.mxu0 %vm82_vm1, %v7587_v31  ;;  %v7583_v60 = vpop.permute.xlu0 %7582  ;;  %v7590_v50 = vsel %vm1376_vm9, %v7579_v36, %v7581_v49 }
 0x3db   :  { %v13104_v63 = vpop.f32.mrb[159].mxu1  ;;  %v4570_v11 = vpop.f32.mrb[160].mxu0  ;;  %v7609_v48 = vsel %vm82_vm1, %v7590_v50, 0 }
 0x3dc   :  { %v4699_v1 = vadd.f32 %v4570_v11, %v4480_v8  ;;  %v4572_v56 = vpop.f32.mrb[161].mxu0  ;;  %v7591_v8 = vsel %vm1376_vm9, %v7581_v49, %v7583_v60 }
 0x3dd   :  { %v4700_v59 = vadd.f32 %v4572_v56, %v4481_v5  ;;  %12687 = vmatmul.mubr.msk.bf16.vlgmr.msra.gmra.mrb[8].mxu1 %vm78_vm2, %v12683_v45  ;;  %v4574_v14 = vpop.f32.mrb[162].mxu0  ;;  %v7585_v19 = vpop.permute.xlu1 %7584  ;;  %v7588_v5 = vsel %vm1376_vm9, %v7575_v24, %v7577_v43 }
 0x3de   :  { %13184 = vmatpush3.bf16.msra.mxu1 %v7397_v3  ;;  %v4575_v27 = vpop.f32.mrb[163].mxu0  ;;  %13185 = vmatprep.mubr.msk.bf16.mxu1 %vm13378_vm4, %v13376_v35  ;;  %v7789_v23 = vpop.permute.xlu0 %7788  ;;  %v7603_v55 = vsel %vm82_vm1, %v7588_v5, 0 }
 0x3df   :  { %12694 = vmatprep.subr.msk.bf16.mxu1 %vm82_vm1, %v7589_v0 }
 0x3e0   :  { %v4611_v57 = vpop.f32.mrb[160].mxu1  ;;  %12689 = vmatmul.mubr.msk.bf16.vlgmr.msra.gmra.mrb[12].mxu0 %vm78_vm2, %v12683_v45 }
 0x3e1   :  { %v4701_v41 = vadd.f32 %v4611_v57, %v4482_v18  ;;  %v4613_v6 = vpop.f32.mrb[161].mxu1  ;;  %7618 = vmatpush1.bf16.msra.mxu0 %v7597_v21  ;;  %7649 = vmatprep.mubr.bf16.mxu0 %v13368_v10  ;;  %v7791_v9 = vpop.permute.xlu1 %7790 }
 0x3e2   :  { %v4702_v4 = vadd.f32 %v4613_v6, %v4483_v26  ;;  %v4615_v17 = vpop.f32.mrb[162].mxu1  ;;  %12696 = vmatprep.subr.msk.bf16.mxu0 %vm82_vm1, %v7591_v8  ;;  %v7793_v25 = vpop.permute.xlu0 %7792  ;;  %v12691_v26 = vld [vmem:[%s16145_s1 + $0x18] sm:$0xf]  ;;  %v7804_v3 = vsel %vm1596_vm10, %v7789_v23, %v7791_v9 }
 0x3e3   :  { %v4616_v22 = vpop.f32.mrb[163].mxu1  ;;  %v4652_v34 = vpop.f32.mrb[164].mxu0 }
 0x3e4   :  { %v4703_v38 = vadd.f32 %v4652_v34, %v4484_v28  ;;  %v4654_v15 = vpop.f32.mrb[165].mxu0  ;;  %v7805_v28 = vsel %vm1596_vm10, %v7791_v9, %v7793_v25 }
 0x3e5   :  { %v4704_v24 = vadd.f32 %v4654_v15, %v4485_v32  ;;  %13186 = vmatmul.mubr.msk.bf16.vlgmr.msra.gmra.mrb[12].mxu1 %vm78_vm2, %v12683_v45  ;;  %v4656_v18 = vpop.f32.mrb[166].mxu0  ;;  %v7795_v44 = vpop.permute.xlu1 %7794  ;;  %v7592_v45 = vsel %vm1376_vm9, %v7583_v60, %v7585_v19  ;;  %v7815_v19 = vsel %vm82_vm1, %v7804_v3, 0 }
 0x3e6   :  { %7659 = vmatpush1.bf16.msra.mxu1 %v7603_v55  ;;  %v4657_v43 = vpop.f32.mrb[167].mxu0  ;;  %7690 = vmatprep.mubr.bf16.mxu1 %v13368_v10  ;;  %v7797_v12 = vpop.permute.xlu0 %7796  ;;  %v7615_v58 = vsel %vm82_vm1, %v7592_v45, 0 }
 0x3e7   :  { %13189 = vmatprep.subr.bf16.mxu1 %v13376_v35  ;;  %v7807_v60 = vsel %vm1596_vm10, %v7795_v44, %v7797_v12 }
 0x3e8   :  { %v4693_v32 = vpop.f32.mrb[164].mxu1  ;;  %12693 = vmatmul.mubr.msk.bf16.vlgmr.msra.gmra.mrb[16].mxu0 %vm78_vm2, %v12691_v26 }
 0x3e9   :  { %v4705_v36 = vadd.f32 %v4693_v32, %v4486_v47  ;;  %v13109_v31 = vpop.f32.mrb[165].mxu1  ;;  %7700 = vmatpush1.bf16.msra.mxu0 %v7609_v48  ;;  %7731 = vmatprep.mubr.bf16.mxu0 %v13368_v10  ;;  %v7799_v52 = vpop.permute.xlu1 %7798 }
 0x3ea   :  { %v4696_v37 = vpop.f32.mrb[166].mxu1  ;;  %12700 = vmatprep.subr.msk.bf16.mxu0 %vm82_vm1, %v7805_v28  ;;  %v7801_v46 = vpop.permute.xlu0 %7800  ;;  %v7808_v55 = vsel %vm1596_vm10, %v7797_v12, %v7799_v52 }
 0x3eb   :  { %v13110_v49 = vpop.f32.mrb[167].mxu1  ;;  %v4789_v63 = vpop.f32.mrb[168].mxu0  ;;  %v7827_v43 = vsel %vm82_vm1, %v7808_v55, 0 }
 0x3ec   :  { %v4918_v11 = vadd.f32 %v4789_v63, %v4699_v1  ;;  %v4791_v2 = vpop.f32.mrb[169].mxu0  ;;  %v7809_v1 = vsel %vm1596_vm10, %v7799_v52, %v7801_v46 }
 0x3ed   :  { %v4919_v47 = vadd.f32 %v4791_v2, %v4700_v59  ;;  %12695 = vmatmul.mubr.msk.bf16.vlgmr.msra.gmra.mrb[16].mxu1 %vm78_vm2, %v12691_v26  ;;  %v4793_v56 = vpop.f32.mrb[170].mxu0  ;;  %v7803_v0 = vpop.permute.xlu1 %7802  ;;  %v7806_v59 = vsel %vm1596_vm10, %v7793_v25, %v7795_v44 }
 0x3ee   :  { %13190 = vmatpush3.bf16.msra.mxu1 %v7615_v58  ;;  %v4794_v14 = vpop.f32.mrb[171].mxu0  ;;  %13191 = vmatprep.mubr.msk.bf16.mxu1 %vm13378_vm4, %v13376_v35  ;;  %v8007_v27 = vpop.permute.xlu0 %8006  ;;  %v7821_v34 = vsel %vm82_vm1, %v7806_v59, 0 }
 0x3ef   :  { %12702 = vmatprep.subr.msk.bf16.mxu1 %vm82_vm1, %v7807_v60 }
 0x3f0   :  { %v4830_v21 = vpop.f32.mrb[168].mxu1  ;;  %12697 = vmatmul.mubr.msk.bf16.vlgmr.msra.gmra.mrb[20].mxu0 %vm78_vm2, %v12691_v26 }
 0x3f1   :  { %v4920_v23 = vadd.f32 %v4830_v21, %v4701_v41  ;;  %v4832_v8 = vpop.f32.mrb[169].mxu1  ;;  %7836 = vmatpush1.bf16.msra.mxu0 %v7815_v19  ;;  %7867 = vmatprep.mubr.bf16.mxu0 %v13368_v10  ;;  %v8009_v57 = vpop.permute.xlu1 %8008 }
 0x3f2   :  { %v4921_v5 = vadd.f32 %v4832_v8, %v4702_v4  ;;  %v4834_v6 = vpop.f32.mrb[170].mxu1  ;;  %12704 = vmatprep.subr.msk.bf16.mxu0 %vm82_vm1, %v7809_v1  ;;  %v8011_v9 = vpop.permute.xlu0 %8010  ;;  %v12699_v4 = vld [vmem:[%s16145_s1 + $0x1c] sm:$0xf]  ;;  %v8022_v58 = vsel %vm1816_vm11, %v8007_v27, %v8009_v57 }
 0x3f3   :  { %v4835_v17 = vpop.f32.mrb[171].mxu1  ;;  %v4871_v22 = vpop.f32.mrb[172].mxu0 }
 0x3f4   :  { %v4922_v50 = vadd.f32 %v4871_v22, %v4703_v38  ;;  %v4873_v15 = vpop.f32.mrb[173].mxu0  ;;  %v8023_v38 = vsel %vm1816_vm11, %v8009_v57, %v8011_v9 }
 0x3f5   :  { %v4923_v25 = vadd.f32 %v4873_v15, %v4704_v24  ;;  %13192 = vmatmul.mubr.msk.bf16.vlgmr.msra.gmra.mrb[20].mxu1 %vm78_vm2, %v12691_v26  ;;  %v4875_v41 = vpop.f32.mrb[174].mxu0  ;;  %v8013_v18 = vpop.permute.xlu1 %8012  ;;  %v7810_v26 = vsel %vm1596_vm10, %v7801_v46, %v7803_v0  ;;  %v8033_v0 = vsel %vm82_vm1, %v8022_v58, 0 }
 0x3f6   :  { %7877 = vmatpush1.bf16.msra.mxu1 %v7821_v34  ;;  %v4876_v44 = vpop.f32.mrb[175].mxu0  ;;  %7908 = vmatprep.mubr.bf16.mxu1 %v13368_v10  ;;  %v8015_v48 = vpop.permute.xlu0 %8014  ;;  %v7833_v37 = vsel %vm82_vm1, %v7810_v26, 0 }
 0x3f7   :  { %13195 = vmatprep.subr.bf16.mxu1 %v13376_v35  ;;  %v8025_v46 = vsel %vm1816_vm11, %v8013_v18, %v8015_v48 }
 0x3f8   :  { %v4912_v24 = vpop.f32.mrb[172].mxu1  ;;  %12701 = vmatmul.mubr.msk.bf16.vlgmr.msra.gmra.mrb[24].mxu0 %vm78_vm2, %v12699_v4 }
 0x3f9   :  { %v4924_v12 = vadd.f32 %v4912_v24, %v4705_v36  ;;  %v13115_v28 = vpop.f32.mrb[173].mxu1  ;;  %7918 = vmatpush1.bf16.msra.mxu0 %v7827_v43  ;;  %7949 = vmatprep.mubr.bf16.mxu0 %v13368_v10  ;;  %v8017_v32 = vpop.permute.xlu1 %8016 }
 0x3fa   :  { %v4915_v45 = vpop.f32.mrb[174].mxu1  ;;  %12708 = vmatprep.subr.msk.bf16.mxu0 %vm82_vm1, %v8023_v38  ;;  %v8019_v31 = vpop.permute.xlu0 %8018  ;;  %v8026_v34 = vsel %vm1816_vm11, %v8015_v48, %v8017_v32 }
 0x3fb   :  { %v13116_v52 = vpop.f32.mrb[175].mxu1  ;;  %v5008_v49 = vpop.f32.mrb[176].mxu0  ;;  %v8045_v44 = vsel %vm82_vm1, %v8026_v34, 0 }
 0x3fc   :  { %v5137_v63 = vadd.f32 %v5008_v49, %v4918_v11  ;;  %v5010_v3 = vpop.f32.mrb[177].mxu0  ;;  %v8027_v11 = vsel %vm1816_vm11, %v8017_v32, %v8019_v31 }
 0x3fd   :  { %v5138_v36 = vadd.f32 %v5010_v3, %v4919_v47  ;;  %12703 = vmatmul.mubr.msk.bf16.vlgmr.msra.gmra.mrb[24].mxu1 %vm78_vm2, %v12699_v4  ;;  %v5012_v2 = vpop.f32.mrb[178].mxu0  ;;  %v8021_v60 = vpop.permute.xlu1 %8020  ;;  %v8024_v47 = vsel %vm1816_vm11, %v8011_v9, %v8013_v18 }
 0x3fe   :  { %13196 = vmatpush3.bf16.msra.mxu1 %v7833_v37  ;;  %v5013_v56 = vpop.f32.mrb[179].mxu0  ;;  %13197 = vmatprep.mubr.msk.bf16.mxu1 %vm13378_vm4, %v13376_v35  ;;  %v8225_v14 = vpop.permute.xlu0 %8224  ;;  %v8039_v22 = vsel %vm82_vm1, %v8024_v47, 0 }
 0x3ff   :  { %12710 = vmatprep.subr.msk.bf16.mxu1 %vm82_vm1, %v8025_v46 }
 0x400   :  { %v5049_v19 = vpop.f32.mrb[176].mxu1  ;;  %12705 = vmatmul.mubr.msk.bf16.vlgmr.msra.gmra.mrb[28].mxu0 %vm78_vm2, %v12699_v4 }
 0x401   :  { %v15297_v27 = vadd.f32 %v5049_v19, %v4920_v23  ;;  %v5051_v1 = vpop.f32.mrb[177].mxu1  ;;  %8054 = vmatpush1.bf16.msra.mxu0 %v8033_v0  ;;  %8085 = vmatprep.mubr.bf16.mxu0 %v13368_v10  ;;  %v8227_v21 = vpop.permute.xlu1 %8226 }
 0x402   :  { %v5140_v59 = vadd.f32 %v5051_v1, %v4921_v5  ;;  %v5053_v8 = vpop.f32.mrb[178].mxu1  ;;  %12712 = vmatprep.subr.msk.bf16.mxu0 %vm82_vm1, %v8027_v11  ;;  %v8229_v57 = vpop.permute.xlu0 %8228  ;;  %v12707_v5 = vld [vmem:[%s16145_s1 + $0x20] sm:$0xf]  ;;  %v8240_v37 = vsel %vm2036_vm12, %v8225_v14, %v8227_v21 }
 0x403   :  { %v5054_v6 = vpop.f32.mrb[179].mxu1  ;;  %v5090_v17 = vpop.f32.mrb[180].mxu0 }
 0x404   :  { %v5141_v55 = vadd.f32 %v5090_v17, %v4922_v50  ;;  %v5092_v9 = vpop.f32.mrb[181].mxu0  ;;  %v8241_v50 = vsel %vm2036_vm12, %v8227_v21, %v8229_v57 }
 0x405   :  { %v15303_v23 = vadd.f32 %v5092_v9, %v4923_v25  ;;  %13198 = vmatmul.mubr.msk.bf16.vlgmr.msra.gmra.mrb[28].mxu1 %vm78_vm2, %v12699_v4  ;;  %v5094_v15 = vpop.f32.mrb[182].mxu0  ;;  %v8231_v41 = vpop.permute.xlu1 %8230  ;;  %v8028_v4 = vsel %vm1816_vm11, %v8019_v31, %v8021_v60  ;;  %v8251_v60 = vsel %vm82_vm1, %v8240_v37, 0 }
 0x406   :  { %8095 = vmatpush1.bf16.msra.mxu1 %v8039_v22  ;;  %v5095_v18 = vpop.f32.mrb[183].mxu0  ;;  %8126 = vmatprep.mubr.bf16.mxu1 %v13368_v10  ;;  %v8233_v43 = vpop.permute.xlu0 %8232  ;;  %v8051_v45 = vsel %vm82_vm1, %v8028_v4, 0 }
 0x407   :  { %13201 = vmatprep.subr.bf16.mxu1 %v13376_v35  ;;  %v8243_v31 = vsel %vm2036_vm12, %v8231_v41, %v8233_v43 }
 0x408   :  { %v5131_v25 = vpop.f32.mrb[180].mxu1  ;;  %12709 = vmatmul.mubr.msk.bf16.vlgmr.msra.gmra.mrb[32].mxu0 %vm78_vm2, %v12707_v5 }
 0x409   :  { %v15315_v48 = vadd.f32 %v5131_v25, %v4924_v12  ;;  %v13121_v38 = vpop.f32.mrb[181].mxu1  ;;  %8136 = vmatpush1.bf16.msra.mxu0 %v8045_v44  ;;  %8167 = vmatprep.mubr.bf16.mxu0 %v13368_v10  ;;  %v8235_v24 = vpop.permute.xlu1 %8234 }
 0x40a   :  { %v5134_v26 = vpop.f32.mrb[182].mxu1  ;;  %12716 = vmatprep.subr.msk.bf16.mxu0 %vm82_vm1, %v8241_v50  ;;  %v8237_v28 = vpop.permute.xlu0 %8236  ;;  %v8244_v22 = vsel %vm2036_vm12, %v8233_v43, %v8235_v24 }
 0x40b   :  { %v13122_v32 = vpop.f32.mrb[183].mxu1  ;;  %v5227_v52 = vpop.f32.mrb[184].mxu0  ;;  %v8245_v0 = vsel %vm2036_vm12, %v8235_v24, %v8237_v28  ;;  %v8263_v18 = vsel %vm82_vm1, %v8244_v22, 0 }
 0x40c   :  { %v5229_v49 = vpop.f32.mrb[185].mxu0  ;;  %v5356_v12 = vadd.f32 %v5227_v52, %v5137_v63  ;;  %v8242_v63 = vsel %vm2036_vm12, %v8229_v57, %v8231_v41 }
 0x40d   :  { %12711 = vmatmul.mubr.msk.bf16.vlgmr.msra.gmra.mrb[32].mxu1 %vm78_vm2, %v12707_v5  ;;  %v5231_v58 = vpop.f32.mrb[186].mxu0  ;;  %v8239_v3 = vpop.permute.xlu1 %8238  ;;  %v5357_v46 = vadd.f32 %v5229_v49, %v5138_v36  ;;  %v8257_v17 = vsel %vm82_vm1, %v8242_v63, 0 }
 0x40e   :  { %13202 = vmatpush3.bf16.msra.mxu1 %v8051_v45  ;;  %v5232_v2 = vpop.f32.mrb[187].mxu0  ;;  %13203 = vmatprep.mubr.msk.bf16.mxu1 %vm13378_vm4, %v13376_v35  ;;  %v8443_v56 = vpop.permute.xlu0 %8442  ;;  %v8246_v43 = vsel %vm2036_vm12, %v8237_v28, %v8239_v3 }
 0x40f   :  { %12718 = vmatprep.subr.msk.bf16.mxu1 %vm82_vm1, %v8243_v31  ;;  %v8269_v26 = vsel %vm82_vm1, %v8246_v43, 0 }
 0x410   :  { %v5268_v14 = vpop.f32.mrb[184].mxu1  ;;  %12713 = vmatmul.mubr.msk.bf16.vlgmr.msra.gmra.mrb[36].mxu0 %vm78_vm2, %v12707_v5 }
 0x411   :  { %v5270_v11 = vpop.f32.mrb[185].mxu1  ;;  %8272 = vmatpush1.bf16.msra.mxu0 %v8251_v60  ;;  %8303 = vmatprep.mubr.bf16.mxu0 %v13368_v10  ;;  %v8445_v36 = vpop.permute.xlu1 %8444  ;;  %v5358_v19 = vadd.f32 %v5268_v14, %v15297_v27  ;;  %v12715_v27 = vld [vmem:[%s16145_s1 + $0x24] sm:$0xf] }
 0x412   :  { %v5272_v47 = vpop.f32.mrb[186].mxu1  ;;  %12720 = vmatprep.subr.msk.bf16.mxu0 %vm82_vm1, %v8245_v0  ;;  %v8447_v1 = vpop.permute.xlu0 %8446  ;;  %v5359_v21 = vadd.f32 %v5270_v11, %v5140_v59  ;;  %v8458_v45 = vsel %vm2256_vm13, %v8443_v56, %v8445_v36 }
 0x413   :  { %v5273_v8 = vpop.f32.mrb[187].mxu1  ;;  %v5309_v6 = vpop.f32.mrb[188].mxu0  ;;  %v8469_v3 = vsel %vm82_vm1, %v8458_v45, 0 }
 0x414   :  { %v5311_v34 = vpop.f32.mrb[189].mxu0  ;;  %v5360_v57 = vadd.f32 %v5309_v6, %v5141_v55  ;;  %v8459_v55 = vsel %vm2256_vm13, %v8445_v36, %v8447_v1 }
 0x415   :  { %13204 = vmatmul.mubr.msk.bf16.vlgmr.msra.gmra.mrb[36].mxu1 %vm78_vm2, %v12707_v5  ;;  %v5313_v9 = vpop.f32.mrb[190].mxu0  ;;  %v8449_v15 = vpop.permute.xlu1 %8448  ;;  %v5361_v41 = vadd.f32 %v5311_v34, %v15303_v23 }
 0x416   :  { %8313 = vmatpush1.bf16.msra.mxu1 %v8257_v17  ;;  %v5314_v59 = vpop.f32.mrb[191].mxu0  ;;  %8344 = vmatprep.mubr.bf16.mxu1 %v13368_v10  ;;  %v8451_v44 = vpop.permute.xlu0 %8450 }
 0x417   :  { %13207 = vmatprep.subr.bf16.mxu1 %v13376_v35  ;;  %v8461_v28 = vsel %vm2256_vm13, %v8449_v15, %v8451_v44 }
 0x418   :  { %v5350_v5 = vpop.f32.mrb[188].mxu1  ;;  %12717 = vmatmul.mubr.msk.bf16.vlgmr.msra.gmra.mrb[40].mxu0 %vm78_vm2, %v12715_v27 }
 0x419   :  { %v13127_v50 = vpop.f32.mrb[189].mxu1  ;;  %8354 = vmatpush1.bf16.msra.mxu0 %v8263_v18  ;;  %8385 = vmatprep.mubr.bf16.mxu0 %v13368_v10  ;;  %v8453_v23 = vpop.permute.xlu1 %8452  ;;  %v5362_v25 = vadd.f32 %v5350_v5, %v15315_v48 }
 0x41a   :  { %v5353_v4 = vpop.f32.mrb[190].mxu1  ;;  %12724 = vmatprep.subr.msk.bf16.mxu0 %vm82_vm1, %v8459_v55  ;;  %v8455_v38 = vpop.permute.xlu0 %8454  ;;  %v8462_v17 = vsel %vm2256_vm13, %v8451_v44, %v8453_v23 }
 0x41b   :  { %v13128_v24 = vpop.f32.mrb[191].mxu1  ;;  %v5446_v32 = vpop.f32.mrb[192].mxu0  ;;  %v8481_v59 = vsel %vm82_vm1, %v8462_v17, 0 }
 0x41c   :  { %v5575_v52 = vadd.f32 %v5446_v32, %v5356_v12  ;;  %v5448_v37 = vpop.f32.mrb[193].mxu0  ;;  %v8463_v12 = vsel %vm2256_vm13, %v8453_v23, %v8455_v38 }
 0x41d   :  { %v5576_v49 = vadd.f32 %v5448_v37, %v5357_v46  ;;  %12719 = vmatmul.mubr.msk.bf16.vlgmr.msra.gmra.mrb[40].mxu1 %vm78_vm2, %v12715_v27  ;;  %v5450_v31 = vpop.f32.mrb[194].mxu0  ;;  %v8457_v58 = vpop.permute.xlu1 %8456  ;;  %v8460_v46 = vsel %vm2256_vm13, %v8447_v1, %v8449_v15 }
 0x41e   :  { %13208 = vmatpush3.bf16.msra.mxu1 %v8269_v26  ;;  %v5451_v48 = vpop.f32.mrb[195].mxu0  ;;  %13209 = vmatprep.mubr.msk.bf16.mxu1 %vm13378_vm4, %v13376_v35  ;;  %v8661_v2 = vpop.permute.xlu0 %8660  ;;  %v8475_v6 = vsel %vm82_vm1, %v8460_v46, 0 }
 0x41f   :  { %12726 = vmatprep.subr.msk.bf16.mxu1 %vm82_vm1, %v8461_v28 }
 0x420   :  { %v5487_v60 = vpop.f32.mrb[192].mxu1  ;;  %12721 = vmatmul.mubr.msk.bf16.vlgmr.msra.gmra.mrb[44].mxu0 %vm78_vm2, %v12715_v27 }
 0x421   :  { %v5577_v56 = vadd.f32 %v5487_v60, %v5358_v19  ;;  %v5489_v0 = vpop.f32.mrb[193].mxu1  ;;  %8490 = vmatpush1.bf16.msra.mxu0 %v8469_v3  ;;  %8521 = vmatprep.mubr.bf16.mxu0 %v13368_v10  ;;  %v8663_v14 = vpop.permute.xlu1 %8662 }
 0x422   :  { %v5578_v63 = vadd.f32 %v5489_v0, %v5359_v21  ;;  %v5491_v11 = vpop.f32.mrb[194].mxu1  ;;  %12728 = vmatprep.subr.msk.bf16.mxu0 %vm82_vm1, %v8463_v12  ;;  %v8665_v36 = vpop.permute.xlu0 %8664  ;;  %v12723_v21 = vld [vmem:[%s16145_s1 + $0x28] sm:$0xf]  ;;  %v8676_v26 = vsel %vm2476_vm14, %v8661_v2, %v8663_v14 }
 0x423   :  { %v5492_v47 = vpop.f32.mrb[195].mxu1  ;;  %v5528_v8 = vpop.f32.mrb[196].mxu0 }
 0x424   :  { %v5579_v22 = vadd.f32 %v5528_v8, %v5360_v57  ;;  %v5530_v34 = vpop.f32.mrb[197].mxu0  ;;  %v8677_v57 = vsel %vm2476_vm14, %v8663_v14, %v8665_v36 }
 0x425   :  { %v5580_v1 = vadd.f32 %v5530_v34, %v5361_v41  ;;  %13210 = vmatmul.mubr.msk.bf16.vlgmr.msra.gmra.mrb[44].mxu1 %vm78_vm2, %v12715_v27  ;;  %v5532_v19 = vpop.f32.mrb[198].mxu0  ;;  %v8667_v9 = vpop.permute.xlu1 %8666  ;;  %v8464_v27 = vsel %vm2256_vm13, %v8455_v38, %v8457_v58  ;;  %v8687_v58 = vsel %vm82_vm1, %v8676_v26, 0 }
 0x426   :  { %8531 = vmatpush1.bf16.msra.mxu1 %v8475_v6  ;;  %v5533_v15 = vpop.f32.mrb[199].mxu0  ;;  %8562 = vmatprep.mubr.bf16.mxu1 %v13368_v10  ;;  %v8669_v18 = vpop.permute.xlu0 %8668  ;;  %v8487_v4 = vsel %vm82_vm1, %v8464_v27, 0 }
 0x427   :  { %13213 = vmatprep.subr.bf16.mxu1 %v13376_v35  ;;  %v8679_v38 = vsel %vm2476_vm14, %v8667_v9, %v8669_v18 }
 0x428   :  { %v5569_v41 = vpop.f32.mrb[196].mxu1  ;;  %12725 = vmatmul.mubr.msk.bf16.vlgmr.msra.gmra.mrb[48].mxu0 %vm78_vm2, %v12723_v21 }
 0x429   :  { %v5581_v44 = vadd.f32 %v5569_v41, %v5362_v25  ;;  %v13133_v55 = vpop.f32.mrb[197].mxu1  ;;  %8572 = vmatpush1.bf16.msra.mxu0 %v8481_v59  ;;  %8603 = vmatprep.mubr.bf16.mxu0 %v13368_v10  ;;  %v8671_v5 = vpop.permute.xlu1 %8670 }
 0x42a   :  { %v5572_v43 = vpop.f32.mrb[198].mxu1  ;;  %12732 = vmatprep.subr.msk.bf16.mxu0 %vm82_vm1, %v8677_v57  ;;  %v8673_v50 = vpop.permute.xlu0 %8672  ;;  %v8680_v6 = vsel %vm2476_vm14, %v8669_v18, %v8671_v5 }
 0x42b   :  { %v13134_v23 = vpop.f32.mrb[199].mxu1  ;;  %v5665_v24 = vpop.f32.mrb[200].mxu0  ;;  %v8699_v15 = vsel %vm82_vm1, %v8680_v6, 0 }
 0x42c   :  { %v5794_v32 = vadd.f32 %v5665_v24, %v5575_v52  ;;  %v5667_v45 = vpop.f32.mrb[201].mxu0  ;;  %v8681_v52 = vsel %vm2476_vm14, %v8671_v5, %v8673_v50 }
 0x42d   :  { %v5795_v25 = vadd.f32 %v5667_v45, %v5576_v49  ;;  %12727 = vmatmul.mubr.msk.bf16.vlgmr.msra.gmra.mrb[48].mxu1 %vm78_vm2, %v12723_v21  ;;  %v5669_v37 = vpop.f32.mrb[202].mxu0  ;;  %v8675_v28 = vpop.permute.xlu1 %8674  ;;  %v8678_v49 = vsel %vm2476_vm14, %v8665_v36, %v8667_v9 }
 0x42e   :  { %13214 = vmatpush3.bf16.msra.mxu1 %v8487_v4  ;;  %v5670_v31 = vpop.f32.mrb[203].mxu0  ;;  %13215 = vmatprep.mubr.msk.bf16.mxu1 %vm13378_vm4, %v13376_v35  ;;  %v8879_v48 = vpop.permute.xlu0 %8878  ;;  %v8693_v8 = vsel %vm82_vm1, %v8678_v49, 0 }
 0x42f   :  { %12734 = vmatprep.subr.msk.bf16.mxu1 %vm82_vm1, %v8679_v38 }
 0x430   :  { %v5706_v3 = vpop.f32.mrb[200].mxu1  ;;  %12729 = vmatmul.mubr.msk.bf16.vlgmr.msra.gmra.mrb[52].mxu0 %vm78_vm2, %v12723_v21 }
 0x431   :  { %v5796_v2 = vadd.f32 %v5706_v3, %v5577_v56  ;;  %v5708_v12 = vpop.f32.mrb[201].mxu1  ;;  %8708 = vmatpush1.bf16.msra.mxu0 %v8687_v58  ;;  %8739 = vmatprep.mubr.bf16.mxu0 %v13368_v10  ;;  %v8881_v60 = vpop.permute.xlu1 %8880 }
 0x432   :  { %v5797_v46 = vadd.f32 %v5708_v12, %v5578_v63  ;;  %v5710_v0 = vpop.f32.mrb[202].mxu1  ;;  %12736 = vmatprep.subr.msk.bf16.mxu0 %vm82_vm1, %v8681_v52  ;;  %v8883_v14 = vpop.permute.xlu0 %8882  ;;  %v12731_v63 = vld [vmem:[%s16145_s1 + $0x2c] sm:$0xf]  ;;  %v8894_v23 = vsel %vm2696_vm15, %v8879_v48, %v8881_v60 }
 0x433   :  { %v5711_v11 = vpop.f32.mrb[203].mxu1  ;;  %v5747_v47 = vpop.f32.mrb[204].mxu0  ;;  %v8905_v37 = vsel %vm82_vm1, %v8894_v23, 0 }
 0x434   :  { %v5798_v17 = vadd.f32 %v5747_v47, %v5579_v22  ;;  %v5749_v34 = vpop.f32.mrb[205].mxu0  ;;  %v8895_v22 = vsel %vm2696_vm15, %v8881_v60, %v8883_v14 }
 0x435   :  { %v5799_v36 = vadd.f32 %v5749_v34, %v5580_v1  ;;  %13216 = vmatmul.mubr.msk.bf16.vlgmr.msra.gmra.mrb[52].mxu1 %vm78_vm2, %v12723_v21  ;;  %v5751_v56 = vpop.f32.mrb[206].mxu0  ;;  %v8885_v19 = vpop.permute.xlu1 %8884  ;;  %v8682_v21 = vsel %vm2476_vm14, %v8673_v50, %v8675_v28 }
 0x436   :  { %8749 = vmatpush1.bf16.msra.mxu1 %v8693_v8  ;;  %v5752_v9 = vpop.f32.mrb[207].mxu0  ;;  %8780 = vmatprep.mubr.bf16.mxu1 %v13368_v10  ;;  %v8887_v59 = vpop.permute.xlu0 %8886  ;;  %v8705_v5 = vsel %vm82_vm1, %v8682_v21, 0  ;;  %v8896_v31 = vsel %vm2696_vm15, %v8883_v14, %v8885_v19  ;;  %v12739_v14 = vld [vmem:[%s16145_s1 + $0x30] sm:$0xf] }
 0x437   :  { %13219 = vmatprep.subr.bf16.mxu1 %v13376_v35  ;;  %v8897_v26 = vsel %vm2696_vm15, %v8885_v19, %v8887_v59  ;;  %v8911_v12 = vsel %vm82_vm1, %v8896_v31, 0  ;;  %v9118_v31 = vsel %vm82_vm1, %v14532_v16, 0 }
 0x438   :  { %v5788_v1 = vpop.f32.mrb[204].mxu1  ;;  %12733 = vmatmul.mubr.msk.bf16.vlgmr.msra.gmra.mrb[56].mxu0 %vm78_vm2, %v12731_v63 }
 0x439   :  { %v5800_v18 = vadd.f32 %v5788_v1, %v5581_v44  ;;  %v13139_v57 = vpop.f32.mrb[205].mxu1  ;;  %8790 = vmatpush1.bf16.msra.mxu0 %v8699_v15  ;;  %8821 = vmatprep.mubr.bf16.mxu0 %v13368_v10  ;;  %v8889_v27 = vpop.permute.xlu1 %8888 }
 0x43a   :  { %v5791_v41 = vpop.f32.mrb[206].mxu1  ;;  %12740 = vmatprep.subr.msk.bf16.mxu0 %vm82_vm1, %v8895_v22  ;;  %v8891_v50 = vpop.permute.xlu0 %8890  ;;  %v8898_v60 = vsel %vm2696_vm15, %v8887_v59, %v8889_v27 }
 0x43b   :  { %v13140_v55 = vpop.f32.mrb[207].mxu1  ;;  %v5884_v43 = vpop.f32.mrb[208].mxu0  ;;  %v8899_v28 = vsel %vm2696_vm15, %v8889_v27, %v8891_v50  ;;  %v8917_v6 = vsel %vm82_vm1, %v8898_v60, 0 }
 0x43c   :  { %v6013_v4 = vadd.f32 %v5884_v43, %v5794_v32  ;;  %v5886_v24 = vpop.f32.mrb[209].mxu0 }
 0x43d   :  { %v6014_v44 = vadd.f32 %v5886_v24, %v5795_v25  ;;  %12735 = vmatmul.mubr.msk.bf16.vlgmr.msra.gmra.mrb[56].mxu1 %vm78_vm2, %v12731_v63  ;;  %v5888_v45 = vpop.f32.mrb[210].mxu0 }
 0x43e   :  { %13220 = vmatpush3.bf16.msra.mxu1 %v8705_v5  ;;  %v5889_v38 = vpop.f32.mrb[211].mxu0  ;;  %13221 = vmatprep.mubr.msk.bf16.mxu1 %vm13378_vm4, %v13376_v35 }
 0x43f   :  { %12742 = vmatprep.subr.msk.bf16.mxu1 %vm82_vm1, %v8897_v26 }
 0x440   :  { %v5925_v32 = vpop.f32.mrb[208].mxu1  ;;  %12737 = vmatmul.mubr.msk.bf16.vlgmr.msra.gmra.mrb[60].mxu0 %vm78_vm2, %v12731_v63 }
 0x441   :  { %v6015_v25 = vadd.f32 %v5925_v32, %v5796_v2  ;;  %v5927_v58 = vpop.f32.mrb[209].mxu1  ;;  %8926 = vmatpush1.bf16.msra.mxu0 %v8905_v37  ;;  %8957 = vmatprep.mubr.bf16.mxu0 %v13368_v10 }
 0x442   :  { %v6016_v48 = vadd.f32 %v5927_v58, %v5797_v46  ;;  %v5929_v52 = vpop.f32.mrb[210].mxu1  ;;  %12744 = vmatprep.subr.msk.bf16.mxu0 %vm82_vm1, %v8899_v28  ;;  %v8893_v46 = vpop.permute.xlu1 %8892 }
 0x443   :  { %v5930_v3 = vpop.f32.mrb[211].mxu1  ;;  %v5966_v49 = vpop.f32.mrb[212].mxu0 }
 0x444   :  { %v6017_v0 = vadd.f32 %v5966_v49, %v5798_v17  ;;  %v5968_v11 = vpop.f32.mrb[213].mxu0  ;;  %v8900_v17 = vsel %vm2696_vm15, %v8891_v50, %v8893_v46  ;;  %v12747_v50 = vld [vmem:[%s16145_s1 + $0x34] sm:$0xf] }
 0x445   :  { %v6018_v47 = vadd.f32 %v5968_v11, %v5799_v36  ;;  %13222 = vmatmul.mubr.msk.bf16.vlgmr.msra.gmra.mrb[60].mxu1 %vm78_vm2, %v12731_v63  ;;  %v5970_v2 = vpop.f32.mrb[214].mxu0  ;;  %v8923_v9 = vsel %vm82_vm1, %v8900_v17, 0 }
 0x446   :  { %8967 = vmatpush1.bf16.msra.mxu1 %v8911_v12  ;;  %v5971_v8 = vpop.f32.mrb[215].mxu0  ;;  %8998 = vmatprep.mubr.bf16.mxu1 %v13368_v10 }
 0x447   :  { %13225 = vmatprep.subr.bf16.mxu1 %v13376_v35 }
 0x448   :  { %v6007_v34 = vpop.f32.mrb[212].mxu1  ;;  %12741 = vmatmul.mubr.msk.bf16.vlgmr.msra.gmra.mrb[64].mxu0 %vm78_vm2, %v12739_v14 }
 0x449   :  { %v6019_v36 = vadd.f32 %v6007_v34, %v5800_v18  ;;  %v13145_v56 = vpop.f32.mrb[213].mxu1  ;;  %9008 = vmatpush1.bf16.msra.mxu0 %v8917_v6  ;;  %9039 = vmatprep.mubr.bf16.mxu0 %v13368_v10  ;;  %v9100_v18 = vsel %vm82_vm1, %v14473_v29, 0 }
 0x44a   :  { %v6010_v63 = vpop.f32.mrb[214].mxu1  ;;  %12748 = vmatprep.subr.msk.bf16.mxu0 %vm82_vm1, %v14478_v30 }
 0x44b   :  { %v13146_v19 = vpop.f32.mrb[215].mxu1  ;;  %v6080_v15 = vpop.f32.mrb[216].mxu0 }
 0x44c   :  { %v15431_v59 = vadd.f32 %v6080_v15, %v6013_v4  ;;  %v6082_v22 = vpop.f32.mrb[217].mxu0 }
 0x44d   :  { %12743 = vmatmul.mubr.msk.bf16.vlgmr.msra.gmra.mrb[64].mxu1 %vm78_vm2, %v12739_v14  ;;  %v15434_v1 = vadd.f32 %v6082_v22, %v6014_v44  ;;  %v6084_v21 = vpop.f32.mrb[218].mxu0 }
 0x44e   :  { %13226 = vmatpush3.bf16.msra.mxu1 %v8923_v9  ;;  %13227 = vmatprep.mubr.msk.bf16.mxu1 %vm13378_vm4, %v13376_v35  ;;  %v6085_v30 = vpop.f32.mrb[219].mxu0 }
 0x44f   :  { %12750 = vmatprep.subr.msk.bf16.mxu1 %vm82_vm1, %v14498_v42  ;;  %v9106_v42 = vsel %vm82_vm1, %v14493_v40, 0 }
 0x450   :  { %v6121_v57 = vpop.f32.mrb[216].mxu1  ;;  %12745 = vmatmul.mubr.msk.bf16.vlgmr.msra.gmra.mrb[68].mxu0 %vm78_vm2, %v12739_v14 }
 0x451   :  { %v15443_v41 = vadd.f32 %v6121_v57, %v6015_v25  ;;  %v6123_v27 = vpop.f32.mrb[217].mxu1  ;;  %9121 = vmatpush1.bf16.msra.mxu0 %v9100_v18  ;;  %9152 = vmatprep.mubr.bf16.mxu0 %v13368_v10 }
 0x452   :  { %v15446_v55 = vadd.f32 %v6123_v27, %v6016_v48  ;;  %v6125_v5 = vpop.f32.mrb[218].mxu1  ;;  %12752 = vmatprep.subr.msk.bf16.mxu0 %vm82_vm1, %v14517_v54  ;;  %v9112_v54 = vsel %vm82_vm1, %v14512_v53, 0 }
 0x453   :  { %v6126_v29 = vpop.f32.mrb[219].mxu1  ;;  %v6162_v43 = vpop.f32.mrb[220].mxu0 }
 0x454   :  { %v15452_v23 = vadd.f32 %v6162_v43, %v6017_v0  ;;  %v6164_v4 = vpop.f32.mrb[221].mxu0 }
 0x455   :  { %v15454_v24 = vadd.f32 %v6164_v4, %v6018_v47  ;;  %13228 = vmatmul.mubr.msk.bf16.vlgmr.msra.gmra.mrb[68].mxu1 %vm78_vm2, %v12739_v14  ;;  %v6166_v26 = vpop.f32.mrb[222].mxu0 }
 0x456   :  { %v6167_v44 = vpop.f32.mrb[223].mxu0  ;;  %9162 = vmatpush1.bf16.msra.mxu1 %v9106_v42  ;;  %9193 = vmatprep.mubr.bf16.mxu1 %v13368_v10 }
 0x457   :  { %13231 = vmatprep.subr.bf16.mxu1 %v13376_v35 }
 0x458   :  { %v6203_v40 = vpop.f32.mrb[220].mxu1  ;;  %12749 = vmatmul.mubr.msk.bf16.vlgmr.msra.gmra.mrb[72].mxu0 %vm78_vm2, %v12747_v50 }
 0x459   :  { %v15465_v45 = vadd.f32 %v6203_v40, %v6019_v36  ;;  %v13151_v38 = vpop.f32.mrb[221].mxu1  ;;  %9203 = vmatpush1.bf16.msra.mxu0 %v9112_v54  ;;  %9234 = vmatprep.mubr.bf16.mxu0 %v13368_v10 }
 0x45a   :  { %v6206_v37 = vpop.f32.mrb[222].mxu1 }
 0x45b   :  { %v13152_v28 = vpop.f32.mrb[223].mxu1  ;;  %v6358_v32 = vpop.f32.mrb[224].mxu0 }
 0x45c   :  { %v6360_v25 = vpop.f32.mrb[225].mxu0 }
 0x45d   :  { %12751 = vmatmul.mubr.msk.bf16.vlgmr.msra.gmra.mrb[72].mxu1 %vm78_vm2, %v12747_v50  ;;  %v6362_v53 = vpop.f32.mrb[226].mxu0 }
 0x45e   :  { %v6363_v58 = vpop.f32.mrb[227].mxu0  ;;  %13232 = vmatpush3.bf16.msra.mxu1 %v9118_v31  ;;  %13233 = vmatprep.mubr.msk.bf16.mxu1 %vm13378_vm4, %v13376_v35 }
 0x460   :  { %v6399_v48 = vpop.f32.mrb[224].mxu1  ;;  %12753 = vmatmul.mubr.msk.bf16.vlgmr.msra.gmra.mrb[76].mxu0 %vm78_vm2, %v12747_v50 }
 0x461   :  { %v6401_v52 = vpop.f32.mrb[225].mxu1  ;;  %9429 = vmatprep.mubr.bf16.mxu0 %v13368_v10 }
 0x462   :  { %v6403_v3 = vpop.f32.mrb[226].mxu1 }
 0x463   :  { %v6404_v49 = vpop.f32.mrb[227].mxu1  ;;  %v6440_v12 = vpop.f32.mrb[228].mxu0 }
 0x464   :  { %v6442_v60 = vpop.f32.mrb[229].mxu0 }
 0x465   :  { %13234 = vmatmul.mubr.msk.bf16.vlgmr.msra.gmra.mrb[76].mxu1 %vm78_vm2, %v12747_v50  ;;  %v6444_v16 = vpop.f32.mrb[230].mxu0 }
 0x466   :  { %v6445_v0 = vpop.f32.mrb[231].mxu0  ;;  %9470 = vmatprep.mubr.bf16.mxu1 %v13368_v10 }
 0x468   :  { %v6481_v11 = vpop.f32.mrb[228].mxu1 }
 0x469   :  { %v13157_v47 = vpop.f32.mrb[229].mxu1 }
 0x46a   :  { %v6484_v2 = vpop.f32.mrb[230].mxu1 }
 0x46b   :  { %v13158_v14 = vpop.f32.mrb[231].mxu1  ;;  %v6568_v46 = vpop.f32.mrb[232].mxu0 }
 0x46c   :  { %v6569_v8 = vadd.f32 %v6568_v46, %v6358_v32  ;;  %v6570_v6 = vpop.f32.mrb[233].mxu0 }
 0x46d   :  { %v6571_v34 = vadd.f32 %v6570_v6, %v6360_v25  ;;  %v6572_v17 = vpop.f32.mrb[234].mxu0 }
 0x46e   :  { %v6573_v36 = vpop.f32.mrb[235].mxu0 }
 0x470   :  { %v6609_v56 = vpop.f32.mrb[232].mxu1 }
 0x471   :  { %v6610_v63 = vadd.f32 %v6609_v56, %v6399_v48  ;;  %v6611_v19 = vpop.f32.mrb[233].mxu1 }
 0x472   :  { %v6612_v9 = vadd.f32 %v6611_v19, %v6401_v52  ;;  %v6613_v15 = vpop.f32.mrb[234].mxu1 }
 0x473   :  { %v6614_v22 = vpop.f32.mrb[235].mxu1  ;;  %v6650_v21 = vpop.f32.mrb[236].mxu0 }
 0x474   :  { %v6651_v18 = vadd.f32 %v6650_v21, %v6440_v12  ;;  %v6652_v30 = vpop.f32.mrb[237].mxu0 }
 0x475   :  { %v6653_v57 = vadd.f32 %v6652_v30, %v6442_v60  ;;  %v6654_v27 = vpop.f32.mrb[238].mxu0 }
 0x476   :  { %v6655_v5 = vpop.f32.mrb[239].mxu0 }
 0x478   :  { %v6691_v29 = vpop.f32.mrb[236].mxu1 }
 0x479   :  { %v6692_v43 = vadd.f32 %v6691_v29, %v6481_v11  ;;  %v13163_v42 = vpop.f32.mrb[237].mxu1 }
 0x47a   :  { %v6694_v4 = vpop.f32.mrb[238].mxu1 }
 0x47b   :  { %v13164_v26 = vpop.f32.mrb[239].mxu1  ;;  %v6779_v50 = vpop.f32.mrb[240].mxu0 }
 0x47c   :  { %v6908_v44 = vadd.f32 %v6779_v50, %v6569_v8  ;;  %v6781_v54 = vpop.f32.mrb[241].mxu0 }
 0x47d   :  { %v6909_v40 = vadd.f32 %v6781_v54, %v6571_v34  ;;  %v6783_v38 = vpop.f32.mrb[242].mxu0 }
 0x47e   :  { %v6784_v37 = vpop.f32.mrb[243].mxu0 }
 0x480   :  { %v6820_v28 = vpop.f32.mrb[240].mxu1 }
 0x481   :  { %v6910_v32 = vadd.f32 %v6820_v28, %v6610_v63  ;;  %v6822_v31 = vpop.f32.mrb[241].mxu1 }
 0x482   :  { %v6911_v25 = vadd.f32 %v6822_v31, %v6612_v9  ;;  %v6824_v53 = vpop.f32.mrb[242].mxu1 }
 0x483   :  { %v6825_v58 = vpop.f32.mrb[243].mxu1  ;;  %v6861_v48 = vpop.f32.mrb[244].mxu0 }
 0x484   :  { %v6912_v52 = vadd.f32 %v6861_v48, %v6651_v18  ;;  %v6863_v3 = vpop.f32.mrb[245].mxu0 }
 0x485   :  { %v6913_v49 = vadd.f32 %v6863_v3, %v6653_v57  ;;  %v6865_v12 = vpop.f32.mrb[246].mxu0 }
 0x486   :  { %v6866_v60 = vpop.f32.mrb[247].mxu0 }
 0x488   :  { %v6902_v16 = vpop.f32.mrb[244].mxu1 }
 0x489   :  { %v6914_v0 = vadd.f32 %v6902_v16, %v6692_v43  ;;  %v13169_v11 = vpop.f32.mrb[245].mxu1 }
 0x48a   :  { %v6905_v47 = vpop.f32.mrb[246].mxu1 }
 0x48b   :  { %v13170_v2 = vpop.f32.mrb[247].mxu1  ;;  %v6997_v14 = vpop.f32.mrb[248].mxu0 }
 0x48c   :  { %v7126_v46 = vadd.f32 %v6997_v14, %v6908_v44  ;;  %v6999_v8 = vpop.f32.mrb[249].mxu0 }
 0x48d   :  { %v7127_v6 = vadd.f32 %v6999_v8, %v6909_v40  ;;  %v7001_v34 = vpop.f32.mrb[250].mxu0 }
 0x48e   :  { %v7002_v17 = vpop.f32.mrb[251].mxu0 }
 0x490   :  { %v7038_v36 = vpop.f32.mrb[248].mxu1 }
 0x491   :  { %v7128_v56 = vadd.f32 %v7038_v36, %v6910_v32  ;;  %v7040_v63 = vpop.f32.mrb[249].mxu1 }
 0x492   :  { %v7129_v19 = vadd.f32 %v7040_v63, %v6911_v25  ;;  %v7042_v9 = vpop.f32.mrb[250].mxu1 }
 0x493   :  { %v7043_v15 = vpop.f32.mrb[251].mxu1  ;;  %v7079_v22 = vpop.f32.mrb[252].mxu0 }
 0x494   :  { %v7130_v21 = vadd.f32 %v7079_v22, %v6912_v52  ;;  %v7081_v18 = vpop.f32.mrb[253].mxu0 }
 0x495   :  { %v7131_v30 = vadd.f32 %v7081_v18, %v6913_v49  ;;  %v7083_v57 = vpop.f32.mrb[254].mxu0 }
 0x496   :  { %v7084_v27 = vpop.f32.mrb[255].mxu0 }
 0x498   :  { %v7120_v5 = vpop.f32.mrb[252].mxu1 }
 0x499   :  { %v7132_v29 = vadd.f32 %v7120_v5, %v6914_v0  ;;  %v13175_v43 = vpop.f32.mrb[253].mxu1 }
 0x49a   :  { %v7123_v42 = vpop.f32.mrb[254].mxu1 }
 0x49b   :  { %v13176_v4 = vpop.f32.mrb[255].mxu1  ;;  %v7215_v26 = vpop.f32.mrb[0].mxu0 }
 0x49c   :  { %v7344_v50 = vadd.f32 %v7215_v26, %v7126_v46  ;;  %v7217_v44 = vpop.f32.mrb[1].mxu0 }
 0x49d   :  { %v7345_v54 = vadd.f32 %v7217_v44, %v7127_v6  ;;  %v7219_v40 = vpop.f32.mrb[2].mxu0 }
 0x49e   :  { %v7220_v38 = vpop.f32.mrb[3].mxu0 }
 0x4a0   :  { %v7256_v37 = vpop.f32.mrb[0].mxu1 }
 0x4a1   :  { %v7346_v28 = vadd.f32 %v7256_v37, %v7128_v56  ;;  %v7258_v32 = vpop.f32.mrb[1].mxu1 }
 0x4a2   :  { %v7347_v31 = vadd.f32 %v7258_v32, %v7129_v19  ;;  %v7260_v25 = vpop.f32.mrb[2].mxu1 }
 0x4a3   :  { %v7261_v53 = vpop.f32.mrb[3].mxu1  ;;  %v7297_v58 = vpop.f32.mrb[4].mxu0 }
 0x4a4   :  { %v7348_v48 = vadd.f32 %v7297_v58, %v7130_v21  ;;  %v7299_v52 = vpop.f32.mrb[5].mxu0 }
 0x4a5   :  { %v7349_v3 = vadd.f32 %v7299_v52, %v7131_v30  ;;  %v7301_v49 = vpop.f32.mrb[6].mxu0 }
 0x4a6   :  { %v7302_v12 = vpop.f32.mrb[7].mxu0 }
 0x4a8   :  { %v7338_v60 = vpop.f32.mrb[4].mxu1 }
 0x4a9   :  { %v7350_v16 = vadd.f32 %v7338_v60, %v7132_v29  ;;  %v13181_v0 = vpop.f32.mrb[5].mxu1 }
 0x4aa   :  { %v7341_v11 = vpop.f32.mrb[6].mxu1 }
 0x4ab   :  { %v13182_v47 = vpop.f32.mrb[7].mxu1  ;;  %v7433_v2 = vpop.f32.mrb[8].mxu0 }
 0x4ac   :  { %v7562_v14 = vadd.f32 %v7433_v2, %v7344_v50  ;;  %v7435_v46 = vpop.f32.mrb[9].mxu0 }
 0x4ad   :  { %v7563_v8 = vadd.f32 %v7435_v46, %v7345_v54  ;;  %v7437_v6 = vpop.f32.mrb[10].mxu0 }
 0x4ae   :  { %v7438_v34 = vpop.f32.mrb[11].mxu0 }
 0x4b0   :  { %v7474_v17 = vpop.f32.mrb[8].mxu1 }
 0x4b1   :  { %v7564_v36 = vadd.f32 %v7474_v17, %v7346_v28  ;;  %v7476_v56 = vpop.f32.mrb[9].mxu1 }
 0x4b2   :  { %v7565_v63 = vadd.f32 %v7476_v56, %v7347_v31  ;;  %v7478_v19 = vpop.f32.mrb[10].mxu1 }
 0x4b3   :  { %v7479_v9 = vpop.f32.mrb[11].mxu1  ;;  %v7515_v15 = vpop.f32.mrb[12].mxu0 }
 0x4b4   :  { %v7566_v22 = vadd.f32 %v7515_v15, %v7348_v48  ;;  %v7517_v21 = vpop.f32.mrb[13].mxu0 }
 0x4b5   :  { %v7567_v18 = vadd.f32 %v7517_v21, %v7349_v3  ;;  %v7519_v30 = vpop.f32.mrb[14].mxu0 }
 0x4b6   :  { %v7520_v57 = vpop.f32.mrb[15].mxu0 }
 0x4b8   :  { %v7556_v27 = vpop.f32.mrb[12].mxu1 }
 0x4b9   :  { %v7568_v5 = vadd.f32 %v7556_v27, %v7350_v16  ;;  %v13187_v29 = vpop.f32.mrb[13].mxu1 }
 0x4ba   :  { %v7559_v43 = vpop.f32.mrb[14].mxu1 }
 0x4bb   :  { %v13188_v42 = vpop.f32.mrb[15].mxu1  ;;  %v7651_v4 = vpop.f32.mrb[16].mxu0 }
 0x4bc   :  { %v7780_v26 = vadd.f32 %v7651_v4, %v7562_v14  ;;  %v7653_v50 = vpop.f32.mrb[17].mxu0 }
 0x4bd   :  { %v7781_v44 = vadd.f32 %v7653_v50, %v7563_v8  ;;  %v7655_v54 = vpop.f32.mrb[18].mxu0 }
 0x4be   :  { %v7656_v40 = vpop.f32.mrb[19].mxu0 }
 0x4c0   :  { %v7692_v38 = vpop.f32.mrb[16].mxu1 }
 0x4c1   :  { %v7782_v37 = vadd.f32 %v7692_v38, %v7564_v36  ;;  %v7694_v28 = vpop.f32.mrb[17].mxu1 }
 0x4c2   :  { %v7783_v32 = vadd.f32 %v7694_v28, %v7565_v63  ;;  %v7696_v31 = vpop.f32.mrb[18].mxu1 }
 0x4c3   :  { %v7697_v25 = vpop.f32.mrb[19].mxu1  ;;  %v7733_v53 = vpop.f32.mrb[20].mxu0 }
 0x4c4   :  { %v7784_v58 = vadd.f32 %v7733_v53, %v7566_v22  ;;  %v7735_v48 = vpop.f32.mrb[21].mxu0 }
 0x4c5   :  { %v7785_v52 = vadd.f32 %v7735_v48, %v7567_v18  ;;  %v7737_v3 = vpop.f32.mrb[22].mxu0 }
 0x4c6   :  { %v7738_v49 = vpop.f32.mrb[23].mxu0 }
 0x4c8   :  { %v7774_v12 = vpop.f32.mrb[20].mxu1 }
 0x4c9   :  { %v7786_v60 = vadd.f32 %v7774_v12, %v7568_v5  ;;  %v13193_v16 = vpop.f32.mrb[21].mxu1 }
 0x4ca   :  { %v7777_v0 = vpop.f32.mrb[22].mxu1 }
 0x4cb   :  { %v13194_v11 = vpop.f32.mrb[23].mxu1  ;;  %v7869_v47 = vpop.f32.mrb[24].mxu0 }
 0x4cc   :  { %v7998_v2 = vadd.f32 %v7869_v47, %v7780_v26  ;;  %v7871_v14 = vpop.f32.mrb[25].mxu0 }
 0x4cd   :  { %v7999_v46 = vadd.f32 %v7871_v14, %v7781_v44  ;;  %v7873_v8 = vpop.f32.mrb[26].mxu0 }
 0x4ce   :  { %v7874_v6 = vpop.f32.mrb[27].mxu0 }
 0x4d0   :  { %v7910_v34 = vpop.f32.mrb[24].mxu1 }
 0x4d1   :  { %v8000_v17 = vadd.f32 %v7910_v34, %v7782_v37  ;;  %v7912_v36 = vpop.f32.mrb[25].mxu1 }
 0x4d2   :  { %v8001_v56 = vadd.f32 %v7912_v36, %v7783_v32  ;;  %v7914_v63 = vpop.f32.mrb[26].mxu1 }
 0x4d3   :  { %v7915_v19 = vpop.f32.mrb[27].mxu1  ;;  %v7951_v9 = vpop.f32.mrb[28].mxu0 }
 0x4d4   :  { %v8002_v15 = vadd.f32 %v7951_v9, %v7784_v58  ;;  %v7953_v22 = vpop.f32.mrb[29].mxu0 }
 0x4d5   :  { %v8003_v21 = vadd.f32 %v7953_v22, %v7785_v52  ;;  %v7955_v18 = vpop.f32.mrb[30].mxu0 }
 0x4d6   :  { %v7956_v30 = vpop.f32.mrb[31].mxu0 }
 0x4d8   :  { %v7992_v57 = vpop.f32.mrb[28].mxu1 }
 0x4d9   :  { %v8004_v27 = vadd.f32 %v7992_v57, %v7786_v60  ;;  %v13199_v5 = vpop.f32.mrb[29].mxu1 }
 0x4da   :  { %v7995_v29 = vpop.f32.mrb[30].mxu1 }
 0x4db   :  { %v13200_v43 = vpop.f32.mrb[31].mxu1  ;;  %v8087_v42 = vpop.f32.mrb[32].mxu0 }
 0x4dc   :  { %v8216_v4 = vadd.f32 %v8087_v42, %v7998_v2  ;;  %v8089_v26 = vpop.f32.mrb[33].mxu0 }
 0x4dd   :  { %v8217_v50 = vadd.f32 %v8089_v26, %v7999_v46  ;;  %v8091_v44 = vpop.f32.mrb[34].mxu0 }
 0x4de   :  { %v8092_v54 = vpop.f32.mrb[35].mxu0 }
 0x4e0   :  { %v8128_v40 = vpop.f32.mrb[32].mxu1 }
 0x4e1   :  { %v8218_v38 = vadd.f32 %v8128_v40, %v8000_v17  ;;  %v8130_v37 = vpop.f32.mrb[33].mxu1 }
 0x4e2   :  { %v8219_v28 = vadd.f32 %v8130_v37, %v8001_v56  ;;  %v8132_v32 = vpop.f32.mrb[34].mxu1 }
 0x4e3   :  { %v8133_v31 = vpop.f32.mrb[35].mxu1  ;;  %v8169_v25 = vpop.f32.mrb[36].mxu0 }
 0x4e4   :  { %v8220_v53 = vadd.f32 %v8169_v25, %v8002_v15  ;;  %v8171_v58 = vpop.f32.mrb[37].mxu0 }
 0x4e5   :  { %v8221_v48 = vadd.f32 %v8171_v58, %v8003_v21  ;;  %v8173_v52 = vpop.f32.mrb[38].mxu0 }
 0x4e6   :  { %v8174_v3 = vpop.f32.mrb[39].mxu0 }
 0x4e8   :  { %v8210_v49 = vpop.f32.mrb[36].mxu1 }
 0x4e9   :  { %v8222_v12 = vadd.f32 %v8210_v49, %v8004_v27  ;;  %v13205_v60 = vpop.f32.mrb[37].mxu1 }
 0x4ea   :  { %v8213_v16 = vpop.f32.mrb[38].mxu1 }
 0x4eb   :  { %v13206_v0 = vpop.f32.mrb[39].mxu1  ;;  %v8305_v11 = vpop.f32.mrb[40].mxu0 }
 0x4ec   :  { %v8434_v47 = vadd.f32 %v8305_v11, %v8216_v4  ;;  %v8307_v2 = vpop.f32.mrb[41].mxu0 }
 0x4ed   :  { %v8435_v14 = vadd.f32 %v8307_v2, %v8217_v50  ;;  %v8309_v46 = vpop.f32.mrb[42].mxu0 }
 0x4ee   :  { %v8310_v8 = vpop.f32.mrb[43].mxu0 }
 0x4f0   :  { %v8346_v6 = vpop.f32.mrb[40].mxu1 }
 0x4f1   :  { %v8436_v34 = vadd.f32 %v8346_v6, %v8218_v38  ;;  %v8348_v17 = vpop.f32.mrb[41].mxu1 }
 0x4f2   :  { %v8437_v36 = vadd.f32 %v8348_v17, %v8219_v28  ;;  %v8350_v56 = vpop.f32.mrb[42].mxu1 }
 0x4f3   :  { %v8351_v63 = vpop.f32.mrb[43].mxu1  ;;  %v8387_v19 = vpop.f32.mrb[44].mxu0 }
 0x4f4   :  { %v8438_v9 = vadd.f32 %v8387_v19, %v8220_v53  ;;  %v8389_v15 = vpop.f32.mrb[45].mxu0 }
 0x4f5   :  { %v8439_v22 = vadd.f32 %v8389_v15, %v8221_v48  ;;  %v8391_v21 = vpop.f32.mrb[46].mxu0 }
 0x4f6   :  { %v8392_v18 = vpop.f32.mrb[47].mxu0 }
 0x4f8   :  { %v8428_v30 = vpop.f32.mrb[44].mxu1 }
 0x4f9   :  { %v8440_v57 = vadd.f32 %v8428_v30, %v8222_v12  ;;  %v13211_v27 = vpop.f32.mrb[45].mxu1 }
 0x4fa   :  { %v8431_v5 = vpop.f32.mrb[46].mxu1 }
 0x4fb   :  { %v13212_v29 = vpop.f32.mrb[47].mxu1  ;;  %v8523_v43 = vpop.f32.mrb[48].mxu0 }
 0x4fc   :  { %v8652_v42 = vadd.f32 %v8523_v43, %v8434_v47  ;;  %v8525_v4 = vpop.f32.mrb[49].mxu0 }
 0x4fd   :  { %v8653_v26 = vadd.f32 %v8525_v4, %v8435_v14  ;;  %v8527_v50 = vpop.f32.mrb[50].mxu0 }
 0x4fe   :  { %v8528_v44 = vpop.f32.mrb[51].mxu0 }
 0x500   :  { %v8564_v54 = vpop.f32.mrb[48].mxu1 }
 0x501   :  { %v8654_v40 = vadd.f32 %v8564_v54, %v8436_v34  ;;  %v8566_v38 = vpop.f32.mrb[49].mxu1 }
 0x502   :  { %v8655_v37 = vadd.f32 %v8566_v38, %v8437_v36  ;;  %v8568_v28 = vpop.f32.mrb[50].mxu1 }
 0x503   :  { %v8569_v32 = vpop.f32.mrb[51].mxu1  ;;  %v8605_v31 = vpop.f32.mrb[52].mxu0 }
 0x504   :  { %v8656_v25 = vadd.f32 %v8605_v31, %v8438_v9  ;;  %v8607_v53 = vpop.f32.mrb[53].mxu0 }
 0x505   :  { %v8657_v58 = vadd.f32 %v8607_v53, %v8439_v22  ;;  %v8609_v48 = vpop.f32.mrb[54].mxu0 }
 0x506   :  { %v8610_v52 = vpop.f32.mrb[55].mxu0 }
 0x508   :  { %v8646_v3 = vpop.f32.mrb[52].mxu1 }
 0x509   :  { %v8658_v49 = vadd.f32 %v8646_v3, %v8440_v57  ;;  %v13217_v12 = vpop.f32.mrb[53].mxu1 }
 0x50a   :  { %v8649_v60 = vpop.f32.mrb[54].mxu1 }
 0x50b   :  { %v13218_v16 = vpop.f32.mrb[55].mxu1  ;;  %v8741_v0 = vpop.f32.mrb[56].mxu0 }
 0x50c   :  { %v8870_v11 = vadd.f32 %v8741_v0, %v8652_v42  ;;  %v8743_v47 = vpop.f32.mrb[57].mxu0 }
 0x50d   :  { %v8871_v2 = vadd.f32 %v8743_v47, %v8653_v26  ;;  %v8745_v14 = vpop.f32.mrb[58].mxu0  ;;  %v9294_v47 = vpop.permute.xlu0 %9293 }
 0x50e   :  { %v8746_v46 = vpop.f32.mrb[59].mxu0 }
 0x510   :  { %v8782_v8 = vpop.f32.mrb[56].mxu1 }
 0x511   :  { %v8872_v6 = vadd.f32 %v8782_v8, %v8654_v40  ;;  %v8784_v34 = vpop.f32.mrb[57].mxu1 }
 0x512   :  { %v8873_v17 = vadd.f32 %v8784_v34, %v8655_v37  ;;  %v8786_v36 = vpop.f32.mrb[58].mxu1 }
 0x513   :  { %v8787_v56 = vpop.f32.mrb[59].mxu1  ;;  %v8823_v63 = vpop.f32.mrb[60].mxu0 }
 0x514   :  { %v8874_v19 = vadd.f32 %v8823_v63, %v8656_v25  ;;  %v8825_v9 = vpop.f32.mrb[61].mxu0 }
 0x515   :  { %v8875_v15 = vadd.f32 %v8825_v9, %v8657_v58  ;;  %v8827_v22 = vpop.f32.mrb[62].mxu0 }
 0x516   :  { %v8828_v21 = vpop.f32.mrb[63].mxu0 }
 0x518   :  { %v8864_v18 = vpop.f32.mrb[60].mxu1 }
 0x519   :  { %v8876_v30 = vadd.f32 %v8864_v18, %v8658_v49  ;;  %v13223_v57 = vpop.f32.mrb[61].mxu1 }
 0x51a   :  { %v8867_v27 = vpop.f32.mrb[62].mxu1 }
 0x51b   :  { %v13224_v5 = vpop.f32.mrb[63].mxu1  ;;  %v8959_v29 = vpop.f32.mrb[64].mxu0 }
 0x51c   :  { %v9088_v43 = vadd.f32 %v8959_v29, %v8870_v11  ;;  %v8961_v42 = vpop.f32.mrb[65].mxu0 }
 0x51d   :  { %v9089_v4 = vadd.f32 %v8961_v42, %v8871_v2  ;;  %v8963_v26 = vpop.f32.mrb[66].mxu0 }
 0x51e   :  { %v8964_v50 = vpop.f32.mrb[67].mxu0 }
 0x520   :  { %v9000_v44 = vpop.f32.mrb[64].mxu1 }
 0x521   :  { %v9090_v54 = vadd.f32 %v9000_v44, %v8872_v6  ;;  %v9002_v40 = vpop.f32.mrb[65].mxu1 }
 0x522   :  { %v9091_v38 = vadd.f32 %v9002_v40, %v8873_v17  ;;  %v9004_v37 = vpop.f32.mrb[66].mxu1 }
 0x523   :  { %v9005_v28 = vpop.f32.mrb[67].mxu1  ;;  %v9041_v32 = vpop.f32.mrb[68].mxu0 }
 0x524   :  { %v9092_v31 = vadd.f32 %v9041_v32, %v8874_v19  ;;  %v9043_v25 = vpop.f32.mrb[69].mxu0 }
 0x525   :  { %v9093_v53 = vadd.f32 %v9043_v25, %v8875_v15  ;;  %v9045_v58 = vpop.f32.mrb[70].mxu0 }
 0x526   :  { %v9046_v48 = vpop.f32.mrb[71].mxu0 }
 0x528   :  { %v9082_v52 = vpop.f32.mrb[68].mxu1 }
 0x529   :  { %v9094_v3 = vadd.f32 %v9082_v52, %v8876_v30  ;;  %v13229_v49 = vpop.f32.mrb[69].mxu1 }
 0x52a   :  { %v9085_v12 = vpop.f32.mrb[70].mxu1 }
 0x52b   :  { %v13230_v60 = vpop.f32.mrb[71].mxu1  ;;  %v9154_v16 = vpop.f32.mrb[72].mxu0 }
 0x52c   :  { %v9283_v0 = vadd.f32 %v9154_v16, %v9088_v43  ;;  %v9156_v11 = vpop.f32.mrb[73].mxu0 }
 0x52d   :  { %v9284_v2 = vadd.f32 %v9156_v11, %v9089_v4  ;;  %v9158_v14 = vpop.f32.mrb[74].mxu0 }
 0x52e   :  { %v9296_v46 = vadd.f32 %v9294_v47, %v9283_v0  ;;  %v9159_v8 = vpop.f32.mrb[75].mxu0 }
 0x52f   :  { %v9297_v6 = vadd.f32 %v9294_v47, %v9284_v2  ;;  %v12755_v2 = vld [vmem:[%s16147_s3 + $0x4] sm:$0xf] }
 0x530   :  { %v9303_v34 = vmax.f32 %v9296_v46, 0.0  ;;  %v9195_v17 = vpop.f32.mrb[72].mxu1 }
 0x531   :  { %v9304_v36 = vmax.f32 %v9297_v6, 0.0  ;;  %v9285_v56 = vadd.f32 %v9195_v17, %v9090_v54  ;;  %v9197_v63 = vpop.f32.mrb[73].mxu1 }
 0x532   :  { %v9310_v19 = vmul.f32 %v9303_v34, %v14064_v7  ;;  %v9286_v9 = vadd.f32 %v9197_v63, %v9091_v38  ;;  %v9199_v15 = vpop.f32.mrb[74].mxu1 }
 0x533   :  { %v9311_v22 = vmul.f32 %v9304_v36, %v14067_v62  ;;  %v9298_v21 = vadd.f32 %v9294_v47, %v9285_v56  ;;  %v9200_v18 = vpop.f32.mrb[75].mxu1  ;;  %v9236_v30 = vpop.f32.mrb[76].mxu0 }
 0x534   :  { %v15479_v57 = vpack.c.bf16 %v9310_v19, %v9310_v19  ;;  %v9299_v27 = vadd.f32 %v9294_v47, %v9286_v9  ;;  %v9287_v5 = vadd.f32 %v9236_v30, %v9092_v31  ;;  %v9238_v29 = vpop.f32.mrb[77].mxu0 }
 0x535   :  { %v15481_v43 = vpack.c.bf16 %v9311_v22, %v9311_v22  ;;  %v9305_v42 = vmax.f32 %v9298_v21, 0.0  ;;  %v9288_v4 = vadd.f32 %v9238_v29, %v9093_v53  ;;  %v9240_v26 = vpop.f32.mrb[78].mxu0 }
 0x536   :  { %v9306_v50 = vmax.f32 %v9299_v27, 0.0  ;;  %v9300_v44 = vadd.f32 %v9294_v47, %v9287_v5  ;;  %v9241_v7 = vpop.f32.mrb[79].mxu0  ;;  %9352 = vrot.lane.b32.xlu0 %v15479_v57, %s13367_s29 }
 0x537   :  { %v9312_v62 = vmul.f32 %v9305_v42, %v14071_v13  ;;  %v9301_v54 = vadd.f32 %v9294_v47, %v9288_v4  ;;  %9354 = vrot.lane.b32.xlu1 %v15481_v43, %s13367_s29 }
 0x538   :  { %v9313_v40 = vmul.f32 %v9306_v50, %v14075_v20  ;;  %v9307_v38 = vmax.f32 %v9300_v44, 0.0  ;;  %v9277_v37 = vpop.f32.mrb[76].mxu1  ;;  %v9324_v50 = vld [vmem:[%s16147_s3] sm:$0xf] }
 0x539   :  { %v15489_v28 = vpack.c.bf16 %v9312_v62, %v9312_v62  ;;  %v9308_v32 = vmax.f32 %v9301_v54, 0.0  ;;  %v9289_v31 = vadd.f32 %v9277_v37, %v9094_v3  ;;  %v13235_v25 = vpop.f32.mrb[77].mxu1 }
 0x53a   :  { %v15491_v53 = vpack.c.bf16 %v9313_v40, %v9313_v40  ;;  %v9314_v58 = vmul.f32 %v9307_v38, %v14083_v33  ;;  %v9280_v48 = vpop.f32.mrb[78].mxu1 }
 0x53b   :  { %v9315_v13 = vmul.f32 %v9308_v32, %v14089_v39  ;;  %v9302_v52 = vadd.f32 %v9294_v47, %v9289_v31  ;;  %v13236_v49 = vpop.f32.mrb[79].mxu1  ;;  %9356 = vrot.lane.b32.xlu0 %v15489_v28, %s13367_s29  ;;  %v9351_v39 = vpop.permute.xlu1 %9350 }
 0x53c   :  { %v15497_v20 = vpack.c.bf16 %v9314_v58, %v9314_v58  ;;  %9358 = vrot.lane.b32.xlu1 %v15491_v53, %s13367_s29 }
 0x53d   :  { %v15501_v12 = vpack.c.bf16 %v9315_v13, %v9315_v13  ;;  %v9309_v3 = vmax.f32 %v9302_v52, 0.0 }
 0x53f   :  { %v9316_v60 = vmul.f32 %v9309_v3, %v14098_v51  ;;  %9360 = vrot.lane.b32.xlu0 %v15497_v20, %s13367_s29 }
 0x540   :  { %9362 = vrot.lane.b32.xlu1 %v15501_v12, %s13367_s29 }
 0x541   :  { %v15508_v33 = vpack.c.bf16 %v9316_v60, %v9316_v60 }
 0x543   :  { %9364 = vrot.lane.b32.xlu0 %v15508_v33, %s13367_s29  ;;  %s13384_s29 = smov [#allocation3]  }
 0x544   :  { %9560 = vrot.lane.b32.xlu1 %v13383_v61, %s13369_s14 }
 0x547   :  { %9562 = vrot.lane.b32.xlu0 %v15479_v57, %s13369_s14 }
 0x548   :  { %9564 = vrot.lane.b32.xlu1 %v15481_v43, %s13369_s14 }
 0x54b   :  { %9566 = vrot.lane.b32.xlu0 %v15489_v28, %s13369_s14 }
 0x54c   :  { %9568 = vrot.lane.b32.xlu1 %v15491_v53, %s13369_s14 }
 0x54f   :  { %9570 = vrot.lane.b32.xlu0 %v15497_v20, %s13369_s14 }
 0x550   :  { %9572 = vrot.lane.b32.xlu1 %v15501_v12, %s13369_s14 }
 0x553   :  { %9574 = vrot.lane.b32.xlu0 %v15508_v33, %s13369_s14  ;;  %s12403_s14 = sshll.u32 %s13384_s29, 4  ;;  %s12404_s14 = int_to_ptr.vmem [resolvable:$true] %s12403_s14 }
 0x554   :  { %9771 = vrot.lane.b32.xlu1 %v13383_v61, %s13370_s15  ;;  %p13348_p1 = scmp.lt.s32.totalorder %s12404_s14, %s12404_s14 }
 0x557   :  { %9773 = vrot.lane.b32.xlu0 %v15479_v57, %s13370_s15 }
 0x558   :  { %9775 = vrot.lane.b32.xlu1 %v15481_v43, %s13370_s15 }
 0x55b   :  { %9777 = vrot.lane.b32.xlu0 %v15489_v28, %s13370_s15 }
 0x55c   :  { %9779 = vrot.lane.b32.xlu1 %v15491_v53, %s13370_s15 }
 0x55f   :  { %9781 = vrot.lane.b32.xlu0 %v15497_v20, %s13370_s15 }
 0x560   :  { %9783 = vrot.lane.b32.xlu1 %v15501_v12, %s13370_s15 }
 0x563   :  { %9785 = vrot.lane.b32.xlu0 %v15508_v33, %s13370_s15  ;;  %s13343_s15 = scalar_lea.vmem %s12404_s14, 1792 }
 0x564   :  { %9989 = vrot.lane.b32.xlu1 %v13383_v61, %s13371_s16  ;;  %p13344_p0 = scmp.ne.s32.totalorder %s12404_s14, %s13343_s15  ;;  %p13349_p2 = scmp.lt.s32.totalorder %s13343_s15, %s13343_s15 }
 0x566   :  { %p13350_p3 = por %p13349_p2, %p13348_p1 }
 0x567   :  { %9991 = vrot.lane.b32.xlu0 %v15479_v57, %s13371_s16 }
 0x568   :  { %9993 = vrot.lane.b32.xlu1 %v15481_v43, %s13371_s16  ;;  %p13351_p4 = pnand %p13350_p3, %p13344_p0 }
 0x56b   :  { %9995 = vrot.lane.b32.xlu0 %v15489_v28, %s13371_s16 }
 0x56c   :  { %9997 = vrot.lane.b32.xlu1 %v15491_v53, %s13371_s16 }
 0x56f   :  { %9999 = vrot.lane.b32.xlu0 %v15497_v20, %s13371_s16 }
 0x570   :  { %10001 = vrot.lane.b32.xlu1 %v15501_v12, %s13371_s16 }
 0x573   :  { %10003 = vrot.lane.b32.xlu0 %v15508_v33, %s13371_s16 }
 0x574   :  { %10207 = vrot.lane.b32.xlu1 %v13383_v61, %s13372_s17 }
 0x577   :  { %10209 = vrot.lane.b32.xlu0 %v15479_v57, %s13372_s17 }
 0x578   :  { %10211 = vrot.lane.b32.xlu1 %v15481_v43, %s13372_s17 }
 0x57b   :  { %10213 = vrot.lane.b32.xlu0 %v15489_v28, %s13372_s17 }
 0x57c   :  { %10215 = vrot.lane.b32.xlu1 %v15491_v53, %s13372_s17 }
 0x57f   :  { %10217 = vrot.lane.b32.xlu0 %v15497_v20, %s13372_s17 }
 0x580   :  { %10219 = vrot.lane.b32.xlu1 %v15501_v12, %s13372_s17 }
 0x583   :  { %10221 = vrot.lane.b32.xlu0 %v15508_v33, %s13372_s17 }
 0x584   :  { %10425 = vrot.lane.b32.xlu1 %v13383_v61, %s13373_s18 }
 0x587   :  { %10427 = vrot.lane.b32.xlu0 %v15479_v57, %s13373_s18 }
 0x588   :  { %10429 = vrot.lane.b32.xlu1 %v15481_v43, %s13373_s18 }
 0x58b   :  { %10431 = vrot.lane.b32.xlu0 %v15489_v28, %s13373_s18 }
 0x58c   :  { %10433 = vrot.lane.b32.xlu1 %v15491_v53, %s13373_s18 }
 0x58f   :  { %10435 = vrot.lane.b32.xlu0 %v15497_v20, %s13373_s18 }
 0x590   :  { %10437 = vrot.lane.b32.xlu1 %v15501_v12, %s13373_s18 }
 0x593   :  { %10439 = vrot.lane.b32.xlu0 %v15508_v33, %s13373_s18 }
 0x594   :  { %10643 = vrot.lane.b32.xlu1 %v13383_v61, %s13374_s19 }
 0x597   :  { %10645 = vrot.lane.b32.xlu0 %v15479_v57, %s13374_s19 }
 0x598   :  { %10647 = vrot.lane.b32.xlu1 %v15481_v43, %s13374_s19 }
 0x59b   :  { %10649 = vrot.lane.b32.xlu0 %v15489_v28, %s13374_s19 }
 0x59c   :  { %10651 = vrot.lane.b32.xlu1 %v15491_v53, %s13374_s19 }
 0x59f   :  { %10653 = vrot.lane.b32.xlu0 %v15497_v20, %s13374_s19 }
 0x5a0   :  { %10655 = vrot.lane.b32.xlu1 %v15501_v12, %s13374_s19 }
 0x5a3   :  { %10657 = vrot.lane.b32.xlu0 %v15508_v33, %s13374_s19 }
 0x5a4   :  { %10861 = vrot.lane.b32.xlu1 %v13383_v61, %s13375_s20 }
 0x5a7   :  { %10863 = vrot.lane.b32.xlu0 %v15479_v57, %s13375_s20 }
 0x5a8   :  { %10865 = vrot.lane.b32.xlu1 %v15481_v43, %s13375_s20  ;;  %v9353_v51 = vpop.permute.xlu0 %9352 }
 0x5a9   :  { %v9366_v16 = vsel %vm70_vm0, %v9351_v39, %v9353_v51  ;;  %v9355_v0 = vpop.permute.xlu1 %9354 }
 0x5aa   :  { %v9367_v11 = vsel %vm70_vm0, %v9353_v51, %v9355_v0  ;;  %v9377_v47 = vsel %vm82_vm1, %v9366_v16, 0  ;;  %v12770_v16 = vld [vmem:[%s16147_s3 + $0x8] sm:$0xf] }
 0x5ab   :  { %10867 = vrot.lane.b32.xlu0 %v15489_v28, %s13375_s20  ;;  %12756 = vmatprep.subr.msk.bf16.mxu0 %vm82_vm1, %v9367_v11 }
 0x5ac   :  { %10869 = vrot.lane.b32.xlu1 %v15491_v53, %s13375_s20  ;;  %9398 = vmatpush1.bf16.msra.mxu0 %v9377_v47 }
 0x5ad   :  { %v9357_v14 = vpop.permute.xlu0 %9356 }
 0x5ae   :  { %v9368_v46 = vsel %vm70_vm0, %v9355_v0, %v9357_v14  ;;  %v9359_v8 = vpop.permute.xlu1 %9358 }
 0x5af   :  { %10871 = vrot.lane.b32.xlu0 %v15497_v20, %s13375_s20  ;;  %12757 = vmatmul.mubr.msk.bf16.vlgmr.msra.gmra.mrb[80].mxu0 %vm78_vm2, %v12755_v2  ;;  %v9369_v6 = vsel %vm70_vm0, %v9357_v14, %v9359_v8  ;;  %v9383_v34 = vsel %vm82_vm1, %v9368_v46, 0 }
 0x5b0   :  { %10873 = vrot.lane.b32.xlu1 %v15501_v12, %s13375_s20  ;;  %12758 = vmatprep.subr.msk.bf16.mxu1 %vm82_vm1, %v9369_v6 }
 0x5b1   :  { %9439 = vmatpush1.bf16.msra.mxu1 %v9383_v34  ;;  %v9361_v17 = vpop.permute.xlu0 %9360  ;;  %9511 = vmatprep.mubr.bf16.mxu0 %v13368_v10 }
 0x5b2   :  { %v9370_v36 = vsel %vm70_vm0, %v9359_v8, %v9361_v17  ;;  %v9363_v56 = vpop.permute.xlu1 %9362  ;;  %13237 = vmatprep.subr.bf16.mxu1 %v13376_v35 }
 0x5b3   :  { %10875 = vrot.lane.b32.xlu0 %v15508_v33, %s13375_s20  ;;  %v9371_v63 = vsel %vm70_vm0, %v9361_v17, %v9363_v56  ;;  %v9389_v19 = vsel %vm82_vm1, %v9370_v36, 0 }
 0x5b4   :  { %11079 = vrot.lane.b32.xlu1 %v13383_v61, %s13377_s23  ;;  %12759 = vmatmul.mubr.msk.bf16.vlgmr.msra.gmra.mrb[80].mxu1 %vm78_vm2, %v12755_v2 }
 0x5b5   :  { %12760 = vmatprep.subr.msk.bf16.mxu0 %vm82_vm1, %v9371_v63  ;;  %v9365_v9 = vpop.permute.xlu0 %9364  ;;  %13239 = vmatprep.mubr.msk.bf16.mxu1 %vm13378_vm4, %v13376_v35 }
 0x5b6   :  { %9480 = vmatpush1.bf16.msra.mxu0 %v9389_v19  ;;  %v9372_v15 = vsel %vm70_vm0, %v9363_v56, %v9365_v9  ;;  %v9561_v22 = vpop.permute.xlu1 %9560 }
 0x5b7   :  { %v9395_v21 = vsel %vm82_vm1, %v9372_v15, 0  ;;  %11081 = vrot.lane.b32.xlu0 %v15479_v57, %s13377_s23 }
 0x5b8   :  { %11083 = vrot.lane.b32.xlu1 %v15481_v43, %s13377_s23  ;;  %13238 = vmatpush3.bf16.msra.mxu1 %v9395_v21 }
 0x5b9   :  { %12761 = vmatmul.mubr.msk.bf16.vlgmr.msra.gmra.mrb[84].mxu0 %vm78_vm2, %v12755_v2  ;;  %v9563_v18 = vpop.permute.xlu0 %9562 }
 0x5ba   :  { %v9576_v30 = vsel %vm283_vm3, %v9561_v22, %v9563_v18  ;;  %v9565_v27 = vpop.permute.xlu1 %9564  ;;  %9639 = vmatprep.mubr.bf16.mxu0 %v13368_v10 }
 0x5bb   :  { %v9587_v5 = vsel %vm82_vm1, %v9576_v30, 0  ;;  %v9577_v29 = vsel %vm283_vm3, %v9563_v18, %v9565_v27  ;;  %11085 = vrot.lane.b32.xlu0 %v15489_v28, %s13377_s23  ;;  %v12778_v30 = vld [vmem:[%s16147_s3 + $0xc] sm:$0xf] }
 0x5bc   :  { %11087 = vrot.lane.b32.xlu1 %v15491_v53, %s13377_s23  ;;  %13240 = vmatmul.mubr.msk.bf16.vlgmr.msra.gmra.mrb[84].mxu1 %vm78_vm2, %v12755_v2 }
 0x5bd   :  { %12763 = vmatprep.subr.msk.bf16.mxu0 %vm82_vm1, %v9577_v29  ;;  %v9567_v42 = vpop.permute.xlu0 %9566  ;;  %9680 = vmatprep.mubr.bf16.mxu1 %v13368_v10 }
 0x5be   :  { %9608 = vmatpush1.bf16.msra.mxu0 %v9587_v5  ;;  %v9578_v4 = vsel %vm283_vm3, %v9565_v27, %v9567_v42  ;;  %v9569_v26 = vpop.permute.xlu1 %9568 }
 0x5bf   :  { %v9593_v44 = vsel %vm82_vm1, %v9578_v4, 0  ;;  %v9579_v7 = vsel %vm283_vm3, %v9567_v42, %v9569_v26  ;;  %11089 = vrot.lane.b32.xlu0 %v15497_v20, %s13377_s23 }
 0x5c0   :  { %11091 = vrot.lane.b32.xlu1 %v15501_v12, %s13377_s23  ;;  %12765 = vmatprep.subr.msk.bf16.mxu1 %vm82_vm1, %v9579_v7 }
 0x5c1   :  { %12764 = vmatmul.mubr.msk.bf16.vlgmr.msra.gmra.mrb[88].mxu0 %vm78_vm2, %v9324_v50  ;;  %9649 = vmatpush1.bf16.msra.mxu1 %v9593_v44  ;;  %v9571_v62 = vpop.permute.xlu0 %9570 }
 0x5c2   :  { %v9580_v54 = vsel %vm283_vm3, %v9569_v26, %v9571_v62  ;;  %v9573_v40 = vpop.permute.xlu1 %9572  ;;  %9721 = vmatprep.mubr.bf16.mxu0 %v13368_v10  ;;  %13243 = vmatprep.subr.bf16.mxu1 %v13376_v35 }
 0x5c3   :  { %v9599_v38 = vsel %vm82_vm1, %v9580_v54, 0  ;;  %v9581_v37 = vsel %vm283_vm3, %v9571_v62, %v9573_v40  ;;  %11093 = vrot.lane.b32.xlu0 %v15508_v33, %s13377_s23 }
 0x5c4   :  { %11297 = vrot.lane.b32.xlu1 %v13383_v61, %s13379_s26  ;;  %12766 = vmatmul.mubr.msk.bf16.vlgmr.msra.gmra.mrb[88].mxu1 %vm78_vm2, %v9324_v50 }
 0x5c5   :  { %12767 = vmatprep.subr.msk.bf16.mxu0 %vm82_vm1, %v9581_v37  ;;  %v9575_v32 = vpop.permute.xlu0 %9574  ;;  %13245 = vmatprep.mubr.msk.bf16.mxu1 %vm13378_vm4, %v13376_v35 }
 0x5c6   :  { %9690 = vmatpush1.bf16.msra.mxu0 %v9599_v38  ;;  %v9582_v31 = vsel %vm283_vm3, %v9573_v40, %v9575_v32  ;;  %v9772_v25 = vpop.permute.xlu1 %9771 }
 0x5c7   :  { %v9605_v58 = vsel %vm82_vm1, %v9582_v31, 0  ;;  %11299 = vrot.lane.b32.xlu0 %v15479_v57, %s13379_s26 }
 0x5c8   :  { %11301 = vrot.lane.b32.xlu1 %v15481_v43, %s13379_s26  ;;  %13244 = vmatpush3.bf16.msra.mxu1 %v9605_v58 }
 0x5c9   :  { %12768 = vmatmul.mubr.msk.bf16.vlgmr.msra.gmra.mrb[92].mxu0 %vm78_vm2, %v9324_v50  ;;  %v9774_v48 = vpop.permute.xlu0 %9773 }
 0x5ca   :  { %v9787_v13 = vsel %vm496_vm5, %v9772_v25, %v9774_v48  ;;  %v9776_v52 = vpop.permute.xlu1 %9775  ;;  %9850 = vmatprep.mubr.bf16.mxu0 %v13368_v10 }
 0x5cb   :  { %v9798_v49 = vsel %vm82_vm1, %v9787_v13, 0  ;;  %v9788_v3 = vsel %vm496_vm5, %v9774_v48, %v9776_v52  ;;  %11303 = vrot.lane.b32.xlu0 %v15489_v28, %s13379_s26  ;;  %v12786_v13 = vld [vmem:[%s16147_s3 + $0x10] sm:$0xf] }
 0x5cc   :  { %11305 = vrot.lane.b32.xlu1 %v15491_v53, %s13379_s26  ;;  %13246 = vmatmul.mubr.msk.bf16.vlgmr.msra.gmra.mrb[92].mxu1 %vm78_vm2, %v9324_v50 }
 0x5cd   :  { %12771 = vmatprep.subr.msk.bf16.mxu0 %vm82_vm1, %v9788_v3  ;;  %v9778_v60 = vpop.permute.xlu0 %9777  ;;  %9891 = vmatprep.mubr.bf16.mxu1 %v13368_v10 }
 0x5ce   :  { %9819 = vmatpush1.bf16.msra.mxu0 %v9798_v49  ;;  %v9789_v39 = vsel %vm496_vm5, %v9776_v52, %v9778_v60  ;;  %v9780_v51 = vpop.permute.xlu1 %9779 }
 0x5cf   :  { %v9804_v0 = vsel %vm82_vm1, %v9789_v39, 0  ;;  %v9790_v11 = vsel %vm496_vm5, %v9778_v60, %v9780_v51  ;;  %11307 = vrot.lane.b32.xlu0 %v15497_v20, %s13379_s26 }
 0x5d0   :  { %11309 = vrot.lane.b32.xlu1 %v15501_v12, %s13379_s26  ;;  %12773 = vmatprep.subr.msk.bf16.mxu1 %vm82_vm1, %v9790_v11 }
 0x5d1   :  { %12772 = vmatmul.mubr.msk.bf16.vlgmr.msra.gmra.mrb[96].mxu0 %vm78_vm2, %v12770_v16  ;;  %9860 = vmatpush1.bf16.msra.mxu1 %v9804_v0  ;;  %v9782_v47 = vpop.permute.xlu0 %9781 }
 0x5d2   :  { %v9791_v2 = vsel %vm496_vm5, %v9780_v51, %v9782_v47  ;;  %v9784_v14 = vpop.permute.xlu1 %9783  ;;  %9932 = vmatprep.mubr.bf16.mxu0 %v13368_v10  ;;  %13249 = vmatprep.subr.bf16.mxu1 %v13376_v35 }
 0x5d3   :  { %v9810_v46 = vsel %vm82_vm1, %v9791_v2, 0  ;;  %v9792_v8 = vsel %vm496_vm5, %v9782_v47, %v9784_v14  ;;  %11311 = vrot.lane.b32.xlu0 %v15508_v33, %s13379_s26 }
 0x5d4   :  { %11515 = vrot.lane.b32.xlu1 %v13383_v61, %s13380_s30  ;;  %12774 = vmatmul.mubr.msk.bf16.vlgmr.msra.gmra.mrb[96].mxu1 %vm78_vm2, %v12770_v16 }
 0x5d5   :  { %12775 = vmatprep.subr.msk.bf16.mxu0 %vm82_vm1, %v9792_v8  ;;  %v9786_v6 = vpop.permute.xlu0 %9785  ;;  %13251 = vmatprep.mubr.msk.bf16.mxu1 %vm13378_vm4, %v13376_v35 }
 0x5d6   :  { %9901 = vmatpush1.bf16.msra.mxu0 %v9810_v46  ;;  %v9793_v34 = vsel %vm496_vm5, %v9784_v14, %v9786_v6  ;;  %v9990_v17 = vpop.permute.xlu1 %9989 }
 0x5d7   :  { %v9816_v36 = vsel %vm82_vm1, %v9793_v34, 0  ;;  %11517 = vrot.lane.b32.xlu0 %v15479_v57, %s13380_s30 }
 0x5d8   :  { %11519 = vrot.lane.b32.xlu1 %v15481_v43, %s13380_s30  ;;  %13250 = vmatpush3.bf16.msra.mxu1 %v9816_v36 }
 0x5d9   :  { %12776 = vmatmul.mubr.msk.bf16.vlgmr.msra.gmra.mrb[100].mxu0 %vm78_vm2, %v12770_v16  ;;  %v9992_v56 = vpop.permute.xlu0 %9991 }
 0x5da   :  { %v10005_v63 = vsel %vm716_vm6, %v9990_v17, %v9992_v56  ;;  %v9994_v19 = vpop.permute.xlu1 %9993  ;;  %10068 = vmatprep.mubr.bf16.mxu0 %v13368_v10 }
 0x5db   :  { %v10016_v9 = vsel %vm82_vm1, %v10005_v63, 0  ;;  %v10006_v15 = vsel %vm716_vm6, %v9992_v56, %v9994_v19  ;;  %11521 = vrot.lane.b32.xlu0 %v15489_v28, %s13380_s30  ;;  %v12794_v56 = vld [vmem:[%s16147_s3 + $0x14] sm:$0xf] }
 0x5dc   :  { %11523 = vrot.lane.b32.xlu1 %v15491_v53, %s13380_s30  ;;  %13252 = vmatmul.mubr.msk.bf16.vlgmr.msra.gmra.mrb[100].mxu1 %vm78_vm2, %v12770_v16 }
 0x5dd   :  { %12779 = vmatprep.subr.msk.bf16.mxu0 %vm82_vm1, %v10006_v15  ;;  %v9996_v22 = vpop.permute.xlu0 %9995  ;;  %10109 = vmatprep.mubr.bf16.mxu1 %v13368_v10  ;;  %v6216_v15 = vld [vmem:[%s16148_s4] sm:$0xff] }
 0x5de   :  { %10037 = vmatpush1.bf16.msra.mxu0 %v10016_v9  ;;  %v10007_v21 = vsel %vm716_vm6, %v9994_v19, %v9996_v22  ;;  %v9998_v18 = vpop.permute.xlu1 %9997 }
 0x5df   :  { %v10022_v27 = vsel %vm82_vm1, %v10007_v21, 0  ;;  %v10008_v5 = vsel %vm716_vm6, %v9996_v22, %v9998_v18  ;;  %11525 = vrot.lane.b32.xlu0 %v15497_v20, %s13380_s30 }
 0x5e0   :  { %11527 = vrot.lane.b32.xlu1 %v15501_v12, %s13380_s30  ;;  %12781 = vmatprep.subr.msk.bf16.mxu1 %vm82_vm1, %v10008_v5 }
 0x5e1   :  { %12780 = vmatmul.mubr.msk.bf16.vlgmr.msra.gmra.mrb[104].mxu0 %vm78_vm2, %v12778_v30  ;;  %10078 = vmatpush1.bf16.msra.mxu1 %v10022_v27  ;;  %v10000_v29 = vpop.permute.xlu0 %9999 }
 0x5e2   :  { %v10009_v42 = vsel %vm716_vm6, %v9998_v18, %v10000_v29  ;;  %v10002_v4 = vpop.permute.xlu1 %10001  ;;  %10150 = vmatprep.mubr.bf16.mxu0 %v13368_v10  ;;  %13255 = vmatprep.subr.bf16.mxu1 %v13376_v35 }
 0x5e3   :  { %v10028_v26 = vsel %vm82_vm1, %v10009_v42, 0  ;;  %v10010_v50 = vsel %vm716_vm6, %v10000_v29, %v10002_v4  ;;  %11529 = vrot.lane.b32.xlu0 %v15508_v33, %s13380_s30 }
 0x5e4   :  { %11733 = vrot.lane.b32.xlu1 %v13383_v61, %s13381_s9  ;;  %12782 = vmatmul.mubr.msk.bf16.vlgmr.msra.gmra.mrb[104].mxu1 %vm78_vm2, %v12778_v30 }
 0x5e5   :  { %12783 = vmatprep.subr.msk.bf16.mxu0 %vm82_vm1, %v10010_v50  ;;  %v10004_v44 = vpop.permute.xlu0 %10003  ;;  %13257 = vmatprep.mubr.msk.bf16.mxu1 %vm13378_vm4, %v13376_v35 }
 0x5e6   :  { %10119 = vmatpush1.bf16.msra.mxu0 %v10028_v26  ;;  %v10011_v7 = vsel %vm716_vm6, %v10002_v4, %v10004_v44  ;;  %v10208_v62 = vpop.permute.xlu1 %10207 }
 0x5e7   :  { %v10034_v54 = vsel %vm82_vm1, %v10011_v7, 0  ;;  %11735 = vrot.lane.b32.xlu0 %v15479_v57, %s13381_s9 }
 0x5e8   :  { %11737 = vrot.lane.b32.xlu1 %v15481_v43, %s13381_s9  ;;  %13256 = vmatpush3.bf16.msra.mxu1 %v10034_v54 }
 0x5e9   :  { %12784 = vmatmul.mubr.msk.bf16.vlgmr.msra.gmra.mrb[108].mxu0 %vm78_vm2, %v12778_v30  ;;  %v10210_v40 = vpop.permute.xlu0 %10209 }
 0x5ea   :  { %v10223_v38 = vsel %vm936_vm7, %v10208_v62, %v10210_v40  ;;  %v10212_v37 = vpop.permute.xlu1 %10211  ;;  %10286 = vmatprep.mubr.bf16.mxu0 %v13368_v10 }
 0x5eb   :  { %v10234_v32 = vsel %vm82_vm1, %v10223_v38, 0  ;;  %v10224_v31 = vsel %vm936_vm7, %v10210_v40, %v10212_v37  ;;  %11739 = vrot.lane.b32.xlu0 %v15489_v28, %s13381_s9  ;;  %v12802_v38 = vld [vmem:[%s16147_s3 + $0x18] sm:$0xf] }
 0x5ec   :  { %11741 = vrot.lane.b32.xlu1 %v15491_v53, %s13381_s9  ;;  %13258 = vmatmul.mubr.msk.bf16.vlgmr.msra.gmra.mrb[108].mxu1 %vm78_vm2, %v12778_v30 }
 0x5ed   :  { %12787 = vmatprep.subr.msk.bf16.mxu0 %vm82_vm1, %v10224_v31  ;;  %v10214_v25 = vpop.permute.xlu0 %10213  ;;  %10327 = vmatprep.mubr.bf16.mxu1 %v13368_v10 }
 0x5ee   :  { %10255 = vmatpush1.bf16.msra.mxu0 %v10234_v32  ;;  %v10225_v58 = vsel %vm936_vm7, %v10212_v37, %v10214_v25  ;;  %v10216_v48 = vpop.permute.xlu1 %10215 }
 0x5ef   :  { %v10240_v52 = vsel %vm82_vm1, %v10225_v58, 0  ;;  %v10226_v49 = vsel %vm936_vm7, %v10214_v25, %v10216_v48  ;;  %11743 = vrot.lane.b32.xlu0 %v15497_v20, %s13381_s9 }
 0x5f0   :  { %11745 = vrot.lane.b32.xlu1 %v15501_v12, %s13381_s9  ;;  %12789 = vmatprep.subr.msk.bf16.mxu1 %vm82_vm1, %v10226_v49 }
 0x5f1   :  { %12788 = vmatmul.mubr.msk.bf16.vlgmr.msra.gmra.mrb[112].mxu0 %vm78_vm2, %v12786_v13  ;;  %10296 = vmatpush1.bf16.msra.mxu1 %v10240_v52  ;;  %v10218_v3 = vpop.permute.xlu0 %10217 }
 0x5f2   :  { %v10227_v60 = vsel %vm936_vm7, %v10216_v48, %v10218_v3  ;;  %v10220_v39 = vpop.permute.xlu1 %10219  ;;  %10368 = vmatprep.mubr.bf16.mxu0 %v13368_v10  ;;  %13261 = vmatprep.subr.bf16.mxu1 %v13376_v35 }
 0x5f3   :  { %v10246_v51 = vsel %vm82_vm1, %v10227_v60, 0  ;;  %v10228_v16 = vsel %vm936_vm7, %v10218_v3, %v10220_v39  ;;  %11747 = vrot.lane.b32.xlu0 %v15508_v33, %s13381_s9 }
 0x5f4   :  { %11951 = vrot.lane.b32.xlu1 %v13383_v61, %s13382_s12  ;;  %12790 = vmatmul.mubr.msk.bf16.vlgmr.msra.gmra.mrb[112].mxu1 %vm78_vm2, %v12786_v13 }
 0x5f5   :  { %12791 = vmatprep.subr.msk.bf16.mxu0 %vm82_vm1, %v10228_v16  ;;  %v10222_v0 = vpop.permute.xlu0 %10221  ;;  %13263 = vmatprep.mubr.msk.bf16.mxu1 %vm13378_vm4, %v13376_v35 }
 0x5f6   :  { %10337 = vmatpush1.bf16.msra.mxu0 %v10246_v51  ;;  %v10229_v11 = vsel %vm936_vm7, %v10220_v39, %v10222_v0  ;;  %v10426_v47 = vpop.permute.xlu1 %10425 }
 0x5f7   :  { %v10252_v2 = vsel %vm82_vm1, %v10229_v11, 0  ;;  %11953 = vrot.lane.b32.xlu0 %v15479_v57, %s13382_s12 }
 0x5f8   :  { %11955 = vrot.lane.b32.xlu1 %v15481_v43, %s13382_s12  ;;  %13262 = vmatpush3.bf16.msra.mxu1 %v10252_v2 }
 0x5f9   :  { %12792 = vmatmul.mubr.msk.bf16.vlgmr.msra.gmra.mrb[116].mxu0 %vm78_vm2, %v12786_v13  ;;  %v10428_v61 = vpop.permute.xlu0 %10427 }
 0x5fa   :  { %v10441_v14 = vsel %vm1156_vm8, %v10426_v47, %v10428_v61  ;;  %v10430_v46 = vpop.permute.xlu1 %10429  ;;  %10504 = vmatprep.mubr.bf16.mxu0 %v13368_v10 }
 0x5fb   :  { %v10452_v8 = vsel %vm82_vm1, %v10441_v14, 0  ;;  %v10442_v6 = vsel %vm1156_vm8, %v10428_v61, %v10430_v46  ;;  %11957 = vrot.lane.b32.xlu0 %v15489_v28, %s13382_s12  ;;  %v12810_v14 = vld [vmem:[%s16147_s3 + $0x1c] sm:$0xf] }
 0x5fc   :  { %11959 = vrot.lane.b32.xlu1 %v15491_v53, %s13382_s12  ;;  %13264 = vmatmul.mubr.msk.bf16.vlgmr.msra.gmra.mrb[116].mxu1 %vm78_vm2, %v12786_v13 }
 0x5fd   :  { %12795 = vmatprep.subr.msk.bf16.mxu0 %vm82_vm1, %v10442_v6  ;;  %v10432_v34 = vpop.permute.xlu0 %10431  ;;  %10545 = vmatprep.mubr.bf16.mxu1 %v13368_v10 }
 0x5fe   :  { %10473 = vmatpush1.bf16.msra.mxu0 %v10452_v8  ;;  %v10443_v17 = vsel %vm1156_vm8, %v10430_v46, %v10432_v34  ;;  %v10434_v36 = vpop.permute.xlu1 %10433 }
 0x5ff   :  { %v10458_v63 = vsel %vm82_vm1, %v10443_v17, 0  ;;  %v10444_v19 = vsel %vm1156_vm8, %v10432_v34, %v10434_v36  ;;  %11961 = vrot.lane.b32.xlu0 %v15497_v20, %s13382_s12 }
 0x600   :  { %11963 = vrot.lane.b32.xlu1 %v15501_v12, %s13382_s12  ;;  %12797 = vmatprep.subr.msk.bf16.mxu1 %vm82_vm1, %v10444_v19 }
 0x601   :  { %12796 = vmatmul.mubr.msk.bf16.vlgmr.msra.gmra.mrb[120].mxu0 %vm78_vm2, %v12794_v56  ;;  %10514 = vmatpush1.bf16.msra.mxu1 %v10458_v63  ;;  %v10436_v9 = vpop.permute.xlu0 %10435 }
 0x602   :  { %v10445_v22 = vsel %vm1156_vm8, %v10434_v36, %v10436_v9  ;;  %v10438_v21 = vpop.permute.xlu1 %10437  ;;  %10586 = vmatprep.mubr.bf16.mxu0 %v13368_v10  ;;  %13267 = vmatprep.subr.bf16.mxu1 %v13376_v35 }
 0x603   :  { %v10464_v18 = vsel %vm82_vm1, %v10445_v22, 0  ;;  %v10446_v30 = vsel %vm1156_vm8, %v10436_v9, %v10438_v21  ;;  %11965 = vrot.lane.b32.xlu0 %v15508_v33, %s13382_s12 }
 0x604   :  { %6219 = vperm.xlu1 %13342, %v6216_v15   ;;  %12798 = vmatmul.mubr.msk.bf16.vlgmr.msra.gmra.mrb[120].mxu1 %vm78_vm2, %v12794_v56 }
 0x605   :  { %12799 = vmatprep.subr.msk.bf16.mxu0 %vm82_vm1, %v10446_v30  ;;  %v10440_v27 = vpop.permute.xlu0 %10439  ;;  %13269 = vmatprep.mubr.msk.bf16.mxu1 %vm13378_vm4, %v13376_v35 }
 0x606   :  { %10555 = vmatpush1.bf16.msra.mxu0 %v10464_v18  ;;  %v10447_v5 = vsel %vm1156_vm8, %v10438_v21, %v10440_v27  ;;  %v10644_v29 = vpop.permute.xlu1 %10643 }
 0x607   :  { %v10470_v42 = vsel %vm82_vm1, %v10447_v5, 0  ;;  %12366 = vperm.xlu0 %13341, %v6216_v15  }
 0x608   :  { %13268 = vmatpush3.bf16.msra.mxu1 %v10470_v42 }
 0x609   :  { %12800 = vmatmul.mubr.msk.bf16.vlgmr.msra.gmra.mrb[124].mxu0 %vm78_vm2, %v12794_v56  ;;  %v10646_v4 = vpop.permute.xlu0 %10645 }
 0x60a   :  { %v10659_v26 = vsel %vm1376_vm9, %v10644_v29, %v10646_v4  ;;  %v10648_v50 = vpop.permute.xlu1 %10647  ;;  %10722 = vmatprep.mubr.bf16.mxu0 %v13368_v10 }
 0x60b   :  { %v10670_v44 = vsel %vm82_vm1, %v10659_v26, 0  ;;  %v10660_v7 = vsel %vm1376_vm9, %v10646_v4, %v10648_v50  ;;  %v12818_v4 = vld [vmem:[%s16147_s3 + $0x20] sm:$0xf] }
 0x60c   :  { %13270 = vmatmul.mubr.msk.bf16.vlgmr.msra.gmra.mrb[124].mxu1 %vm78_vm2, %v12794_v56  ;;  %12803 = vmatprep.subr.msk.bf16.mxu0 %vm82_vm1, %v10660_v7 }
 0x60d   :  { %10691 = vmatpush1.bf16.msra.mxu0 %v10670_v44  ;;  %v10650_v62 = vpop.permute.xlu0 %10649  ;;  %10763 = vmatprep.mubr.bf16.mxu1 %v13368_v10 }
 0x60e   :  { %v10661_v54 = vsel %vm1376_vm9, %v10648_v50, %v10650_v62  ;;  %v10652_v40 = vpop.permute.xlu1 %10651 }
 0x60f   :  { %v10676_v37 = vsel %vm82_vm1, %v10661_v54, 0  ;;  %v10662_v32 = vsel %vm1376_vm9, %v10650_v62, %v10652_v40 }
 0x610   :  { %12805 = vmatprep.subr.msk.bf16.mxu1 %vm82_vm1, %v10662_v32 }
 0x611   :  { %12804 = vmatmul.mubr.msk.bf16.vlgmr.msra.gmra.mrb[128].mxu0 %vm78_vm2, %v12802_v38  ;;  %10732 = vmatpush1.bf16.msra.mxu1 %v10676_v37  ;;  %v10654_v31 = vpop.permute.xlu0 %10653 }
 0x612   :  { %v10663_v25 = vsel %vm1376_vm9, %v10652_v40, %v10654_v31  ;;  %v10656_v58 = vpop.permute.xlu1 %10655  ;;  %10804 = vmatprep.mubr.bf16.mxu0 %v13368_v10  ;;  %13273 = vmatprep.subr.bf16.mxu1 %v13376_v35 }
 0x613   :  { %v10682_v48 = vsel %vm82_vm1, %v10663_v25, 0  ;;  %v10664_v13 = vsel %vm1376_vm9, %v10654_v31, %v10656_v58 }
 0x614   :  { %12806 = vmatmul.mubr.msk.bf16.vlgmr.msra.gmra.mrb[128].mxu1 %vm78_vm2, %v12802_v38  ;;  %12807 = vmatprep.subr.msk.bf16.mxu0 %vm82_vm1, %v10664_v13 }
 0x615   :  { %10773 = vmatpush1.bf16.msra.mxu0 %v10682_v48  ;;  %v10658_v52 = vpop.permute.xlu0 %10657  ;;  %13275 = vmatprep.mubr.msk.bf16.mxu1 %vm13378_vm4, %v13376_v35 }
 0x616   :  { %v10665_v49 = vsel %vm1376_vm9, %v10656_v58, %v10658_v52  ;;  %v10862_v3 = vpop.permute.xlu1 %10861 }
 0x617   :  { %v10688_v60 = vsel %vm82_vm1, %v10665_v49, 0 }
 0x618   :  { %13274 = vmatpush3.bf16.msra.mxu1 %v10688_v60 }
 0x619   :  { %12808 = vmatmul.mubr.msk.bf16.vlgmr.msra.gmra.mrb[132].mxu0 %vm78_vm2, %v12802_v38  ;;  %v10864_v39 = vpop.permute.xlu0 %10863 }
 0x61a   :  { %v10877_v51 = vsel %vm1596_vm10, %v10862_v3, %v10864_v39  ;;  %v10866_v16 = vpop.permute.xlu1 %10865  ;;  %10940 = vmatprep.mubr.bf16.mxu0 %v13368_v10 }
 0x61b   :  { %v10888_v0 = vsel %vm82_vm1, %v10877_v51, 0  ;;  %v10878_v11 = vsel %vm1596_vm10, %v10864_v39, %v10866_v16  ;;  %v12826_v39 = vld [vmem:[%s16147_s3 + $0x24] sm:$0xf] }
 0x61c   :  { %13276 = vmatmul.mubr.msk.bf16.vlgmr.msra.gmra.mrb[132].mxu1 %vm78_vm2, %v12802_v38  ;;  %12811 = vmatprep.subr.msk.bf16.mxu0 %vm82_vm1, %v10878_v11 }
 0x61d   :  { %10909 = vmatpush1.bf16.msra.mxu0 %v10888_v0  ;;  %v10868_v47 = vpop.permute.xlu0 %10867  ;;  %10981 = vmatprep.mubr.bf16.mxu1 %v13368_v10 }
 0x61e   :  { %v10879_v2 = vsel %vm1596_vm10, %v10866_v16, %v10868_v47  ;;  %v10870_v61 = vpop.permute.xlu1 %10869 }
 0x61f   :  { %v10894_v46 = vsel %vm82_vm1, %v10879_v2, 0  ;;  %v10880_v8 = vsel %vm1596_vm10, %v10868_v47, %v10870_v61 }
 0x620   :  { %12813 = vmatprep.subr.msk.bf16.mxu1 %vm82_vm1, %v10880_v8 }
 0x621   :  { %12812 = vmatmul.mubr.msk.bf16.vlgmr.msra.gmra.mrb[136].mxu0 %vm78_vm2, %v12810_v14  ;;  %10950 = vmatpush1.bf16.msra.mxu1 %v10894_v46  ;;  %v10872_v6 = vpop.permute.xlu0 %10871 }
 0x622   :  { %v10881_v34 = vsel %vm1596_vm10, %v10870_v61, %v10872_v6  ;;  %v10874_v17 = vpop.permute.xlu1 %10873  ;;  %11022 = vmatprep.mubr.bf16.mxu0 %v13368_v10  ;;  %13279 = vmatprep.subr.bf16.mxu1 %v13376_v35 }
 0x623   :  { %v10900_v36 = vsel %vm82_vm1, %v10881_v34, 0  ;;  %v10882_v56 = vsel %vm1596_vm10, %v10872_v6, %v10874_v17 }
 0x624   :  { %12814 = vmatmul.mubr.msk.bf16.vlgmr.msra.gmra.mrb[136].mxu1 %vm78_vm2, %v12810_v14  ;;  %12815 = vmatprep.subr.msk.bf16.mxu0 %vm82_vm1, %v10882_v56 }
 0x625   :  { %10991 = vmatpush1.bf16.msra.mxu0 %v10900_v36  ;;  %v10876_v63 = vpop.permute.xlu0 %10875  ;;  %13281 = vmatprep.mubr.msk.bf16.mxu1 %vm13378_vm4, %v13376_v35 }
 0x626   :  { %v10883_v19 = vsel %vm1596_vm10, %v10874_v17, %v10876_v63  ;;  %v11080_v9 = vpop.permute.xlu1 %11079 }
 0x627   :  { %v10906_v15 = vsel %vm82_vm1, %v10883_v19, 0 }
 0x628   :  { %13280 = vmatpush3.bf16.msra.mxu1 %v10906_v15 }
 0x629   :  { %12816 = vmatmul.mubr.msk.bf16.vlgmr.msra.gmra.mrb[140].mxu0 %vm78_vm2, %v12810_v14  ;;  %v11082_v22 = vpop.permute.xlu0 %11081 }
 0x62a   :  { %v11095_v21 = vsel %vm1816_vm11, %v11080_v9, %v11082_v22  ;;  %v11084_v18 = vpop.permute.xlu1 %11083  ;;  %11158 = vmatprep.mubr.bf16.mxu0 %v13368_v10 }
 0x62b   :  { %v11106_v30 = vsel %vm82_vm1, %v11095_v21, 0  ;;  %v11096_v27 = vsel %vm1816_vm11, %v11082_v22, %v11084_v18  ;;  %v12834_v22 = vld [vmem:[%s16147_s3 + $0x28] sm:$0xf] }
 0x62c   :  { %13282 = vmatmul.mubr.msk.bf16.vlgmr.msra.gmra.mrb[140].mxu1 %vm78_vm2, %v12810_v14  ;;  %12819 = vmatprep.subr.msk.bf16.mxu0 %vm82_vm1, %v11096_v27 }
 0x62d   :  { %11127 = vmatpush1.bf16.msra.mxu0 %v11106_v30  ;;  %v11086_v5 = vpop.permute.xlu0 %11085  ;;  %11199 = vmatprep.mubr.bf16.mxu1 %v13368_v10 }
 0x62e   :  { %v11097_v29 = vsel %vm1816_vm11, %v11084_v18, %v11086_v5  ;;  %v11088_v42 = vpop.permute.xlu1 %11087 }
 0x62f   :  { %v11112_v26 = vsel %vm82_vm1, %v11097_v29, 0  ;;  %v11098_v50 = vsel %vm1816_vm11, %v11086_v5, %v11088_v42 }
 0x630   :  { %12821 = vmatprep.subr.msk.bf16.mxu1 %vm82_vm1, %v11098_v50 }
 0x631   :  { %12820 = vmatmul.mubr.msk.bf16.vlgmr.msra.gmra.mrb[144].mxu0 %vm78_vm2, %v12818_v4  ;;  %11168 = vmatpush1.bf16.msra.mxu1 %v11112_v26  ;;  %v11090_v44 = vpop.permute.xlu0 %11089 }
 0x632   :  { %v11099_v7 = vsel %vm1816_vm11, %v11088_v42, %v11090_v44  ;;  %v11092_v62 = vpop.permute.xlu1 %11091  ;;  %11240 = vmatprep.mubr.bf16.mxu0 %v13368_v10  ;;  %13285 = vmatprep.subr.bf16.mxu1 %v13376_v35 }
 0x633   :  { %v11118_v54 = vsel %vm82_vm1, %v11099_v7, 0  ;;  %v11100_v40 = vsel %vm1816_vm11, %v11090_v44, %v11092_v62 }
 0x634   :  { %12822 = vmatmul.mubr.msk.bf16.vlgmr.msra.gmra.mrb[144].mxu1 %vm78_vm2, %v12818_v4  ;;  %12823 = vmatprep.subr.msk.bf16.mxu0 %vm82_vm1, %v11100_v40 }
 0x635   :  { %11209 = vmatpush1.bf16.msra.mxu0 %v11118_v54  ;;  %v11094_v38 = vpop.permute.xlu0 %11093  ;;  %13287 = vmatprep.mubr.msk.bf16.mxu1 %vm13378_vm4, %v13376_v35 }
 0x636   :  { %v11101_v37 = vsel %vm1816_vm11, %v11092_v62, %v11094_v38  ;;  %v11298_v32 = vpop.permute.xlu1 %11297 }
 0x637   :  { %v11124_v31 = vsel %vm82_vm1, %v11101_v37, 0 }
 0x638   :  { %13286 = vmatpush3.bf16.msra.mxu1 %v11124_v31 }
 0x639   :  { %12824 = vmatmul.mubr.msk.bf16.vlgmr.msra.gmra.mrb[148].mxu0 %vm78_vm2, %v12818_v4  ;;  %v11300_v25 = vpop.permute.xlu0 %11299 }
 0x63a   :  { %v11313_v58 = vsel %vm2036_vm12, %v11298_v32, %v11300_v25  ;;  %v11302_v48 = vpop.permute.xlu1 %11301  ;;  %11376 = vmatprep.mubr.bf16.mxu0 %v13368_v10 }
 0x63b   :  { %v11324_v13 = vsel %vm82_vm1, %v11313_v58, 0  ;;  %v11314_v52 = vsel %vm2036_vm12, %v11300_v25, %v11302_v48  ;;  %v12842_v25 = vld [vmem:[%s16147_s3 + $0x2c] sm:$0xf] }
 0x63c   :  { %13288 = vmatmul.mubr.msk.bf16.vlgmr.msra.gmra.mrb[148].mxu1 %vm78_vm2, %v12818_v4  ;;  %12827 = vmatprep.subr.msk.bf16.mxu0 %vm82_vm1, %v11314_v52 }
 0x63d   :  { %11345 = vmatpush1.bf16.msra.mxu0 %v11324_v13  ;;  %v11304_v49 = vpop.permute.xlu0 %11303  ;;  %11417 = vmatprep.mubr.bf16.mxu1 %v13368_v10 }
 0x63e   :  { %v11315_v3 = vsel %vm2036_vm12, %v11302_v48, %v11304_v49  ;;  %v11306_v60 = vpop.permute.xlu1 %11305 }
 0x63f   :  { %v11330_v51 = vsel %vm82_vm1, %v11315_v3, 0  ;;  %v11316_v16 = vsel %vm2036_vm12, %v11304_v49, %v11306_v60 }
 0x640   :  { %12829 = vmatprep.subr.msk.bf16.mxu1 %vm82_vm1, %v11316_v16 }
 0x641   :  { %12828 = vmatmul.mubr.msk.bf16.vlgmr.msra.gmra.mrb[152].mxu0 %vm78_vm2, %v12826_v39  ;;  %11386 = vmatpush1.bf16.msra.mxu1 %v11330_v51  ;;  %v11308_v0 = vpop.permute.xlu0 %11307 }
 0x642   :  { %v11317_v11 = vsel %vm2036_vm12, %v11306_v60, %v11308_v0  ;;  %v11310_v47 = vpop.permute.xlu1 %11309  ;;  %11458 = vmatprep.mubr.bf16.mxu0 %v13368_v10  ;;  %13291 = vmatprep.subr.bf16.mxu1 %v13376_v35 }
 0x643   :  { %v11336_v2 = vsel %vm82_vm1, %v11317_v11, 0  ;;  %v11318_v61 = vsel %vm2036_vm12, %v11308_v0, %v11310_v47 }
 0x644   :  { %12830 = vmatmul.mubr.msk.bf16.vlgmr.msra.gmra.mrb[152].mxu1 %vm78_vm2, %v12826_v39  ;;  %12831 = vmatprep.subr.msk.bf16.mxu0 %vm82_vm1, %v11318_v61 }
 0x645   :  { %11427 = vmatpush1.bf16.msra.mxu0 %v11336_v2  ;;  %v11312_v14 = vpop.permute.xlu0 %11311  ;;  %13293 = vmatprep.mubr.msk.bf16.mxu1 %vm13378_vm4, %v13376_v35 }
 0x646   :  { %v11319_v46 = vsel %vm2036_vm12, %v11310_v47, %v11312_v14  ;;  %v11516_v8 = vpop.permute.xlu1 %11515 }
 0x647   :  { %v11342_v6 = vsel %vm82_vm1, %v11319_v46, 0 }
 0x648   :  { %13292 = vmatpush3.bf16.msra.mxu1 %v11342_v6 }
 0x649   :  { %12832 = vmatmul.mubr.msk.bf16.vlgmr.msra.gmra.mrb[156].mxu0 %vm78_vm2, %v12826_v39  ;;  %v11518_v34 = vpop.permute.xlu0 %11517 }
 0x64a   :  { %v11531_v17 = vsel %vm2256_vm13, %v11516_v8, %v11518_v34  ;;  %v11520_v36 = vpop.permute.xlu1 %11519  ;;  %11594 = vmatprep.mubr.bf16.mxu0 %v13368_v10 }
 0x64b   :  { %v11542_v56 = vsel %vm82_vm1, %v11531_v17, 0  ;;  %v11532_v63 = vsel %vm2256_vm13, %v11518_v34, %v11520_v36  ;;  %v12850_v34 = vld [vmem:[%s16147_s3 + $0x30] sm:$0xf] }
 0x64c   :  { %13294 = vmatmul.mubr.msk.bf16.vlgmr.msra.gmra.mrb[156].mxu1 %vm78_vm2, %v12826_v39  ;;  %12835 = vmatprep.subr.msk.bf16.mxu0 %vm82_vm1, %v11532_v63 }
 0x64d   :  { %11563 = vmatpush1.bf16.msra.mxu0 %v11542_v56  ;;  %v11522_v19 = vpop.permute.xlu0 %11521  ;;  %11635 = vmatprep.mubr.bf16.mxu1 %v13368_v10 }
 0x64e   :  { %v11533_v9 = vsel %vm2256_vm13, %v11520_v36, %v11522_v19  ;;  %v11524_v15 = vpop.permute.xlu1 %11523 }
 0x64f   :  { %v11548_v21 = vsel %vm82_vm1, %v11533_v9, 0  ;;  %v11534_v18 = vsel %vm2256_vm13, %v11522_v19, %v11524_v15 }
 0x650   :  { %12837 = vmatprep.subr.msk.bf16.mxu1 %vm82_vm1, %v11534_v18 }
 0x651   :  { %12836 = vmatmul.mubr.msk.bf16.vlgmr.msra.gmra.mrb[160].mxu0 %vm78_vm2, %v12834_v22  ;;  %11604 = vmatpush1.bf16.msra.mxu1 %v11548_v21  ;;  %v11526_v30 = vpop.permute.xlu0 %11525 }
 0x652   :  { %v11535_v27 = vsel %vm2256_vm13, %v11524_v15, %v11526_v30  ;;  %v11528_v5 = vpop.permute.xlu1 %11527  ;;  %11676 = vmatprep.mubr.bf16.mxu0 %v13368_v10  ;;  %13297 = vmatprep.subr.bf16.mxu1 %v13376_v35 }
 0x653   :  { %v11554_v29 = vsel %vm82_vm1, %v11535_v27, 0  ;;  %v11536_v42 = vsel %vm2256_vm13, %v11526_v30, %v11528_v5  ;;  %v12173_v30 = vsel %vm82_vm1, %v15479_v57, 0  ;;  %v12858_v57 = vld [vmem:[%s16147_s3 + $0x34] sm:$0xf] }
 0x654   :  { %12838 = vmatmul.mubr.msk.bf16.vlgmr.msra.gmra.mrb[160].mxu1 %vm78_vm2, %v12834_v22  ;;  %12839 = vmatprep.subr.msk.bf16.mxu0 %vm82_vm1, %v11536_v42  ;;  %v6230_v27 = vld [vmem:[%s16144_s0 + $0x10] sm:$0xff]  ;;  %v12191_v42 = vsel %vm82_vm1, %v15508_v33, 0 }
 0x655   :  { %11645 = vmatpush1.bf16.msra.mxu0 %v11554_v29  ;;  %v11530_v4 = vpop.permute.xlu0 %11529  ;;  %13299 = vmatprep.mubr.msk.bf16.mxu1 %vm13378_vm4, %v13376_v35 }
 0x656   :  { %v11537_v26 = vsel %vm2256_vm13, %v11528_v5, %v11530_v4  ;;  %v11734_v50 = vpop.permute.xlu1 %11733  ;;  %v6231_v5 = vld [vmem:[%s16144_s0 + $0x18] sm:$0xff] }
 0x657   :  { %v11560_v44 = vsel %vm82_vm1, %v11537_v26, 0  ;;  %v6234_v26 = vld [vmem:[%s16144_s0 + $0x30] sm:$0xff] }
 0x658   :  { %13298 = vmatpush3.bf16.msra.mxu1 %v11560_v44 }
 0x659   :  { %12840 = vmatmul.mubr.msk.bf16.vlgmr.msra.gmra.mrb[164].mxu0 %vm78_vm2, %v12834_v22  ;;  %v11736_v7 = vpop.permute.xlu0 %11735 }
 0x65a   :  { %v11749_v62 = vsel %vm2476_vm14, %v11734_v50, %v11736_v7  ;;  %v11738_v54 = vpop.permute.xlu1 %11737  ;;  %11812 = vmatprep.mubr.bf16.mxu0 %v13368_v10  ;;  %v6235_v50 = vld [vmem:[%s16144_s0 + $0x38] sm:$0xff] }
 0x65b   :  { %v11760_v40 = vsel %vm82_vm1, %v11749_v62, 0  ;;  %v11750_v38 = vsel %vm2476_vm14, %v11736_v7, %v11738_v54 }
 0x65c   :  { %13300 = vmatmul.mubr.msk.bf16.vlgmr.msra.gmra.mrb[164].mxu1 %vm78_vm2, %v12834_v22  ;;  %12843 = vmatprep.subr.msk.bf16.mxu0 %vm82_vm1, %v11750_v38 }
 0x65d   :  { %11781 = vmatpush1.bf16.msra.mxu0 %v11760_v40  ;;  %v11740_v37 = vpop.permute.xlu0 %11739  ;;  %11853 = vmatprep.mubr.bf16.mxu1 %v13368_v10 }
 0x65e   :  { %v11751_v32 = vsel %vm2476_vm14, %v11738_v54, %v11740_v37  ;;  %v11742_v31 = vpop.permute.xlu1 %11741 }
 0x65f   :  { %v11766_v58 = vsel %vm82_vm1, %v11751_v32, 0  ;;  %v11752_v48 = vsel %vm2476_vm14, %v11740_v37, %v11742_v31 }
 0x660   :  { %12845 = vmatprep.subr.msk.bf16.mxu1 %vm82_vm1, %v11752_v48 }
 0x661   :  { %12844 = vmatmul.mubr.msk.bf16.vlgmr.msra.gmra.mrb[168].mxu0 %vm78_vm2, %v12842_v25  ;;  %11822 = vmatpush1.bf16.msra.mxu1 %v11766_v58  ;;  %v11744_v13 = vpop.permute.xlu0 %11743 }
 0x662   :  { %v11753_v52 = vsel %vm2476_vm14, %v11742_v31, %v11744_v13  ;;  %v11746_v49 = vpop.permute.xlu1 %11745  ;;  %11894 = vmatprep.mubr.bf16.mxu0 %v13368_v10  ;;  %13303 = vmatprep.subr.bf16.mxu1 %v13376_v35 }
 0x663   :  { %v11772_v3 = vsel %vm82_vm1, %v11753_v52, 0  ;;  %v11754_v60 = vsel %vm2476_vm14, %v11744_v13, %v11746_v49 }
 0x664   :  { %12846 = vmatmul.mubr.msk.bf16.vlgmr.msra.gmra.mrb[168].mxu1 %vm78_vm2, %v12842_v25  ;;  %12847 = vmatprep.subr.msk.bf16.mxu0 %vm82_vm1, %v11754_v60 }
 0x665   :  { %11863 = vmatpush1.bf16.msra.mxu0 %v11772_v3  ;;  %v11748_v39 = vpop.permute.xlu0 %11747  ;;  %13305 = vmatprep.mubr.msk.bf16.mxu1 %vm13378_vm4, %v13376_v35 }
 0x666   :  { %v11755_v51 = vsel %vm2476_vm14, %v11746_v49, %v11748_v39  ;;  %v11952_v16 = vpop.permute.xlu1 %11951 }
 0x667   :  { %v11778_v0 = vsel %vm82_vm1, %v11755_v51, 0 }
 0x668   :  { %13304 = vmatpush3.bf16.msra.mxu1 %v11778_v0 }
 0x669   :  { %12848 = vmatmul.mubr.msk.bf16.vlgmr.msra.gmra.mrb[172].mxu0 %vm78_vm2, %v12842_v25  ;;  %v11954_v11 = vpop.permute.xlu0 %11953 }
 0x66a   :  { %v11967_v47 = vsel %vm2696_vm15, %v11952_v16, %v11954_v11  ;;  %v11956_v2 = vpop.permute.xlu1 %11955  ;;  %12030 = vmatprep.mubr.bf16.mxu0 %v13368_v10 }
 0x66b   :  { %v11978_v61 = vsel %vm82_vm1, %v11967_v47, 0  ;;  %v11968_v14 = vsel %vm2696_vm15, %v11954_v11, %v11956_v2 }
 0x66c   :  { %13306 = vmatmul.mubr.msk.bf16.vlgmr.msra.gmra.mrb[172].mxu1 %vm78_vm2, %v12842_v25  ;;  %12851 = vmatprep.subr.msk.bf16.mxu0 %vm82_vm1, %v11968_v14 }
 0x66d   :  { %11999 = vmatpush1.bf16.msra.mxu0 %v11978_v61  ;;  %v11958_v46 = vpop.permute.xlu0 %11957  ;;  %12071 = vmatprep.mubr.bf16.mxu1 %v13368_v10 }
 0x66e   :  { %v11969_v8 = vsel %vm2696_vm15, %v11956_v2, %v11958_v46  ;;  %v11960_v6 = vpop.permute.xlu1 %11959 }
 0x66f   :  { %v11984_v17 = vsel %vm82_vm1, %v11969_v8, 0  ;;  %v11970_v36 = vsel %vm2696_vm15, %v11958_v46, %v11960_v6 }
 0x670   :  { %12853 = vmatprep.subr.msk.bf16.mxu1 %vm82_vm1, %v11970_v36 }
 0x671   :  { %12852 = vmatmul.mubr.msk.bf16.vlgmr.msra.gmra.mrb[176].mxu0 %vm78_vm2, %v12850_v34  ;;  %12040 = vmatpush1.bf16.msra.mxu1 %v11984_v17  ;;  %v11962_v56 = vpop.permute.xlu0 %11961 }
 0x672   :  { %v11971_v63 = vsel %vm2696_vm15, %v11960_v6, %v11962_v56  ;;  %v11964_v19 = vpop.permute.xlu1 %11963  ;;  %12112 = vmatprep.mubr.bf16.mxu0 %v13368_v10  ;;  %13309 = vmatprep.subr.bf16.mxu1 %v13376_v35 }
 0x673   :  { %v11990_v9 = vsel %vm82_vm1, %v11971_v63, 0  ;;  %v11972_v15 = vsel %vm2696_vm15, %v11962_v56, %v11964_v19 }
 0x674   :  { %12854 = vmatmul.mubr.msk.bf16.vlgmr.msra.gmra.mrb[176].mxu1 %vm78_vm2, %v12850_v34  ;;  %12855 = vmatprep.subr.msk.bf16.mxu0 %vm82_vm1, %v11972_v15 }
 0x675   :  { %12081 = vmatpush1.bf16.msra.mxu0 %v11990_v9  ;;  %v11966_v22 = vpop.permute.xlu0 %11965  ;;  %13311 = vmatprep.mubr.msk.bf16.mxu1 %vm13378_vm4, %v13376_v35 }
 0x676   :  { %v11973_v21 = vsel %vm2696_vm15, %v11964_v19, %v11966_v22  ;;  %12859 = vmatprep.subr.msk.bf16.mxu0 %vm82_vm1, %v15481_v43  ;;  %v12179_v43 = vsel %vm82_vm1, %v15489_v28, 0 }
 0x677   :  { %v11996_v18 = vsel %vm82_vm1, %v11973_v21, 0 }
 0x678   :  { %13310 = vmatpush3.bf16.msra.mxu1 %v11996_v18 }
 0x679   :  { %12856 = vmatmul.mubr.msk.bf16.vlgmr.msra.gmra.mrb[180].mxu0 %vm78_vm2, %v12850_v34  ;;  %12861 = vmatprep.subr.msk.bf16.mxu1 %vm82_vm1, %v15491_v53  ;;  %v12185_v53 = vsel %vm82_vm1, %v15497_v20, 0  ;;  %v6232_v20 = vld [vmem:[%s16144_s0 + $0x20] sm:$0xff] }
 0x67a   :  { %12194 = vmatpush1.bf16.msra.mxu0 %v12173_v30  ;;  %12225 = vmatprep.mubr.bf16.mxu0 %v13368_v10 }
 0x67b   :  { %12863 = vmatprep.subr.msk.bf16.mxu0 %vm82_vm1, %v15501_v12  ;;  %v6229_v12 = vld [vmem:[%s16144_s0 + $0x8] sm:$0xff] }
 0x67c   :  { %13312 = vmatmul.mubr.msk.bf16.vlgmr.msra.gmra.mrb[180].mxu1 %vm78_vm2, %v12850_v34 }
 0x67d   :  { %12235 = vmatpush1.bf16.msra.mxu1 %v12179_v43  ;;  %12266 = vmatprep.mubr.bf16.mxu1 %v13368_v10 }
 0x67e   :  { %13315 = vmatprep.subr.bf16.mxu1 %v13376_v35 }
 0x681   :  { %12860 = vmatmul.mubr.msk.bf16.vlgmr.msra.gmra.mrb[184].mxu0 %vm78_vm2, %v12858_v57 }
 0x682   :  { %12276 = vmatpush1.bf16.msra.mxu0 %v12185_v53  ;;  %12307 = vmatprep.mubr.bf16.mxu0 %v13368_v10  ;;  %v9431_v28 = vpop.f32.mrb[80].mxu0  ;;  %v6233_v10 = vld [vmem:[%s16144_s0 + $0x28] sm:$0xff] }
 0x683   :  { %v6220_v29 = vpop.permute.xlu1 %6219  ;;  %v9433_v4 = vpop.f32.mrb[81].mxu0 }
 0x684   :  { %v6222_v44 = vadd.f32 %v6220_v29, %v15431_v59  ;;  %v6223_v7 = vadd.f32 %v6220_v29, %v15434_v1  ;;  %v6224_v62 = vadd.f32 %v6220_v29, %v15443_v41  ;;  %v6225_v33 = vadd.f32 %v6220_v29, %v15446_v55  ;;  %12862 = vmatmul.mubr.msk.bf16.vlgmr.msra.gmra.mrb[184].mxu1 %vm78_vm2, %v12858_v57  ;;  %v9435_v54 = vpop.f32.mrb[82].mxu0 }
 0x685   :  { %v6226_v40 = vadd.f32 %v6220_v29, %v15452_v23  ;;  %v6227_v38 = vadd.f32 %v6220_v29, %v15454_v24  ;;  %v6228_v37 = vadd.f32 %v6220_v29, %v15465_v45  ;;  %13316 = vmatpush3.bf16.msra.mxu1 %v12191_v42  ;;  %v9436_v32 = vpop.f32.mrb[83].mxu0  ;;  %13317 = vmatprep.mubr.msk.bf16.mxu1 %vm13378_vm4, %v13376_v35 }
 0x686   :  { %v6236_v59 = vadd.f32 %v6229_v12, %v6222_v44  ;;  %v6237_v1 = vadd.f32 %v6230_v27, %v6223_v7  ;;  %v6238_v31 = vadd.f32 %v6231_v5, %v6224_v62  ;;  %v6239_v41 = vadd.f32 %v6232_v20, %v6225_v33 }
 0x687   :  { %v6240_v25 = vadd.f32 %v6233_v10, %v6226_v40  ;;  %v6241_v55 = vadd.f32 %v6234_v26, %v6227_v38  ;;  %v6242_v58 = vadd.f32 %v6235_v50, %v6228_v37  ;;  %v9472_v48 = vpop.f32.mrb[80].mxu1 }
 0x688   :  { %6243 = vst [vmem:[#allocation3] sm:$0xff] %v6236_v59  ;;  %6244 = vst [vmem:[#allocation3 + $0x8] sm:$0xff] %v6237_v1  ;;  %v9474_v23 = vpop.f32.mrb[81].mxu1 }
 0x689   :  { %6245 = vst [vmem:[#allocation3 + $0x10] sm:$0xff] %v6238_v31  ;;  %6246 = vst [vmem:[#allocation3 + $0x18] sm:$0xff] %v6239_v41  ;;  %12864 = vmatmul.mubr.msk.bf16.vlgmr.msra.gmra.mrb[188].mxu0 %vm78_vm2, %v12858_v57  ;;  %v9476_v24 = vpop.f32.mrb[82].mxu1 }
 0x68a   :  { %6247 = vst [vmem:[#allocation3 + $0x20] sm:$0xff] %v6240_v25  ;;  %6248 = vst [vmem:[#allocation3 + $0x28] sm:$0xff] %v6241_v55  ;;  %v9477_v35 = vpop.f32.mrb[83].mxu1 }
 0x68b   :  { %6249 = vst [vmem:[#allocation3 + $0x30] sm:$0xff] %v6242_v58 }
 0x68c   :  { %13318 = vmatmul.mubr.msk.bf16.vlgmr.msra.gmra.mrb[188].mxu1 %vm78_vm2, %v12858_v57  ;;  %v9513_v45 = vpop.f32.mrb[84].mxu0 }
 0x68d   :  { %v9515_v13 = vpop.f32.mrb[85].mxu0 }
 0x68e   :  { %v9517_v52 = vpop.f32.mrb[86].mxu0 }
 0x68f   :  { %v9554_v49 = vpop.f32.mrb[84].mxu1  ;;  %v9518_v3 = vpop.f32.mrb[87].mxu0 }
 0x690   :  { %v13241_v60 = vpop.f32.mrb[85].mxu1 }
 0x691   :  { %v9557_v39 = vpop.f32.mrb[86].mxu1 }
 0x692   :  { %v13242_v51 = vpop.f32.mrb[87].mxu1 }
 0x694   :  { %v9641_v16 = vpop.f32.mrb[88].mxu0 }
 0x695   :  { %v9642_v0 = vadd.f32 %v9641_v16, %v9431_v28  ;;  %v9643_v11 = vpop.f32.mrb[89].mxu0 }
 0x696   :  { %v9644_v47 = vadd.f32 %v9643_v11, %v9433_v4  ;;  %v9645_v2 = vpop.f32.mrb[90].mxu0 }
 0x697   :  { %v9682_v61 = vpop.f32.mrb[88].mxu1  ;;  %v9646_v14 = vpop.f32.mrb[91].mxu0 }
 0x698   :  { %v9683_v46 = vadd.f32 %v9682_v61, %v9472_v48  ;;  %v9684_v8 = vpop.f32.mrb[89].mxu1 }
 0x699   :  { %v9685_v6 = vadd.f32 %v9684_v8, %v9474_v23  ;;  %v9686_v34 = vpop.f32.mrb[90].mxu1 }
 0x69a   :  { %v9687_v17 = vpop.f32.mrb[91].mxu1 }
 0x69c   :  { %v9723_v36 = vpop.f32.mrb[92].mxu0 }
 0x69d   :  { %v9724_v56 = vadd.f32 %v9723_v36, %v9513_v45  ;;  %v9725_v63 = vpop.f32.mrb[93].mxu0 }
 0x69e   :  { %v9726_v19 = vadd.f32 %v9725_v63, %v9515_v13  ;;  %v9727_v9 = vpop.f32.mrb[94].mxu0 }
 0x69f   :  { %v9764_v15 = vpop.f32.mrb[92].mxu1  ;;  %v9728_v22 = vpop.f32.mrb[95].mxu0 }
 0x6a0   :  { %v9765_v21 = vadd.f32 %v9764_v15, %v9554_v49  ;;  %v13247_v18 = vpop.f32.mrb[93].mxu1 }
 0x6a1   :  { %v9767_v30 = vpop.f32.mrb[94].mxu1 }
 0x6a2   :  { %v13248_v43 = vpop.f32.mrb[95].mxu1 }
 0x6a4   :  { %v9852_v57 = vpop.f32.mrb[96].mxu0 }
 0x6a5   :  { %v9981_v53 = vadd.f32 %v9852_v57, %v9642_v0  ;;  %v9854_v12 = vpop.f32.mrb[97].mxu0 }
 0x6a6   :  { %v9982_v28 = vadd.f32 %v9854_v12, %v9644_v47  ;;  %v9856_v27 = vpop.f32.mrb[98].mxu0 }
 0x6a7   :  { %v9893_v5 = vpop.f32.mrb[96].mxu1  ;;  %v9857_v20 = vpop.f32.mrb[99].mxu0 }
 0x6a8   :  { %v9983_v29 = vadd.f32 %v9893_v5, %v9683_v46  ;;  %v9895_v42 = vpop.f32.mrb[97].mxu1 }
 0x6a9   :  { %v9984_v4 = vadd.f32 %v9895_v42, %v9685_v6  ;;  %v9897_v10 = vpop.f32.mrb[98].mxu1 }
 0x6aa   :  { %v9898_v26 = vpop.f32.mrb[99].mxu1 }
 0x6ac   :  { %v9934_v50 = vpop.f32.mrb[100].mxu0 }
 0x6ad   :  { %v9985_v44 = vadd.f32 %v9934_v50, %v9724_v56  ;;  %v9936_v7 = vpop.f32.mrb[101].mxu0 }
 0x6ae   :  { %v9986_v62 = vadd.f32 %v9936_v7, %v9726_v19  ;;  %v9938_v33 = vpop.f32.mrb[102].mxu0 }
 0x6af   :  { %v9975_v54 = vpop.f32.mrb[100].mxu1  ;;  %v9939_v40 = vpop.f32.mrb[103].mxu0 }
 0x6b0   :  { %v9987_v38 = vadd.f32 %v9975_v54, %v9765_v21  ;;  %v13253_v37 = vpop.f32.mrb[101].mxu1 }
 0x6b1   :  { %v9978_v32 = vpop.f32.mrb[102].mxu1 }
 0x6b2   :  { %v13254_v59 = vpop.f32.mrb[103].mxu1 }
 0x6b4   :  { %v10070_v1 = vpop.f32.mrb[104].mxu0 }
 0x6b5   :  { %v10199_v31 = vadd.f32 %v10070_v1, %v9981_v53  ;;  %v10072_v41 = vpop.f32.mrb[105].mxu0 }
 0x6b6   :  { %v10200_v25 = vadd.f32 %v10072_v41, %v9982_v28  ;;  %v10074_v55 = vpop.f32.mrb[106].mxu0 }
 0x6b7   :  { %v10111_v58 = vpop.f32.mrb[104].mxu1  ;;  %v10075_v48 = vpop.f32.mrb[107].mxu0 }
 0x6b8   :  { %v10201_v23 = vadd.f32 %v10111_v58, %v9983_v29  ;;  %v10113_v24 = vpop.f32.mrb[105].mxu1 }
 0x6b9   :  { %v10202_v35 = vadd.f32 %v10113_v24, %v9984_v4  ;;  %v10115_v45 = vpop.f32.mrb[106].mxu1 }
 0x6ba   :  { %v10116_v13 = vpop.f32.mrb[107].mxu1 }
 0x6bc   :  { %v10152_v52 = vpop.f32.mrb[108].mxu0 }
 0x6bd   :  { %v10203_v49 = vadd.f32 %v10152_v52, %v9985_v44  ;;  %v10154_v3 = vpop.f32.mrb[109].mxu0 }
 0x6be   :  { %v10204_v60 = vadd.f32 %v10154_v3, %v9986_v62  ;;  %v10156_v39 = vpop.f32.mrb[110].mxu0 }
 0x6bf   :  { %v10193_v51 = vpop.f32.mrb[108].mxu1  ;;  %v10157_v16 = vpop.f32.mrb[111].mxu0 }
 0x6c0   :  { %v10205_v0 = vadd.f32 %v10193_v51, %v9987_v38  ;;  %v13259_v11 = vpop.f32.mrb[109].mxu1 }
 0x6c1   :  { %v10196_v47 = vpop.f32.mrb[110].mxu1 }
 0x6c2   :  { %v13260_v2 = vpop.f32.mrb[111].mxu1 }
 0x6c4   :  { %v10288_v61 = vpop.f32.mrb[112].mxu0 }
 0x6c5   :  { %v10417_v14 = vadd.f32 %v10288_v61, %v10199_v31  ;;  %v10290_v46 = vpop.f32.mrb[113].mxu0 }
 0x6c6   :  { %v10418_v8 = vadd.f32 %v10290_v46, %v10200_v25  ;;  %v10292_v6 = vpop.f32.mrb[114].mxu0 }
 0x6c7   :  { %v10329_v34 = vpop.f32.mrb[112].mxu1  ;;  %v10293_v17 = vpop.f32.mrb[115].mxu0 }
 0x6c8   :  { %v10419_v36 = vadd.f32 %v10329_v34, %v10201_v23  ;;  %v10331_v56 = vpop.f32.mrb[113].mxu1 }
 0x6c9   :  { %v10420_v63 = vadd.f32 %v10331_v56, %v10202_v35  ;;  %v10333_v19 = vpop.f32.mrb[114].mxu1 }
 0x6ca   :  { %v10334_v9 = vpop.f32.mrb[115].mxu1 }
 0x6cc   :  { %v10370_v15 = vpop.f32.mrb[116].mxu0 }
 0x6cd   :  { %v10421_v22 = vadd.f32 %v10370_v15, %v10203_v49  ;;  %v10372_v21 = vpop.f32.mrb[117].mxu0 }
 0x6ce   :  { %v10422_v18 = vadd.f32 %v10372_v21, %v10204_v60  ;;  %v10374_v30 = vpop.f32.mrb[118].mxu0 }
 0x6cf   :  { %v10411_v43 = vpop.f32.mrb[116].mxu1  ;;  %v10375_v57 = vpop.f32.mrb[119].mxu0 }
 0x6d0   :  { %v10423_v53 = vadd.f32 %v10411_v43, %v10205_v0  ;;  %v13265_v12 = vpop.f32.mrb[117].mxu1 }
 0x6d1   :  { %v10414_v28 = vpop.f32.mrb[118].mxu1 }
 0x6d2   :  { %v13266_v27 = vpop.f32.mrb[119].mxu1 }
 0x6d4   :  { %v10506_v5 = vpop.f32.mrb[120].mxu0 }
 0x6d5   :  { %v10635_v20 = vadd.f32 %v10506_v5, %v10417_v14  ;;  %v10508_v29 = vpop.f32.mrb[121].mxu0 }
 0x6d6   :  { %v10636_v42 = vadd.f32 %v10508_v29, %v10418_v8  ;;  %v10510_v4 = vpop.f32.mrb[122].mxu0 }
 0x6d7   :  { %v10547_v10 = vpop.f32.mrb[120].mxu1  ;;  %v10511_v26 = vpop.f32.mrb[123].mxu0 }
 0x6d8   :  { %v10637_v50 = vadd.f32 %v10547_v10, %v10419_v36  ;;  %v10549_v44 = vpop.f32.mrb[121].mxu1 }
 0x6d9   :  { %v10638_v7 = vadd.f32 %v10549_v44, %v10420_v63  ;;  %v10551_v62 = vpop.f32.mrb[122].mxu1 }
 0x6da   :  { %v10552_v33 = vpop.f32.mrb[123].mxu1 }
 0x6dc   :  { %v10588_v54 = vpop.f32.mrb[124].mxu0 }
 0x6dd   :  { %v10639_v40 = vadd.f32 %v10588_v54, %v10421_v22  ;;  %v10590_v38 = vpop.f32.mrb[125].mxu0 }
 0x6de   :  { %v10640_v37 = vadd.f32 %v10590_v38, %v10422_v18  ;;  %v10592_v32 = vpop.f32.mrb[126].mxu0 }
 0x6df   :  { %v10629_v59 = vpop.f32.mrb[124].mxu1  ;;  %v10593_v1 = vpop.f32.mrb[127].mxu0 }
 0x6e0   :  { %v10641_v31 = vadd.f32 %v10629_v59, %v10423_v53  ;;  %v13271_v41 = vpop.f32.mrb[125].mxu1 }
 0x6e1   :  { %v10632_v25 = vpop.f32.mrb[126].mxu1 }
 0x6e2   :  { %v13272_v55 = vpop.f32.mrb[127].mxu1 }
 0x6e4   :  { %v10724_v58 = vpop.f32.mrb[128].mxu0 }
 0x6e5   :  { %v10853_v48 = vadd.f32 %v10724_v58, %v10635_v20  ;;  %v10726_v23 = vpop.f32.mrb[129].mxu0 }
 0x6e6   :  { %v10854_v24 = vadd.f32 %v10726_v23, %v10636_v42  ;;  %v10728_v35 = vpop.f32.mrb[130].mxu0 }
 0x6e7   :  { %v10765_v45 = vpop.f32.mrb[128].mxu1  ;;  %v10729_v13 = vpop.f32.mrb[131].mxu0 }
 0x6e8   :  { %v10855_v52 = vadd.f32 %v10765_v45, %v10637_v50  ;;  %v10767_v49 = vpop.f32.mrb[129].mxu1 }
 0x6e9   :  { %v10856_v3 = vadd.f32 %v10767_v49, %v10638_v7  ;;  %v10769_v60 = vpop.f32.mrb[130].mxu1 }
 0x6ea   :  { %v10770_v39 = vpop.f32.mrb[131].mxu1 }
 0x6ec   :  { %v10806_v51 = vpop.f32.mrb[132].mxu0 }
 0x6ed   :  { %v10857_v16 = vadd.f32 %v10806_v51, %v10639_v40  ;;  %v10808_v0 = vpop.f32.mrb[133].mxu0 }
 0x6ee   :  { %v10858_v11 = vadd.f32 %v10808_v0, %v10640_v37  ;;  %v10810_v47 = vpop.f32.mrb[134].mxu0 }
 0x6ef   :  { %v10847_v2 = vpop.f32.mrb[132].mxu1  ;;  %v10811_v61 = vpop.f32.mrb[135].mxu0 }
 0x6f0   :  { %v10859_v14 = vadd.f32 %v10847_v2, %v10641_v31  ;;  %v13277_v46 = vpop.f32.mrb[133].mxu1 }
 0x6f1   :  { %v10850_v8 = vpop.f32.mrb[134].mxu1 }
 0x6f2   :  { %v13278_v6 = vpop.f32.mrb[135].mxu1 }
 0x6f4   :  { %v10942_v34 = vpop.f32.mrb[136].mxu0 }
 0x6f5   :  { %v11071_v17 = vadd.f32 %v10942_v34, %v10853_v48  ;;  %v10944_v36 = vpop.f32.mrb[137].mxu0 }
 0x6f6   :  { %v11072_v56 = vadd.f32 %v10944_v36, %v10854_v24  ;;  %v10946_v63 = vpop.f32.mrb[138].mxu0 }
 0x6f7   :  { %v10983_v19 = vpop.f32.mrb[136].mxu1  ;;  %v10947_v9 = vpop.f32.mrb[139].mxu0 }
 0x6f8   :  { %v11073_v15 = vadd.f32 %v10983_v19, %v10855_v52  ;;  %v10985_v22 = vpop.f32.mrb[137].mxu1 }
 0x6f9   :  { %v11074_v21 = vadd.f32 %v10985_v22, %v10856_v3  ;;  %v10987_v18 = vpop.f32.mrb[138].mxu1 }
 0x6fa   :  { %v10988_v30 = vpop.f32.mrb[139].mxu1 }
 0x6fc   :  { %v11024_v43 = vpop.f32.mrb[140].mxu0 }
 0x6fd   :  { %v11075_v57 = vadd.f32 %v11024_v43, %v10857_v16  ;;  %v11026_v53 = vpop.f32.mrb[141].mxu0 }
 0x6fe   :  { %v11076_v12 = vadd.f32 %v11026_v53, %v10858_v11  ;;  %v11028_v28 = vpop.f32.mrb[142].mxu0 }
 0x6ff   :  { %v11065_v27 = vpop.f32.mrb[140].mxu1  ;;  %v11029_v5 = vpop.f32.mrb[143].mxu0 }
 0x700   :  { %v11077_v20 = vadd.f32 %v11065_v27, %v10859_v14  ;;  %v13283_v29 = vpop.f32.mrb[141].mxu1 }
 0x701   :  { %v11068_v42 = vpop.f32.mrb[142].mxu1 }
 0x702   :  { %v13284_v4 = vpop.f32.mrb[143].mxu1 }
 0x704   :  { %v11160_v10 = vpop.f32.mrb[144].mxu0 }
 0x705   :  { %v11289_v26 = vadd.f32 %v11160_v10, %v11071_v17  ;;  %v11162_v50 = vpop.f32.mrb[145].mxu0 }
 0x706   :  { %v11290_v44 = vadd.f32 %v11162_v50, %v11072_v56  ;;  %v11164_v7 = vpop.f32.mrb[146].mxu0 }
 0x707   :  { %v11201_v62 = vpop.f32.mrb[144].mxu1  ;;  %v11165_v33 = vpop.f32.mrb[147].mxu0 }
 0x708   :  { %v11291_v54 = vadd.f32 %v11201_v62, %v11073_v15  ;;  %v11203_v40 = vpop.f32.mrb[145].mxu1 }
 0x709   :  { %v11292_v38 = vadd.f32 %v11203_v40, %v11074_v21  ;;  %v11205_v37 = vpop.f32.mrb[146].mxu1 }
 0x70a   :  { %v11206_v32 = vpop.f32.mrb[147].mxu1 }
 0x70c   :  { %v11242_v59 = vpop.f32.mrb[148].mxu0 }
 0x70d   :  { %v11293_v1 = vadd.f32 %v11242_v59, %v11075_v57  ;;  %v11244_v31 = vpop.f32.mrb[149].mxu0 }
 0x70e   :  { %v11294_v41 = vadd.f32 %v11244_v31, %v11076_v12  ;;  %v11246_v25 = vpop.f32.mrb[150].mxu0 }
 0x70f   :  { %v11283_v55 = vpop.f32.mrb[148].mxu1  ;;  %v11247_v58 = vpop.f32.mrb[151].mxu0 }
 0x710   :  { %v11295_v48 = vadd.f32 %v11283_v55, %v11077_v20  ;;  %v13289_v23 = vpop.f32.mrb[149].mxu1 }
 0x711   :  { %v11286_v24 = vpop.f32.mrb[150].mxu1 }
 0x712   :  { %v13290_v35 = vpop.f32.mrb[151].mxu1 }
 0x714   :  { %v11378_v45 = vpop.f32.mrb[152].mxu0 }
 0x715   :  { %v11507_v13 = vadd.f32 %v11378_v45, %v11289_v26  ;;  %v11380_v52 = vpop.f32.mrb[153].mxu0 }
 0x716   :  { %v11508_v49 = vadd.f32 %v11380_v52, %v11290_v44  ;;  %v11382_v3 = vpop.f32.mrb[154].mxu0 }
 0x717   :  { %v11419_v60 = vpop.f32.mrb[152].mxu1  ;;  %v11383_v39 = vpop.f32.mrb[155].mxu0 }
 0x718   :  { %v11509_v51 = vadd.f32 %v11419_v60, %v11291_v54  ;;  %v11421_v16 = vpop.f32.mrb[153].mxu1 }
 0x719   :  { %v11510_v0 = vadd.f32 %v11421_v16, %v11292_v38  ;;  %v11423_v11 = vpop.f32.mrb[154].mxu1 }
 0x71a   :  { %v11424_v47 = vpop.f32.mrb[155].mxu1 }
 0x71c   :  { %v11460_v2 = vpop.f32.mrb[156].mxu0 }
 0x71d   :  { %v11511_v61 = vadd.f32 %v11460_v2, %v11293_v1  ;;  %v11462_v14 = vpop.f32.mrb[157].mxu0 }
 0x71e   :  { %v11512_v46 = vadd.f32 %v11462_v14, %v11294_v41  ;;  %v11464_v8 = vpop.f32.mrb[158].mxu0 }
 0x71f   :  { %v11501_v6 = vpop.f32.mrb[156].mxu1  ;;  %v11465_v34 = vpop.f32.mrb[159].mxu0 }
 0x720   :  { %v11513_v17 = vadd.f32 %v11501_v6, %v11295_v48  ;;  %v13295_v36 = vpop.f32.mrb[157].mxu1 }
 0x721   :  { %v11504_v56 = vpop.f32.mrb[158].mxu1 }
 0x722   :  { %v13296_v63 = vpop.f32.mrb[159].mxu1 }
 0x724   :  { %v11596_v19 = vpop.f32.mrb[160].mxu0 }
 0x725   :  { %v11725_v9 = vadd.f32 %v11596_v19, %v11507_v13  ;;  %v11598_v15 = vpop.f32.mrb[161].mxu0 }
 0x726   :  { %v11726_v22 = vadd.f32 %v11598_v15, %v11508_v49  ;;  %v11600_v21 = vpop.f32.mrb[162].mxu0 }
 0x727   :  { %v11637_v18 = vpop.f32.mrb[160].mxu1  ;;  %v11601_v30 = vpop.f32.mrb[163].mxu0 }
 0x728   :  { %v11727_v43 = vadd.f32 %v11637_v18, %v11509_v51  ;;  %v11639_v57 = vpop.f32.mrb[161].mxu1 }
 0x729   :  { %v11728_v53 = vadd.f32 %v11639_v57, %v11510_v0  ;;  %v11641_v12 = vpop.f32.mrb[162].mxu1  ;;  %v12367_v57 = vpop.permute.xlu0 %12366 }
 0x72a   :  { %v11642_v28 = vpop.f32.mrb[163].mxu1 }
 0x72c   :  { %v11678_v27 = vpop.f32.mrb[164].mxu0 }
 0x72d   :  { %v11729_v5 = vadd.f32 %v11678_v27, %v11511_v61  ;;  %v11680_v20 = vpop.f32.mrb[165].mxu0 }
 0x72e   :  { %v11730_v29 = vadd.f32 %v11680_v20, %v11512_v46  ;;  %v11682_v42 = vpop.f32.mrb[166].mxu0 }
 0x72f   :  { %v11719_v4 = vpop.f32.mrb[164].mxu1  ;;  %v11683_v10 = vpop.f32.mrb[167].mxu0 }
 0x730   :  { %v11731_v26 = vadd.f32 %v11719_v4, %v11513_v17  ;;  %v13301_v50 = vpop.f32.mrb[165].mxu1 }
 0x731   :  { %v11722_v44 = vpop.f32.mrb[166].mxu1  ;;  %v12868_v50 = vld [vmem:[%s16144_s0 + $0x58] sm:$0xff] }
 0x732   :  { %v13302_v7 = vpop.f32.mrb[167].mxu1 }
 0x734   :  { %v11814_v62 = vpop.f32.mrb[168].mxu0 }
 0x735   :  { %v11943_v33 = vadd.f32 %v11814_v62, %v11725_v9  ;;  %v11816_v54 = vpop.f32.mrb[169].mxu0 }
 0x736   :  { %v11944_v40 = vadd.f32 %v11816_v54, %v11726_v22  ;;  %v11818_v38 = vpop.f32.mrb[170].mxu0  ;;  %v12869_v54 = vld [vmem:[%s16144_s0 + $0x60] sm:$0xff] }
 0x737   :  { %v11855_v37 = vpop.f32.mrb[168].mxu1  ;;  %v11819_v32 = vpop.f32.mrb[171].mxu0 }
 0x738   :  { %v11945_v59 = vadd.f32 %v11855_v37, %v11727_v43  ;;  %v11857_v1 = vpop.f32.mrb[169].mxu1 }
 0x739   :  { %v11946_v31 = vadd.f32 %v11857_v1, %v11728_v53  ;;  %v11859_v41 = vpop.f32.mrb[170].mxu1  ;;  %v12866_v53 = vld [vmem:[%s16144_s0 + $0x48] sm:$0xff] }
 0x73a   :  { %v11860_v25 = vpop.f32.mrb[171].mxu1  ;;  %v12870_v41 = vld [vmem:[%s16144_s0 + $0x68] sm:$0xff] }
 0x73c   :  { %v11896_v55 = vpop.f32.mrb[172].mxu0 }
 0x73d   :  { %v11947_v58 = vadd.f32 %v11896_v55, %v11729_v5  ;;  %v11898_v48 = vpop.f32.mrb[173].mxu0  ;;  %v12867_v5 = vld [vmem:[%s16144_s0 + $0x50] sm:$0xff] }
 0x73e   :  { %v11948_v23 = vadd.f32 %v11898_v48, %v11730_v29  ;;  %v11900_v24 = vpop.f32.mrb[174].mxu0  ;;  %v12871_v48 = vld [vmem:[%s16144_s0 + $0x70] sm:$0xff] }
 0x73f   :  { %v11937_v35 = vpop.f32.mrb[172].mxu1  ;;  %v11901_v45 = vpop.f32.mrb[175].mxu0 }
 0x740   :  { %v11949_v13 = vadd.f32 %v11937_v35, %v11731_v26  ;;  %v13307_v52 = vpop.f32.mrb[173].mxu1 }
 0x741   :  { %v11940_v49 = vpop.f32.mrb[174].mxu1 }
 0x742   :  { %v13308_v3 = vpop.f32.mrb[175].mxu1  ;;  %v12872_v49 = vld [vmem:[%s16144_s0 + $0x78] sm:$0xff] }
 0x744   :  { %v12032_v60 = vpop.f32.mrb[176].mxu0 }
 0x745   :  { %v12161_v39 = vadd.f32 %v12032_v60, %v11943_v33  ;;  %v12034_v51 = vpop.f32.mrb[177].mxu0 }
 0x746   :  { %v12162_v16 = vadd.f32 %v12034_v51, %v11944_v40  ;;  %v12036_v0 = vpop.f32.mrb[178].mxu0 }
 0x747   :  { %v12073_v11 = vpop.f32.mrb[176].mxu1  ;;  %v12037_v47 = vpop.f32.mrb[179].mxu0 }
 0x748   :  { %v12163_v2 = vadd.f32 %v12073_v11, %v11945_v59  ;;  %v12075_v61 = vpop.f32.mrb[177].mxu1 }
 0x749   :  { %v12164_v14 = vadd.f32 %v12075_v61, %v11946_v31  ;;  %v12077_v46 = vpop.f32.mrb[178].mxu1 }
 0x74a   :  { %v12078_v8 = vpop.f32.mrb[179].mxu1 }
 0x74c   :  { %v12114_v6 = vpop.f32.mrb[180].mxu0 }
 0x74d   :  { %v12165_v34 = vadd.f32 %v12114_v6, %v11947_v58  ;;  %v12116_v17 = vpop.f32.mrb[181].mxu0 }
 0x74e   :  { %v12166_v36 = vadd.f32 %v12116_v17, %v11948_v23  ;;  %v12118_v56 = vpop.f32.mrb[182].mxu0 }
 0x74f   :  { %v12155_v63 = vpop.f32.mrb[180].mxu1  ;;  %v12119_v19 = vpop.f32.mrb[183].mxu0 }
 0x750   :  { %v12167_v9 = vadd.f32 %v12155_v63, %v11949_v13  ;;  %v13313_v15 = vpop.f32.mrb[181].mxu1 }
 0x751   :  { %v12158_v22 = vpop.f32.mrb[182].mxu1 }
 0x752   :  { %v13314_v21 = vpop.f32.mrb[183].mxu1 }
 0x754   :  { %v12227_v18 = vpop.f32.mrb[184].mxu0 }
 0x755   :  { %v12356_v30 = vadd.f32 %v12227_v18, %v12161_v39  ;;  %v12229_v43 = vpop.f32.mrb[185].mxu0 }
 0x756   :  { %v12357_v12 = vadd.f32 %v12229_v43, %v12162_v16  ;;  %v12231_v28 = vpop.f32.mrb[186].mxu0 }
 0x757   :  { %v12369_v27 = vadd.f32 %v12367_v57, %v12356_v30  ;;  %v12268_v20 = vpop.f32.mrb[184].mxu1  ;;  %v12232_v29 = vpop.f32.mrb[187].mxu0 }
 0x758   :  { %v12370_v42 = vadd.f32 %v12367_v57, %v12357_v12  ;;  %v12358_v4 = vadd.f32 %v12268_v20, %v12163_v2  ;;  %v12270_v10 = vpop.f32.mrb[185].mxu1 }
 0x759   :  { %v12383_v26 = vadd.f32 %v12866_v53, %v12369_v27  ;;  %v12359_v44 = vadd.f32 %v12270_v10, %v12164_v14  ;;  %v12272_v7 = vpop.f32.mrb[186].mxu1 }
 0x75a   :  { %v12384_v62 = vadd.f32 %v12867_v5, %v12370_v42  ;;  %v12371_v33 = vadd.f32 %v12367_v57, %v12358_v4  ;;  %v12273_v40 = vpop.f32.mrb[187].mxu1 }
 0x75b   :  { %12391 = vst [vmem:[#allocation3 + $0x38] sm:$0xff] %v12383_v26  ;;  %v12372_v38 = vadd.f32 %v12367_v57, %v12359_v44 }
 0x75c   :  { %12392 = vst [vmem:[#allocation3 + $0x40] sm:$0xff] %v12384_v62  ;;  %v12385_v37 = vadd.f32 %v12868_v50, %v12371_v33  ;;  %v12309_v32 = vpop.f32.mrb[188].mxu0 }
 0x75d   :  { %v12386_v59 = vadd.f32 %v12869_v54, %v12372_v38  ;;  %v12360_v1 = vadd.f32 %v12309_v32, %v12165_v34  ;;  %v12311_v31 = vpop.f32.mrb[189].mxu0 }
 0x75e   :  { %12393 = vst [vmem:[#allocation3 + $0x48] sm:$0xff] %v12385_v37  ;;  %v12361_v25 = vadd.f32 %v12311_v31, %v12166_v36  ;;  %v12313_v55 = vpop.f32.mrb[190].mxu0 }
 0x75f   :  { %12394 = vst [vmem:[#allocation3 + $0x50] sm:$0xff] %v12386_v59  ;;  %v12373_v58 = vadd.f32 %v12367_v57, %v12360_v1  ;;  %v12350_v23 = vpop.f32.mrb[188].mxu1  ;;  %v12314_v24 = vpop.f32.mrb[191].mxu0 }
 0x760   :  { %v12374_v35 = vadd.f32 %v12367_v57, %v12361_v25  ;;  %v12362_v45 = vadd.f32 %v12350_v23, %v12167_v9  ;;  %v13319_v13 = vpop.f32.mrb[189].mxu1 }
 0x761   :  { %v12387_v52 = vadd.f32 %v12870_v41, %v12373_v58  ;;  %v12353_v3 = vpop.f32.mrb[190].mxu1 }
 0x762   :  { %v12388_v60 = vadd.f32 %v12871_v48, %v12374_v35  ;;  %v12375_v39 = vadd.f32 %v12367_v57, %v12362_v45  ;;  %v13320_v51 = vpop.f32.mrb[191].mxu1 }
 0x763   :  { %12395 = vst [vmem:[#allocation3 + $0x58] sm:$0xff] %v12387_v52 }
 0x764   :  { %12396 = vst [vmem:[#allocation3 + $0x60] sm:$0xff] %v12388_v60  ;;  %v12389_v16 = vadd.f32 %v12872_v49, %v12375_v39 }
 0x766   :  { %12397 = vst [vmem:[#allocation3 + $0x68] sm:$0xff] %v12389_v16 }
 0x767   :  { %13354 = shalt.err (!%p13351_p4)
}
 0x768   :  { %s13355_s17 = scalar_lea.hbm %s16150_s6, 1792 }
 0x769   :  { %p13356_p5 = scmp.ne.s32.totalorder %s16150_s6, %s13355_s17  ;;  %p13359_p6 = scmp.lt.u32.totalorder %s13355_s17, %s16150_s6 }
 0x76b   :  { %p13361_p7 = pnand %p13359_p6, %p13356_p5 }
 0x76d   :  { %13364 = shalt.err (!%p13361_p7)
}
 0x76e   :  { %s13385_s23 = smov 896   ;;  %s13386_s26 = smov 56  }
 0x76f   :  { %12409 = dma.vmem_to_hbm [thread:$0]  %s12404_s14, 1792, %s16150_s6, [#allocation4], %s13385_s23, %s13385_s23, %s13386_s26  }
 0x770   :  { %13365 = dma.done.wait [#allocation4], 1792  }
 0x771   :  { %13366 = vsyncadd [#allocation4], 4294965504 }
 0x772   :  { %12413 = vsyncpa [#allocation4], 1 }

</bundles_post_ra>
